<compile_context>
chip_gen: v7x
topology: tpu7x:2x2x1
jax: 0.10.0
libtpu: 0.0.40
codegen_flags: <defaults>
</compile_context>

<pallas_src>
import functools

import jax
import jax.numpy as jnp
from jax.experimental import pallas as pl
from jax.experimental.pallas import tpu as pltpu

LEAKY_SLOPE = 0.01   # PyTorch nn.LeakyReLU default negative_slope
BN_EPS = 1e-5        # PyTorch nn.BatchNorm2d default eps
MAX_TILE = 8192      # flat-spatial (lane) tile size cap; sweep candidate


def _round_up(x, m):
    return ((x + m - 1) // m) * m


def _pad_axis(a, axis, size):
    pad = [(0, 0)] * a.ndim
    pad[axis] = (0, size - a.shape[axis])
    return jnp.pad(a, pad)


# --------------------------------------------------------------------------
# Fused conv kernel: tap-accumulated transposed matmuls + f32 epilogue
# --------------------------------------------------------------------------
def _conv_kernel(*refs, parts, taps, tm, win, act, apply_pre, apply_post):
    """One grid step = (batch n, flat-spatial tile m)."""
    x_hbm = refs[:parts]                                 # HBM (ANY) inputs
    w_refs = refs[parts:2 * parts]                       # (T, Cout, Cin_p) bf16
    prm_ref = refs[2 * parts]                            # (Cout, 4) f32
    out_ref = refs[2 * parts + 1]                        # (1, Cout, tm)
    bufs = refs[2 * parts + 2:3 * parts + 2]             # (2, Cin_p, win) VMEM
    sem = refs[3 * parts + 2]                            # DMA sems (parts, 2)

    n = pl.program_id(0)
    m = pl.program_id(1)
    slot = m & 1

    def dma(tile_idx, slot_idx, p):
        start = pl.multiple_of(tile_idx * tm, 128)
        return pltpu.make_async_copy(
            x_hbm[p].at[n, :, pl.ds(start, win)],
            bufs[p].at[slot_idx],
            sem.at[p, slot_idx])

    # First tile of each image: fetch its own window (nothing prefetched it).
    @pl.when(m == 0)
    def _():
        for p in range(parts):
            dma(m, slot, p).start()

    # Prefetch next tile's window into the other slot while we compute.
    @pl.when(m + 1 < pl.num_programs(1))
    def _():
        for p in range(parts):
            dma(m + 1, 1 - slot, p).start()

    for p in range(parts):
        dma(m, slot, p).wait()

    cout = out_ref.shape[1]
    acc = jnp.zeros((cout, tm), jnp.float32)
    for p in range(parts):
        xwin = bufs[p].at[slot]                          # ref view (Cin_p, win)
        for t, off in enumerate(taps):                   # static python loop
            xs = xwin[:, off:off + tm]                   # (Cin_p, tm) bf16
            acc = acc + jnp.dot(w_refs[p][t], xs,
                                preferred_element_type=jnp.float32)

    prm = prm_ref[...]                                   # (Cout, 4) f32
    if apply_pre:                                        # folded BN before act
        y = acc * prm[:, 0:1] + prm[:, 1:2]
    else:                                                # bias only
        y = acc + prm[:, 1:2]
    if act == "leaky":
        y = jnp.where(y > 0, y, LEAKY_SLOPE * y)
    elif act == "relu":
        y = jnp.maximum(y, 0.0)
    elif act == "sigmoid":
        # exp on the EUP + approximate reciprocal, clipped for overflow safety.
        y = pl.reciprocal(1.0 + jnp.exp(-jnp.clip(y, -30.0, 30.0)), approx=True)
    if apply_post:                                       # BN applied after act
        y = y * prm[:, 2:3] + prm[:, 3:4]
    out_ref[0] = y.astype(out_ref.dtype)


def conv2d_fused(xs, w, b, *, dilation=1, act="none", bn=None, bn_first=False,
                 out_dtype=jnp.bfloat16):
    """Stride-1 'same' Conv2d over implicitly channel-concatenated NCHW inputs
    with bias + folded inference BatchNorm + activation fused in.

    xs : list of (N, Cin_p, H, W) (channels implicitly concatenated)
    w  : (Cout, sum(Cin_p), KH, KW)   b : (Cout,)
    bn : optional (scale, shift);  bn_first=True -> conv->BN->act,
         False -> conv->act[->BN].
    Returns (N, Cout, H, W).
    """
    N, _, H, W = xs[0].shape
    Cout, cin_total, KH, KW = w.shape
    d = dilation
    ph, pw = d * (KH // 2), d * (KW // 2)
    Hp, Wp = H + 2 * ph, W + 2 * pw
    l_valid = H * Wp                                 # flat rows we keep
    halo = (KH - 1) * d * Wp + (KW - 1) * d          # largest tap offset
    halo_pad = _round_up(halo, 128)                  # aligned DMA window tail
    taps = tuple(kh * d * Wp + kw * d for kh in range(KH) for kw in range(KW))

    # Tile the flat spatial axis (lane-dense, multiple of 128); sized so the
    # f32 accumulator + double-buffered DMA windows stay small even under
    # v7x's 64 MiB VMEM.
    tm = min(MAX_TILE, _round_up(l_valid, 128))
    n_tiles = pl.cdiv(l_valid, tm)
    l_out = n_tiles * tm
    win = tm + halo_pad
    l_in = l_out + halo_pad

    # Pad channel counts to multiples of 8 for friendly layouts.
    cout_p = _round_up(Cout, 8)
    w_p = _pad_axis(w, 0, cout_p)
    b_p = jnp.pad(b.astype(jnp.float32), (0, cout_p - Cout))

    flats, wts, cins = [], [], []
    c0 = 0
    for x in xs:
        cin = x.shape[1]
        cin_p = _round_up(cin, 8)
        xq = _pad_axis(x.astype(jnp.bfloat16), 1, cin_p)
        xp = jnp.pad(xq, ((0, 0), (0, 0), (ph, ph), (pw, pw)))
        xf = xp.reshape(N, cin_p, Hp * Wp)
        xf = jnp.pad(xf, ((0, 0), (0, 0), (0, l_in - Hp * Wp)))
        flats.append(xf)
        wq = _pad_axis(w_p[:, c0:c0 + cin], 1, cin_p)        # (cout_p, cin_p, KH, KW)
        wt = jnp.transpose(wq, (2, 3, 0, 1)).reshape(KH * KW, cout_p, cin_p)
        wts.append(wt.astype(jnp.bfloat16))
        cins.append(cin_p)
        c0 += cin

    # Epilogue params: y = post(act(y*pre_s + pre_b)); bias folded into BN
    # shift when BN immediately follows the conv.
    ones = jnp.ones((cout_p,), jnp.float32)
    zeros = jnp.zeros((cout_p,), jnp.float32)
    if bn is not None:
        s = jnp.pad(bn[0].astype(jnp.float32), (0, cout_p - Cout),
                    constant_values=1.0)
        t = jnp.pad(bn[1].astype(jnp.float32), (0, cout_p - Cout))
    else:
        s, t = ones, zeros
    if bn is not None and bn_first:
        pre_s, pre_b = s, b_p * s + t
        post_s, post_b = ones, zeros
        apply_pre, apply_post = True, False
    else:
        pre_s, pre_b = ones, b_p
        post_s, post_b = s, t
        apply_pre, apply_post = False, bn is not None
    prm = jnp.stack([pre_s, pre_b, post_s, post_b], axis=1)   # (cout_p, 4) f32

    parts = len(xs)
    kernel = functools.partial(_conv_kernel, parts=parts, taps=taps, tm=tm,
                               win=win, act=act, apply_pre=apply_pre,
                               apply_post=apply_post)

    in_specs = ([pl.BlockSpec(memory_space=pl.ANY)] * parts
                + [pl.BlockSpec(wt.shape, lambda n_, m_: (0, 0, 0))
                   for wt in wts]
                + [pl.BlockSpec((cout_p, 4), lambda n_, m_: (0, 0))])
    out_specs = pl.BlockSpec((1, cout_p, tm), lambda n_, m_: (n_, 0, m_))
    scratch = ([pltpu.VMEM((2, cin, win), jnp.bfloat16) for cin in cins]
               + [pltpu.SemaphoreType.DMA((parts, 2))])

    out_isz = jnp.dtype(out_dtype).itemsize
    w_bytes = sum(int(wt.size) * 2 for wt in wts)
    cost = pl.CostEstimate(
        flops=int(2 * N * l_out * len(taps) * cin_total * Cout),
        transcendentals=int(N * l_out * Cout if act == "sigmoid" else 0),
        bytes_accessed=int(sum(N * n_tiles * win * c * 2 for c in cins)
                           + N * l_out * cout_p * out_isz + w_bytes))

    vmem_est = (2 * sum(c * win * 2 for c in cins)     # double-buffered windows
                + 2 * cout_p * tm * out_isz            # pipelined output blocks
                + cout_p * tm * 4                      # f32 accumulator
                + 2 * w_bytes + cout_p * 16 + 65536)
    vmem_limit = int(min(48 * 1024 * 1024, 16 * 1024 * 1024 + 2 * vmem_est))

    out = pl.pallas_call(
        kernel,
        out_shape=jax.ShapeDtypeStruct((N, cout_p, l_out), out_dtype),
        grid=(N, n_tiles),
        in_specs=in_specs,
        out_specs=out_specs,
        scratch_shapes=scratch,
        compiler_params=pltpu.CompilerParams(
            # Tile axis must run sequentially for the double-buffer slot
            # bookkeeping; batch axis still megacore-parallel on v7x.
            dimension_semantics=("parallel", "arbitrary"),
            vmem_limit_bytes=vmem_limit),
        cost_estimate=cost,
    )(*flats, *wts, prm)

    # Strip channel padding, tile padding and the W "same"-padding columns.
    out = out[:, :Cout, :l_valid].reshape(N, Cout, H, Wp)[:, :, :, :W]
    return out


# --------------------------------------------------------------------------
# Deterministic parameter construction
# --------------------------------------------------------------------------
def init_conv(key, cout, cin, k):
    k1, k2 = jax.random.split(key)
    fan_in = cin * k * k
    w = jax.random.normal(k1, (cout, cin, k, k), jnp.float32) / jnp.sqrt(fan_in)
    b = 0.01 * jax.random.normal(k2, (cout,), jnp.float32)
    return w, b


def init_bn(key, c):
    # Inference-mode BatchNorm folded to per-channel (scale, shift).
    k1, k2, k3, k4 = jax.random.split(key, 4)
    gamma = 1.0 + 0.1 * jax.random.normal(k1, (c,), jnp.float32)
    beta = 0.1 * jax.random.normal(k2, (c,), jnp.float32)
    mean = 0.1 * jax.random.normal(k3, (c,), jnp.float32)
    var = 1.0 + 0.1 * jnp.abs(jax.random.normal(k4, (c,), jnp.float32))
    scale = gamma / jnp.sqrt(var + BN_EPS)
    shift = beta - mean * scale
    return scale, shift


def init_res_context_block(key, cin, cout):
    k1, k2, k3, k4, k5 = jax.random.split(key, 5)
    return {
        "conv1": init_conv(k1, cout, cin, 1),
        "conv2": init_conv(k2, cout, cout, 3),
        "bn1": init_bn(k3, cout),
        "conv3": init_conv(k4, cout, cout, 3),
        "bn2": init_bn(k5, cout),
    }


def res_context_block(p, x):
    # SalsaNext ResContextBlock: conv1(1x1)+LeakyReLU shortcut;
    # conv2(3x3)+LeakyReLU+BN; conv3(3x3, dil=2)+LeakyReLU+BN; residual add.
    shortcut = conv2d_fused([x], *p["conv1"], act="leaky")
    res = conv2d_fused([shortcut], *p["conv2"], act="leaky", bn=p["bn1"])
    res = conv2d_fused([res], *p["conv3"], dilation=2, act="leaky", bn=p["bn2"])
    return shortcut + res                    # elementwise add left to XLA


def init_fam(key, range_channel, range_context_channel, multi_scale_channel,
             meta_channel, final_channel, n_classes):
    ks = jax.random.split(key, 16)
    msc, rcc, fc, mc = (multi_scale_channel, range_context_channel,
                        final_channel, meta_channel)
    return {
        "range_enc1": init_res_context_block(ks[0], range_channel, rcc),
        "range_enc2": init_res_context_block(ks[1], rcc, rcc),
        "range_enc3": init_res_context_block(ks[2], rcc, rcc),
        "rg_conv1": init_conv(ks[3], msc, msc + rcc, 3),
        "rg_bn1": init_bn(ks[4], msc),
        "rg_conv2": init_conv(ks[5], msc, msc, 3),
        "rg_bn2": init_bn(ks[6], msc),
        "rg_conv3": init_conv(ks[7], msc, msc, 3),
        "rg_act3": init_bn(ks[8], msc),          # nn.BatchNorm2d named rg_act3
        "rc_conv1": init_conv(ks[9], fc, msc + mc, 3),
        "rc_bn1": init_bn(ks[10], fc),
        "rc_conv2": init_conv(ks[11], fc, fc, 3),
        "rc_bn2": init_bn(ks[12], fc),
        "rc_conv3": init_conv(ks[13], fc, 2 * fc, 1),
        "rc_bn3": init_bn(ks[14], fc),
        "range_logits": init_conv(ks[15], n_classes, fc, 1),
    }


def feature_aggregation_forward(p, range_img, multi_scale_feature, meta_feature):
    # All tensors are NCHW, matching the PyTorch module.
    rc = res_context_block(p["range_enc1"], range_img)
    rc = res_context_block(p["range_enc2"], rc)
    rc = res_context_block(p["range_enc3"], rc)

    # torch.cat((msf, range_context), 1) fused into rg_conv1 (split-K).
    fuse1 = conv2d_fused([multi_scale_feature, rc], *p["rg_conv1"],
                         act="leaky", bn=p["rg_bn1"], bn_first=False)
    # rg_conv2 -> BN(rg_bn2) -> ReLU(rg_act2)
    attn = conv2d_fused([fuse1], *p["rg_conv2"],
                        act="relu", bn=p["rg_bn2"], bn_first=True)
    # rg_conv3 -> Sigmoid(rg_bn3) -> BN(rg_act3)   (names swapped in the module)
    attn = conv2d_fused([attn], *p["rg_conv3"],
                        act="sigmoid", bn=p["rg_act3"], bn_first=False)
    # Elementwise combine left to XLA fusion (skinny Pallas FMA dropped).
    range_guided = (fuse1.astype(jnp.float32) * attn.astype(jnp.float32)
                    + multi_scale_feature)

    # torch.cat((range_guided, meta), 1) fused into rc_conv1 (split-K).
    fuse2 = conv2d_fused([range_guided, meta_feature], *p["rc_conv1"],
                         act="leaky", bn=p["rc_bn1"], bn_first=True)
    fuse3 = conv2d_fused([fuse2], *p["rc_conv2"], dilation=2,
                         act="leaky", bn=p["rc_bn2"], bn_first=True)
    # torch.cat((fuse2, fuse3), 1) fused into the 1x1 rc_conv3 (split-K).
    final = conv2d_fused([fuse2, fuse3], *p["rc_conv3"],
                         act="leaky", bn=p["rc_bn3"], bn_first=True)
    logits = conv2d_fused([final], *p["range_logits"], act="none",
                          out_dtype=jnp.float32)
    return logits        # (N, n_classes, H, W)


if __name__ == "__main__":
    key = jax.random.PRNGKey(0)
    k_params, k_r, k_m, k_meta = jax.random.split(key, 4)

    # Small synthetic shapes consistent with the module's channel arithmetic.
    N, H, W = 2, 16, 16
    range_ch, range_ctx_ch, msc_ch = 5, 8, 8
    meta_ch, final_ch, n_classes = 4, 8, 4

    params = init_fam(k_params, range_ch, range_ctx_ch, msc_ch,
                      meta_ch, final_ch, n_classes)

    range_img = jax.random.normal(k_r, (N, range_ch, H, W), jnp.float32)
    multi_scale = jax.random.normal(k_m, (N, msc_ch, H, W), jnp.float32)
    meta = jax.random.normal(k_meta, (N, meta_ch, H, W), jnp.float32)

    fwd = jax.jit(feature_aggregation_forward)
    logits = fwd(params, range_img, multi_scale, meta)
    jax.block_until_ready(logits)

    assert logits.shape == (N, n_classes, H, W), logits.shape
    assert bool(jnp.all(jnp.isfinite(logits)))
    print("KERNEL_OK")
</pallas_src>

<mosaic_0001>
module attributes {stable_mosaic.version = 11 : i64} {
  func.func @_conv_kernel(%arg0: i32, %arg1: i32, %arg2: memref<2x8x256xbf16, #tpu.memory_space<any>>, %arg3: memref<1x8x8xbf16, #tpu.memory_space<vmem>>, %arg4: memref<8x4xf32, #tpu.memory_space<vmem>>, %arg5: memref<1x8x256xbf16, #tpu.memory_space<vmem>>, %arg6: memref<2x8x256xbf16, #tpu.memory_space<vmem>>, %arg7: memref<1x2x!tpu.dma_semaphore, #tpu.memory_space<semaphore_mem>>) attributes {dimension_semantics = [#tpu.dimension_semantics<parallel>, #tpu.dimension_semantics<arbitrary>], iteration_bounds = array<i64: 2, 1>, scalar_prefetch = 0 : i64, scratch_operands = 2 : i64, tpu.core_type = #tpu.core_type<tc>, window_params = [{}, {pipeline_mode = #tpu.pipeline_mode<synchronous>, transform_indices = @transform_1, window_bounds = array<i64: 1, 8, 8>}, {pipeline_mode = #tpu.pipeline_mode<synchronous>, transform_indices = @transform_2, window_bounds = array<i64: 8, 4>}, {transform_indices = @transform_3, window_bounds = array<i64: 1, 8, 256>}]} {
    %c1_i32 = arith.constant 1 : i32
    %0 = arith.andi %arg1, %c1_i32 : i32
    %c0_i32 = arith.constant 0 : i32
    %1 = arith.cmpi eq, %arg1, %c0_i32 : i32
    %2 = arith.extui %1 : i1 to i32
    %c0_i32_0 = arith.constant 0 : i32
    %3 = arith.cmpi ne, %2, %c0_i32_0 : i32
    scf.if %3 {
      %c256_i32_22 = arith.constant 256 : i32
      %37 = arith.muli %arg1, %c256_i32_22 : i32
      %38 = tpu.assume_multiple %37, 128 : i32
      %c0_i32_23 = arith.constant 0 : i32
      %c0_i32_24 = arith.constant 0 : i32
      %39 = tpu.memref_slice %arg2[%arg0, %c0_i32_24, %38] : memref<2x8x256xbf16, #tpu.memory_space<any>> -> memref<1x8x256xbf16, #tpu.memory_space<any>>
      %40 = tpu.memref_squeeze %39 : memref<1x8x256xbf16, #tpu.memory_space<any>> -> memref<8x256xbf16, #tpu.memory_space<any>>
      %c0_i32_25 = arith.constant 0 : i32
      %c0_i32_26 = arith.constant 0 : i32
      %41 = tpu.memref_slice %arg6[%0, %c0_i32_25, %c0_i32_26] : memref<2x8x256xbf16, #tpu.memory_space<vmem>> -> memref<1x8x256xbf16, #tpu.memory_space<vmem>>
      %42 = tpu.memref_squeeze %41 : memref<1x8x256xbf16, #tpu.memory_space<vmem>> -> memref<8x256xbf16, #tpu.memory_space<vmem>>
      %43 = tpu.memref_slice %arg7[%c0_i32_23, %0] : memref<1x2x!tpu.dma_semaphore, #tpu.memory_space<semaphore_mem>> -> memref<1x1x!tpu.dma_semaphore, #tpu.memory_space<semaphore_mem>>
      %44 = tpu.memref_squeeze %43 : memref<1x1x!tpu.dma_semaphore, #tpu.memory_space<semaphore_mem>> -> memref<!tpu.dma_semaphore, #tpu.memory_space<semaphore_mem>>
      tpu.enqueue_dma source(%40 : memref<8x256xbf16, #tpu.memory_space<any>>) target(%42 : memref<8x256xbf16, #tpu.memory_space<vmem>>) target_semaphore(%44 : memref<!tpu.dma_semaphore, #tpu.memory_space<semaphore_mem>>)
    } else {
    }
    %c1_i32_1 = arith.constant 1 : i32
    %4 = arith.addi %arg1, %c1_i32_1 : i32
    %c1_i32_2 = arith.constant 1 : i32
    %5 = arith.cmpi slt, %4, %c1_i32_2 : i32
    %6 = arith.extui %5 : i1 to i32
    %c0_i32_3 = arith.constant 0 : i32
    %7 = arith.cmpi ne, %6, %c0_i32_3 : i32
    scf.if %7 {
      %c1_i32_22 = arith.constant 1 : i32
      %37 = arith.addi %arg1, %c1_i32_22 : i32
      %c1_i32_23 = arith.constant 1 : i32
      %38 = arith.subi %c1_i32_23, %0 : i32
      %c256_i32_24 = arith.constant 256 : i32
      %39 = arith.muli %37, %c256_i32_24 : i32
      %40 = tpu.assume_multiple %39, 128 : i32
      %c0_i32_25 = arith.constant 0 : i32
      %c0_i32_26 = arith.constant 0 : i32
      %41 = tpu.memref_slice %arg2[%arg0, %c0_i32_26, %40] : memref<2x8x256xbf16, #tpu.memory_space<any>> -> memref<1x8x256xbf16, #tpu.memory_space<any>>
      %42 = tpu.memref_squeeze %41 : memref<1x8x256xbf16, #tpu.memory_space<any>> -> memref<8x256xbf16, #tpu.memory_space<any>>
      %c0_i32_27 = arith.constant 0 : i32
      %c0_i32_28 = arith.constant 0 : i32
      %43 = tpu.memref_slice %arg6[%38, %c0_i32_27, %c0_i32_28] : memref<2x8x256xbf16, #tpu.memory_space<vmem>> -> memref<1x8x256xbf16, #tpu.memory_space<vmem>>
      %44 = tpu.memref_squeeze %43 : memref<1x8x256xbf16, #tpu.memory_space<vmem>> -> memref<8x256xbf16, #tpu.memory_space<vmem>>
      %45 = tpu.memref_slice %arg7[%c0_i32_25, %38] : memref<1x2x!tpu.dma_semaphore, #tpu.memory_space<semaphore_mem>> -> memref<1x1x!tpu.dma_semaphore, #tpu.memory_space<semaphore_mem>>
      %46 = tpu.memref_squeeze %45 : memref<1x1x!tpu.dma_semaphore, #tpu.memory_space<semaphore_mem>> -> memref<!tpu.dma_semaphore, #tpu.memory_space<semaphore_mem>>
      tpu.enqueue_dma source(%42 : memref<8x256xbf16, #tpu.memory_space<any>>) target(%44 : memref<8x256xbf16, #tpu.memory_space<vmem>>) target_semaphore(%46 : memref<!tpu.dma_semaphore, #tpu.memory_space<semaphore_mem>>)
    } else {
    }
    %c256_i32 = arith.constant 256 : i32
    %8 = arith.muli %arg1, %c256_i32 : i32
    %9 = tpu.assume_multiple %8, 128 : i32
    %c0_i32_4 = arith.constant 0 : i32
    %c0_i32_5 = arith.constant 0 : i32
    %10 = tpu.memref_slice %arg2[%arg0, %c0_i32_5, %9] : memref<2x8x256xbf16, #tpu.memory_space<any>> -> memref<1x8x256xbf16, #tpu.memory_space<any>>
    %11 = tpu.memref_squeeze %10 : memref<1x8x256xbf16, #tpu.memory_space<any>> -> memref<8x256xbf16, #tpu.memory_space<any>>
    %c0_i32_6 = arith.constant 0 : i32
    %c0_i32_7 = arith.constant 0 : i32
    %12 = tpu.memref_slice %arg6[%0, %c0_i32_6, %c0_i32_7] : memref<2x8x256xbf16, #tpu.memory_space<vmem>> -> memref<1x8x256xbf16, #tpu.memory_space<vmem>>
    %13 = tpu.memref_squeeze %12 : memref<1x8x256xbf16, #tpu.memory_space<vmem>> -> memref<8x256xbf16, #tpu.memory_space<vmem>>
    %14 = tpu.memref_slice %arg7[%c0_i32_4, %0] : memref<1x2x!tpu.dma_semaphore, #tpu.memory_space<semaphore_mem>> -> memref<1x1x!tpu.dma_semaphore, #tpu.memory_space<semaphore_mem>>
    %15 = tpu.memref_squeeze %14 : memref<1x1x!tpu.dma_semaphore, #tpu.memory_space<semaphore_mem>> -> memref<!tpu.dma_semaphore, #tpu.memory_space<semaphore_mem>>
    tpu.wait_dma2 semaphore(%15 : memref<!tpu.dma_semaphore, #tpu.memory_space<semaphore_mem>>) src(%11 : memref<8x256xbf16, #tpu.memory_space<any>>) dst(%13 : memref<8x256xbf16, #tpu.memory_space<vmem>>)
    %cst = arith.constant 0.000000e+00 : f32
    %16 = vector.broadcast %cst : f32 to vector<8x256xf32>
    %c0_i32_8 = arith.constant 0 : i32
    %c0_i32_9 = arith.constant 0 : i32
    %17 = tpu.memref_slice %arg6[%0, %c0_i32_8, %c0_i32_9] : memref<2x8x256xbf16, #tpu.memory_space<vmem>> -> memref<1x8x256xbf16, #tpu.memory_space<vmem>>
    %18 = tpu.memref_squeeze %17 : memref<1x8x256xbf16, #tpu.memory_space<vmem>> -> memref<8x256xbf16, #tpu.memory_space<vmem>>
    %c0 = arith.constant 0 : index
    %c0_10 = arith.constant 0 : index
    %19 = vector.load %18[%c0, %c0_10] : memref<8x256xbf16, #tpu.memory_space<vmem>>, vector<8x256xbf16>
    %c0_11 = arith.constant 0 : index
    %c0_12 = arith.constant 0 : index
    %c0_13 = arith.constant 0 : index
    %20 = vector.load %arg3[%c0_11, %c0_12, %c0_13] : memref<1x8x8xbf16, #tpu.memory_space<vmem>>, vector<1x8x8xbf16>
    %21 = vector.shape_cast %20 : vector<1x8x8xbf16> to vector<8x8xbf16>
    %cst_14 = arith.constant dense<0.000000e+00> : vector<8x256xf32>
    %22 = tpu.matmul %21, %19, %cst_14 {dimension_numbers = #tpu.dot_dimension_numbers<[1], [0], [0], [1], [0, 0, 1, 1], [], []>} : vector<8x8xbf16>, vector<8x256xbf16>, vector<8x256xf32> -> vector<8x256xf32>
    %23 = arith.addf %16, %22 : vector<8x256xf32>
    %c0_15 = arith.constant 0 : index
    %c0_16 = arith.constant 0 : index
    %24 = vector.load %arg4[%c0_15, %c0_16] : memref<8x4xf32, #tpu.memory_space<vmem>>, vector<8x4xf32>
    %25 = vector.extract_strided_slice %24 {offsets = [0, 1], sizes = [8, 1], strides = [1, 1]} : vector<8x4xf32> to vector<8x1xf32>
    %26 = vector.broadcast %25 : vector<8x1xf32> to vector<8x256xf32>
    %27 = arith.addf %23, %26 : vector<8x256xf32>
    %cst_17 = arith.constant 0.000000e+00 : f32
    %28 = vector.broadcast %cst_17 : f32 to vector<8x256xf32>
    %29 = arith.cmpf ogt, %27, %28 : vector<8x256xf32>
    %cst_18 = arith.constant 0.00999999977 : f32
    %30 = vector.broadcast %cst_18 : f32 to vector<8x256xf32>
    %31 = arith.mulf %30, %27 : vector<8x256xf32>
    %32 = arith.select %29, %27, %31 : vector<8x256xi1>, vector<8x256xf32>
    %33 = arith.truncf %32 : vector<8x256xf32> to vector<8x256xbf16>
    %c0_19 = arith.constant 0 : index
    %c0_20 = arith.constant 0 : index
    %c0_21 = arith.constant 0 : index
    %34 = vector.load %arg5[%c0_19, %c0_20, %c0_21] : memref<1x8x256xbf16, #tpu.memory_space<vmem>>, vector<1x8x256xbf16>
    %35 = vector.shape_cast %34 : vector<1x8x256xbf16> to vector<8x256xbf16>
    %36 = vector.shape_cast %33 : vector<8x256xbf16> to vector<1x8x256xbf16>
    tpu.vector_store %arg5[%c0_19, %c0_20, %c0_21], %36 {strides = array<i32>} : memref<1x8x256xbf16, #tpu.memory_space<vmem>>, vector<1x8x256xbf16>,
    return
  }
  func.func @transform_1(%arg0: i32, %arg1: i32) -> (i32, i32, i32) {
    %c0_i32 = arith.constant 0 : i32
    %c0_i32_0 = arith.constant 0 : i32
    %c0_i32_1 = arith.constant 0 : i32
    %c0_i32_2 = arith.constant 0 : i32
    return %c0_i32, %c0_i32_0, %c0_i32_1 : i32, i32, i32
  }
  func.func @transform_2(%arg0: i32, %arg1: i32) -> (i32, i32) {
    %c0_i32 = arith.constant 0 : i32
    %c0_i32_0 = arith.constant 0 : i32
    %c0_i32_1 = arith.constant 0 : i32
    return %c0_i32, %c0_i32_0 : i32, i32
  }
  func.func @transform_3(%arg0: i32, %arg1: i32) -> (i32, i32, i32) {
    %c0_i32 = arith.constant 0 : i32
    %c0_i32_0 = arith.constant 0 : i32
    return %arg0, %c0_i32, %arg1 : i32, i32, i32
  }
}

module attributes {stable_mosaic.version = 11 : i64} {
  func.func @_conv_kernel(%arg0: i32, %arg1: i32, %arg2: memref<2x8x512xbf16, #tpu.memory_space<any>>, %arg3: memref<9x8x8xbf16, #tpu.memory_space<vmem>>, %arg4: memref<8x4xf32, #tpu.memory_space<vmem>>, %arg5: memref<1x8x384xbf16, #tpu.memory_space<vmem>>, %arg6: memref<2x8x512xbf16, #tpu.memory_space<vmem>>, %arg7: memref<1x2x!tpu.dma_semaphore, #tpu.memory_space<semaphore_mem>>) attributes {dimension_semantics = [#tpu.dimension_semantics<parallel>, #tpu.dimension_semantics<arbitrary>], iteration_bounds = array<i64: 2, 1>, scalar_prefetch = 0 : i64, scratch_operands = 2 : i64, tpu.core_type = #tpu.core_type<tc>, window_params = [{}, {pipeline_mode = #tpu.pipeline_mode<synchronous>, transform_indices = @transform_1, window_bounds = array<i64: 9, 8, 8>}, {pipeline_mode = #tpu.pipeline_mode<synchronous>, transform_indices = @transform_2, window_bounds = array<i64: 8, 4>}, {transform_indices = @transform_3, window_bounds = array<i64: 1, 8, 384>}]} {
    %c1_i32 = arith.constant 1 : i32
    %0 = arith.andi %arg1, %c1_i32 : i32
    %c0_i32 = arith.constant 0 : i32
    %1 = arith.cmpi eq, %arg1, %c0_i32 : i32
    %2 = arith.extui %1 : i1 to i32
    %c0_i32_0 = arith.constant 0 : i32
    %3 = arith.cmpi ne, %2, %c0_i32_0 : i32
    scf.if %3 {
      %c384_i32_72 = arith.constant 384 : i32
      %99 = arith.muli %arg1, %c384_i32_72 : i32
      %100 = tpu.assume_multiple %99, 128 : i32
      %c0_i32_73 = arith.constant 0 : i32
      %c0_i32_74 = arith.constant 0 : i32
      %101 = tpu.memref_slice %arg2[%arg0, %c0_i32_74, %100] : memref<2x8x512xbf16, #tpu.memory_space<any>> -> memref<1x8x512xbf16, #tpu.memory_space<any>>
      %102 = tpu.memref_squeeze %101 : memref<1x8x512xbf16, #tpu.memory_space<any>> -> memref<8x512xbf16, #tpu.memory_space<any>>
      %c0_i32_75 = arith.constant 0 : i32
      %c0_i32_76 = arith.constant 0 : i32
      %103 = tpu.memref_slice %arg6[%0, %c0_i32_75, %c0_i32_76] : memref<2x8x512xbf16, #tpu.memory_space<vmem>> -> memref<1x8x512xbf16, #tpu.memory_space<vmem>>
      %104 = tpu.memref_squeeze %103 : memref<1x8x512xbf16, #tpu.memory_space<vmem>> -> memref<8x512xbf16, #tpu.memory_space<vmem>>
      %105 = tpu.memref_slice %arg7[%c0_i32_73, %0] : memref<1x2x!tpu.dma_semaphore, #tpu.memory_space<semaphore_mem>> -> memref<1x1x!tpu.dma_semaphore, #tpu.memory_space<semaphore_mem>>
      %106 = tpu.memref_squeeze %105 : memref<1x1x!tpu.dma_semaphore, #tpu.memory_space<semaphore_mem>> -> memref<!tpu.dma_semaphore, #tpu.memory_space<semaphore_mem>>
      tpu.enqueue_dma source(%102 : memref<8x512xbf16, #tpu.memory_space<any>>) target(%104 : memref<8x512xbf16, #tpu.memory_space<vmem>>) target_semaphore(%106 : memref<!tpu.dma_semaphore, #tpu.memory_space<semaphore_mem>>)
    } else {
    }
    %c1_i32_1 = arith.constant 1 : i32
    %4 = arith.addi %arg1, %c1_i32_1 : i32
    %c1_i32_2 = arith.constant 1 : i32
    %5 = arith.cmpi slt, %4, %c1_i32_2 : i32
    %6 = arith.extui %5 : i1 to i32
    %c0_i32_3 = arith.constant 0 : i32
    %7 = arith.cmpi ne, %6, %c0_i32_3 : i32
    scf.if %7 {
      %c1_i32_72 = arith.constant 1 : i32
      %99 = arith.addi %arg1, %c1_i32_72 : i32
      %c1_i32_73 = arith.constant 1 : i32
      %100 = arith.subi %c1_i32_73, %0 : i32
      %c384_i32_74 = arith.constant 384 : i32
      %101 = arith.muli %99, %c384_i32_74 : i32
      %102 = tpu.assume_multiple %101, 128 : i32
      %c0_i32_75 = arith.constant 0 : i32
      %c0_i32_76 = arith.constant 0 : i32
      %103 = tpu.memref_slice %arg2[%arg0, %c0_i32_76, %102] : memref<2x8x512xbf16, #tpu.memory_space<any>> -> memref<1x8x512xbf16, #tpu.memory_space<any>>
      %104 = tpu.memref_squeeze %103 : memref<1x8x512xbf16, #tpu.memory_space<any>> -> memref<8x512xbf16, #tpu.memory_space<any>>
      %c0_i32_77 = arith.constant 0 : i32
      %c0_i32_78 = arith.constant 0 : i32
      %105 = tpu.memref_slice %arg6[%100, %c0_i32_77, %c0_i32_78] : memref<2x8x512xbf16, #tpu.memory_space<vmem>> -> memref<1x8x512xbf16, #tpu.memory_space<vmem>>
      %106 = tpu.memref_squeeze %105 : memref<1x8x512xbf16, #tpu.memory_space<vmem>> -> memref<8x512xbf16, #tpu.memory_space<vmem>>
      %107 = tpu.memref_slice %arg7[%c0_i32_75, %100] : memref<1x2x!tpu.dma_semaphore, #tpu.memory_space<semaphore_mem>> -> memref<1x1x!tpu.dma_semaphore, #tpu.memory_space<semaphore_mem>>
      %108 = tpu.memref_squeeze %107 : memref<1x1x!tpu.dma_semaphore, #tpu.memory_space<semaphore_mem>> -> memref<!tpu.dma_semaphore, #tpu.memory_space<semaphore_mem>>
      tpu.enqueue_dma source(%104 : memref<8x512xbf16, #tpu.memory_space<any>>) target(%106 : memref<8x512xbf16, #tpu.memory_space<vmem>>) target_semaphore(%108 : memref<!tpu.dma_semaphore, #tpu.memory_space<semaphore_mem>>)
    } else {
    }
    %c384_i32 = arith.constant 384 : i32
    %8 = arith.muli %arg1, %c384_i32 : i32
    %9 = tpu.assume_multiple %8, 128 : i32
    %c0_i32_4 = arith.constant 0 : i32
    %c0_i32_5 = arith.constant 0 : i32
    %10 = tpu.memref_slice %arg2[%arg0, %c0_i32_5, %9] : memref<2x8x512xbf16, #tpu.memory_space<any>> -> memref<1x8x512xbf16, #tpu.memory_space<any>>
    %11 = tpu.memref_squeeze %10 : memref<1x8x512xbf16, #tpu.memory_space<any>> -> memref<8x512xbf16, #tpu.memory_space<any>>
    %c0_i32_6 = arith.constant 0 : i32
    %c0_i32_7 = arith.constant 0 : i32
    %12 = tpu.memref_slice %arg6[%0, %c0_i32_6, %c0_i32_7] : memref<2x8x512xbf16, #tpu.memory_space<vmem>> -> memref<1x8x512xbf16, #tpu.memory_space<vmem>>
    %13 = tpu.memref_squeeze %12 : memref<1x8x512xbf16, #tpu.memory_space<vmem>> -> memref<8x512xbf16, #tpu.memory_space<vmem>>
    %14 = tpu.memref_slice %arg7[%c0_i32_4, %0] : memref<1x2x!tpu.dma_semaphore, #tpu.memory_space<semaphore_mem>> -> memref<1x1x!tpu.dma_semaphore, #tpu.memory_space<semaphore_mem>>
    %15 = tpu.memref_squeeze %14 : memref<1x1x!tpu.dma_semaphore, #tpu.memory_space<semaphore_mem>> -> memref<!tpu.dma_semaphore, #tpu.memory_space<semaphore_mem>>
    tpu.wait_dma2 semaphore(%15 : memref<!tpu.dma_semaphore, #tpu.memory_space<semaphore_mem>>) src(%11 : memref<8x512xbf16, #tpu.memory_space<any>>) dst(%13 : memref<8x512xbf16, #tpu.memory_space<vmem>>)
    %cst = arith.constant 0.000000e+00 : f32
    %16 = vector.broadcast %cst : f32 to vector<8x384xf32>
    %c0_i32_8 = arith.constant 0 : i32
    %c0_i32_9 = arith.constant 0 : i32
    %17 = tpu.memref_slice %arg6[%0, %c0_i32_8, %c0_i32_9] : memref<2x8x512xbf16, #tpu.memory_space<vmem>> -> memref<1x8x512xbf16, #tpu.memory_space<vmem>>
    %18 = tpu.memref_squeeze %17 : memref<1x8x512xbf16, #tpu.memory_space<vmem>> -> memref<8x512xbf16, #tpu.memory_space<vmem>>
    %c0 = arith.constant 0 : index
    %c0_10 = arith.constant 0 : index
    %19 = vector.load %18[%c0, %c0_10] : memref<8x512xbf16, #tpu.memory_space<vmem>>, vector<8x384xbf16>
    %c0_11 = arith.constant 0 : index
    %c0_12 = arith.constant 0 : index
    %c0_13 = arith.constant 0 : index
    %20 = vector.load %arg3[%c0_11, %c0_12, %c0_13] : memref<9x8x8xbf16, #tpu.memory_space<vmem>>, vector<1x8x8xbf16>
    %21 = vector.shape_cast %20 : vector<1x8x8xbf16> to vector<8x8xbf16>
    %cst_14 = arith.constant dense<0.000000e+00> : vector<8x384xf32>
    %22 = tpu.matmul %21, %19, %cst_14 {dimension_numbers = #tpu.dot_dimension_numbers<[1], [0], [0], [1], [0, 0, 1, 1], [], []>} : vector<8x8xbf16>, vector<8x384xbf16>, vector<8x384xf32> -> vector<8x384xf32>
    %23 = arith.addf %16, %22 : vector<8x384xf32>
    %c0_i32_15 = arith.constant 0 : i32
    %c0_i32_16 = arith.constant 0 : i32
    %24 = tpu.memref_slice %arg6[%0, %c0_i32_15, %c0_i32_16] : memref<2x8x512xbf16, #tpu.memory_space<vmem>> -> memref<1x8x512xbf16, #tpu.memory_space<vmem>>
    %25 = tpu.memref_squeeze %24 : memref<1x8x512xbf16, #tpu.memory_space<vmem>> -> memref<8x512xbf16, #tpu.memory_space<vmem>>
    %c0_17 = arith.constant 0 : index
    %c1 = arith.constant 1 : index
    %26 = vector.load %25[%c0_17, %c1] : memref<8x512xbf16, #tpu.memory_space<vmem>>, vector<8x384xbf16>
    %c1_18 = arith.constant 1 : index
    %c0_19 = arith.constant 0 : index
    %c0_20 = arith.constant 0 : index
    %27 = vector.load %arg3[%c1_18, %c0_19, %c0_20] : memref<9x8x8xbf16, #tpu.memory_space<vmem>>, vector<1x8x8xbf16>
    %28 = vector.shape_cast %27 : vector<1x8x8xbf16> to vector<8x8xbf16>
    %cst_21 = arith.constant dense<0.000000e+00> : vector<8x384xf32>
    %29 = tpu.matmul %28, %26, %cst_21 {dimension_numbers = #tpu.dot_dimension_numbers<[1], [0], [0], [1], [0, 0, 1, 1], [], []>} : vector<8x8xbf16>, vector<8x384xbf16>, vector<8x384xf32> -> vector<8x384xf32>
    %30 = arith.addf %23, %29 : vector<8x384xf32>
    %c0_i32_22 = arith.constant 0 : i32
    %c0_i32_23 = arith.constant 0 : i32
    %31 = tpu.memref_slice %arg6[%0, %c0_i32_22, %c0_i32_23] : memref<2x8x512xbf16, #tpu.memory_space<vmem>> -> memref<1x8x512xbf16, #tpu.memory_space<vmem>>
    %32 = tpu.memref_squeeze %31 : memref<1x8x512xbf16, #tpu.memory_space<vmem>> -> memref<8x512xbf16, #tpu.memory_space<vmem>>
    %c0_24 = arith.constant 0 : index
    %c2 = arith.constant 2 : index
    %33 = vector.load %32[%c0_24, %c2] : memref<8x512xbf16, #tpu.memory_space<vmem>>, vector<8x384xbf16>
    %c2_25 = arith.constant 2 : index
    %c0_26 = arith.constant 0 : index
    %c0_27 = arith.constant 0 : index
    %34 = vector.load %arg3[%c2_25, %c0_26, %c0_27] : memref<9x8x8xbf16, #tpu.memory_space<vmem>>, vector<1x8x8xbf16>
    %35 = vector.shape_cast %34 : vector<1x8x8xbf16> to vector<8x8xbf16>
    %cst_28 = arith.constant dense<0.000000e+00> : vector<8x384xf32>
    %36 = tpu.matmul %35, %33, %cst_28 {dimension_numbers = #tpu.dot_dimension_numbers<[1], [0], [0], [1], [0, 0, 1, 1], [], []>} : vector<8x8xbf16>, vector<8x384xbf16>, vector<8x384xf32> -> vector<8x384xf32>
    %37 = arith.addf %30, %36 : vector<8x384xf32>
    %c0_i32_29 = arith.constant 0 : i32
    %c0_i32_30 = arith.constant 0 : i32
    %38 = tpu.memref_slice %arg6[%0, %c0_i32_29, %c0_i32_30] : memref<2x8x512xbf16, #tpu.memory_space<vmem>> -> memref<1x8x512xbf16, #tpu.memory_space<vmem>>
    %39 = tpu.memref_squeeze %38 : memref<1x8x512xbf16, #tpu.memory_space<vmem>> -> memref<8x512xbf16, #tpu.memory_space<vmem>>
    %c0_31 = arith.constant 0 : index
    %c18 = arith.constant 18 : index
    %40 = vector.load %39[%c0_31, %c18] : memref<8x512xbf16, #tpu.memory_space<vmem>>, vector<8x384xbf16>
    %c3 = arith.constant 3 : index
    %c0_32 = arith.constant 0 : index
    %c0_33 = arith.constant 0 : index
    %41 = vector.load %arg3[%c3, %c0_32, %c0_33] : memref<9x8x8xbf16, #tpu.memory_space<vmem>>, vector<1x8x8xbf16>
    %42 = vector.shape_cast %41 : vector<1x8x8xbf16> to vector<8x8xbf16>
    %cst_34 = arith.constant dense<0.000000e+00> : vector<8x384xf32>
    %43 = tpu.matmul %42, %40, %cst_34 {dimension_numbers = #tpu.dot_dimension_numbers<[1], [0], [0], [1], [0, 0, 1, 1], [], []>} : vector<8x8xbf16>, vector<8x384xbf16>, vector<8x384xf32> -> vector<8x384xf32>
    %44 = arith.addf %37, %43 : vector<8x384xf32>
    %c0_i32_35 = arith.constant 0 : i32
    %c0_i32_36 = arith.constant 0 : i32
    %45 = tpu.memref_slice %arg6[%0, %c0_i32_35, %c0_i32_36] : memref<2x8x512xbf16, #tpu.memory_space<vmem>> -> memref<1x8x512xbf16, #tpu.memory_space<vmem>>
    %46 = tpu.memref_squeeze %45 : memref<1x8x512xbf16, #tpu.memory_space<vmem>> -> memref<8x512xbf16, #tpu.memory_space<vmem>>
    %c0_37 = arith.constant 0 : index
    %c19 = arith.constant 19 : index
    %47 = vector.load %46[%c0_37, %c19] : memref<8x512xbf16, #tpu.memory_space<vmem>>, vector<8x384xbf16>
    %c4 = arith.constant 4 : index
    %c0_38 = arith.constant 0 : index
    %c0_39 = arith.constant 0 : index
    %48 = vector.load %arg3[%c4, %c0_38, %c0_39] : memref<9x8x8xbf16, #tpu.memory_space<vmem>>, vector<1x8x8xbf16>
    %49 = vector.shape_cast %48 : vector<1x8x8xbf16> to vector<8x8xbf16>
    %cst_40 = arith.constant dense<0.000000e+00> : vector<8x384xf32>
    %50 = tpu.matmul %49, %47, %cst_40 {dimension_numbers = #tpu.dot_dimension_numbers<[1], [0], [0], [1], [0, 0, 1, 1], [], []>} : vector<8x8xbf16>, vector<8x384xbf16>, vector<8x384xf32> -> vector<8x384xf32>
    %51 = arith.addf %44, %50 : vector<8x384xf32>
    %c0_i32_41 = arith.constant 0 : i32
    %c0_i32_42 = arith.constant 0 : i32
    %52 = tpu.memref_slice %arg6[%0, %c0_i32_41, %c0_i32_42] : memref<2x8x512xbf16, #tpu.memory_space<vmem>> -> memref<1x8x512xbf16, #tpu.memory_space<vmem>>
    %53 = tpu.memref_squeeze %52 : memref<1x8x512xbf16, #tpu.memory_space<vmem>> -> memref<8x512xbf16, #tpu.memory_space<vmem>>
    %c0_43 = arith.constant 0 : index
    %c20 = arith.constant 20 : index
    %54 = vector.load %53[%c0_43, %c20] : memref<8x512xbf16, #tpu.memory_space<vmem>>, vector<8x384xbf16>
    %c5 = arith.constant 5 : index
    %c0_44 = arith.constant 0 : index
    %c0_45 = arith.constant 0 : index
    %55 = vector.load %arg3[%c5, %c0_44, %c0_45] : memref<9x8x8xbf16, #tpu.memory_space<vmem>>, vector<1x8x8xbf16>
    %56 = vector.shape_cast %55 : vector<1x8x8xbf16> to vector<8x8xbf16>
    %cst_46 = arith.constant dense<0.000000e+00> : vector<8x384xf32>
    %57 = tpu.matmul %56, %54, %cst_46 {dimension_numbers = #tpu.dot_dimension_numbers<[1], [0], [0], [1], [0, 0, 1, 1], [], []>} : vector<8x8xbf16>, vector<8x384xbf16>, vector<8x384xf32> -> vector<8x384xf32>
    %58 = arith.addf %51, %57 : vector<8x384xf32>
    %c0_i32_47 = arith.constant 0 : i32
    %c0_i32_48 = arith.constant 0 : i32
    %59 = tpu.memref_slice %arg6[%0, %c0_i32_47, %c0_i32_48] : memref<2x8x512xbf16, #tpu.memory_space<vmem>> -> memref<1x8x512xbf16, #tpu.memory_space<vmem>>
    %60 = tpu.memref_squeeze %59 : memref<1x8x512xbf16, #tpu.memory_space<vmem>> -> memref<8x512xbf16, #tpu.memory_space<vmem>>
    %c0_49 = arith.constant 0 : index
    %c36 = arith.constant 36 : index
    %61 = vector.load %60[%c0_49, %c36] : memref<8x512xbf16, #tpu.memory_space<vmem>>, vector<8x384xbf16>
    %c6 = arith.constant 6 : index
    %c0_50 = arith.constant 0 : index
    %c0_51 = arith.constant 0 : index
    %62 = vector.load %arg3[%c6, %c0_50, %c0_51] : memref<9x8x8xbf16, #tpu.memory_space<vmem>>, vector<1x8x8xbf16>
    %63 = vector.shape_cast %62 : vector<1x8x8xbf16> to vector<8x8xbf16>
    %cst_52 = arith.constant dense<0.000000e+00> : vector<8x384xf32>
    %64 = tpu.matmul %63, %61, %cst_52 {dimension_numbers = #tpu.dot_dimension_numbers<[1], [0], [0], [1], [0, 0, 1, 1], [], []>} : vector<8x8xbf16>, vector<8x384xbf16>, vector<8x384xf32> -> vector<8x384xf32>
    %65 = arith.addf %58, %64 : vector<8x384xf32>
    %c0_i32_53 = arith.constant 0 : i32
    %c0_i32_54 = arith.constant 0 : i32
    %66 = tpu.memref_slice %arg6[%0, %c0_i32_53, %c0_i32_54] : memref<2x8x512xbf16, #tpu.memory_space<vmem>> -> memref<1x8x512xbf16, #tpu.memory_space<vmem>>
    %67 = tpu.memref_squeeze %66 : memref<1x8x512xbf16, #tpu.memory_space<vmem>> -> memref<8x512xbf16, #tpu.memory_space<vmem>>
    %c0_55 = arith.constant 0 : index
    %c37 = arith.constant 37 : index
    %68 = vector.load %67[%c0_55, %c37] : memref<8x512xbf16, #tpu.memory_space<vmem>>, vector<8x384xbf16>
    %c7 = arith.constant 7 : index
    %c0_56 = arith.constant 0 : index
    %c0_57 = arith.constant 0 : index
    %69 = vector.load %arg3[%c7, %c0_56, %c0_57] : memref<9x8x8xbf16, #tpu.memory_space<vmem>>, vector<1x8x8xbf16>
    %70 = vector.shape_cast %69 : vector<1x8x8xbf16> to vector<8x8xbf16>
    %cst_58 = arith.constant dense<0.000000e+00> : vector<8x384xf32>
    %71 = tpu.matmul %70, %68, %cst_58 {dimension_numbers = #tpu.dot_dimension_numbers<[1], [0], [0], [1], [0, 0, 1, 1], [], []>} : vector<8x8xbf16>, vector<8x384xbf16>, vector<8x384xf32> -> vector<8x384xf32>
    %72 = arith.addf %65, %71 : vector<8x384xf32>
    %c0_i32_59 = arith.constant 0 : i32
    %c0_i32_60 = arith.constant 0 : i32
    %73 = tpu.memref_slice %arg6[%0, %c0_i32_59, %c0_i32_60] : memref<2x8x512xbf16, #tpu.memory_space<vmem>> -> memref<1x8x512xbf16, #tpu.memory_space<vmem>>
    %74 = tpu.memref_squeeze %73 : memref<1x8x512xbf16, #tpu.memory_space<vmem>> -> memref<8x512xbf16, #tpu.memory_space<vmem>>
    %c0_61 = arith.constant 0 : index
    %c38 = arith.constant 38 : index
    %75 = vector.load %74[%c0_61, %c38] : memref<8x512xbf16, #tpu.memory_space<vmem>>, vector<8x384xbf16>
    %c8 = arith.constant 8 : index
    %c0_62 = arith.constant 0 : index
    %c0_63 = arith.constant 0 : index
    %76 = vector.load %arg3[%c8, %c0_62, %c0_63] : memref<9x8x8xbf16, #tpu.memory_space<vmem>>, vector<1x8x8xbf16>
    %77 = vector.shape_cast %76 : vector<1x8x8xbf16> to vector<8x8xbf16>
    %cst_64 = arith.constant dense<0.000000e+00> : vector<8x384xf32>
    %78 = tpu.matmul %77, %75, %cst_64 {dimension_numbers = #tpu.dot_dimension_numbers<[1], [0], [0], [1], [0, 0, 1, 1], [], []>} : vector<8x8xbf16>, vector<8x384xbf16>, vector<8x384xf32> -> vector<8x384xf32>
    %79 = arith.addf %72, %78 : vector<8x384xf32>
    %c0_65 = arith.constant 0 : index
    %c0_66 = arith.constant 0 : index
    %80 = vector.load %arg4[%c0_65, %c0_66] : memref<8x4xf32, #tpu.memory_space<vmem>>, vector<8x4xf32>
    %81 = vector.extract_strided_slice %80 {offsets = [0, 1], sizes = [8, 1], strides = [1, 1]} : vector<8x4xf32> to vector<8x1xf32>
    %82 = vector.broadcast %81 : vector<8x1xf32> to vector<8x384xf32>
    %83 = arith.addf %79, %82 : vector<8x384xf32>
    %cst_67 = arith.constant 0.000000e+00 : f32
    %84 = vector.broadcast %cst_67 : f32 to vector<8x384xf32>
    %85 = arith.cmpf ogt, %83, %84 : vector<8x384xf32>
    %cst_68 = arith.constant 0.00999999977 : f32
    %86 = vector.broadcast %cst_68 : f32 to vector<8x384xf32>
    %87 = arith.mulf %86, %83 : vector<8x384xf32>
    %88 = arith.select %85, %83, %87 : vector<8x384xi1>, vector<8x384xf32>
    %89 = vector.extract_strided_slice %80 {offsets = [0, 2], sizes = [8, 1], strides = [1, 1]} : vector<8x4xf32> to vector<8x1xf32>
    %90 = vector.broadcast %89 : vector<8x1xf32> to vector<8x384xf32>
    %91 = arith.mulf %88, %90 : vector<8x384xf32>
    %92 = vector.extract_strided_slice %80 {offsets = [0, 3], sizes = [8, 1], strides = [1, 1]} : vector<8x4xf32> to vector<8x1xf32>
    %93 = vector.broadcast %92 : vector<8x1xf32> to vector<8x384xf32>
    %94 = arith.addf %91, %93 : vector<8x384xf32>
    %95 = arith.truncf %94 : vector<8x384xf32> to vector<8x384xbf16>
    %c0_69 = arith.constant 0 : index
    %c0_70 = arith.constant 0 : index
    %c0_71 = arith.constant 0 : index
    %96 = vector.load %arg5[%c0_69, %c0_70, %c0_71] : memref<1x8x384xbf16, #tpu.memory_space<vmem>>, vector<1x8x384xbf16>
    %97 = vector.shape_cast %96 : vector<1x8x384xbf16> to vector<8x384xbf16>
    %98 = vector.shape_cast %95 : vector<8x384xbf16> to vector<1x8x384xbf16>
    tpu.vector_store %arg5[%c0_69, %c0_70, %c0_71], %98 {strides = array<i32>} : memref<1x8x384xbf16, #tpu.memory_space<vmem>>, vector<1x8x384xbf16>,
    return
  }
  func.func @transform_1(%arg0: i32, %arg1: i32) -> (i32, i32, i32) {
    %c0_i32 = arith.constant 0 : i32
    %c0_i32_0 = arith.constant 0 : i32
    %c0_i32_1 = arith.constant 0 : i32
    %c0_i32_2 = arith.constant 0 : i32
    return %c0_i32, %c0_i32_0, %c0_i32_1 : i32, i32, i32
  }
  func.func @transform_2(%arg0: i32, %arg1: i32) -> (i32, i32) {
    %c0_i32 = arith.constant 0 : i32
    %c0_i32_0 = arith.constant 0 : i32
    %c0_i32_1 = arith.constant 0 : i32
    return %c0_i32, %c0_i32_0 : i32, i32
  }
  func.func @transform_3(%arg0: i32, %arg1: i32) -> (i32, i32, i32) {
    %c0_i32 = arith.constant 0 : i32
    %c0_i32_0 = arith.constant 0 : i32
    return %arg0, %c0_i32, %arg1 : i32, i32, i32
  }
}

module attributes {stable_mosaic.version = 11 : i64} {
  func.func @_conv_kernel(%arg0: i32, %arg1: i32, %arg2: memref<2x8x512xbf16, #tpu.memory_space<any>>, %arg3: memref<9x8x8xbf16, #tpu.memory_space<vmem>>, %arg4: memref<8x4xf32, #tpu.memory_space<vmem>>, %arg5: memref<1x8x384xbf16, #tpu.memory_space<vmem>>, %arg6: memref<2x8x512xbf16, #tpu.memory_space<vmem>>, %arg7: memref<1x2x!tpu.dma_semaphore, #tpu.memory_space<semaphore_mem>>) attributes {dimension_semantics = [#tpu.dimension_semantics<parallel>, #tpu.dimension_semantics<arbitrary>], iteration_bounds = array<i64: 2, 1>, scalar_prefetch = 0 : i64, scratch_operands = 2 : i64, tpu.core_type = #tpu.core_type<tc>, window_params = [{}, {pipeline_mode = #tpu.pipeline_mode<synchronous>, transform_indices = @transform_1, window_bounds = array<i64: 9, 8, 8>}, {pipeline_mode = #tpu.pipeline_mode<synchronous>, transform_indices = @transform_2, window_bounds = array<i64: 8, 4>}, {transform_indices = @transform_3, window_bounds = array<i64: 1, 8, 384>}]} {
    %c1_i32 = arith.constant 1 : i32
    %0 = arith.andi %arg1, %c1_i32 : i32
    %c0_i32 = arith.constant 0 : i32
    %1 = arith.cmpi eq, %arg1, %c0_i32 : i32
    %2 = arith.extui %1 : i1 to i32
    %c0_i32_0 = arith.constant 0 : i32
    %3 = arith.cmpi ne, %2, %c0_i32_0 : i32
    scf.if %3 {
      %c384_i32_72 = arith.constant 384 : i32
      %99 = arith.muli %arg1, %c384_i32_72 : i32
      %100 = tpu.assume_multiple %99, 128 : i32
      %c0_i32_73 = arith.constant 0 : i32
      %c0_i32_74 = arith.constant 0 : i32
      %101 = tpu.memref_slice %arg2[%arg0, %c0_i32_74, %100] : memref<2x8x512xbf16, #tpu.memory_space<any>> -> memref<1x8x512xbf16, #tpu.memory_space<any>>
      %102 = tpu.memref_squeeze %101 : memref<1x8x512xbf16, #tpu.memory_space<any>> -> memref<8x512xbf16, #tpu.memory_space<any>>
      %c0_i32_75 = arith.constant 0 : i32
      %c0_i32_76 = arith.constant 0 : i32
      %103 = tpu.memref_slice %arg6[%0, %c0_i32_75, %c0_i32_76] : memref<2x8x512xbf16, #tpu.memory_space<vmem>> -> memref<1x8x512xbf16, #tpu.memory_space<vmem>>
      %104 = tpu.memref_squeeze %103 : memref<1x8x512xbf16, #tpu.memory_space<vmem>> -> memref<8x512xbf16, #tpu.memory_space<vmem>>
      %105 = tpu.memref_slice %arg7[%c0_i32_73, %0] : memref<1x2x!tpu.dma_semaphore, #tpu.memory_space<semaphore_mem>> -> memref<1x1x!tpu.dma_semaphore, #tpu.memory_space<semaphore_mem>>
      %106 = tpu.memref_squeeze %105 : memref<1x1x!tpu.dma_semaphore, #tpu.memory_space<semaphore_mem>> -> memref<!tpu.dma_semaphore, #tpu.memory_space<semaphore_mem>>
      tpu.enqueue_dma source(%102 : memref<8x512xbf16, #tpu.memory_space<any>>) target(%104 : memref<8x512xbf16, #tpu.memory_space<vmem>>) target_semaphore(%106 : memref<!tpu.dma_semaphore, #tpu.memory_space<semaphore_mem>>)
    } else {
    }
    %c1_i32_1 = arith.constant 1 : i32
    %4 = arith.addi %arg1, %c1_i32_1 : i32
    %c1_i32_2 = arith.constant 1 : i32
    %5 = arith.cmpi slt, %4, %c1_i32_2 : i32
    %6 = arith.extui %5 : i1 to i32
    %c0_i32_3 = arith.constant 0 : i32
    %7 = arith.cmpi ne, %6, %c0_i32_3 : i32
    scf.if %7 {
      %c1_i32_72 = arith.constant 1 : i32
      %99 = arith.addi %arg1, %c1_i32_72 : i32
      %c1_i32_73 = arith.constant 1 : i32
      %100 = arith.subi %c1_i32_73, %0 : i32
      %c384_i32_74 = arith.constant 384 : i32
      %101 = arith.muli %99, %c384_i32_74 : i32
      %102 = tpu.assume_multiple %101, 128 : i32
      %c0_i32_75 = arith.constant 0 : i32
      %c0_i32_76 = arith.constant 0 : i32
      %103 = tpu.memref_slice %arg2[%arg0, %c0_i32_76, %102] : memref<2x8x512xbf16, #tpu.memory_space<any>> -> memref<1x8x512xbf16, #tpu.memory_space<any>>
      %104 = tpu.memref_squeeze %103 : memref<1x8x512xbf16, #tpu.memory_space<any>> -> memref<8x512xbf16, #tpu.memory_space<any>>
      %c0_i32_77 = arith.constant 0 : i32
      %c0_i32_78 = arith.constant 0 : i32
      %105 = tpu.memref_slice %arg6[%100, %c0_i32_77, %c0_i32_78] : memref<2x8x512xbf16, #tpu.memory_space<vmem>> -> memref<1x8x512xbf16, #tpu.memory_space<vmem>>
      %106 = tpu.memref_squeeze %105 : memref<1x8x512xbf16, #tpu.memory_space<vmem>> -> memref<8x512xbf16, #tpu.memory_space<vmem>>
      %107 = tpu.memref_slice %arg7[%c0_i32_75, %100] : memref<1x2x!tpu.dma_semaphore, #tpu.memory_space<semaphore_mem>> -> memref<1x1x!tpu.dma_semaphore, #tpu.memory_space<semaphore_mem>>
      %108 = tpu.memref_squeeze %107 : memref<1x1x!tpu.dma_semaphore, #tpu.memory_space<semaphore_mem>> -> memref<!tpu.dma_semaphore, #tpu.memory_space<semaphore_mem>>
      tpu.enqueue_dma source(%104 : memref<8x512xbf16, #tpu.memory_space<any>>) target(%106 : memref<8x512xbf16, #tpu.memory_space<vmem>>) target_semaphore(%108 : memref<!tpu.dma_semaphore, #tpu.memory_space<semaphore_mem>>)
    } else {
    }
    %c384_i32 = arith.constant 384 : i32
    %8 = arith.muli %arg1, %c384_i32 : i32
    %9 = tpu.assume_multiple %8, 128 : i32
    %c0_i32_4 = arith.constant 0 : i32
    %c0_i32_5 = arith.constant 0 : i32
    %10 = tpu.memref_slice %arg2[%arg0, %c0_i32_5, %9] : memref<2x8x512xbf16, #tpu.memory_space<any>> -> memref<1x8x512xbf16, #tpu.memory_space<any>>
    %11 = tpu.memref_squeeze %10 : memref<1x8x512xbf16, #tpu.memory_space<any>> -> memref<8x512xbf16, #tpu.memory_space<any>>
    %c0_i32_6 = arith.constant 0 : i32
    %c0_i32_7 = arith.constant 0 : i32
    %12 = tpu.memref_slice %arg6[%0, %c0_i32_6, %c0_i32_7] : memref<2x8x512xbf16, #tpu.memory_space<vmem>> -> memref<1x8x512xbf16, #tpu.memory_space<vmem>>
    %13 = tpu.memref_squeeze %12 : memref<1x8x512xbf16, #tpu.memory_space<vmem>> -> memref<8x512xbf16, #tpu.memory_space<vmem>>
    %14 = tpu.memref_slice %arg7[%c0_i32_4, %0] : memref<1x2x!tpu.dma_semaphore, #tpu.memory_space<semaphore_mem>> -> memref<1x1x!tpu.dma_semaphore, #tpu.memory_space<semaphore_mem>>
    %15 = tpu.memref_squeeze %14 : memref<1x1x!tpu.dma_semaphore, #tpu.memory_space<semaphore_mem>> -> memref<!tpu.dma_semaphore, #tpu.memory_space<semaphore_mem>>
    tpu.wait_dma2 semaphore(%15 : memref<!tpu.dma_semaphore, #tpu.memory_space<semaphore_mem>>) src(%11 : memref<8x512xbf16, #tpu.memory_space<any>>) dst(%13 : memref<8x512xbf16, #tpu.memory_space<vmem>>)
    %cst = arith.constant 0.000000e+00 : f32
    %16 = vector.broadcast %cst : f32 to vector<8x384xf32>
    %c0_i32_8 = arith.constant 0 : i32
    %c0_i32_9 = arith.constant 0 : i32
    %17 = tpu.memref_slice %arg6[%0, %c0_i32_8, %c0_i32_9] : memref<2x8x512xbf16, #tpu.memory_space<vmem>> -> memref<1x8x512xbf16, #tpu.memory_space<vmem>>
    %18 = tpu.memref_squeeze %17 : memref<1x8x512xbf16, #tpu.memory_space<vmem>> -> memref<8x512xbf16, #tpu.memory_space<vmem>>
    %c0 = arith.constant 0 : index
    %c0_10 = arith.constant 0 : index
    %19 = vector.load %18[%c0, %c0_10] : memref<8x512xbf16, #tpu.memory_space<vmem>>, vector<8x384xbf16>
    %c0_11 = arith.constant 0 : index
    %c0_12 = arith.constant 0 : index
    %c0_13 = arith.constant 0 : index
    %20 = vector.load %arg3[%c0_11, %c0_12, %c0_13] : memref<9x8x8xbf16, #tpu.memory_space<vmem>>, vector<1x8x8xbf16>
    %21 = vector.shape_cast %20 : vector<1x8x8xbf16> to vector<8x8xbf16>
    %cst_14 = arith.constant dense<0.000000e+00> : vector<8x384xf32>
    %22 = tpu.matmul %21, %19, %cst_14 {dimension_numbers = #tpu.dot_dimension_numbers<[1], [0], [0], [1], [0, 0, 1, 1], [], []>} : vector<8x8xbf16>, vector<8x384xbf16>, vector<8x384xf32> -> vector<8x384xf32>
    %23 = arith.addf %16, %22 : vector<8x384xf32>
    %c0_i32_15 = arith.constant 0 : i32
    %c0_i32_16 = arith.constant 0 : i32
    %24 = tpu.memref_slice %arg6[%0, %c0_i32_15, %c0_i32_16] : memref<2x8x512xbf16, #tpu.memory_space<vmem>> -> memref<1x8x512xbf16, #tpu.memory_space<vmem>>
    %25 = tpu.memref_squeeze %24 : memref<1x8x512xbf16, #tpu.memory_space<vmem>> -> memref<8x512xbf16, #tpu.memory_space<vmem>>
    %c0_17 = arith.constant 0 : index
    %c2 = arith.constant 2 : index
    %26 = vector.load %25[%c0_17, %c2] : memref<8x512xbf16, #tpu.memory_space<vmem>>, vector<8x384xbf16>
    %c1 = arith.constant 1 : index
    %c0_18 = arith.constant 0 : index
    %c0_19 = arith.constant 0 : index
    %27 = vector.load %arg3[%c1, %c0_18, %c0_19] : memref<9x8x8xbf16, #tpu.memory_space<vmem>>, vector<1x8x8xbf16>
    %28 = vector.shape_cast %27 : vector<1x8x8xbf16> to vector<8x8xbf16>
    %cst_20 = arith.constant dense<0.000000e+00> : vector<8x384xf32>
    %29 = tpu.matmul %28, %26, %cst_20 {dimension_numbers = #tpu.dot_dimension_numbers<[1], [0], [0], [1], [0, 0, 1, 1], [], []>} : vector<8x8xbf16>, vector<8x384xbf16>, vector<8x384xf32> -> vector<8x384xf32>
    %30 = arith.addf %23, %29 : vector<8x384xf32>
    %c0_i32_21 = arith.constant 0 : i32
    %c0_i32_22 = arith.constant 0 : i32
    %31 = tpu.memref_slice %arg6[%0, %c0_i32_21, %c0_i32_22] : memref<2x8x512xbf16, #tpu.memory_space<vmem>> -> memref<1x8x512xbf16, #tpu.memory_space<vmem>>
    %32 = tpu.memref_squeeze %31 : memref<1x8x512xbf16, #tpu.memory_space<vmem>> -> memref<8x512xbf16, #tpu.memory_space<vmem>>
    %c0_23 = arith.constant 0 : index
    %c4 = arith.constant 4 : index
    %33 = vector.load %32[%c0_23, %c4] : memref<8x512xbf16, #tpu.memory_space<vmem>>, vector<8x384xbf16>
    %c2_24 = arith.constant 2 : index
    %c0_25 = arith.constant 0 : index
    %c0_26 = arith.constant 0 : index
    %34 = vector.load %arg3[%c2_24, %c0_25, %c0_26] : memref<9x8x8xbf16, #tpu.memory_space<vmem>>, vector<1x8x8xbf16>
    %35 = vector.shape_cast %34 : vector<1x8x8xbf16> to vector<8x8xbf16>
    %cst_27 = arith.constant dense<0.000000e+00> : vector<8x384xf32>
    %36 = tpu.matmul %35, %33, %cst_27 {dimension_numbers = #tpu.dot_dimension_numbers<[1], [0], [0], [1], [0, 0, 1, 1], [], []>} : vector<8x8xbf16>, vector<8x384xbf16>, vector<8x384xf32> -> vector<8x384xf32>
    %37 = arith.addf %30, %36 : vector<8x384xf32>
    %c0_i32_28 = arith.constant 0 : i32
    %c0_i32_29 = arith.constant 0 : i32
    %38 = tpu.memref_slice %arg6[%0, %c0_i32_28, %c0_i32_29] : memref<2x8x512xbf16, #tpu.memory_space<vmem>> -> memref<1x8x512xbf16, #tpu.memory_space<vmem>>
    %39 = tpu.memref_squeeze %38 : memref<1x8x512xbf16, #tpu.memory_space<vmem>> -> memref<8x512xbf16, #tpu.memory_space<vmem>>
    %c0_30 = arith.constant 0 : index
    %c40 = arith.constant 40 : index
    %40 = vector.load %39[%c0_30, %c40] : memref<8x512xbf16, #tpu.memory_space<vmem>>, vector<8x384xbf16>
    %c3 = arith.constant 3 : index
    %c0_31 = arith.constant 0 : index
    %c0_32 = arith.constant 0 : index
    %41 = vector.load %arg3[%c3, %c0_31, %c0_32] : memref<9x8x8xbf16, #tpu.memory_space<vmem>>, vector<1x8x8xbf16>
    %42 = vector.shape_cast %41 : vector<1x8x8xbf16> to vector<8x8xbf16>
    %cst_33 = arith.constant dense<0.000000e+00> : vector<8x384xf32>
    %43 = tpu.matmul %42, %40, %cst_33 {dimension_numbers = #tpu.dot_dimension_numbers<[1], [0], [0], [1], [0, 0, 1, 1], [], []>} : vector<8x8xbf16>, vector<8x384xbf16>, vector<8x384xf32> -> vector<8x384xf32>
    %44 = arith.addf %37, %43 : vector<8x384xf32>
    %c0_i32_34 = arith.constant 0 : i32
    %c0_i32_35 = arith.constant 0 : i32
    %45 = tpu.memref_slice %arg6[%0, %c0_i32_34, %c0_i32_35] : memref<2x8x512xbf16, #tpu.memory_space<vmem>> -> memref<1x8x512xbf16, #tpu.memory_space<vmem>>
    %46 = tpu.memref_squeeze %45 : memref<1x8x512xbf16, #tpu.memory_space<vmem>> -> memref<8x512xbf16, #tpu.memory_space<vmem>>
    %c0_36 = arith.constant 0 : index
    %c42 = arith.constant 42 : index
    %47 = vector.load %46[%c0_36, %c42] : memref<8x512xbf16, #tpu.memory_space<vmem>>, vector<8x384xbf16>
    %c4_37 = arith.constant 4 : index
    %c0_38 = arith.constant 0 : index
    %c0_39 = arith.constant 0 : index
    %48 = vector.load %arg3[%c4_37, %c0_38, %c0_39] : memref<9x8x8xbf16, #tpu.memory_space<vmem>>, vector<1x8x8xbf16>
    %49 = vector.shape_cast %48 : vector<1x8x8xbf16> to vector<8x8xbf16>
    %cst_40 = arith.constant dense<0.000000e+00> : vector<8x384xf32>
    %50 = tpu.matmul %49, %47, %cst_40 {dimension_numbers = #tpu.dot_dimension_numbers<[1], [0], [0], [1], [0, 0, 1, 1], [], []>} : vector<8x8xbf16>, vector<8x384xbf16>, vector<8x384xf32> -> vector<8x384xf32>
    %51 = arith.addf %44, %50 : vector<8x384xf32>
    %c0_i32_41 = arith.constant 0 : i32
    %c0_i32_42 = arith.constant 0 : i32
    %52 = tpu.memref_slice %arg6[%0, %c0_i32_41, %c0_i32_42] : memref<2x8x512xbf16, #tpu.memory_space<vmem>> -> memref<1x8x512xbf16, #tpu.memory_space<vmem>>
    %53 = tpu.memref_squeeze %52 : memref<1x8x512xbf16, #tpu.memory_space<vmem>> -> memref<8x512xbf16, #tpu.memory_space<vmem>>
    %c0_43 = arith.constant 0 : index
    %c44 = arith.constant 44 : index
    %54 = vector.load %53[%c0_43, %c44] : memref<8x512xbf16, #tpu.memory_space<vmem>>, vector<8x384xbf16>
    %c5 = arith.constant 5 : index
    %c0_44 = arith.constant 0 : index
    %c0_45 = arith.constant 0 : index
    %55 = vector.load %arg3[%c5, %c0_44, %c0_45] : memref<9x8x8xbf16, #tpu.memory_space<vmem>>, vector<1x8x8xbf16>
    %56 = vector.shape_cast %55 : vector<1x8x8xbf16> to vector<8x8xbf16>
    %cst_46 = arith.constant dense<0.000000e+00> : vector<8x384xf32>
    %57 = tpu.matmul %56, %54, %cst_46 {dimension_numbers = #tpu.dot_dimension_numbers<[1], [0], [0], [1], [0, 0, 1, 1], [], []>} : vector<8x8xbf16>, vector<8x384xbf16>, vector<8x384xf32> -> vector<8x384xf32>
    %58 = arith.addf %51, %57 : vector<8x384xf32>
    %c0_i32_47 = arith.constant 0 : i32
    %c0_i32_48 = arith.constant 0 : i32
    %59 = tpu.memref_slice %arg6[%0, %c0_i32_47, %c0_i32_48] : memref<2x8x512xbf16, #tpu.memory_space<vmem>> -> memref<1x8x512xbf16, #tpu.memory_space<vmem>>
    %60 = tpu.memref_squeeze %59 : memref<1x8x512xbf16, #tpu.memory_space<vmem>> -> memref<8x512xbf16, #tpu.memory_space<vmem>>
    %c0_49 = arith.constant 0 : index
    %c80 = arith.constant 80 : index
    %61 = vector.load %60[%c0_49, %c80] : memref<8x512xbf16, #tpu.memory_space<vmem>>, vector<8x384xbf16>
    %c6 = arith.constant 6 : index
    %c0_50 = arith.constant 0 : index
    %c0_51 = arith.constant 0 : index
    %62 = vector.load %arg3[%c6, %c0_50, %c0_51] : memref<9x8x8xbf16, #tpu.memory_space<vmem>>, vector<1x8x8xbf16>
    %63 = vector.shape_cast %62 : vector<1x8x8xbf16> to vector<8x8xbf16>
    %cst_52 = arith.constant dense<0.000000e+00> : vector<8x384xf32>
    %64 = tpu.matmul %63, %61, %cst_52 {dimension_numbers = #tpu.dot_dimension_numbers<[1], [0], [0], [1], [0, 0, 1, 1], [], []>} : vector<8x8xbf16>, vector<8x384xbf16>, vector<8x384xf32> -> vector<8x384xf32>
    %65 = arith.addf %58, %64 : vector<8x384xf32>
    %c0_i32_53 = arith.constant 0 : i32
    %c0_i32_54 = arith.constant 0 : i32
    %66 = tpu.memref_slice %arg6[%0, %c0_i32_53, %c0_i32_54] : memref<2x8x512xbf16, #tpu.memory_space<vmem>> -> memref<1x8x512xbf16, #tpu.memory_space<vmem>>
    %67 = tpu.memref_squeeze %66 : memref<1x8x512xbf16, #tpu.memory_space<vmem>> -> memref<8x512xbf16, #tpu.memory_space<vmem>>
    %c0_55 = arith.constant 0 : index
    %c82 = arith.constant 82 : index
    %68 = vector.load %67[%c0_55, %c82] : memref<8x512xbf16, #tpu.memory_space<vmem>>, vector<8x384xbf16>
    %c7 = arith.constant 7 : index
    %c0_56 = arith.constant 0 : index
    %c0_57 = arith.constant 0 : index
    %69 = vector.load %arg3[%c7, %c0_56, %c0_57] : memref<9x8x8xbf16, #tpu.memory_space<vmem>>, vector<1x8x8xbf16>
    %70 = vector.shape_cast %69 : vector<1x8x8xbf16> to vector<8x8xbf16>
    %cst_58 = arith.constant dense<0.000000e+00> : vector<8x384xf32>
    %71 = tpu.matmul %70, %68, %cst_58 {dimension_numbers = #tpu.dot_dimension_numbers<[1], [0], [0], [1], [0, 0, 1, 1], [], []>} : vector<8x8xbf16>, vector<8x384xbf16>, vector<8x384xf32> -> vector<8x384xf32>
    %72 = arith.addf %65, %71 : vector<8x384xf32>
    %c0_i32_59 = arith.constant 0 : i32
    %c0_i32_60 = arith.constant 0 : i32
    %73 = tpu.memref_slice %arg6[%0, %c0_i32_59, %c0_i32_60] : memref<2x8x512xbf16, #tpu.memory_space<vmem>> -> memref<1x8x512xbf16, #tpu.memory_space<vmem>>
    %74 = tpu.memref_squeeze %73 : memref<1x8x512xbf16, #tpu.memory_space<vmem>> -> memref<8x512xbf16, #tpu.memory_space<vmem>>
    %c0_61 = arith.constant 0 : index
    %c84 = arith.constant 84 : index
    %75 = vector.load %74[%c0_61, %c84] : memref<8x512xbf16, #tpu.memory_space<vmem>>, vector<8x384xbf16>
    %c8 = arith.constant 8 : index
    %c0_62 = arith.constant 0 : index
    %c0_63 = arith.constant 0 : index
    %76 = vector.load %arg3[%c8, %c0_62, %c0_63] : memref<9x8x8xbf16, #tpu.memory_space<vmem>>, vector<1x8x8xbf16>
    %77 = vector.shape_cast %76 : vector<1x8x8xbf16> to vector<8x8xbf16>
    %cst_64 = arith.constant dense<0.000000e+00> : vector<8x384xf32>
    %78 = tpu.matmul %77, %75, %cst_64 {dimension_numbers = #tpu.dot_dimension_numbers<[1], [0], [0], [1], [0, 0, 1, 1], [], []>} : vector<8x8xbf16>, vector<8x384xbf16>, vector<8x384xf32> -> vector<8x384xf32>
    %79 = arith.addf %72, %78 : vector<8x384xf32>
    %c0_65 = arith.constant 0 : index
    %c0_66 = arith.constant 0 : index
    %80 = vector.load %arg4[%c0_65, %c0_66] : memref<8x4xf32, #tpu.memory_space<vmem>>, vector<8x4xf32>
    %81 = vector.extract_strided_slice %80 {offsets = [0, 1], sizes = [8, 1], strides = [1, 1]} : vector<8x4xf32> to vector<8x1xf32>
    %82 = vector.broadcast %81 : vector<8x1xf32> to vector<8x384xf32>
    %83 = arith.addf %79, %82 : vector<8x384xf32>
    %cst_67 = arith.constant 0.000000e+00 : f32
    %84 = vector.broadcast %cst_67 : f32 to vector<8x384xf32>
    %85 = arith.cmpf ogt, %83, %84 : vector<8x384xf32>
    %cst_68 = arith.constant 0.00999999977 : f32
    %86 = vector.broadcast %cst_68 : f32 to vector<8x384xf32>
    %87 = arith.mulf %86, %83 : vector<8x384xf32>
    %88 = arith.select %85, %83, %87 : vector<8x384xi1>, vector<8x384xf32>
    %89 = vector.extract_strided_slice %80 {offsets = [0, 2], sizes = [8, 1], strides = [1, 1]} : vector<8x4xf32> to vector<8x1xf32>
    %90 = vector.broadcast %89 : vector<8x1xf32> to vector<8x384xf32>
    %91 = arith.mulf %88, %90 : vector<8x384xf32>
    %92 = vector.extract_strided_slice %80 {offsets = [0, 3], sizes = [8, 1], strides = [1, 1]} : vector<8x4xf32> to vector<8x1xf32>
    %93 = vector.broadcast %92 : vector<8x1xf32> to vector<8x384xf32>
    %94 = arith.addf %91, %93 : vector<8x384xf32>
    %95 = arith.truncf %94 : vector<8x384xf32> to vector<8x384xbf16>
    %c0_69 = arith.constant 0 : index
    %c0_70 = arith.constant 0 : index
    %c0_71 = arith.constant 0 : index
    %96 = vector.load %arg5[%c0_69, %c0_70, %c0_71] : memref<1x8x384xbf16, #tpu.memory_space<vmem>>, vector<1x8x384xbf16>
    %97 = vector.shape_cast %96 : vector<1x8x384xbf16> to vector<8x384xbf16>
    %98 = vector.shape_cast %95 : vector<8x384xbf16> to vector<1x8x384xbf16>
    tpu.vector_store %arg5[%c0_69, %c0_70, %c0_71], %98 {strides = array<i32>} : memref<1x8x384xbf16, #tpu.memory_space<vmem>>, vector<1x8x384xbf16>,
    return
  }
  func.func @transform_1(%arg0: i32, %arg1: i32) -> (i32, i32, i32) {
    %c0_i32 = arith.constant 0 : i32
    %c0_i32_0 = arith.constant 0 : i32
    %c0_i32_1 = arith.constant 0 : i32
    %c0_i32_2 = arith.constant 0 : i32
    return %c0_i32, %c0_i32_0, %c0_i32_1 : i32, i32, i32
  }
  func.func @transform_2(%arg0: i32, %arg1: i32) -> (i32, i32) {
    %c0_i32 = arith.constant 0 : i32
    %c0_i32_0 = arith.constant 0 : i32
    %c0_i32_1 = arith.constant 0 : i32
    return %c0_i32, %c0_i32_0 : i32, i32
  }
  func.func @transform_3(%arg0: i32, %arg1: i32) -> (i32, i32, i32) {
    %c0_i32 = arith.constant 0 : i32
    %c0_i32_0 = arith.constant 0 : i32
    return %arg0, %c0_i32, %arg1 : i32, i32, i32
  }
}

module attributes {stable_mosaic.version = 11 : i64} {
  func.func @_conv_kernel(%arg0: i32, %arg1: i32, %arg2: memref<2x8x256xbf16, #tpu.memory_space<any>>, %arg3: memref<1x8x8xbf16, #tpu.memory_space<vmem>>, %arg4: memref<8x4xf32, #tpu.memory_space<vmem>>, %arg5: memref<1x8x256xbf16, #tpu.memory_space<vmem>>, %arg6: memref<2x8x256xbf16, #tpu.memory_space<vmem>>, %arg7: memref<1x2x!tpu.dma_semaphore, #tpu.memory_space<semaphore_mem>>) attributes {dimension_semantics = [#tpu.dimension_semantics<parallel>, #tpu.dimension_semantics<arbitrary>], iteration_bounds = array<i64: 2, 1>, scalar_prefetch = 0 : i64, scratch_operands = 2 : i64, tpu.core_type = #tpu.core_type<tc>, window_params = [{}, {pipeline_mode = #tpu.pipeline_mode<synchronous>, transform_indices = @transform_1, window_bounds = array<i64: 1, 8, 8>}, {pipeline_mode = #tpu.pipeline_mode<synchronous>, transform_indices = @transform_2, window_bounds = array<i64: 8, 4>}, {transform_indices = @transform_3, window_bounds = array<i64: 1, 8, 256>}]} {
    %c1_i32 = arith.constant 1 : i32
    %0 = arith.andi %arg1, %c1_i32 : i32
    %c0_i32 = arith.constant 0 : i32
    %1 = arith.cmpi eq, %arg1, %c0_i32 : i32
    %2 = arith.extui %1 : i1 to i32
    %c0_i32_0 = arith.constant 0 : i32
    %3 = arith.cmpi ne, %2, %c0_i32_0 : i32
    scf.if %3 {
      %c256_i32_22 = arith.constant 256 : i32
      %37 = arith.muli %arg1, %c256_i32_22 : i32
      %38 = tpu.assume_multiple %37, 128 : i32
      %c0_i32_23 = arith.constant 0 : i32
      %c0_i32_24 = arith.constant 0 : i32
      %39 = tpu.memref_slice %arg2[%arg0, %c0_i32_24, %38] : memref<2x8x256xbf16, #tpu.memory_space<any>> -> memref<1x8x256xbf16, #tpu.memory_space<any>>
      %40 = tpu.memref_squeeze %39 : memref<1x8x256xbf16, #tpu.memory_space<any>> -> memref<8x256xbf16, #tpu.memory_space<any>>
      %c0_i32_25 = arith.constant 0 : i32
      %c0_i32_26 = arith.constant 0 : i32
      %41 = tpu.memref_slice %arg6[%0, %c0_i32_25, %c0_i32_26] : memref<2x8x256xbf16, #tpu.memory_space<vmem>> -> memref<1x8x256xbf16, #tpu.memory_space<vmem>>
      %42 = tpu.memref_squeeze %41 : memref<1x8x256xbf16, #tpu.memory_space<vmem>> -> memref<8x256xbf16, #tpu.memory_space<vmem>>
      %43 = tpu.memref_slice %arg7[%c0_i32_23, %0] : memref<1x2x!tpu.dma_semaphore, #tpu.memory_space<semaphore_mem>> -> memref<1x1x!tpu.dma_semaphore, #tpu.memory_space<semaphore_mem>>
      %44 = tpu.memref_squeeze %43 : memref<1x1x!tpu.dma_semaphore, #tpu.memory_space<semaphore_mem>> -> memref<!tpu.dma_semaphore, #tpu.memory_space<semaphore_mem>>
      tpu.enqueue_dma source(%40 : memref<8x256xbf16, #tpu.memory_space<any>>) target(%42 : memref<8x256xbf16, #tpu.memory_space<vmem>>) target_semaphore(%44 : memref<!tpu.dma_semaphore, #tpu.memory_space<semaphore_mem>>)
    } else {
    }
    %c1_i32_1 = arith.constant 1 : i32
    %4 = arith.addi %arg1, %c1_i32_1 : i32
    %c1_i32_2 = arith.constant 1 : i32
    %5 = arith.cmpi slt, %4, %c1_i32_2 : i32
    %6 = arith.extui %5 : i1 to i32
    %c0_i32_3 = arith.constant 0 : i32
    %7 = arith.cmpi ne, %6, %c0_i32_3 : i32
    scf.if %7 {
      %c1_i32_22 = arith.constant 1 : i32
      %37 = arith.addi %arg1, %c1_i32_22 : i32
      %c1_i32_23 = arith.constant 1 : i32
      %38 = arith.subi %c1_i32_23, %0 : i32
      %c256_i32_24 = arith.constant 256 : i32
      %39 = arith.muli %37, %c256_i32_24 : i32
      %40 = tpu.assume_multiple %39, 128 : i32
      %c0_i32_25 = arith.constant 0 : i32
      %c0_i32_26 = arith.constant 0 : i32
      %41 = tpu.memref_slice %arg2[%arg0, %c0_i32_26, %40] : memref<2x8x256xbf16, #tpu.memory_space<any>> -> memref<1x8x256xbf16, #tpu.memory_space<any>>
      %42 = tpu.memref_squeeze %41 : memref<1x8x256xbf16, #tpu.memory_space<any>> -> memref<8x256xbf16, #tpu.memory_space<any>>
      %c0_i32_27 = arith.constant 0 : i32
      %c0_i32_28 = arith.constant 0 : i32
      %43 = tpu.memref_slice %arg6[%38, %c0_i32_27, %c0_i32_28] : memref<2x8x256xbf16, #tpu.memory_space<vmem>> -> memref<1x8x256xbf16, #tpu.memory_space<vmem>>
      %44 = tpu.memref_squeeze %43 : memref<1x8x256xbf16, #tpu.memory_space<vmem>> -> memref<8x256xbf16, #tpu.memory_space<vmem>>
      %45 = tpu.memref_slice %arg7[%c0_i32_25, %38] : memref<1x2x!tpu.dma_semaphore, #tpu.memory_space<semaphore_mem>> -> memref<1x1x!tpu.dma_semaphore, #tpu.memory_space<semaphore_mem>>
      %46 = tpu.memref_squeeze %45 : memref<1x1x!tpu.dma_semaphore, #tpu.memory_space<semaphore_mem>> -> memref<!tpu.dma_semaphore, #tpu.memory_space<semaphore_mem>>
      tpu.enqueue_dma source(%42 : memref<8x256xbf16, #tpu.memory_space<any>>) target(%44 : memref<8x256xbf16, #tpu.memory_space<vmem>>) target_semaphore(%46 : memref<!tpu.dma_semaphore, #tpu.memory_space<semaphore_mem>>)
    } else {
    }
    %c256_i32 = arith.constant 256 : i32
    %8 = arith.muli %arg1, %c256_i32 : i32
    %9 = tpu.assume_multiple %8, 128 : i32
    %c0_i32_4 = arith.constant 0 : i32
    %c0_i32_5 = arith.constant 0 : i32
    %10 = tpu.memref_slice %arg2[%arg0, %c0_i32_5, %9] : memref<2x8x256xbf16, #tpu.memory_space<any>> -> memref<1x8x256xbf16, #tpu.memory_space<any>>
    %11 = tpu.memref_squeeze %10 : memref<1x8x256xbf16, #tpu.memory_space<any>> -> memref<8x256xbf16, #tpu.memory_space<any>>
    %c0_i32_6 = arith.constant 0 : i32
    %c0_i32_7 = arith.constant 0 : i32
    %12 = tpu.memref_slice %arg6[%0, %c0_i32_6, %c0_i32_7] : memref<2x8x256xbf16, #tpu.memory_space<vmem>> -> memref<1x8x256xbf16, #tpu.memory_space<vmem>>
    %13 = tpu.memref_squeeze %12 : memref<1x8x256xbf16, #tpu.memory_space<vmem>> -> memref<8x256xbf16, #tpu.memory_space<vmem>>
    %14 = tpu.memref_slice %arg7[%c0_i32_4, %0] : memref<1x2x!tpu.dma_semaphore, #tpu.memory_space<semaphore_mem>> -> memref<1x1x!tpu.dma_semaphore, #tpu.memory_space<semaphore_mem>>
    %15 = tpu.memref_squeeze %14 : memref<1x1x!tpu.dma_semaphore, #tpu.memory_space<semaphore_mem>> -> memref<!tpu.dma_semaphore, #tpu.memory_space<semaphore_mem>>
    tpu.wait_dma2 semaphore(%15 : memref<!tpu.dma_semaphore, #tpu.memory_space<semaphore_mem>>) src(%11 : memref<8x256xbf16, #tpu.memory_space<any>>) dst(%13 : memref<8x256xbf16, #tpu.memory_space<vmem>>)
    %cst = arith.constant 0.000000e+00 : f32
    %16 = vector.broadcast %cst : f32 to vector<8x256xf32>
    %c0_i32_8 = arith.constant 0 : i32
    %c0_i32_9 = arith.constant 0 : i32
    %17 = tpu.memref_slice %arg6[%0, %c0_i32_8, %c0_i32_9] : memref<2x8x256xbf16, #tpu.memory_space<vmem>> -> memref<1x8x256xbf16, #tpu.memory_space<vmem>>
    %18 = tpu.memref_squeeze %17 : memref<1x8x256xbf16, #tpu.memory_space<vmem>> -> memref<8x256xbf16, #tpu.memory_space<vmem>>
    %c0 = arith.constant 0 : index
    %c0_10 = arith.constant 0 : index
    %19 = vector.load %18[%c0, %c0_10] : memref<8x256xbf16, #tpu.memory_space<vmem>>, vector<8x256xbf16>
    %c0_11 = arith.constant 0 : index
    %c0_12 = arith.constant 0 : index
    %c0_13 = arith.constant 0 : index
    %20 = vector.load %arg3[%c0_11, %c0_12, %c0_13] : memref<1x8x8xbf16, #tpu.memory_space<vmem>>, vector<1x8x8xbf16>
    %21 = vector.shape_cast %20 : vector<1x8x8xbf16> to vector<8x8xbf16>
    %cst_14 = arith.constant dense<0.000000e+00> : vector<8x256xf32>
    %22 = tpu.matmul %21, %19, %cst_14 {dimension_numbers = #tpu.dot_dimension_numbers<[1], [0], [0], [1], [0, 0, 1, 1], [], []>} : vector<8x8xbf16>, vector<8x256xbf16>, vector<8x256xf32> -> vector<8x256xf32>
    %23 = arith.addf %16, %22 : vector<8x256xf32>
    %c0_15 = arith.constant 0 : index
    %c0_16 = arith.constant 0 : index
    %24 = vector.load %arg4[%c0_15, %c0_16] : memref<8x4xf32, #tpu.memory_space<vmem>>, vector<8x4xf32>
    %25 = vector.extract_strided_slice %24 {offsets = [0, 1], sizes = [8, 1], strides = [1, 1]} : vector<8x4xf32> to vector<8x1xf32>
    %26 = vector.broadcast %25 : vector<8x1xf32> to vector<8x256xf32>
    %27 = arith.addf %23, %26 : vector<8x256xf32>
    %cst_17 = arith.constant 0.000000e+00 : f32
    %28 = vector.broadcast %cst_17 : f32 to vector<8x256xf32>
    %29 = arith.cmpf ogt, %27, %28 : vector<8x256xf32>
    %cst_18 = arith.constant 0.00999999977 : f32
    %30 = vector.broadcast %cst_18 : f32 to vector<8x256xf32>
    %31 = arith.mulf %30, %27 : vector<8x256xf32>
    %32 = arith.select %29, %27, %31 : vector<8x256xi1>, vector<8x256xf32>
    %33 = arith.truncf %32 : vector<8x256xf32> to vector<8x256xbf16>
    %c0_19 = arith.constant 0 : index
    %c0_20 = arith.constant 0 : index
    %c0_21 = arith.constant 0 : index
    %34 = vector.load %arg5[%c0_19, %c0_20, %c0_21] : memref<1x8x256xbf16, #tpu.memory_space<vmem>>, vector<1x8x256xbf16>
    %35 = vector.shape_cast %34 : vector<1x8x256xbf16> to vector<8x256xbf16>
    %36 = vector.shape_cast %33 : vector<8x256xbf16> to vector<1x8x256xbf16>
    tpu.vector_store %arg5[%c0_19, %c0_20, %c0_21], %36 {strides = array<i32>} : memref<1x8x256xbf16, #tpu.memory_space<vmem>>, vector<1x8x256xbf16>,
    return
  }
  func.func @transform_1(%arg0: i32, %arg1: i32) -> (i32, i32, i32) {
    %c0_i32 = arith.constant 0 : i32
    %c0_i32_0 = arith.constant 0 : i32
    %c0_i32_1 = arith.constant 0 : i32
    %c0_i32_2 = arith.constant 0 : i32
    return %c0_i32, %c0_i32_0, %c0_i32_1 : i32, i32, i32
  }
  func.func @transform_2(%arg0: i32, %arg1: i32) -> (i32, i32) {
    %c0_i32 = arith.constant 0 : i32
    %c0_i32_0 = arith.constant 0 : i32
    %c0_i32_1 = arith.constant 0 : i32
    return %c0_i32, %c0_i32_0 : i32, i32
  }
  func.func @transform_3(%arg0: i32, %arg1: i32) -> (i32, i32, i32) {
    %c0_i32 = arith.constant 0 : i32
    %c0_i32_0 = arith.constant 0 : i32
    return %arg0, %c0_i32, %arg1 : i32, i32, i32
  }
}

module attributes {stable_mosaic.version = 11 : i64} {
  func.func @_conv_kernel(%arg0: i32, %arg1: i32, %arg2: memref<2x8x512xbf16, #tpu.memory_space<any>>, %arg3: memref<9x8x8xbf16, #tpu.memory_space<vmem>>, %arg4: memref<8x4xf32, #tpu.memory_space<vmem>>, %arg5: memref<1x8x384xbf16, #tpu.memory_space<vmem>>, %arg6: memref<2x8x512xbf16, #tpu.memory_space<vmem>>, %arg7: memref<1x2x!tpu.dma_semaphore, #tpu.memory_space<semaphore_mem>>) attributes {dimension_semantics = [#tpu.dimension_semantics<parallel>, #tpu.dimension_semantics<arbitrary>], iteration_bounds = array<i64: 2, 1>, scalar_prefetch = 0 : i64, scratch_operands = 2 : i64, tpu.core_type = #tpu.core_type<tc>, window_params = [{}, {pipeline_mode = #tpu.pipeline_mode<synchronous>, transform_indices = @transform_1, window_bounds = array<i64: 9, 8, 8>}, {pipeline_mode = #tpu.pipeline_mode<synchronous>, transform_indices = @transform_2, window_bounds = array<i64: 8, 4>}, {transform_indices = @transform_3, window_bounds = array<i64: 1, 8, 384>}]} {
    %c1_i32 = arith.constant 1 : i32
    %0 = arith.andi %arg1, %c1_i32 : i32
    %c0_i32 = arith.constant 0 : i32
    %1 = arith.cmpi eq, %arg1, %c0_i32 : i32
    %2 = arith.extui %1 : i1 to i32
    %c0_i32_0 = arith.constant 0 : i32
    %3 = arith.cmpi ne, %2, %c0_i32_0 : i32
    scf.if %3 {
      %c384_i32_71 = arith.constant 384 : i32
      %93 = arith.muli %arg1, %c384_i32_71 : i32
      %94 = tpu.assume_multiple %93, 128 : i32
      %c0_i32_72 = arith.constant 0 : i32
      %c0_i32_73 = arith.constant 0 : i32
      %95 = tpu.memref_slice %arg2[%arg0, %c0_i32_73, %94] : memref<2x8x512xbf16, #tpu.memory_space<any>> -> memref<1x8x512xbf16, #tpu.memory_space<any>>
      %96 = tpu.memref_squeeze %95 : memref<1x8x512xbf16, #tpu.memory_space<any>> -> memref<8x512xbf16, #tpu.memory_space<any>>
      %c0_i32_74 = arith.constant 0 : i32
      %c0_i32_75 = arith.constant 0 : i32
      %97 = tpu.memref_slice %arg6[%0, %c0_i32_74, %c0_i32_75] : memref<2x8x512xbf16, #tpu.memory_space<vmem>> -> memref<1x8x512xbf16, #tpu.memory_space<vmem>>
      %98 = tpu.memref_squeeze %97 : memref<1x8x512xbf16, #tpu.memory_space<vmem>> -> memref<8x512xbf16, #tpu.memory_space<vmem>>
      %99 = tpu.memref_slice %arg7[%c0_i32_72, %0] : memref<1x2x!tpu.dma_semaphore, #tpu.memory_space<semaphore_mem>> -> memref<1x1x!tpu.dma_semaphore, #tpu.memory_space<semaphore_mem>>
      %100 = tpu.memref_squeeze %99 : memref<1x1x!tpu.dma_semaphore, #tpu.memory_space<semaphore_mem>> -> memref<!tpu.dma_semaphore, #tpu.memory_space<semaphore_mem>>
      tpu.enqueue_dma source(%96 : memref<8x512xbf16, #tpu.memory_space<any>>) target(%98 : memref<8x512xbf16, #tpu.memory_space<vmem>>) target_semaphore(%100 : memref<!tpu.dma_semaphore, #tpu.memory_space<semaphore_mem>>)
    } else {
    }
    %c1_i32_1 = arith.constant 1 : i32
    %4 = arith.addi %arg1, %c1_i32_1 : i32
    %c1_i32_2 = arith.constant 1 : i32
    %5 = arith.cmpi slt, %4, %c1_i32_2 : i32
    %6 = arith.extui %5 : i1 to i32
    %c0_i32_3 = arith.constant 0 : i32
    %7 = arith.cmpi ne, %6, %c0_i32_3 : i32
    scf.if %7 {
      %c1_i32_71 = arith.constant 1 : i32
      %93 = arith.addi %arg1, %c1_i32_71 : i32
      %c1_i32_72 = arith.constant 1 : i32
      %94 = arith.subi %c1_i32_72, %0 : i32
      %c384_i32_73 = arith.constant 384 : i32
      %95 = arith.muli %93, %c384_i32_73 : i32
      %96 = tpu.assume_multiple %95, 128 : i32
      %c0_i32_74 = arith.constant 0 : i32
      %c0_i32_75 = arith.constant 0 : i32
      %97 = tpu.memref_slice %arg2[%arg0, %c0_i32_75, %96] : memref<2x8x512xbf16, #tpu.memory_space<any>> -> memref<1x8x512xbf16, #tpu.memory_space<any>>
      %98 = tpu.memref_squeeze %97 : memref<1x8x512xbf16, #tpu.memory_space<any>> -> memref<8x512xbf16, #tpu.memory_space<any>>
      %c0_i32_76 = arith.constant 0 : i32
      %c0_i32_77 = arith.constant 0 : i32
      %99 = tpu.memref_slice %arg6[%94, %c0_i32_76, %c0_i32_77] : memref<2x8x512xbf16, #tpu.memory_space<vmem>> -> memref<1x8x512xbf16, #tpu.memory_space<vmem>>
      %100 = tpu.memref_squeeze %99 : memref<1x8x512xbf16, #tpu.memory_space<vmem>> -> memref<8x512xbf16, #tpu.memory_space<vmem>>
      %101 = tpu.memref_slice %arg7[%c0_i32_74, %94] : memref<1x2x!tpu.dma_semaphore, #tpu.memory_space<semaphore_mem>> -> memref<1x1x!tpu.dma_semaphore, #tpu.memory_space<semaphore_mem>>
      %102 = tpu.memref_squeeze %101 : memref<1x1x!tpu.dma_semaphore, #tpu.memory_space<semaphore_mem>> -> memref<!tpu.dma_semaphore, #tpu.memory_space<semaphore_mem>>
      tpu.enqueue_dma source(%98 : memref<8x512xbf16, #tpu.memory_space<any>>) target(%100 : memref<8x512xbf16, #tpu.memory_space<vmem>>) target_semaphore(%102 : memref<!tpu.dma_semaphore, #tpu.memory_space<semaphore_mem>>)
    } else {
    }
    %c384_i32 = arith.constant 384 : i32
    %8 = arith.muli %arg1, %c384_i32 : i32
    %9 = tpu.assume_multiple %8, 128 : i32
    %c0_i32_4 = arith.constant 0 : i32
    %c0_i32_5 = arith.constant 0 : i32
    %10 = tpu.memref_slice %arg2[%arg0, %c0_i32_5, %9] : memref<2x8x512xbf16, #tpu.memory_space<any>> -> memref<1x8x512xbf16, #tpu.memory_space<any>>
    %11 = tpu.memref_squeeze %10 : memref<1x8x512xbf16, #tpu.memory_space<any>> -> memref<8x512xbf16, #tpu.memory_space<any>>
    %c0_i32_6 = arith.constant 0 : i32
    %c0_i32_7 = arith.constant 0 : i32
    %12 = tpu.memref_slice %arg6[%0, %c0_i32_6, %c0_i32_7] : memref<2x8x512xbf16, #tpu.memory_space<vmem>> -> memref<1x8x512xbf16, #tpu.memory_space<vmem>>
    %13 = tpu.memref_squeeze %12 : memref<1x8x512xbf16, #tpu.memory_space<vmem>> -> memref<8x512xbf16, #tpu.memory_space<vmem>>
    %14 = tpu.memref_slice %arg7[%c0_i32_4, %0] : memref<1x2x!tpu.dma_semaphore, #tpu.memory_space<semaphore_mem>> -> memref<1x1x!tpu.dma_semaphore, #tpu.memory_space<semaphore_mem>>
    %15 = tpu.memref_squeeze %14 : memref<1x1x!tpu.dma_semaphore, #tpu.memory_space<semaphore_mem>> -> memref<!tpu.dma_semaphore, #tpu.memory_space<semaphore_mem>>
    tpu.wait_dma2 semaphore(%15 : memref<!tpu.dma_semaphore, #tpu.memory_space<semaphore_mem>>) src(%11 : memref<8x512xbf16, #tpu.memory_space<any>>) dst(%13 : memref<8x512xbf16, #tpu.memory_space<vmem>>)
    %cst = arith.constant 0.000000e+00 : f32
    %16 = vector.broadcast %cst : f32 to vector<8x384xf32>
    %c0_i32_8 = arith.constant 0 : i32
    %c0_i32_9 = arith.constant 0 : i32
    %17 = tpu.memref_slice %arg6[%0, %c0_i32_8, %c0_i32_9] : memref<2x8x512xbf16, #tpu.memory_space<vmem>> -> memref<1x8x512xbf16, #tpu.memory_space<vmem>>
    %18 = tpu.memref_squeeze %17 : memref<1x8x512xbf16, #tpu.memory_space<vmem>> -> memref<8x512xbf16, #tpu.memory_space<vmem>>
    %c0 = arith.constant 0 : index
    %c0_10 = arith.constant 0 : index
    %19 = vector.load %18[%c0, %c0_10] : memref<8x512xbf16, #tpu.memory_space<vmem>>, vector<8x384xbf16>
    %c0_11 = arith.constant 0 : index
    %c0_12 = arith.constant 0 : index
    %c0_13 = arith.constant 0 : index
    %20 = vector.load %arg3[%c0_11, %c0_12, %c0_13] : memref<9x8x8xbf16, #tpu.memory_space<vmem>>, vector<1x8x8xbf16>
    %21 = vector.shape_cast %20 : vector<1x8x8xbf16> to vector<8x8xbf16>
    %cst_14 = arith.constant dense<0.000000e+00> : vector<8x384xf32>
    %22 = tpu.matmul %21, %19, %cst_14 {dimension_numbers = #tpu.dot_dimension_numbers<[1], [0], [0], [1], [0, 0, 1, 1], [], []>} : vector<8x8xbf16>, vector<8x384xbf16>, vector<8x384xf32> -> vector<8x384xf32>
    %23 = arith.addf %16, %22 : vector<8x384xf32>
    %c0_i32_15 = arith.constant 0 : i32
    %c0_i32_16 = arith.constant 0 : i32
    %24 = tpu.memref_slice %arg6[%0, %c0_i32_15, %c0_i32_16] : memref<2x8x512xbf16, #tpu.memory_space<vmem>> -> memref<1x8x512xbf16, #tpu.memory_space<vmem>>
    %25 = tpu.memref_squeeze %24 : memref<1x8x512xbf16, #tpu.memory_space<vmem>> -> memref<8x512xbf16, #tpu.memory_space<vmem>>
    %c0_17 = arith.constant 0 : index
    %c1 = arith.constant 1 : index
    %26 = vector.load %25[%c0_17, %c1] : memref<8x512xbf16, #tpu.memory_space<vmem>>, vector<8x384xbf16>
    %c1_18 = arith.constant 1 : index
    %c0_19 = arith.constant 0 : index
    %c0_20 = arith.constant 0 : index
    %27 = vector.load %arg3[%c1_18, %c0_19, %c0_20] : memref<9x8x8xbf16, #tpu.memory_space<vmem>>, vector<1x8x8xbf16>
    %28 = vector.shape_cast %27 : vector<1x8x8xbf16> to vector<8x8xbf16>
    %cst_21 = arith.constant dense<0.000000e+00> : vector<8x384xf32>
    %29 = tpu.matmul %28, %26, %cst_21 {dimension_numbers = #tpu.dot_dimension_numbers<[1], [0], [0], [1], [0, 0, 1, 1], [], []>} : vector<8x8xbf16>, vector<8x384xbf16>, vector<8x384xf32> -> vector<8x384xf32>
    %30 = arith.addf %23, %29 : vector<8x384xf32>
    %c0_i32_22 = arith.constant 0 : i32
    %c0_i32_23 = arith.constant 0 : i32
    %31 = tpu.memref_slice %arg6[%0, %c0_i32_22, %c0_i32_23] : memref<2x8x512xbf16, #tpu.memory_space<vmem>> -> memref<1x8x512xbf16, #tpu.memory_space<vmem>>
    %32 = tpu.memref_squeeze %31 : memref<1x8x512xbf16, #tpu.memory_space<vmem>> -> memref<8x512xbf16, #tpu.memory_space<vmem>>
    %c0_24 = arith.constant 0 : index
    %c2 = arith.constant 2 : index
    %33 = vector.load %32[%c0_24, %c2] : memref<8x512xbf16, #tpu.memory_space<vmem>>, vector<8x384xbf16>
    %c2_25 = arith.constant 2 : index
    %c0_26 = arith.constant 0 : index
    %c0_27 = arith.constant 0 : index
    %34 = vector.load %arg3[%c2_25, %c0_26, %c0_27] : memref<9x8x8xbf16, #tpu.memory_space<vmem>>, vector<1x8x8xbf16>
    %35 = vector.shape_cast %34 : vector<1x8x8xbf16> to vector<8x8xbf16>
    %cst_28 = arith.constant dense<0.000000e+00> : vector<8x384xf32>
    %36 = tpu.matmul %35, %33, %cst_28 {dimension_numbers = #tpu.dot_dimension_numbers<[1], [0], [0], [1], [0, 0, 1, 1], [], []>} : vector<8x8xbf16>, vector<8x384xbf16>, vector<8x384xf32> -> vector<8x384xf32>
    %37 = arith.addf %30, %36 : vector<8x384xf32>
    %c0_i32_29 = arith.constant 0 : i32
    %c0_i32_30 = arith.constant 0 : i32
    %38 = tpu.memref_slice %arg6[%0, %c0_i32_29, %c0_i32_30] : memref<2x8x512xbf16, #tpu.memory_space<vmem>> -> memref<1x8x512xbf16, #tpu.memory_space<vmem>>
    %39 = tpu.memref_squeeze %38 : memref<1x8x512xbf16, #tpu.memory_space<vmem>> -> memref<8x512xbf16, #tpu.memory_space<vmem>>
    %c0_31 = arith.constant 0 : index
    %c18 = arith.constant 18 : index
    %40 = vector.load %39[%c0_31, %c18] : memref<8x512xbf16, #tpu.memory_space<vmem>>, vector<8x384xbf16>
    %c3 = arith.constant 3 : index
    %c0_32 = arith.constant 0 : index
    %c0_33 = arith.constant 0 : index
    %41 = vector.load %arg3[%c3, %c0_32, %c0_33] : memref<9x8x8xbf16, #tpu.memory_space<vmem>>, vector<1x8x8xbf16>
    %42 = vector.shape_cast %41 : vector<1x8x8xbf16> to vector<8x8xbf16>
    %cst_34 = arith.constant dense<0.000000e+00> : vector<8x384xf32>
    %43 = tpu.matmul %42, %40, %cst_34 {dimension_numbers = #tpu.dot_dimension_numbers<[1], [0], [0], [1], [0, 0, 1, 1], [], []>} : vector<8x8xbf16>, vector<8x384xbf16>, vector<8x384xf32> -> vector<8x384xf32>
    %44 = arith.addf %37, %43 : vector<8x384xf32>
    %c0_i32_35 = arith.constant 0 : i32
    %c0_i32_36 = arith.constant 0 : i32
    %45 = tpu.memref_slice %arg6[%0, %c0_i32_35, %c0_i32_36] : memref<2x8x512xbf16, #tpu.memory_space<vmem>> -> memref<1x8x512xbf16, #tpu.memory_space<vmem>>
    %46 = tpu.memref_squeeze %45 : memref<1x8x512xbf16, #tpu.memory_space<vmem>> -> memref<8x512xbf16, #tpu.memory_space<vmem>>
    %c0_37 = arith.constant 0 : index
    %c19 = arith.constant 19 : index
    %47 = vector.load %46[%c0_37, %c19] : memref<8x512xbf16, #tpu.memory_space<vmem>>, vector<8x384xbf16>
    %c4 = arith.constant 4 : index
    %c0_38 = arith.constant 0 : index
    %c0_39 = arith.constant 0 : index
    %48 = vector.load %arg3[%c4, %c0_38, %c0_39] : memref<9x8x8xbf16, #tpu.memory_space<vmem>>, vector<1x8x8xbf16>
    %49 = vector.shape_cast %48 : vector<1x8x8xbf16> to vector<8x8xbf16>
    %cst_40 = arith.constant dense<0.000000e+00> : vector<8x384xf32>
    %50 = tpu.matmul %49, %47, %cst_40 {dimension_numbers = #tpu.dot_dimension_numbers<[1], [0], [0], [1], [0, 0, 1, 1], [], []>} : vector<8x8xbf16>, vector<8x384xbf16>, vector<8x384xf32> -> vector<8x384xf32>
    %51 = arith.addf %44, %50 : vector<8x384xf32>
    %c0_i32_41 = arith.constant 0 : i32
    %c0_i32_42 = arith.constant 0 : i32
    %52 = tpu.memref_slice %arg6[%0, %c0_i32_41, %c0_i32_42] : memref<2x8x512xbf16, #tpu.memory_space<vmem>> -> memref<1x8x512xbf16, #tpu.memory_space<vmem>>
    %53 = tpu.memref_squeeze %52 : memref<1x8x512xbf16, #tpu.memory_space<vmem>> -> memref<8x512xbf16, #tpu.memory_space<vmem>>
    %c0_43 = arith.constant 0 : index
    %c20 = arith.constant 20 : index
    %54 = vector.load %53[%c0_43, %c20] : memref<8x512xbf16, #tpu.memory_space<vmem>>, vector<8x384xbf16>
    %c5 = arith.constant 5 : index
    %c0_44 = arith.constant 0 : index
    %c0_45 = arith.constant 0 : index
    %55 = vector.load %arg3[%c5, %c0_44, %c0_45] : memref<9x8x8xbf16, #tpu.memory_space<vmem>>, vector<1x8x8xbf16>
    %56 = vector.shape_cast %55 : vector<1x8x8xbf16> to vector<8x8xbf16>
    %cst_46 = arith.constant dense<0.000000e+00> : vector<8x384xf32>
    %57 = tpu.matmul %56, %54, %cst_46 {dimension_numbers = #tpu.dot_dimension_numbers<[1], [0], [0], [1], [0, 0, 1, 1], [], []>} : vector<8x8xbf16>, vector<8x384xbf16>, vector<8x384xf32> -> vector<8x384xf32>
    %58 = arith.addf %51, %57 : vector<8x384xf32>
    %c0_i32_47 = arith.constant 0 : i32
    %c0_i32_48 = arith.constant 0 : i32
    %59 = tpu.memref_slice %arg6[%0, %c0_i32_47, %c0_i32_48] : memref<2x8x512xbf16, #tpu.memory_space<vmem>> -> memref<1x8x512xbf16, #tpu.memory_space<vmem>>
    %60 = tpu.memref_squeeze %59 : memref<1x8x512xbf16, #tpu.memory_space<vmem>> -> memref<8x512xbf16, #tpu.memory_space<vmem>>
    %c0_49 = arith.constant 0 : index
    %c36 = arith.constant 36 : index
    %61 = vector.load %60[%c0_49, %c36] : memref<8x512xbf16, #tpu.memory_space<vmem>>, vector<8x384xbf16>
    %c6 = arith.constant 6 : index
    %c0_50 = arith.constant 0 : index
    %c0_51 = arith.constant 0 : index
    %62 = vector.load %arg3[%c6, %c0_50, %c0_51] : memref<9x8x8xbf16, #tpu.memory_space<vmem>>, vector<1x8x8xbf16>
    %63 = vector.shape_cast %62 : vector<1x8x8xbf16> to vector<8x8xbf16>
    %cst_52 = arith.constant dense<0.000000e+00> : vector<8x384xf32>
    %64 = tpu.matmul %63, %61, %cst_52 {dimension_numbers = #tpu.dot_dimension_numbers<[1], [0], [0], [1], [0, 0, 1, 1], [], []>} : vector<8x8xbf16>, vector<8x384xbf16>, vector<8x384xf32> -> vector<8x384xf32>
    %65 = arith.addf %58, %64 : vector<8x384xf32>
    %c0_i32_53 = arith.constant 0 : i32
    %c0_i32_54 = arith.constant 0 : i32
    %66 = tpu.memref_slice %arg6[%0, %c0_i32_53, %c0_i32_54] : memref<2x8x512xbf16, #tpu.memory_space<vmem>> -> memref<1x8x512xbf16, #tpu.memory_space<vmem>>
    %67 = tpu.memref_squeeze %66 : memref<1x8x512xbf16, #tpu.memory_space<vmem>> -> memref<8x512xbf16, #tpu.memory_space<vmem>>
    %c0_55 = arith.constant 0 : index
    %c37 = arith.constant 37 : index
    %68 = vector.load %67[%c0_55, %c37] : memref<8x512xbf16, #tpu.memory_space<vmem>>, vector<8x384xbf16>
    %c7 = arith.constant 7 : index
    %c0_56 = arith.constant 0 : index
    %c0_57 = arith.constant 0 : index
    %69 = vector.load %arg3[%c7, %c0_56, %c0_57] : memref<9x8x8xbf16, #tpu.memory_space<vmem>>, vector<1x8x8xbf16>
    %70 = vector.shape_cast %69 : vector<1x8x8xbf16> to vector<8x8xbf16>
    %cst_58 = arith.constant dense<0.000000e+00> : vector<8x384xf32>
    %71 = tpu.matmul %70, %68, %cst_58 {dimension_numbers = #tpu.dot_dimension_numbers<[1], [0], [0], [1], [0, 0, 1, 1], [], []>} : vector<8x8xbf16>, vector<8x384xbf16>, vector<8x384xf32> -> vector<8x384xf32>
    %72 = arith.addf %65, %71 : vector<8x384xf32>
    %c0_i32_59 = arith.constant 0 : i32
    %c0_i32_60 = arith.constant 0 : i32
    %73 = tpu.memref_slice %arg6[%0, %c0_i32_59, %c0_i32_60] : memref<2x8x512xbf16, #tpu.memory_space<vmem>> -> memref<1x8x512xbf16, #tpu.memory_space<vmem>>
    %74 = tpu.memref_squeeze %73 : memref<1x8x512xbf16, #tpu.memory_space<vmem>> -> memref<8x512xbf16, #tpu.memory_space<vmem>>
    %c0_61 = arith.constant 0 : index
    %c38 = arith.constant 38 : index
    %75 = vector.load %74[%c0_61, %c38] : memref<8x512xbf16, #tpu.memory_space<vmem>>, vector<8x384xbf16>
    %c8 = arith.constant 8 : index
    %c0_62 = arith.constant 0 : index
    %c0_63 = arith.constant 0 : index
    %76 = vector.load %arg3[%c8, %c0_62, %c0_63] : memref<9x8x8xbf16, #tpu.memory_space<vmem>>, vector<1x8x8xbf16>
    %77 = vector.shape_cast %76 : vector<1x8x8xbf16> to vector<8x8xbf16>
    %cst_64 = arith.constant dense<0.000000e+00> : vector<8x384xf32>
    %78 = tpu.matmul %77, %75, %cst_64 {dimension_numbers = #tpu.dot_dimension_numbers<[1], [0], [0], [1], [0, 0, 1, 1], [], []>} : vector<8x8xbf16>, vector<8x384xbf16>, vector<8x384xf32> -> vector<8x384xf32>
    %79 = arith.addf %72, %78 : vector<8x384xf32>
    %c0_65 = arith.constant 0 : index
    %c0_66 = arith.constant 0 : index
    %80 = vector.load %arg4[%c0_65, %c0_66] : memref<8x4xf32, #tpu.memory_space<vmem>>, vector<8x4xf32>
    %81 = vector.extract_strided_slice %80 {offsets = [0, 0], sizes = [8, 1], strides = [1, 1]} : vector<8x4xf32> to vector<8x1xf32>
    %82 = vector.broadcast %81 : vector<8x1xf32> to vector<8x384xf32>
    %83 = arith.mulf %79, %82 : vector<8x384xf32>
    %84 = vector.extract_strided_slice %80 {offsets = [0, 1], sizes = [8, 1], strides = [1, 1]} : vector<8x4xf32> to vector<8x1xf32>
    %85 = vector.broadcast %84 : vector<8x1xf32> to vector<8x384xf32>
    %86 = arith.addf %83, %85 : vector<8x384xf32>
    %cst_67 = arith.constant 0.000000e+00 : f32
    %87 = vector.broadcast %cst_67 : f32 to vector<8x384xf32>
    %88 = arith.maximumf %86, %87 : vector<8x384xf32>
    %89 = arith.truncf %88 : vector<8x384xf32> to vector<8x384xbf16>
    %c0_68 = arith.constant 0 : index
    %c0_69 = arith.constant 0 : index
    %c0_70 = arith.constant 0 : index
    %90 = vector.load %arg5[%c0_68, %c0_69, %c0_70] : memref<1x8x384xbf16, #tpu.memory_space<vmem>>, vector<1x8x384xbf16>
    %91 = vector.shape_cast %90 : vector<1x8x384xbf16> to vector<8x384xbf16>
    %92 = vector.shape_cast %89 : vector<8x384xbf16> to vector<1x8x384xbf16>
    tpu.vector_store %arg5[%c0_68, %c0_69, %c0_70], %92 {strides = array<i32>} : memref<1x8x384xbf16, #tpu.memory_space<vmem>>, vector<1x8x384xbf16>,
    return
  }
  func.func @transform_1(%arg0: i32, %arg1: i32) -> (i32, i32, i32) {
    %c0_i32 = arith.constant 0 : i32
    %c0_i32_0 = arith.constant 0 : i32
    %c0_i32_1 = arith.constant 0 : i32
    %c0_i32_2 = arith.constant 0 : i32
    return %c0_i32, %c0_i32_0, %c0_i32_1 : i32, i32, i32
  }
  func.func @transform_2(%arg0: i32, %arg1: i32) -> (i32, i32) {
    %c0_i32 = arith.constant 0 : i32
    %c0_i32_0 = arith.constant 0 : i32
    %c0_i32_1 = arith.constant 0 : i32
    return %c0_i32, %c0_i32_0 : i32, i32
  }
  func.func @transform_3(%arg0: i32, %arg1: i32) -> (i32, i32, i32) {
    %c0_i32 = arith.constant 0 : i32
    %c0_i32_0 = arith.constant 0 : i32
    return %arg0, %c0_i32, %arg1 : i32, i32, i32
  }
}

module attributes {stable_mosaic.version = 11 : i64} {
  func.func @_conv_kernel(%arg0: i32, %arg1: i32, %arg2: memref<2x8x512xbf16, #tpu.memory_space<any>>, %arg3: memref<9x8x8xbf16, #tpu.memory_space<vmem>>, %arg4: memref<8x4xf32, #tpu.memory_space<vmem>>, %arg5: memref<1x8x384xbf16, #tpu.memory_space<vmem>>, %arg6: memref<2x8x512xbf16, #tpu.memory_space<vmem>>, %arg7: memref<1x2x!tpu.dma_semaphore, #tpu.memory_space<semaphore_mem>>) attributes {dimension_semantics = [#tpu.dimension_semantics<parallel>, #tpu.dimension_semantics<arbitrary>], iteration_bounds = array<i64: 2, 1>, scalar_prefetch = 0 : i64, scratch_operands = 2 : i64, tpu.core_type = #tpu.core_type<tc>, window_params = [{}, {pipeline_mode = #tpu.pipeline_mode<synchronous>, transform_indices = @transform_1, window_bounds = array<i64: 9, 8, 8>}, {pipeline_mode = #tpu.pipeline_mode<synchronous>, transform_indices = @transform_2, window_bounds = array<i64: 8, 4>}, {transform_indices = @transform_3, window_bounds = array<i64: 1, 8, 384>}]} {
    %c1_i32 = arith.constant 1 : i32
    %0 = arith.andi %arg1, %c1_i32 : i32
    %c0_i32 = arith.constant 0 : i32
    %1 = arith.cmpi eq, %arg1, %c0_i32 : i32
    %2 = arith.extui %1 : i1 to i32
    %c0_i32_0 = arith.constant 0 : i32
    %3 = arith.cmpi ne, %2, %c0_i32_0 : i32
    scf.if %3 {
      %c384_i32_74 = arith.constant 384 : i32
      %104 = arith.muli %arg1, %c384_i32_74 : i32
      %105 = tpu.assume_multiple %104, 128 : i32
      %c0_i32_75 = arith.constant 0 : i32
      %c0_i32_76 = arith.constant 0 : i32
      %106 = tpu.memref_slice %arg2[%arg0, %c0_i32_76, %105] : memref<2x8x512xbf16, #tpu.memory_space<any>> -> memref<1x8x512xbf16, #tpu.memory_space<any>>
      %107 = tpu.memref_squeeze %106 : memref<1x8x512xbf16, #tpu.memory_space<any>> -> memref<8x512xbf16, #tpu.memory_space<any>>
      %c0_i32_77 = arith.constant 0 : i32
      %c0_i32_78 = arith.constant 0 : i32
      %108 = tpu.memref_slice %arg6[%0, %c0_i32_77, %c0_i32_78] : memref<2x8x512xbf16, #tpu.memory_space<vmem>> -> memref<1x8x512xbf16, #tpu.memory_space<vmem>>
      %109 = tpu.memref_squeeze %108 : memref<1x8x512xbf16, #tpu.memory_space<vmem>> -> memref<8x512xbf16, #tpu.memory_space<vmem>>
      %110 = tpu.memref_slice %arg7[%c0_i32_75, %0] : memref<1x2x!tpu.dma_semaphore, #tpu.memory_space<semaphore_mem>> -> memref<1x1x!tpu.dma_semaphore, #tpu.memory_space<semaphore_mem>>
      %111 = tpu.memref_squeeze %110 : memref<1x1x!tpu.dma_semaphore, #tpu.memory_space<semaphore_mem>> -> memref<!tpu.dma_semaphore, #tpu.memory_space<semaphore_mem>>
      tpu.enqueue_dma source(%107 : memref<8x512xbf16, #tpu.memory_space<any>>) target(%109 : memref<8x512xbf16, #tpu.memory_space<vmem>>) target_semaphore(%111 : memref<!tpu.dma_semaphore, #tpu.memory_space<semaphore_mem>>)
    } else {
    }
    %c1_i32_1 = arith.constant 1 : i32
    %4 = arith.addi %arg1, %c1_i32_1 : i32
    %c1_i32_2 = arith.constant 1 : i32
    %5 = arith.cmpi slt, %4, %c1_i32_2 : i32
    %6 = arith.extui %5 : i1 to i32
    %c0_i32_3 = arith.constant 0 : i32
    %7 = arith.cmpi ne, %6, %c0_i32_3 : i32
    scf.if %7 {
      %c1_i32_74 = arith.constant 1 : i32
      %104 = arith.addi %arg1, %c1_i32_74 : i32
      %c1_i32_75 = arith.constant 1 : i32
      %105 = arith.subi %c1_i32_75, %0 : i32
      %c384_i32_76 = arith.constant 384 : i32
      %106 = arith.muli %104, %c384_i32_76 : i32
      %107 = tpu.assume_multiple %106, 128 : i32
      %c0_i32_77 = arith.constant 0 : i32
      %c0_i32_78 = arith.constant 0 : i32
      %108 = tpu.memref_slice %arg2[%arg0, %c0_i32_78, %107] : memref<2x8x512xbf16, #tpu.memory_space<any>> -> memref<1x8x512xbf16, #tpu.memory_space<any>>
      %109 = tpu.memref_squeeze %108 : memref<1x8x512xbf16, #tpu.memory_space<any>> -> memref<8x512xbf16, #tpu.memory_space<any>>
      %c0_i32_79 = arith.constant 0 : i32
      %c0_i32_80 = arith.constant 0 : i32
      %110 = tpu.memref_slice %arg6[%105, %c0_i32_79, %c0_i32_80] : memref<2x8x512xbf16, #tpu.memory_space<vmem>> -> memref<1x8x512xbf16, #tpu.memory_space<vmem>>
      %111 = tpu.memref_squeeze %110 : memref<1x8x512xbf16, #tpu.memory_space<vmem>> -> memref<8x512xbf16, #tpu.memory_space<vmem>>
      %112 = tpu.memref_slice %arg7[%c0_i32_77, %105] : memref<1x2x!tpu.dma_semaphore, #tpu.memory_space<semaphore_mem>> -> memref<1x1x!tpu.dma_semaphore, #tpu.memory_space<semaphore_mem>>
      %113 = tpu.memref_squeeze %112 : memref<1x1x!tpu.dma_semaphore, #tpu.memory_space<semaphore_mem>> -> memref<!tpu.dma_semaphore, #tpu.memory_space<semaphore_mem>>
      tpu.enqueue_dma source(%109 : memref<8x512xbf16, #tpu.memory_space<any>>) target(%111 : memref<8x512xbf16, #tpu.memory_space<vmem>>) target_semaphore(%113 : memref<!tpu.dma_semaphore, #tpu.memory_space<semaphore_mem>>)
    } else {
    }
    %c384_i32 = arith.constant 384 : i32
    %8 = arith.muli %arg1, %c384_i32 : i32
    %9 = tpu.assume_multiple %8, 128 : i32
    %c0_i32_4 = arith.constant 0 : i32
    %c0_i32_5 = arith.constant 0 : i32
    %10 = tpu.memref_slice %arg2[%arg0, %c0_i32_5, %9] : memref<2x8x512xbf16, #tpu.memory_space<any>> -> memref<1x8x512xbf16, #tpu.memory_space<any>>
    %11 = tpu.memref_squeeze %10 : memref<1x8x512xbf16, #tpu.memory_space<any>> -> memref<8x512xbf16, #tpu.memory_space<any>>
    %c0_i32_6 = arith.constant 0 : i32
    %c0_i32_7 = arith.constant 0 : i32
    %12 = tpu.memref_slice %arg6[%0, %c0_i32_6, %c0_i32_7] : memref<2x8x512xbf16, #tpu.memory_space<vmem>> -> memref<1x8x512xbf16, #tpu.memory_space<vmem>>
    %13 = tpu.memref_squeeze %12 : memref<1x8x512xbf16, #tpu.memory_space<vmem>> -> memref<8x512xbf16, #tpu.memory_space<vmem>>
    %14 = tpu.memref_slice %arg7[%c0_i32_4, %0] : memref<1x2x!tpu.dma_semaphore, #tpu.memory_space<semaphore_mem>> -> memref<1x1x!tpu.dma_semaphore, #tpu.memory_space<semaphore_mem>>
    %15 = tpu.memref_squeeze %14 : memref<1x1x!tpu.dma_semaphore, #tpu.memory_space<semaphore_mem>> -> memref<!tpu.dma_semaphore, #tpu.memory_space<semaphore_mem>>
    tpu.wait_dma2 semaphore(%15 : memref<!tpu.dma_semaphore, #tpu.memory_space<semaphore_mem>>) src(%11 : memref<8x512xbf16, #tpu.memory_space<any>>) dst(%13 : memref<8x512xbf16, #tpu.memory_space<vmem>>)
    %cst = arith.constant 0.000000e+00 : f32
    %16 = vector.broadcast %cst : f32 to vector<8x384xf32>
    %c0_i32_8 = arith.constant 0 : i32
    %c0_i32_9 = arith.constant 0 : i32
    %17 = tpu.memref_slice %arg6[%0, %c0_i32_8, %c0_i32_9] : memref<2x8x512xbf16, #tpu.memory_space<vmem>> -> memref<1x8x512xbf16, #tpu.memory_space<vmem>>
    %18 = tpu.memref_squeeze %17 : memref<1x8x512xbf16, #tpu.memory_space<vmem>> -> memref<8x512xbf16, #tpu.memory_space<vmem>>
    %c0 = arith.constant 0 : index
    %c0_10 = arith.constant 0 : index
    %19 = vector.load %18[%c0, %c0_10] : memref<8x512xbf16, #tpu.memory_space<vmem>>, vector<8x384xbf16>
    %c0_11 = arith.constant 0 : index
    %c0_12 = arith.constant 0 : index
    %c0_13 = arith.constant 0 : index
    %20 = vector.load %arg3[%c0_11, %c0_12, %c0_13] : memref<9x8x8xbf16, #tpu.memory_space<vmem>>, vector<1x8x8xbf16>
    %21 = vector.shape_cast %20 : vector<1x8x8xbf16> to vector<8x8xbf16>
    %cst_14 = arith.constant dense<0.000000e+00> : vector<8x384xf32>
    %22 = tpu.matmul %21, %19, %cst_14 {dimension_numbers = #tpu.dot_dimension_numbers<[1], [0], [0], [1], [0, 0, 1, 1], [], []>} : vector<8x8xbf16>, vector<8x384xbf16>, vector<8x384xf32> -> vector<8x384xf32>
    %23 = arith.addf %16, %22 : vector<8x384xf32>
    %c0_i32_15 = arith.constant 0 : i32
    %c0_i32_16 = arith.constant 0 : i32
    %24 = tpu.memref_slice %arg6[%0, %c0_i32_15, %c0_i32_16] : memref<2x8x512xbf16, #tpu.memory_space<vmem>> -> memref<1x8x512xbf16, #tpu.memory_space<vmem>>
    %25 = tpu.memref_squeeze %24 : memref<1x8x512xbf16, #tpu.memory_space<vmem>> -> memref<8x512xbf16, #tpu.memory_space<vmem>>
    %c0_17 = arith.constant 0 : index
    %c1 = arith.constant 1 : index
    %26 = vector.load %25[%c0_17, %c1] : memref<8x512xbf16, #tpu.memory_space<vmem>>, vector<8x384xbf16>
    %c1_18 = arith.constant 1 : index
    %c0_19 = arith.constant 0 : index
    %c0_20 = arith.constant 0 : index
    %27 = vector.load %arg3[%c1_18, %c0_19, %c0_20] : memref<9x8x8xbf16, #tpu.memory_space<vmem>>, vector<1x8x8xbf16>
    %28 = vector.shape_cast %27 : vector<1x8x8xbf16> to vector<8x8xbf16>
    %cst_21 = arith.constant dense<0.000000e+00> : vector<8x384xf32>
    %29 = tpu.matmul %28, %26, %cst_21 {dimension_numbers = #tpu.dot_dimension_numbers<[1], [0], [0], [1], [0, 0, 1, 1], [], []>} : vector<8x8xbf16>, vector<8x384xbf16>, vector<8x384xf32> -> vector<8x384xf32>
    %30 = arith.addf %23, %29 : vector<8x384xf32>
    %c0_i32_22 = arith.constant 0 : i32
    %c0_i32_23 = arith.constant 0 : i32
    %31 = tpu.memref_slice %arg6[%0, %c0_i32_22, %c0_i32_23] : memref<2x8x512xbf16, #tpu.memory_space<vmem>> -> memref<1x8x512xbf16, #tpu.memory_space<vmem>>
    %32 = tpu.memref_squeeze %31 : memref<1x8x512xbf16, #tpu.memory_space<vmem>> -> memref<8x512xbf16, #tpu.memory_space<vmem>>
    %c0_24 = arith.constant 0 : index
    %c2 = arith.constant 2 : index
    %33 = vector.load %32[%c0_24, %c2] : memref<8x512xbf16, #tpu.memory_space<vmem>>, vector<8x384xbf16>
    %c2_25 = arith.constant 2 : index
    %c0_26 = arith.constant 0 : index
    %c0_27 = arith.constant 0 : index
    %34 = vector.load %arg3[%c2_25, %c0_26, %c0_27] : memref<9x8x8xbf16, #tpu.memory_space<vmem>>, vector<1x8x8xbf16>
    %35 = vector.shape_cast %34 : vector<1x8x8xbf16> to vector<8x8xbf16>
    %cst_28 = arith.constant dense<0.000000e+00> : vector<8x384xf32>
    %36 = tpu.matmul %35, %33, %cst_28 {dimension_numbers = #tpu.dot_dimension_numbers<[1], [0], [0], [1], [0, 0, 1, 1], [], []>} : vector<8x8xbf16>, vector<8x384xbf16>, vector<8x384xf32> -> vector<8x384xf32>
    %37 = arith.addf %30, %36 : vector<8x384xf32>
    %c0_i32_29 = arith.constant 0 : i32
    %c0_i32_30 = arith.constant 0 : i32
    %38 = tpu.memref_slice %arg6[%0, %c0_i32_29, %c0_i32_30] : memref<2x8x512xbf16, #tpu.memory_space<vmem>> -> memref<1x8x512xbf16, #tpu.memory_space<vmem>>
    %39 = tpu.memref_squeeze %38 : memref<1x8x512xbf16, #tpu.memory_space<vmem>> -> memref<8x512xbf16, #tpu.memory_space<vmem>>
    %c0_31 = arith.constant 0 : index
    %c18 = arith.constant 18 : index
    %40 = vector.load %39[%c0_31, %c18] : memref<8x512xbf16, #tpu.memory_space<vmem>>, vector<8x384xbf16>
    %c3 = arith.constant 3 : index
    %c0_32 = arith.constant 0 : index
    %c0_33 = arith.constant 0 : index
    %41 = vector.load %arg3[%c3, %c0_32, %c0_33] : memref<9x8x8xbf16, #tpu.memory_space<vmem>>, vector<1x8x8xbf16>
    %42 = vector.shape_cast %41 : vector<1x8x8xbf16> to vector<8x8xbf16>
    %cst_34 = arith.constant dense<0.000000e+00> : vector<8x384xf32>
    %43 = tpu.matmul %42, %40, %cst_34 {dimension_numbers = #tpu.dot_dimension_numbers<[1], [0], [0], [1], [0, 0, 1, 1], [], []>} : vector<8x8xbf16>, vector<8x384xbf16>, vector<8x384xf32> -> vector<8x384xf32>
    %44 = arith.addf %37, %43 : vector<8x384xf32>
    %c0_i32_35 = arith.constant 0 : i32
    %c0_i32_36 = arith.constant 0 : i32
    %45 = tpu.memref_slice %arg6[%0, %c0_i32_35, %c0_i32_36] : memref<2x8x512xbf16, #tpu.memory_space<vmem>> -> memref<1x8x512xbf16, #tpu.memory_space<vmem>>
    %46 = tpu.memref_squeeze %45 : memref<1x8x512xbf16, #tpu.memory_space<vmem>> -> memref<8x512xbf16, #tpu.memory_space<vmem>>
    %c0_37 = arith.constant 0 : index
    %c19 = arith.constant 19 : index
    %47 = vector.load %46[%c0_37, %c19] : memref<8x512xbf16, #tpu.memory_space<vmem>>, vector<8x384xbf16>
    %c4 = arith.constant 4 : index
    %c0_38 = arith.constant 0 : index
    %c0_39 = arith.constant 0 : index
    %48 = vector.load %arg3[%c4, %c0_38, %c0_39] : memref<9x8x8xbf16, #tpu.memory_space<vmem>>, vector<1x8x8xbf16>
    %49 = vector.shape_cast %48 : vector<1x8x8xbf16> to vector<8x8xbf16>
    %cst_40 = arith.constant dense<0.000000e+00> : vector<8x384xf32>
    %50 = tpu.matmul %49, %47, %cst_40 {dimension_numbers = #tpu.dot_dimension_numbers<[1], [0], [0], [1], [0, 0, 1, 1], [], []>} : vector<8x8xbf16>, vector<8x384xbf16>, vector<8x384xf32> -> vector<8x384xf32>
    %51 = arith.addf %44, %50 : vector<8x384xf32>
    %c0_i32_41 = arith.constant 0 : i32
    %c0_i32_42 = arith.constant 0 : i32
    %52 = tpu.memref_slice %arg6[%0, %c0_i32_41, %c0_i32_42] : memref<2x8x512xbf16, #tpu.memory_space<vmem>> -> memref<1x8x512xbf16, #tpu.memory_space<vmem>>
    %53 = tpu.memref_squeeze %52 : memref<1x8x512xbf16, #tpu.memory_space<vmem>> -> memref<8x512xbf16, #tpu.memory_space<vmem>>
    %c0_43 = arith.constant 0 : index
    %c20 = arith.constant 20 : index
    %54 = vector.load %53[%c0_43, %c20] : memref<8x512xbf16, #tpu.memory_space<vmem>>, vector<8x384xbf16>
    %c5 = arith.constant 5 : index
    %c0_44 = arith.constant 0 : index
    %c0_45 = arith.constant 0 : index
    %55 = vector.load %arg3[%c5, %c0_44, %c0_45] : memref<9x8x8xbf16, #tpu.memory_space<vmem>>, vector<1x8x8xbf16>
    %56 = vector.shape_cast %55 : vector<1x8x8xbf16> to vector<8x8xbf16>
    %cst_46 = arith.constant dense<0.000000e+00> : vector<8x384xf32>
    %57 = tpu.matmul %56, %54, %cst_46 {dimension_numbers = #tpu.dot_dimension_numbers<[1], [0], [0], [1], [0, 0, 1, 1], [], []>} : vector<8x8xbf16>, vector<8x384xbf16>, vector<8x384xf32> -> vector<8x384xf32>
    %58 = arith.addf %51, %57 : vector<8x384xf32>
    %c0_i32_47 = arith.constant 0 : i32
    %c0_i32_48 = arith.constant 0 : i32
    %59 = tpu.memref_slice %arg6[%0, %c0_i32_47, %c0_i32_48] : memref<2x8x512xbf16, #tpu.memory_space<vmem>> -> memref<1x8x512xbf16, #tpu.memory_space<vmem>>
    %60 = tpu.memref_squeeze %59 : memref<1x8x512xbf16, #tpu.memory_space<vmem>> -> memref<8x512xbf16, #tpu.memory_space<vmem>>
    %c0_49 = arith.constant 0 : index
    %c36 = arith.constant 36 : index
    %61 = vector.load %60[%c0_49, %c36] : memref<8x512xbf16, #tpu.memory_space<vmem>>, vector<8x384xbf16>
    %c6 = arith.constant 6 : index
    %c0_50 = arith.constant 0 : index
    %c0_51 = arith.constant 0 : index
    %62 = vector.load %arg3[%c6, %c0_50, %c0_51] : memref<9x8x8xbf16, #tpu.memory_space<vmem>>, vector<1x8x8xbf16>
    %63 = vector.shape_cast %62 : vector<1x8x8xbf16> to vector<8x8xbf16>
    %cst_52 = arith.constant dense<0.000000e+00> : vector<8x384xf32>
    %64 = tpu.matmul %63, %61, %cst_52 {dimension_numbers = #tpu.dot_dimension_numbers<[1], [0], [0], [1], [0, 0, 1, 1], [], []>} : vector<8x8xbf16>, vector<8x384xbf16>, vector<8x384xf32> -> vector<8x384xf32>
    %65 = arith.addf %58, %64 : vector<8x384xf32>
    %c0_i32_53 = arith.constant 0 : i32
    %c0_i32_54 = arith.constant 0 : i32
    %66 = tpu.memref_slice %arg6[%0, %c0_i32_53, %c0_i32_54] : memref<2x8x512xbf16, #tpu.memory_space<vmem>> -> memref<1x8x512xbf16, #tpu.memory_space<vmem>>
    %67 = tpu.memref_squeeze %66 : memref<1x8x512xbf16, #tpu.memory_space<vmem>> -> memref<8x512xbf16, #tpu.memory_space<vmem>>
    %c0_55 = arith.constant 0 : index
    %c37 = arith.constant 37 : index
    %68 = vector.load %67[%c0_55, %c37] : memref<8x512xbf16, #tpu.memory_space<vmem>>, vector<8x384xbf16>
    %c7 = arith.constant 7 : index
    %c0_56 = arith.constant 0 : index
    %c0_57 = arith.constant 0 : index
    %69 = vector.load %arg3[%c7, %c0_56, %c0_57] : memref<9x8x8xbf16, #tpu.memory_space<vmem>>, vector<1x8x8xbf16>
    %70 = vector.shape_cast %69 : vector<1x8x8xbf16> to vector<8x8xbf16>
    %cst_58 = arith.constant dense<0.000000e+00> : vector<8x384xf32>
    %71 = tpu.matmul %70, %68, %cst_58 {dimension_numbers = #tpu.dot_dimension_numbers<[1], [0], [0], [1], [0, 0, 1, 1], [], []>} : vector<8x8xbf16>, vector<8x384xbf16>, vector<8x384xf32> -> vector<8x384xf32>
    %72 = arith.addf %65, %71 : vector<8x384xf32>
    %c0_i32_59 = arith.constant 0 : i32
    %c0_i32_60 = arith.constant 0 : i32
    %73 = tpu.memref_slice %arg6[%0, %c0_i32_59, %c0_i32_60] : memref<2x8x512xbf16, #tpu.memory_space<vmem>> -> memref<1x8x512xbf16, #tpu.memory_space<vmem>>
    %74 = tpu.memref_squeeze %73 : memref<1x8x512xbf16, #tpu.memory_space<vmem>> -> memref<8x512xbf16, #tpu.memory_space<vmem>>
    %c0_61 = arith.constant 0 : index
    %c38 = arith.constant 38 : index
    %75 = vector.load %74[%c0_61, %c38] : memref<8x512xbf16, #tpu.memory_space<vmem>>, vector<8x384xbf16>
    %c8 = arith.constant 8 : index
    %c0_62 = arith.constant 0 : index
    %c0_63 = arith.constant 0 : index
    %76 = vector.load %arg3[%c8, %c0_62, %c0_63] : memref<9x8x8xbf16, #tpu.memory_space<vmem>>, vector<1x8x8xbf16>
    %77 = vector.shape_cast %76 : vector<1x8x8xbf16> to vector<8x8xbf16>
    %cst_64 = arith.constant dense<0.000000e+00> : vector<8x384xf32>
    %78 = tpu.matmul %77, %75, %cst_64 {dimension_numbers = #tpu.dot_dimension_numbers<[1], [0], [0], [1], [0, 0, 1, 1], [], []>} : vector<8x8xbf16>, vector<8x384xbf16>, vector<8x384xf32> -> vector<8x384xf32>
    %79 = arith.addf %72, %78 : vector<8x384xf32>
    %c0_65 = arith.constant 0 : index
    %c0_66 = arith.constant 0 : index
    %80 = vector.load %arg4[%c0_65, %c0_66] : memref<8x4xf32, #tpu.memory_space<vmem>>, vector<8x4xf32>
    %81 = vector.extract_strided_slice %80 {offsets = [0, 1], sizes = [8, 1], strides = [1, 1]} : vector<8x4xf32> to vector<8x1xf32>
    %82 = vector.broadcast %81 : vector<8x1xf32> to vector<8x384xf32>
    %83 = arith.addf %79, %82 : vector<8x384xf32>
    %cst_67 = arith.constant -3.000000e+01 : f32
    %cst_68 = arith.constant 3.000000e+01 : f32
    %84 = vector.broadcast %cst_67 : f32 to vector<8x384xf32>
    %85 = arith.maximumf %84, %83 : vector<8x384xf32>
    %86 = vector.broadcast %cst_68 : f32 to vector<8x384xf32>
    %87 = arith.minimumf %86, %85 : vector<8x384xf32>
    %cst_69 = arith.constant 0.000000e+00 : f32
    %88 = vector.broadcast %cst_69 : f32 to vector<8x384xf32>
    %89 = arith.subf %88, %87 : vector<8x384xf32>
    %90 = math.exp %89 : vector<8x384xf32>
    %cst_70 = arith.constant 1.000000e+00 : f32
    %91 = vector.broadcast %cst_70 : f32 to vector<8x384xf32>
    %92 = arith.addf %91, %90 : vector<8x384xf32>
    %93 = tpu.reciprocal %92 {approx = true} : vector<8x384xf32> -> vector<8x384xf32>
    %94 = vector.extract_strided_slice %80 {offsets = [0, 2], sizes = [8, 1], strides = [1, 1]} : vector<8x4xf32> to vector<8x1xf32>
    %95 = vector.broadcast %94 : vector<8x1xf32> to vector<8x384xf32>
    %96 = arith.mulf %93, %95 : vector<8x384xf32>
    %97 = vector.extract_strided_slice %80 {offsets = [0, 3], sizes = [8, 1], strides = [1, 1]} : vector<8x4xf32> to vector<8x1xf32>
    %98 = vector.broadcast %97 : vector<8x1xf32> to vector<8x384xf32>
    %99 = arith.addf %96, %98 : vector<8x384xf32>
    %100 = arith.truncf %99 : vector<8x384xf32> to vector<8x384xbf16>
    %c0_71 = arith.constant 0 : index
    %c0_72 = arith.constant 0 : index
    %c0_73 = arith.constant 0 : index
    %101 = vector.load %arg5[%c0_71, %c0_72, %c0_73] : memref<1x8x384xbf16, #tpu.memory_space<vmem>>, vector<1x8x384xbf16>
    %102 = vector.shape_cast %101 : vector<1x8x384xbf16> to vector<8x384xbf16>
    %103 = vector.shape_cast %100 : vector<8x384xbf16> to vector<1x8x384xbf16>
    tpu.vector_store %arg5[%c0_71, %c0_72, %c0_73], %103 {strides = array<i32>} : memref<1x8x384xbf16, #tpu.memory_space<vmem>>, vector<1x8x384xbf16>,
    return
  }
  func.func @transform_1(%arg0: i32, %arg1: i32) -> (i32, i32, i32) {
    %c0_i32 = arith.constant 0 : i32
    %c0_i32_0 = arith.constant 0 : i32
    %c0_i32_1 = arith.constant 0 : i32
    %c0_i32_2 = arith.constant 0 : i32
    return %c0_i32, %c0_i32_0, %c0_i32_1 : i32, i32, i32
  }
  func.func @transform_2(%arg0: i32, %arg1: i32) -> (i32, i32) {
    %c0_i32 = arith.constant 0 : i32
    %c0_i32_0 = arith.constant 0 : i32
    %c0_i32_1 = arith.constant 0 : i32
    return %c0_i32, %c0_i32_0 : i32, i32
  }
  func.func @transform_3(%arg0: i32, %arg1: i32) -> (i32, i32, i32) {
    %c0_i32 = arith.constant 0 : i32
    %c0_i32_0 = arith.constant 0 : i32
    return %arg0, %c0_i32, %arg1 : i32, i32, i32
  }
}

module attributes {stable_mosaic.version = 11 : i64} {
  func.func @_conv_kernel(%arg0: i32, %arg1: i32, %arg2: memref<2x8x512xbf16, #tpu.memory_space<any>>, %arg3: memref<2x8x512xbf16, #tpu.memory_space<any>>, %arg4: memref<9x8x8xbf16, #tpu.memory_space<vmem>>, %arg5: memref<9x8x8xbf16, #tpu.memory_space<vmem>>, %arg6: memref<8x4xf32, #tpu.memory_space<vmem>>, %arg7: memref<1x8x384xbf16, #tpu.memory_space<vmem>>, %arg8: memref<2x8x512xbf16, #tpu.memory_space<vmem>>, %arg9: memref<2x8x512xbf16, #tpu.memory_space<vmem>>, %arg10: memref<2x2x!tpu.dma_semaphore, #tpu.memory_space<semaphore_mem>>) attributes {dimension_semantics = [#tpu.dimension_semantics<parallel>, #tpu.dimension_semantics<arbitrary>], iteration_bounds = array<i64: 2, 1>, scalar_prefetch = 0 : i64, scratch_operands = 3 : i64, tpu.core_type = #tpu.core_type<tc>, window_params = [{}, {}, {pipeline_mode = #tpu.pipeline_mode<synchronous>, transform_indices = @transform_2, window_bounds = array<i64: 9, 8, 8>}, {pipeline_mode = #tpu.pipeline_mode<synchronous>, transform_indices = @transform_3, window_bounds = array<i64: 9, 8, 8>}, {pipeline_mode = #tpu.pipeline_mode<synchronous>, transform_indices = @transform_4, window_bounds = array<i64: 8, 4>}, {transform_indices = @transform_5, window_bounds = array<i64: 1, 8, 384>}]} {
    %c1_i32 = arith.constant 1 : i32
    %0 = arith.andi %arg1, %c1_i32 : i32
    %c0_i32 = arith.constant 0 : i32
    %1 = arith.cmpi eq, %arg1, %c0_i32 : i32
    %2 = arith.extui %1 : i1 to i32
    %c0_i32_0 = arith.constant 0 : i32
    %3 = arith.cmpi ne, %2, %c0_i32_0 : i32
    scf.if %3 {
      %c384_i32_149 = arith.constant 384 : i32
      %170 = arith.muli %arg1, %c384_i32_149 : i32
      %171 = tpu.assume_multiple %170, 128 : i32
      %c0_i32_150 = arith.constant 0 : i32
      %c0_i32_151 = arith.constant 0 : i32
      %172 = tpu.memref_slice %arg2[%arg0, %c0_i32_151, %171] : memref<2x8x512xbf16, #tpu.memory_space<any>> -> memref<1x8x512xbf16, #tpu.memory_space<any>>
      %173 = tpu.memref_squeeze %172 : memref<1x8x512xbf16, #tpu.memory_space<any>> -> memref<8x512xbf16, #tpu.memory_space<any>>
      %c0_i32_152 = arith.constant 0 : i32
      %c0_i32_153 = arith.constant 0 : i32
      %174 = tpu.memref_slice %arg8[%0, %c0_i32_152, %c0_i32_153] : memref<2x8x512xbf16, #tpu.memory_space<vmem>> -> memref<1x8x512xbf16, #tpu.memory_space<vmem>>
      %175 = tpu.memref_squeeze %174 : memref<1x8x512xbf16, #tpu.memory_space<vmem>> -> memref<8x512xbf16, #tpu.memory_space<vmem>>
      %176 = tpu.memref_slice %arg10[%c0_i32_150, %0] : memref<2x2x!tpu.dma_semaphore, #tpu.memory_space<semaphore_mem>> -> memref<1x1x!tpu.dma_semaphore, #tpu.memory_space<semaphore_mem>>
      %177 = tpu.memref_squeeze %176 : memref<1x1x!tpu.dma_semaphore, #tpu.memory_space<semaphore_mem>> -> memref<!tpu.dma_semaphore, #tpu.memory_space<semaphore_mem>>
      tpu.enqueue_dma source(%173 : memref<8x512xbf16, #tpu.memory_space<any>>) target(%175 : memref<8x512xbf16, #tpu.memory_space<vmem>>) target_semaphore(%177 : memref<!tpu.dma_semaphore, #tpu.memory_space<semaphore_mem>>)
      %c384_i32_154 = arith.constant 384 : i32
      %178 = arith.muli %arg1, %c384_i32_154 : i32
      %179 = tpu.assume_multiple %178, 128 : i32
      %c1_i32_155 = arith.constant 1 : i32
      %c0_i32_156 = arith.constant 0 : i32
      %180 = tpu.memref_slice %arg3[%arg0, %c0_i32_156, %179] : memref<2x8x512xbf16, #tpu.memory_space<any>> -> memref<1x8x512xbf16, #tpu.memory_space<any>>
      %181 = tpu.memref_squeeze %180 : memref<1x8x512xbf16, #tpu.memory_space<any>> -> memref<8x512xbf16, #tpu.memory_space<any>>
      %c0_i32_157 = arith.constant 0 : i32
      %c0_i32_158 = arith.constant 0 : i32
      %182 = tpu.memref_slice %arg9[%0, %c0_i32_157, %c0_i32_158] : memref<2x8x512xbf16, #tpu.memory_space<vmem>> -> memref<1x8x512xbf16, #tpu.memory_space<vmem>>
      %183 = tpu.memref_squeeze %182 : memref<1x8x512xbf16, #tpu.memory_space<vmem>> -> memref<8x512xbf16, #tpu.memory_space<vmem>>
      %184 = tpu.memref_slice %arg10[%c1_i32_155, %0] : memref<2x2x!tpu.dma_semaphore, #tpu.memory_space<semaphore_mem>> -> memref<1x1x!tpu.dma_semaphore, #tpu.memory_space<semaphore_mem>>
      %185 = tpu.memref_squeeze %184 : memref<1x1x!tpu.dma_semaphore, #tpu.memory_space<semaphore_mem>> -> memref<!tpu.dma_semaphore, #tpu.memory_space<semaphore_mem>>
      tpu.enqueue_dma source(%181 : memref<8x512xbf16, #tpu.memory_space<any>>) target(%183 : memref<8x512xbf16, #tpu.memory_space<vmem>>) target_semaphore(%185 : memref<!tpu.dma_semaphore, #tpu.memory_space<semaphore_mem>>)
    } else {
    }
    %c1_i32_1 = arith.constant 1 : i32
    %4 = arith.addi %arg1, %c1_i32_1 : i32
    %c1_i32_2 = arith.constant 1 : i32
    %5 = arith.cmpi slt, %4, %c1_i32_2 : i32
    %6 = arith.extui %5 : i1 to i32
    %c0_i32_3 = arith.constant 0 : i32
    %7 = arith.cmpi ne, %6, %c0_i32_3 : i32
    scf.if %7 {
      %c1_i32_149 = arith.constant 1 : i32
      %170 = arith.addi %arg1, %c1_i32_149 : i32
      %c1_i32_150 = arith.constant 1 : i32
      %171 = arith.subi %c1_i32_150, %0 : i32
      %c384_i32_151 = arith.constant 384 : i32
      %172 = arith.muli %170, %c384_i32_151 : i32
      %173 = tpu.assume_multiple %172, 128 : i32
      %c0_i32_152 = arith.constant 0 : i32
      %c0_i32_153 = arith.constant 0 : i32
      %174 = tpu.memref_slice %arg2[%arg0, %c0_i32_153, %173] : memref<2x8x512xbf16, #tpu.memory_space<any>> -> memref<1x8x512xbf16, #tpu.memory_space<any>>
      %175 = tpu.memref_squeeze %174 : memref<1x8x512xbf16, #tpu.memory_space<any>> -> memref<8x512xbf16, #tpu.memory_space<any>>
      %c0_i32_154 = arith.constant 0 : i32
      %c0_i32_155 = arith.constant 0 : i32
      %176 = tpu.memref_slice %arg8[%171, %c0_i32_154, %c0_i32_155] : memref<2x8x512xbf16, #tpu.memory_space<vmem>> -> memref<1x8x512xbf16, #tpu.memory_space<vmem>>
      %177 = tpu.memref_squeeze %176 : memref<1x8x512xbf16, #tpu.memory_space<vmem>> -> memref<8x512xbf16, #tpu.memory_space<vmem>>
      %178 = tpu.memref_slice %arg10[%c0_i32_152, %171] : memref<2x2x!tpu.dma_semaphore, #tpu.memory_space<semaphore_mem>> -> memref<1x1x!tpu.dma_semaphore, #tpu.memory_space<semaphore_mem>>
      %179 = tpu.memref_squeeze %178 : memref<1x1x!tpu.dma_semaphore, #tpu.memory_space<semaphore_mem>> -> memref<!tpu.dma_semaphore, #tpu.memory_space<semaphore_mem>>
      tpu.enqueue_dma source(%175 : memref<8x512xbf16, #tpu.memory_space<any>>) target(%177 : memref<8x512xbf16, #tpu.memory_space<vmem>>) target_semaphore(%179 : memref<!tpu.dma_semaphore, #tpu.memory_space<semaphore_mem>>)
      %c1_i32_156 = arith.constant 1 : i32
      %180 = arith.addi %arg1, %c1_i32_156 : i32
      %c1_i32_157 = arith.constant 1 : i32
      %181 = arith.subi %c1_i32_157, %0 : i32
      %c384_i32_158 = arith.constant 384 : i32
      %182 = arith.muli %180, %c384_i32_158 : i32
      %183 = tpu.assume_multiple %182, 128 : i32
      %c1_i32_159 = arith.constant 1 : i32
      %c0_i32_160 = arith.constant 0 : i32
      %184 = tpu.memref_slice %arg3[%arg0, %c0_i32_160, %183] : memref<2x8x512xbf16, #tpu.memory_space<any>> -> memref<1x8x512xbf16, #tpu.memory_space<any>>
      %185 = tpu.memref_squeeze %184 : memref<1x8x512xbf16, #tpu.memory_space<any>> -> memref<8x512xbf16, #tpu.memory_space<any>>
      %c0_i32_161 = arith.constant 0 : i32
      %c0_i32_162 = arith.constant 0 : i32
      %186 = tpu.memref_slice %arg9[%181, %c0_i32_161, %c0_i32_162] : memref<2x8x512xbf16, #tpu.memory_space<vmem>> -> memref<1x8x512xbf16, #tpu.memory_space<vmem>>
      %187 = tpu.memref_squeeze %186 : memref<1x8x512xbf16, #tpu.memory_space<vmem>> -> memref<8x512xbf16, #tpu.memory_space<vmem>>
      %188 = tpu.memref_slice %arg10[%c1_i32_159, %181] : memref<2x2x!tpu.dma_semaphore, #tpu.memory_space<semaphore_mem>> -> memref<1x1x!tpu.dma_semaphore, #tpu.memory_space<semaphore_mem>>
      %189 = tpu.memref_squeeze %188 : memref<1x1x!tpu.dma_semaphore, #tpu.memory_space<semaphore_mem>> -> memref<!tpu.dma_semaphore, #tpu.memory_space<semaphore_mem>>
      tpu.enqueue_dma source(%185 : memref<8x512xbf16, #tpu.memory_space<any>>) target(%187 : memref<8x512xbf16, #tpu.memory_space<vmem>>) target_semaphore(%189 : memref<!tpu.dma_semaphore, #tpu.memory_space<semaphore_mem>>)
    } else {
    }
    %c384_i32 = arith.constant 384 : i32
    %8 = arith.muli %arg1, %c384_i32 : i32
    %9 = tpu.assume_multiple %8, 128 : i32
    %c0_i32_4 = arith.constant 0 : i32
    %c0_i32_5 = arith.constant 0 : i32
    %10 = tpu.memref_slice %arg2[%arg0, %c0_i32_5, %9] : memref<2x8x512xbf16, #tpu.memory_space<any>> -> memref<1x8x512xbf16, #tpu.memory_space<any>>
    %11 = tpu.memref_squeeze %10 : memref<1x8x512xbf16, #tpu.memory_space<any>> -> memref<8x512xbf16, #tpu.memory_space<any>>
    %c0_i32_6 = arith.constant 0 : i32
    %c0_i32_7 = arith.constant 0 : i32
    %12 = tpu.memref_slice %arg8[%0, %c0_i32_6, %c0_i32_7] : memref<2x8x512xbf16, #tpu.memory_space<vmem>> -> memref<1x8x512xbf16, #tpu.memory_space<vmem>>
    %13 = tpu.memref_squeeze %12 : memref<1x8x512xbf16, #tpu.memory_space<vmem>> -> memref<8x512xbf16, #tpu.memory_space<vmem>>
    %14 = tpu.memref_slice %arg10[%c0_i32_4, %0] : memref<2x2x!tpu.dma_semaphore, #tpu.memory_space<semaphore_mem>> -> memref<1x1x!tpu.dma_semaphore, #tpu.memory_space<semaphore_mem>>
    %15 = tpu.memref_squeeze %14 : memref<1x1x!tpu.dma_semaphore, #tpu.memory_space<semaphore_mem>> -> memref<!tpu.dma_semaphore, #tpu.memory_space<semaphore_mem>>
    tpu.wait_dma2 semaphore(%15 : memref<!tpu.dma_semaphore, #tpu.memory_space<semaphore_mem>>) src(%11 : memref<8x512xbf16, #tpu.memory_space<any>>) dst(%13 : memref<8x512xbf16, #tpu.memory_space<vmem>>)
    %c384_i32_8 = arith.constant 384 : i32
    %16 = arith.muli %arg1, %c384_i32_8 : i32
    %17 = tpu.assume_multiple %16, 128 : i32
    %c1_i32_9 = arith.constant 1 : i32
    %c0_i32_10 = arith.constant 0 : i32
    %18 = tpu.memref_slice %arg3[%arg0, %c0_i32_10, %17] : memref<2x8x512xbf16, #tpu.memory_space<any>> -> memref<1x8x512xbf16, #tpu.memory_space<any>>
    %19 = tpu.memref_squeeze %18 : memref<1x8x512xbf16, #tpu.memory_space<any>> -> memref<8x512xbf16, #tpu.memory_space<any>>
    %c0_i32_11 = arith.constant 0 : i32
    %c0_i32_12 = arith.constant 0 : i32
    %20 = tpu.memref_slice %arg9[%0, %c0_i32_11, %c0_i32_12] : memref<2x8x512xbf16, #tpu.memory_space<vmem>> -> memref<1x8x512xbf16, #tpu.memory_space<vmem>>
    %21 = tpu.memref_squeeze %20 : memref<1x8x512xbf16, #tpu.memory_space<vmem>> -> memref<8x512xbf16, #tpu.memory_space<vmem>>
    %22 = tpu.memref_slice %arg10[%c1_i32_9, %0] : memref<2x2x!tpu.dma_semaphore, #tpu.memory_space<semaphore_mem>> -> memref<1x1x!tpu.dma_semaphore, #tpu.memory_space<semaphore_mem>>
    %23 = tpu.memref_squeeze %22 : memref<1x1x!tpu.dma_semaphore, #tpu.memory_space<semaphore_mem>> -> memref<!tpu.dma_semaphore, #tpu.memory_space<semaphore_mem>>
    tpu.wait_dma2 semaphore(%23 : memref<!tpu.dma_semaphore, #tpu.memory_space<semaphore_mem>>) src(%19 : memref<8x512xbf16, #tpu.memory_space<any>>) dst(%21 : memref<8x512xbf16, #tpu.memory_space<vmem>>)
    %cst = arith.constant 0.000000e+00 : f32
    %24 = vector.broadcast %cst : f32 to vector<8x384xf32>
    %c0_i32_13 = arith.constant 0 : i32
    %c0_i32_14 = arith.constant 0 : i32
    %25 = tpu.memref_slice %arg8[%0, %c0_i32_13, %c0_i32_14] : memref<2x8x512xbf16, #tpu.memory_space<vmem>> -> memref<1x8x512xbf16, #tpu.memory_space<vmem>>
    %26 = tpu.memref_squeeze %25 : memref<1x8x512xbf16, #tpu.memory_space<vmem>> -> memref<8x512xbf16, #tpu.memory_space<vmem>>
    %c0 = arith.constant 0 : index
    %c0_15 = arith.constant 0 : index
    %27 = vector.load %26[%c0, %c0_15] : memref<8x512xbf16, #tpu.memory_space<vmem>>, vector<8x384xbf16>
    %c0_16 = arith.constant 0 : index
    %c0_17 = arith.constant 0 : index
    %c0_18 = arith.constant 0 : index
    %28 = vector.load %arg4[%c0_16, %c0_17, %c0_18] : memref<9x8x8xbf16, #tpu.memory_space<vmem>>, vector<1x8x8xbf16>
    %29 = vector.shape_cast %28 : vector<1x8x8xbf16> to vector<8x8xbf16>
    %cst_19 = arith.constant dense<0.000000e+00> : vector<8x384xf32>
    %30 = tpu.matmul %29, %27, %cst_19 {dimension_numbers = #tpu.dot_dimension_numbers<[1], [0], [0], [1], [0, 0, 1, 1], [], []>} : vector<8x8xbf16>, vector<8x384xbf16>, vector<8x384xf32> -> vector<8x384xf32>
    %31 = arith.addf %24, %30 : vector<8x384xf32>
    %c0_i32_20 = arith.constant 0 : i32
    %c0_i32_21 = arith.constant 0 : i32
    %32 = tpu.memref_slice %arg8[%0, %c0_i32_20, %c0_i32_21] : memref<2x8x512xbf16, #tpu.memory_space<vmem>> -> memref<1x8x512xbf16, #tpu.memory_space<vmem>>
    %33 = tpu.memref_squeeze %32 : memref<1x8x512xbf16, #tpu.memory_space<vmem>> -> memref<8x512xbf16, #tpu.memory_space<vmem>>
    %c0_22 = arith.constant 0 : index
    %c1 = arith.constant 1 : index
    %34 = vector.load %33[%c0_22, %c1] : memref<8x512xbf16, #tpu.memory_space<vmem>>, vector<8x384xbf16>
    %c1_23 = arith.constant 1 : index
    %c0_24 = arith.constant 0 : index
    %c0_25 = arith.constant 0 : index
    %35 = vector.load %arg4[%c1_23, %c0_24, %c0_25] : memref<9x8x8xbf16, #tpu.memory_space<vmem>>, vector<1x8x8xbf16>
    %36 = vector.shape_cast %35 : vector<1x8x8xbf16> to vector<8x8xbf16>
    %cst_26 = arith.constant dense<0.000000e+00> : vector<8x384xf32>
    %37 = tpu.matmul %36, %34, %cst_26 {dimension_numbers = #tpu.dot_dimension_numbers<[1], [0], [0], [1], [0, 0, 1, 1], [], []>} : vector<8x8xbf16>, vector<8x384xbf16>, vector<8x384xf32> -> vector<8x384xf32>
    %38 = arith.addf %31, %37 : vector<8x384xf32>
    %c0_i32_27 = arith.constant 0 : i32
    %c0_i32_28 = arith.constant 0 : i32
    %39 = tpu.memref_slice %arg8[%0, %c0_i32_27, %c0_i32_28] : memref<2x8x512xbf16, #tpu.memory_space<vmem>> -> memref<1x8x512xbf16, #tpu.memory_space<vmem>>
    %40 = tpu.memref_squeeze %39 : memref<1x8x512xbf16, #tpu.memory_space<vmem>> -> memref<8x512xbf16, #tpu.memory_space<vmem>>
    %c0_29 = arith.constant 0 : index
    %c2 = arith.constant 2 : index
    %41 = vector.load %40[%c0_29, %c2] : memref<8x512xbf16, #tpu.memory_space<vmem>>, vector<8x384xbf16>
    %c2_30 = arith.constant 2 : index
    %c0_31 = arith.constant 0 : index
    %c0_32 = arith.constant 0 : index
    %42 = vector.load %arg4[%c2_30, %c0_31, %c0_32] : memref<9x8x8xbf16, #tpu.memory_space<vmem>>, vector<1x8x8xbf16>
    %43 = vector.shape_cast %42 : vector<1x8x8xbf16> to vector<8x8xbf16>
    %cst_33 = arith.constant dense<0.000000e+00> : vector<8x384xf32>
    %44 = tpu.matmul %43, %41, %cst_33 {dimension_numbers = #tpu.dot_dimension_numbers<[1], [0], [0], [1], [0, 0, 1, 1], [], []>} : vector<8x8xbf16>, vector<8x384xbf16>, vector<8x384xf32> -> vector<8x384xf32>
    %45 = arith.addf %38, %44 : vector<8x384xf32>
    %c0_i32_34 = arith.constant 0 : i32
    %c0_i32_35 = arith.constant 0 : i32
    %46 = tpu.memref_slice %arg8[%0, %c0_i32_34, %c0_i32_35] : memref<2x8x512xbf16, #tpu.memory_space<vmem>> -> memref<1x8x512xbf16, #tpu.memory_space<vmem>>
    %47 = tpu.memref_squeeze %46 : memref<1x8x512xbf16, #tpu.memory_space<vmem>> -> memref<8x512xbf16, #tpu.memory_space<vmem>>
    %c0_36 = arith.constant 0 : index
    %c18 = arith.constant 18 : index
    %48 = vector.load %47[%c0_36, %c18] : memref<8x512xbf16, #tpu.memory_space<vmem>>, vector<8x384xbf16>
    %c3 = arith.constant 3 : index
    %c0_37 = arith.constant 0 : index
    %c0_38 = arith.constant 0 : index
    %49 = vector.load %arg4[%c3, %c0_37, %c0_38] : memref<9x8x8xbf16, #tpu.memory_space<vmem>>, vector<1x8x8xbf16>
    %50 = vector.shape_cast %49 : vector<1x8x8xbf16> to vector<8x8xbf16>
    %cst_39 = arith.constant dense<0.000000e+00> : vector<8x384xf32>
    %51 = tpu.matmul %50, %48, %cst_39 {dimension_numbers = #tpu.dot_dimension_numbers<[1], [0], [0], [1], [0, 0, 1, 1], [], []>} : vector<8x8xbf16>, vector<8x384xbf16>, vector<8x384xf32> -> vector<8x384xf32>
    %52 = arith.addf %45, %51 : vector<8x384xf32>
    %c0_i32_40 = arith.constant 0 : i32
    %c0_i32_41 = arith.constant 0 : i32
    %53 = tpu.memref_slice %arg8[%0, %c0_i32_40, %c0_i32_41] : memref<2x8x512xbf16, #tpu.memory_space<vmem>> -> memref<1x8x512xbf16, #tpu.memory_space<vmem>>
    %54 = tpu.memref_squeeze %53 : memref<1x8x512xbf16, #tpu.memory_space<vmem>> -> memref<8x512xbf16, #tpu.memory_space<vmem>>
    %c0_42 = arith.constant 0 : index
    %c19 = arith.constant 19 : index
    %55 = vector.load %54[%c0_42, %c19] : memref<8x512xbf16, #tpu.memory_space<vmem>>, vector<8x384xbf16>
    %c4 = arith.constant 4 : index
    %c0_43 = arith.constant 0 : index
    %c0_44 = arith.constant 0 : index
    %56 = vector.load %arg4[%c4, %c0_43, %c0_44] : memref<9x8x8xbf16, #tpu.memory_space<vmem>>, vector<1x8x8xbf16>
    %57 = vector.shape_cast %56 : vector<1x8x8xbf16> to vector<8x8xbf16>
    %cst_45 = arith.constant dense<0.000000e+00> : vector<8x384xf32>
    %58 = tpu.matmul %57, %55, %cst_45 {dimension_numbers = #tpu.dot_dimension_numbers<[1], [0], [0], [1], [0, 0, 1, 1], [], []>} : vector<8x8xbf16>, vector<8x384xbf16>, vector<8x384xf32> -> vector<8x384xf32>
    %59 = arith.addf %52, %58 : vector<8x384xf32>
    %c0_i32_46 = arith.constant 0 : i32
    %c0_i32_47 = arith.constant 0 : i32
    %60 = tpu.memref_slice %arg8[%0, %c0_i32_46, %c0_i32_47] : memref<2x8x512xbf16, #tpu.memory_space<vmem>> -> memref<1x8x512xbf16, #tpu.memory_space<vmem>>
    %61 = tpu.memref_squeeze %60 : memref<1x8x512xbf16, #tpu.memory_space<vmem>> -> memref<8x512xbf16, #tpu.memory_space<vmem>>
    %c0_48 = arith.constant 0 : index
    %c20 = arith.constant 20 : index
    %62 = vector.load %61[%c0_48, %c20] : memref<8x512xbf16, #tpu.memory_space<vmem>>, vector<8x384xbf16>
    %c5 = arith.constant 5 : index
    %c0_49 = arith.constant 0 : index
    %c0_50 = arith.constant 0 : index
    %63 = vector.load %arg4[%c5, %c0_49, %c0_50] : memref<9x8x8xbf16, #tpu.memory_space<vmem>>, vector<1x8x8xbf16>
    %64 = vector.shape_cast %63 : vector<1x8x8xbf16> to vector<8x8xbf16>
    %cst_51 = arith.constant dense<0.000000e+00> : vector<8x384xf32>
    %65 = tpu.matmul %64, %62, %cst_51 {dimension_numbers = #tpu.dot_dimension_numbers<[1], [0], [0], [1], [0, 0, 1, 1], [], []>} : vector<8x8xbf16>, vector<8x384xbf16>, vector<8x384xf32> -> vector<8x384xf32>
    %66 = arith.addf %59, %65 : vector<8x384xf32>
    %c0_i32_52 = arith.constant 0 : i32
    %c0_i32_53 = arith.constant 0 : i32
    %67 = tpu.memref_slice %arg8[%0, %c0_i32_52, %c0_i32_53] : memref<2x8x512xbf16, #tpu.memory_space<vmem>> -> memref<1x8x512xbf16, #tpu.memory_space<vmem>>
    %68 = tpu.memref_squeeze %67 : memref<1x8x512xbf16, #tpu.memory_space<vmem>> -> memref<8x512xbf16, #tpu.memory_space<vmem>>
    %c0_54 = arith.constant 0 : index
    %c36 = arith.constant 36 : index
    %69 = vector.load %68[%c0_54, %c36] : memref<8x512xbf16, #tpu.memory_space<vmem>>, vector<8x384xbf16>
    %c6 = arith.constant 6 : index
    %c0_55 = arith.constant 0 : index
    %c0_56 = arith.constant 0 : index
    %70 = vector.load %arg4[%c6, %c0_55, %c0_56] : memref<9x8x8xbf16, #tpu.memory_space<vmem>>, vector<1x8x8xbf16>
    %71 = vector.shape_cast %70 : vector<1x8x8xbf16> to vector<8x8xbf16>
    %cst_57 = arith.constant dense<0.000000e+00> : vector<8x384xf32>
    %72 = tpu.matmul %71, %69, %cst_57 {dimension_numbers = #tpu.dot_dimension_numbers<[1], [0], [0], [1], [0, 0, 1, 1], [], []>} : vector<8x8xbf16>, vector<8x384xbf16>, vector<8x384xf32> -> vector<8x384xf32>
    %73 = arith.addf %66, %72 : vector<8x384xf32>
    %c0_i32_58 = arith.constant 0 : i32
    %c0_i32_59 = arith.constant 0 : i32
    %74 = tpu.memref_slice %arg8[%0, %c0_i32_58, %c0_i32_59] : memref<2x8x512xbf16, #tpu.memory_space<vmem>> -> memref<1x8x512xbf16, #tpu.memory_space<vmem>>
    %75 = tpu.memref_squeeze %74 : memref<1x8x512xbf16, #tpu.memory_space<vmem>> -> memref<8x512xbf16, #tpu.memory_space<vmem>>
    %c0_60 = arith.constant 0 : index
    %c37 = arith.constant 37 : index
    %76 = vector.load %75[%c0_60, %c37] : memref<8x512xbf16, #tpu.memory_space<vmem>>, vector<8x384xbf16>
    %c7 = arith.constant 7 : index
    %c0_61 = arith.constant 0 : index
    %c0_62 = arith.constant 0 : index
    %77 = vector.load %arg4[%c7, %c0_61, %c0_62] : memref<9x8x8xbf16, #tpu.memory_space<vmem>>, vector<1x8x8xbf16>
    %78 = vector.shape_cast %77 : vector<1x8x8xbf16> to vector<8x8xbf16>
    %cst_63 = arith.constant dense<0.000000e+00> : vector<8x384xf32>
    %79 = tpu.matmul %78, %76, %cst_63 {dimension_numbers = #tpu.dot_dimension_numbers<[1], [0], [0], [1], [0, 0, 1, 1], [], []>} : vector<8x8xbf16>, vector<8x384xbf16>, vector<8x384xf32> -> vector<8x384xf32>
    %80 = arith.addf %73, %79 : vector<8x384xf32>
    %c0_i32_64 = arith.constant 0 : i32
    %c0_i32_65 = arith.constant 0 : i32
    %81 = tpu.memref_slice %arg8[%0, %c0_i32_64, %c0_i32_65] : memref<2x8x512xbf16, #tpu.memory_space<vmem>> -> memref<1x8x512xbf16, #tpu.memory_space<vmem>>
    %82 = tpu.memref_squeeze %81 : memref<1x8x512xbf16, #tpu.memory_space<vmem>> -> memref<8x512xbf16, #tpu.memory_space<vmem>>
    %c0_66 = arith.constant 0 : index
    %c38 = arith.constant 38 : index
    %83 = vector.load %82[%c0_66, %c38] : memref<8x512xbf16, #tpu.memory_space<vmem>>, vector<8x384xbf16>
    %c8 = arith.constant 8 : index
    %c0_67 = arith.constant 0 : index
    %c0_68 = arith.constant 0 : index
    %84 = vector.load %arg4[%c8, %c0_67, %c0_68] : memref<9x8x8xbf16, #tpu.memory_space<vmem>>, vector<1x8x8xbf16>
    %85 = vector.shape_cast %84 : vector<1x8x8xbf16> to vector<8x8xbf16>
    %cst_69 = arith.constant dense<0.000000e+00> : vector<8x384xf32>
    %86 = tpu.matmul %85, %83, %cst_69 {dimension_numbers = #tpu.dot_dimension_numbers<[1], [0], [0], [1], [0, 0, 1, 1], [], []>} : vector<8x8xbf16>, vector<8x384xbf16>, vector<8x384xf32> -> vector<8x384xf32>
    %87 = arith.addf %80, %86 : vector<8x384xf32>
    %c0_i32_70 = arith.constant 0 : i32
    %c0_i32_71 = arith.constant 0 : i32
    %88 = tpu.memref_slice %arg9[%0, %c0_i32_70, %c0_i32_71] : memref<2x8x512xbf16, #tpu.memory_space<vmem>> -> memref<1x8x512xbf16, #tpu.memory_space<vmem>>
    %89 = tpu.memref_squeeze %88 : memref<1x8x512xbf16, #tpu.memory_space<vmem>> -> memref<8x512xbf16, #tpu.memory_space<vmem>>
    %c0_72 = arith.constant 0 : index
    %c0_73 = arith.constant 0 : index
    %90 = vector.load %89[%c0_72, %c0_73] : memref<8x512xbf16, #tpu.memory_space<vmem>>, vector<8x384xbf16>
    %c0_74 = arith.constant 0 : index
    %c0_75 = arith.constant 0 : index
    %c0_76 = arith.constant 0 : index
    %91 = vector.load %arg5[%c0_74, %c0_75, %c0_76] : memref<9x8x8xbf16, #tpu.memory_space<vmem>>, vector<1x8x8xbf16>
    %92 = vector.shape_cast %91 : vector<1x8x8xbf16> to vector<8x8xbf16>
    %cst_77 = arith.constant dense<0.000000e+00> : vector<8x384xf32>
    %93 = tpu.matmul %92, %90, %cst_77 {dimension_numbers = #tpu.dot_dimension_numbers<[1], [0], [0], [1], [0, 0, 1, 1], [], []>} : vector<8x8xbf16>, vector<8x384xbf16>, vector<8x384xf32> -> vector<8x384xf32>
    %94 = arith.addf %87, %93 : vector<8x384xf32>
    %c0_i32_78 = arith.constant 0 : i32
    %c0_i32_79 = arith.constant 0 : i32
    %95 = tpu.memref_slice %arg9[%0, %c0_i32_78, %c0_i32_79] : memref<2x8x512xbf16, #tpu.memory_space<vmem>> -> memref<1x8x512xbf16, #tpu.memory_space<vmem>>
    %96 = tpu.memref_squeeze %95 : memref<1x8x512xbf16, #tpu.memory_space<vmem>> -> memref<8x512xbf16, #tpu.memory_space<vmem>>
    %c0_80 = arith.constant 0 : index
    %c1_81 = arith.constant 1 : index
    %97 = vector.load %96[%c0_80, %c1_81] : memref<8x512xbf16, #tpu.memory_space<vmem>>, vector<8x384xbf16>
    %c1_82 = arith.constant 1 : index
    %c0_83 = arith.constant 0 : index
    %c0_84 = arith.constant 0 : index
    %98 = vector.load %arg5[%c1_82, %c0_83, %c0_84] : memref<9x8x8xbf16, #tpu.memory_space<vmem>>, vector<1x8x8xbf16>
    %99 = vector.shape_cast %98 : vector<1x8x8xbf16> to vector<8x8xbf16>
    %cst_85 = arith.constant dense<0.000000e+00> : vector<8x384xf32>
    %100 = tpu.matmul %99, %97, %cst_85 {dimension_numbers = #tpu.dot_dimension_numbers<[1], [0], [0], [1], [0, 0, 1, 1], [], []>} : vector<8x8xbf16>, vector<8x384xbf16>, vector<8x384xf32> -> vector<8x384xf32>
    %101 = arith.addf %94, %100 : vector<8x384xf32>
    %c0_i32_86 = arith.constant 0 : i32
    %c0_i32_87 = arith.constant 0 : i32
    %102 = tpu.memref_slice %arg9[%0, %c0_i32_86, %c0_i32_87] : memref<2x8x512xbf16, #tpu.memory_space<vmem>> -> memref<1x8x512xbf16, #tpu.memory_space<vmem>>
    %103 = tpu.memref_squeeze %102 : memref<1x8x512xbf16, #tpu.memory_space<vmem>> -> memref<8x512xbf16, #tpu.memory_space<vmem>>
    %c0_88 = arith.constant 0 : index
    %c2_89 = arith.constant 2 : index
    %104 = vector.load %103[%c0_88, %c2_89] : memref<8x512xbf16, #tpu.memory_space<vmem>>, vector<8x384xbf16>
    %c2_90 = arith.constant 2 : index
    %c0_91 = arith.constant 0 : index
    %c0_92 = arith.constant 0 : index
    %105 = vector.load %arg5[%c2_90, %c0_91, %c0_92] : memref<9x8x8xbf16, #tpu.memory_space<vmem>>, vector<1x8x8xbf16>
    %106 = vector.shape_cast %105 : vector<1x8x8xbf16> to vector<8x8xbf16>
    %cst_93 = arith.constant dense<0.000000e+00> : vector<8x384xf32>
    %107 = tpu.matmul %106, %104, %cst_93 {dimension_numbers = #tpu.dot_dimension_numbers<[1], [0], [0], [1], [0, 0, 1, 1], [], []>} : vector<8x8xbf16>, vector<8x384xbf16>, vector<8x384xf32> -> vector<8x384xf32>
    %108 = arith.addf %101, %107 : vector<8x384xf32>
    %c0_i32_94 = arith.constant 0 : i32
    %c0_i32_95 = arith.constant 0 : i32
    %109 = tpu.memref_slice %arg9[%0, %c0_i32_94, %c0_i32_95] : memref<2x8x512xbf16, #tpu.memory_space<vmem>> -> memref<1x8x512xbf16, #tpu.memory_space<vmem>>
    %110 = tpu.memref_squeeze %109 : memref<1x8x512xbf16, #tpu.memory_space<vmem>> -> memref<8x512xbf16, #tpu.memory_space<vmem>>
    %c0_96 = arith.constant 0 : index
    %c18_97 = arith.constant 18 : index
    %111 = vector.load %110[%c0_96, %c18_97] : memref<8x512xbf16, #tpu.memory_space<vmem>>, vector<8x384xbf16>
    %c3_98 = arith.constant 3 : index
    %c0_99 = arith.constant 0 : index
    %c0_100 = arith.constant 0 : index
    %112 = vector.load %arg5[%c3_98, %c0_99, %c0_100] : memref<9x8x8xbf16, #tpu.memory_space<vmem>>, vector<1x8x8xbf16>
    %113 = vector.shape_cast %112 : vector<1x8x8xbf16> to vector<8x8xbf16>
    %cst_101 = arith.constant dense<0.000000e+00> : vector<8x384xf32>
    %114 = tpu.matmul %113, %111, %cst_101 {dimension_numbers = #tpu.dot_dimension_numbers<[1], [0], [0], [1], [0, 0, 1, 1], [], []>} : vector<8x8xbf16>, vector<8x384xbf16>, vector<8x384xf32> -> vector<8x384xf32>
    %115 = arith.addf %108, %114 : vector<8x384xf32>
    %c0_i32_102 = arith.constant 0 : i32
    %c0_i32_103 = arith.constant 0 : i32
    %116 = tpu.memref_slice %arg9[%0, %c0_i32_102, %c0_i32_103] : memref<2x8x512xbf16, #tpu.memory_space<vmem>> -> memref<1x8x512xbf16, #tpu.memory_space<vmem>>
    %117 = tpu.memref_squeeze %116 : memref<1x8x512xbf16, #tpu.memory_space<vmem>> -> memref<8x512xbf16, #tpu.memory_space<vmem>>
    %c0_104 = arith.constant 0 : index
    %c19_105 = arith.constant 19 : index
    %118 = vector.load %117[%c0_104, %c19_105] : memref<8x512xbf16, #tpu.memory_space<vmem>>, vector<8x384xbf16>
    %c4_106 = arith.constant 4 : index
    %c0_107 = arith.constant 0 : index
    %c0_108 = arith.constant 0 : index
    %119 = vector.load %arg5[%c4_106, %c0_107, %c0_108] : memref<9x8x8xbf16, #tpu.memory_space<vmem>>, vector<1x8x8xbf16>
    %120 = vector.shape_cast %119 : vector<1x8x8xbf16> to vector<8x8xbf16>
    %cst_109 = arith.constant dense<0.000000e+00> : vector<8x384xf32>
    %121 = tpu.matmul %120, %118, %cst_109 {dimension_numbers = #tpu.dot_dimension_numbers<[1], [0], [0], [1], [0, 0, 1, 1], [], []>} : vector<8x8xbf16>, vector<8x384xbf16>, vector<8x384xf32> -> vector<8x384xf32>
    %122 = arith.addf %115, %121 : vector<8x384xf32>
    %c0_i32_110 = arith.constant 0 : i32
    %c0_i32_111 = arith.constant 0 : i32
    %123 = tpu.memref_slice %arg9[%0, %c0_i32_110, %c0_i32_111] : memref<2x8x512xbf16, #tpu.memory_space<vmem>> -> memref<1x8x512xbf16, #tpu.memory_space<vmem>>
    %124 = tpu.memref_squeeze %123 : memref<1x8x512xbf16, #tpu.memory_space<vmem>> -> memref<8x512xbf16, #tpu.memory_space<vmem>>
    %c0_112 = arith.constant 0 : index
    %c20_113 = arith.constant 20 : index
    %125 = vector.load %124[%c0_112, %c20_113] : memref<8x512xbf16, #tpu.memory_space<vmem>>, vector<8x384xbf16>
    %c5_114 = arith.constant 5 : index
    %c0_115 = arith.constant 0 : index
    %c0_116 = arith.constant 0 : index
    %126 = vector.load %arg5[%c5_114, %c0_115, %c0_116] : memref<9x8x8xbf16, #tpu.memory_space<vmem>>, vector<1x8x8xbf16>
    %127 = vector.shape_cast %126 : vector<1x8x8xbf16> to vector<8x8xbf16>
    %cst_117 = arith.constant dense<0.000000e+00> : vector<8x384xf32>
    %128 = tpu.matmul %127, %125, %cst_117 {dimension_numbers = #tpu.dot_dimension_numbers<[1], [0], [0], [1], [0, 0, 1, 1], [], []>} : vector<8x8xbf16>, vector<8x384xbf16>, vector<8x384xf32> -> vector<8x384xf32>
    %129 = arith.addf %122, %128 : vector<8x384xf32>
    %c0_i32_118 = arith.constant 0 : i32
    %c0_i32_119 = arith.constant 0 : i32
    %130 = tpu.memref_slice %arg9[%0, %c0_i32_118, %c0_i32_119] : memref<2x8x512xbf16, #tpu.memory_space<vmem>> -> memref<1x8x512xbf16, #tpu.memory_space<vmem>>
    %131 = tpu.memref_squeeze %130 : memref<1x8x512xbf16, #tpu.memory_space<vmem>> -> memref<8x512xbf16, #tpu.memory_space<vmem>>
    %c0_120 = arith.constant 0 : index
    %c36_121 = arith.constant 36 : index
    %132 = vector.load %131[%c0_120, %c36_121] : memref<8x512xbf16, #tpu.memory_space<vmem>>, vector<8x384xbf16>
    %c6_122 = arith.constant 6 : index
    %c0_123 = arith.constant 0 : index
    %c0_124 = arith.constant 0 : index
    %133 = vector.load %arg5[%c6_122, %c0_123, %c0_124] : memref<9x8x8xbf16, #tpu.memory_space<vmem>>, vector<1x8x8xbf16>
    %134 = vector.shape_cast %133 : vector<1x8x8xbf16> to vector<8x8xbf16>
    %cst_125 = arith.constant dense<0.000000e+00> : vector<8x384xf32>
    %135 = tpu.matmul %134, %132, %cst_125 {dimension_numbers = #tpu.dot_dimension_numbers<[1], [0], [0], [1], [0, 0, 1, 1], [], []>} : vector<8x8xbf16>, vector<8x384xbf16>, vector<8x384xf32> -> vector<8x384xf32>
    %136 = arith.addf %129, %135 : vector<8x384xf32>
    %c0_i32_126 = arith.constant 0 : i32
    %c0_i32_127 = arith.constant 0 : i32
    %137 = tpu.memref_slice %arg9[%0, %c0_i32_126, %c0_i32_127] : memref<2x8x512xbf16, #tpu.memory_space<vmem>> -> memref<1x8x512xbf16, #tpu.memory_space<vmem>>
    %138 = tpu.memref_squeeze %137 : memref<1x8x512xbf16, #tpu.memory_space<vmem>> -> memref<8x512xbf16, #tpu.memory_space<vmem>>
    %c0_128 = arith.constant 0 : index
    %c37_129 = arith.constant 37 : index
    %139 = vector.load %138[%c0_128, %c37_129] : memref<8x512xbf16, #tpu.memory_space<vmem>>, vector<8x384xbf16>
    %c7_130 = arith.constant 7 : index
    %c0_131 = arith.constant 0 : index
    %c0_132 = arith.constant 0 : index
    %140 = vector.load %arg5[%c7_130, %c0_131, %c0_132] : memref<9x8x8xbf16, #tpu.memory_space<vmem>>, vector<1x8x8xbf16>
    %141 = vector.shape_cast %140 : vector<1x8x8xbf16> to vector<8x8xbf16>
    %cst_133 = arith.constant dense<0.000000e+00> : vector<8x384xf32>
    %142 = tpu.matmul %141, %139, %cst_133 {dimension_numbers = #tpu.dot_dimension_numbers<[1], [0], [0], [1], [0, 0, 1, 1], [], []>} : vector<8x8xbf16>, vector<8x384xbf16>, vector<8x384xf32> -> vector<8x384xf32>
    %143 = arith.addf %136, %142 : vector<8x384xf32>
    %c0_i32_134 = arith.constant 0 : i32
    %c0_i32_135 = arith.constant 0 : i32
    %144 = tpu.memref_slice %arg9[%0, %c0_i32_134, %c0_i32_135] : memref<2x8x512xbf16, #tpu.memory_space<vmem>> -> memref<1x8x512xbf16, #tpu.memory_space<vmem>>
    %145 = tpu.memref_squeeze %144 : memref<1x8x512xbf16, #tpu.memory_space<vmem>> -> memref<8x512xbf16, #tpu.memory_space<vmem>>
    %c0_136 = arith.constant 0 : index
    %c38_137 = arith.constant 38 : index
    %146 = vector.load %145[%c0_136, %c38_137] : memref<8x512xbf16, #tpu.memory_space<vmem>>, vector<8x384xbf16>
    %c8_138 = arith.constant 8 : index
    %c0_139 = arith.constant 0 : index
    %c0_140 = arith.constant 0 : index
    %147 = vector.load %arg5[%c8_138, %c0_139, %c0_140] : memref<9x8x8xbf16, #tpu.memory_space<vmem>>, vector<1x8x8xbf16>
    %148 = vector.shape_cast %147 : vector<1x8x8xbf16> to vector<8x8xbf16>
    %cst_141 = arith.constant dense<0.000000e+00> : vector<8x384xf32>
    %149 = tpu.matmul %148, %146, %cst_141 {dimension_numbers = #tpu.dot_dimension_numbers<[1], [0], [0], [1], [0, 0, 1, 1], [], []>} : vector<8x8xbf16>, vector<8x384xbf16>, vector<8x384xf32> -> vector<8x384xf32>
    %150 = arith.addf %143, %149 : vector<8x384xf32>
    %c0_142 = arith.constant 0 : index
    %c0_143 = arith.constant 0 : index
    %151 = vector.load %arg6[%c0_142, %c0_143] : memref<8x4xf32, #tpu.memory_space<vmem>>, vector<8x4xf32>
    %152 = vector.extract_strided_slice %151 {offsets = [0, 1], sizes = [8, 1], strides = [1, 1]} : vector<8x4xf32> to vector<8x1xf32>
    %153 = vector.broadcast %152 : vector<8x1xf32> to vector<8x384xf32>
    %154 = arith.addf %150, %153 : vector<8x384xf32>
    %cst_144 = arith.constant 0.000000e+00 : f32
    %155 = vector.broadcast %cst_144 : f32 to vector<8x384xf32>
    %156 = arith.cmpf ogt, %154, %155 : vector<8x384xf32>
    %cst_145 = arith.constant 0.00999999977 : f32
    %157 = vector.broadcast %cst_145 : f32 to vector<8x384xf32>
    %158 = arith.mulf %157, %154 : vector<8x384xf32>
    %159 = arith.select %156, %154, %158 : vector<8x384xi1>, vector<8x384xf32>
    %160 = vector.extract_strided_slice %151 {offsets = [0, 2], sizes = [8, 1], strides = [1, 1]} : vector<8x4xf32> to vector<8x1xf32>
    %161 = vector.broadcast %160 : vector<8x1xf32> to vector<8x384xf32>
    %162 = arith.mulf %159, %161 : vector<8x384xf32>
    %163 = vector.extract_strided_slice %151 {offsets = [0, 3], sizes = [8, 1], strides = [1, 1]} : vector<8x4xf32> to vector<8x1xf32>
    %164 = vector.broadcast %163 : vector<8x1xf32> to vector<8x384xf32>
    %165 = arith.addf %162, %164 : vector<8x384xf32>
    %166 = arith.truncf %165 : vector<8x384xf32> to vector<8x384xbf16>
    %c0_146 = arith.constant 0 : index
    %c0_147 = arith.constant 0 : index
    %c0_148 = arith.constant 0 : index
    %167 = vector.load %arg7[%c0_146, %c0_147, %c0_148] : memref<1x8x384xbf16, #tpu.memory_space<vmem>>, vector<1x8x384xbf16>
    %168 = vector.shape_cast %167 : vector<1x8x384xbf16> to vector<8x384xbf16>
    %169 = vector.shape_cast %166 : vector<8x384xbf16> to vector<1x8x384xbf16>
    tpu.vector_store %arg7[%c0_146, %c0_147, %c0_148], %169 {strides = array<i32>} : memref<1x8x384xbf16, #tpu.memory_space<vmem>>, vector<1x8x384xbf16>,
    return
  }
  func.func @transform_2(%arg0: i32, %arg1: i32) -> (i32, i32, i32) {
    %c0_i32 = arith.constant 0 : i32
    %c0_i32_0 = arith.constant 0 : i32
    %c0_i32_1 = arith.constant 0 : i32
    %c0_i32_2 = arith.constant 0 : i32
    return %c0_i32, %c0_i32_0, %c0_i32_1 : i32, i32, i32
  }
  func.func @transform_3(%arg0: i32, %arg1: i32) -> (i32, i32, i32) {
    %c0_i32 = arith.constant 0 : i32
    %c0_i32_0 = arith.constant 0 : i32
    %c0_i32_1 = arith.constant 0 : i32
    %c0_i32_2 = arith.constant 0 : i32
    return %c0_i32, %c0_i32_0, %c0_i32_1 : i32, i32, i32
  }
  func.func @transform_4(%arg0: i32, %arg1: i32) -> (i32, i32) {
    %c0_i32 = arith.constant 0 : i32
    %c0_i32_0 = arith.constant 0 : i32
    %c0_i32_1 = arith.constant 0 : i32
    return %c0_i32, %c0_i32_0 : i32, i32
  }
  func.func @transform_5(%arg0: i32, %arg1: i32) -> (i32, i32, i32) {
    %c0_i32 = arith.constant 0 : i32
    %c0_i32_0 = arith.constant 0 : i32
    return %arg0, %c0_i32, %arg1 : i32, i32, i32
  }
}

module attributes {stable_mosaic.version = 11 : i64} {
  func.func @_conv_kernel(%arg0: i32, %arg1: i32, %arg2: memref<2x8x512xbf16, #tpu.memory_space<any>>, %arg3: memref<9x8x8xbf16, #tpu.memory_space<vmem>>, %arg4: memref<8x4xf32, #tpu.memory_space<vmem>>, %arg5: memref<1x8x384xbf16, #tpu.memory_space<vmem>>, %arg6: memref<2x8x512xbf16, #tpu.memory_space<vmem>>, %arg7: memref<1x2x!tpu.dma_semaphore, #tpu.memory_space<semaphore_mem>>) attributes {dimension_semantics = [#tpu.dimension_semantics<parallel>, #tpu.dimension_semantics<arbitrary>], iteration_bounds = array<i64: 2, 1>, scalar_prefetch = 0 : i64, scratch_operands = 2 : i64, tpu.core_type = #tpu.core_type<tc>, window_params = [{}, {pipeline_mode = #tpu.pipeline_mode<synchronous>, transform_indices = @transform_1, window_bounds = array<i64: 9, 8, 8>}, {pipeline_mode = #tpu.pipeline_mode<synchronous>, transform_indices = @transform_2, window_bounds = array<i64: 8, 4>}, {transform_indices = @transform_3, window_bounds = array<i64: 1, 8, 384>}]} {
    %c1_i32 = arith.constant 1 : i32
    %0 = arith.andi %arg1, %c1_i32 : i32
    %c0_i32 = arith.constant 0 : i32
    %1 = arith.cmpi eq, %arg1, %c0_i32 : i32
    %2 = arith.extui %1 : i1 to i32
    %c0_i32_0 = arith.constant 0 : i32
    %3 = arith.cmpi ne, %2, %c0_i32_0 : i32
    scf.if %3 {
      %c384_i32_72 = arith.constant 384 : i32
      %96 = arith.muli %arg1, %c384_i32_72 : i32
      %97 = tpu.assume_multiple %96, 128 : i32
      %c0_i32_73 = arith.constant 0 : i32
      %c0_i32_74 = arith.constant 0 : i32
      %98 = tpu.memref_slice %arg2[%arg0, %c0_i32_74, %97] : memref<2x8x512xbf16, #tpu.memory_space<any>> -> memref<1x8x512xbf16, #tpu.memory_space<any>>
      %99 = tpu.memref_squeeze %98 : memref<1x8x512xbf16, #tpu.memory_space<any>> -> memref<8x512xbf16, #tpu.memory_space<any>>
      %c0_i32_75 = arith.constant 0 : i32
      %c0_i32_76 = arith.constant 0 : i32
      %100 = tpu.memref_slice %arg6[%0, %c0_i32_75, %c0_i32_76] : memref<2x8x512xbf16, #tpu.memory_space<vmem>> -> memref<1x8x512xbf16, #tpu.memory_space<vmem>>
      %101 = tpu.memref_squeeze %100 : memref<1x8x512xbf16, #tpu.memory_space<vmem>> -> memref<8x512xbf16, #tpu.memory_space<vmem>>
      %102 = tpu.memref_slice %arg7[%c0_i32_73, %0] : memref<1x2x!tpu.dma_semaphore, #tpu.memory_space<semaphore_mem>> -> memref<1x1x!tpu.dma_semaphore, #tpu.memory_space<semaphore_mem>>
      %103 = tpu.memref_squeeze %102 : memref<1x1x!tpu.dma_semaphore, #tpu.memory_space<semaphore_mem>> -> memref<!tpu.dma_semaphore, #tpu.memory_space<semaphore_mem>>
      tpu.enqueue_dma source(%99 : memref<8x512xbf16, #tpu.memory_space<any>>) target(%101 : memref<8x512xbf16, #tpu.memory_space<vmem>>) target_semaphore(%103 : memref<!tpu.dma_semaphore, #tpu.memory_space<semaphore_mem>>)
    } else {
    }
    %c1_i32_1 = arith.constant 1 : i32
    %4 = arith.addi %arg1, %c1_i32_1 : i32
    %c1_i32_2 = arith.constant 1 : i32
    %5 = arith.cmpi slt, %4, %c1_i32_2 : i32
    %6 = arith.extui %5 : i1 to i32
    %c0_i32_3 = arith.constant 0 : i32
    %7 = arith.cmpi ne, %6, %c0_i32_3 : i32
    scf.if %7 {
      %c1_i32_72 = arith.constant 1 : i32
      %96 = arith.addi %arg1, %c1_i32_72 : i32
      %c1_i32_73 = arith.constant 1 : i32
      %97 = arith.subi %c1_i32_73, %0 : i32
      %c384_i32_74 = arith.constant 384 : i32
      %98 = arith.muli %96, %c384_i32_74 : i32
      %99 = tpu.assume_multiple %98, 128 : i32
      %c0_i32_75 = arith.constant 0 : i32
      %c0_i32_76 = arith.constant 0 : i32
      %100 = tpu.memref_slice %arg2[%arg0, %c0_i32_76, %99] : memref<2x8x512xbf16, #tpu.memory_space<any>> -> memref<1x8x512xbf16, #tpu.memory_space<any>>
      %101 = tpu.memref_squeeze %100 : memref<1x8x512xbf16, #tpu.memory_space<any>> -> memref<8x512xbf16, #tpu.memory_space<any>>
      %c0_i32_77 = arith.constant 0 : i32
      %c0_i32_78 = arith.constant 0 : i32
      %102 = tpu.memref_slice %arg6[%97, %c0_i32_77, %c0_i32_78] : memref<2x8x512xbf16, #tpu.memory_space<vmem>> -> memref<1x8x512xbf16, #tpu.memory_space<vmem>>
      %103 = tpu.memref_squeeze %102 : memref<1x8x512xbf16, #tpu.memory_space<vmem>> -> memref<8x512xbf16, #tpu.memory_space<vmem>>
      %104 = tpu.memref_slice %arg7[%c0_i32_75, %97] : memref<1x2x!tpu.dma_semaphore, #tpu.memory_space<semaphore_mem>> -> memref<1x1x!tpu.dma_semaphore, #tpu.memory_space<semaphore_mem>>
      %105 = tpu.memref_squeeze %104 : memref<1x1x!tpu.dma_semaphore, #tpu.memory_space<semaphore_mem>> -> memref<!tpu.dma_semaphore, #tpu.memory_space<semaphore_mem>>
      tpu.enqueue_dma source(%101 : memref<8x512xbf16, #tpu.memory_space<any>>) target(%103 : memref<8x512xbf16, #tpu.memory_space<vmem>>) target_semaphore(%105 : memref<!tpu.dma_semaphore, #tpu.memory_space<semaphore_mem>>)
    } else {
    }
    %c384_i32 = arith.constant 384 : i32
    %8 = arith.muli %arg1, %c384_i32 : i32
    %9 = tpu.assume_multiple %8, 128 : i32
    %c0_i32_4 = arith.constant 0 : i32
    %c0_i32_5 = arith.constant 0 : i32
    %10 = tpu.memref_slice %arg2[%arg0, %c0_i32_5, %9] : memref<2x8x512xbf16, #tpu.memory_space<any>> -> memref<1x8x512xbf16, #tpu.memory_space<any>>
    %11 = tpu.memref_squeeze %10 : memref<1x8x512xbf16, #tpu.memory_space<any>> -> memref<8x512xbf16, #tpu.memory_space<any>>
    %c0_i32_6 = arith.constant 0 : i32
    %c0_i32_7 = arith.constant 0 : i32
    %12 = tpu.memref_slice %arg6[%0, %c0_i32_6, %c0_i32_7] : memref<2x8x512xbf16, #tpu.memory_space<vmem>> -> memref<1x8x512xbf16, #tpu.memory_space<vmem>>
    %13 = tpu.memref_squeeze %12 : memref<1x8x512xbf16, #tpu.memory_space<vmem>> -> memref<8x512xbf16, #tpu.memory_space<vmem>>
    %14 = tpu.memref_slice %arg7[%c0_i32_4, %0] : memref<1x2x!tpu.dma_semaphore, #tpu.memory_space<semaphore_mem>> -> memref<1x1x!tpu.dma_semaphore, #tpu.memory_space<semaphore_mem>>
    %15 = tpu.memref_squeeze %14 : memref<1x1x!tpu.dma_semaphore, #tpu.memory_space<semaphore_mem>> -> memref<!tpu.dma_semaphore, #tpu.memory_space<semaphore_mem>>
    tpu.wait_dma2 semaphore(%15 : memref<!tpu.dma_semaphore, #tpu.memory_space<semaphore_mem>>) src(%11 : memref<8x512xbf16, #tpu.memory_space<any>>) dst(%13 : memref<8x512xbf16, #tpu.memory_space<vmem>>)
    %cst = arith.constant 0.000000e+00 : f32
    %16 = vector.broadcast %cst : f32 to vector<8x384xf32>
    %c0_i32_8 = arith.constant 0 : i32
    %c0_i32_9 = arith.constant 0 : i32
    %17 = tpu.memref_slice %arg6[%0, %c0_i32_8, %c0_i32_9] : memref<2x8x512xbf16, #tpu.memory_space<vmem>> -> memref<1x8x512xbf16, #tpu.memory_space<vmem>>
    %18 = tpu.memref_squeeze %17 : memref<1x8x512xbf16, #tpu.memory_space<vmem>> -> memref<8x512xbf16, #tpu.memory_space<vmem>>
    %c0 = arith.constant 0 : index
    %c0_10 = arith.constant 0 : index
    %19 = vector.load %18[%c0, %c0_10] : memref<8x512xbf16, #tpu.memory_space<vmem>>, vector<8x384xbf16>
    %c0_11 = arith.constant 0 : index
    %c0_12 = arith.constant 0 : index
    %c0_13 = arith.constant 0 : index
    %20 = vector.load %arg3[%c0_11, %c0_12, %c0_13] : memref<9x8x8xbf16, #tpu.memory_space<vmem>>, vector<1x8x8xbf16>
    %21 = vector.shape_cast %20 : vector<1x8x8xbf16> to vector<8x8xbf16>
    %cst_14 = arith.constant dense<0.000000e+00> : vector<8x384xf32>
    %22 = tpu.matmul %21, %19, %cst_14 {dimension_numbers = #tpu.dot_dimension_numbers<[1], [0], [0], [1], [0, 0, 1, 1], [], []>} : vector<8x8xbf16>, vector<8x384xbf16>, vector<8x384xf32> -> vector<8x384xf32>
    %23 = arith.addf %16, %22 : vector<8x384xf32>
    %c0_i32_15 = arith.constant 0 : i32
    %c0_i32_16 = arith.constant 0 : i32
    %24 = tpu.memref_slice %arg6[%0, %c0_i32_15, %c0_i32_16] : memref<2x8x512xbf16, #tpu.memory_space<vmem>> -> memref<1x8x512xbf16, #tpu.memory_space<vmem>>
    %25 = tpu.memref_squeeze %24 : memref<1x8x512xbf16, #tpu.memory_space<vmem>> -> memref<8x512xbf16, #tpu.memory_space<vmem>>
    %c0_17 = arith.constant 0 : index
    %c2 = arith.constant 2 : index
    %26 = vector.load %25[%c0_17, %c2] : memref<8x512xbf16, #tpu.memory_space<vmem>>, vector<8x384xbf16>
    %c1 = arith.constant 1 : index
    %c0_18 = arith.constant 0 : index
    %c0_19 = arith.constant 0 : index
    %27 = vector.load %arg3[%c1, %c0_18, %c0_19] : memref<9x8x8xbf16, #tpu.memory_space<vmem>>, vector<1x8x8xbf16>
    %28 = vector.shape_cast %27 : vector<1x8x8xbf16> to vector<8x8xbf16>
    %cst_20 = arith.constant dense<0.000000e+00> : vector<8x384xf32>
    %29 = tpu.matmul %28, %26, %cst_20 {dimension_numbers = #tpu.dot_dimension_numbers<[1], [0], [0], [1], [0, 0, 1, 1], [], []>} : vector<8x8xbf16>, vector<8x384xbf16>, vector<8x384xf32> -> vector<8x384xf32>
    %30 = arith.addf %23, %29 : vector<8x384xf32>
    %c0_i32_21 = arith.constant 0 : i32
    %c0_i32_22 = arith.constant 0 : i32
    %31 = tpu.memref_slice %arg6[%0, %c0_i32_21, %c0_i32_22] : memref<2x8x512xbf16, #tpu.memory_space<vmem>> -> memref<1x8x512xbf16, #tpu.memory_space<vmem>>
    %32 = tpu.memref_squeeze %31 : memref<1x8x512xbf16, #tpu.memory_space<vmem>> -> memref<8x512xbf16, #tpu.memory_space<vmem>>
    %c0_23 = arith.constant 0 : index
    %c4 = arith.constant 4 : index
    %33 = vector.load %32[%c0_23, %c4] : memref<8x512xbf16, #tpu.memory_space<vmem>>, vector<8x384xbf16>
    %c2_24 = arith.constant 2 : index
    %c0_25 = arith.constant 0 : index
    %c0_26 = arith.constant 0 : index
    %34 = vector.load %arg3[%c2_24, %c0_25, %c0_26] : memref<9x8x8xbf16, #tpu.memory_space<vmem>>, vector<1x8x8xbf16>
    %35 = vector.shape_cast %34 : vector<1x8x8xbf16> to vector<8x8xbf16>
    %cst_27 = arith.constant dense<0.000000e+00> : vector<8x384xf32>
    %36 = tpu.matmul %35, %33, %cst_27 {dimension_numbers = #tpu.dot_dimension_numbers<[1], [0], [0], [1], [0, 0, 1, 1], [], []>} : vector<8x8xbf16>, vector<8x384xbf16>, vector<8x384xf32> -> vector<8x384xf32>
    %37 = arith.addf %30, %36 : vector<8x384xf32>
    %c0_i32_28 = arith.constant 0 : i32
    %c0_i32_29 = arith.constant 0 : i32
    %38 = tpu.memref_slice %arg6[%0, %c0_i32_28, %c0_i32_29] : memref<2x8x512xbf16, #tpu.memory_space<vmem>> -> memref<1x8x512xbf16, #tpu.memory_space<vmem>>
    %39 = tpu.memref_squeeze %38 : memref<1x8x512xbf16, #tpu.memory_space<vmem>> -> memref<8x512xbf16, #tpu.memory_space<vmem>>
    %c0_30 = arith.constant 0 : index
    %c40 = arith.constant 40 : index
    %40 = vector.load %39[%c0_30, %c40] : memref<8x512xbf16, #tpu.memory_space<vmem>>, vector<8x384xbf16>
    %c3 = arith.constant 3 : index
    %c0_31 = arith.constant 0 : index
    %c0_32 = arith.constant 0 : index
    %41 = vector.load %arg3[%c3, %c0_31, %c0_32] : memref<9x8x8xbf16, #tpu.memory_space<vmem>>, vector<1x8x8xbf16>
    %42 = vector.shape_cast %41 : vector<1x8x8xbf16> to vector<8x8xbf16>
    %cst_33 = arith.constant dense<0.000000e+00> : vector<8x384xf32>
    %43 = tpu.matmul %42, %40, %cst_33 {dimension_numbers = #tpu.dot_dimension_numbers<[1], [0], [0], [1], [0, 0, 1, 1], [], []>} : vector<8x8xbf16>, vector<8x384xbf16>, vector<8x384xf32> -> vector<8x384xf32>
    %44 = arith.addf %37, %43 : vector<8x384xf32>
    %c0_i32_34 = arith.constant 0 : i32
    %c0_i32_35 = arith.constant 0 : i32
    %45 = tpu.memref_slice %arg6[%0, %c0_i32_34, %c0_i32_35] : memref<2x8x512xbf16, #tpu.memory_space<vmem>> -> memref<1x8x512xbf16, #tpu.memory_space<vmem>>
    %46 = tpu.memref_squeeze %45 : memref<1x8x512xbf16, #tpu.memory_space<vmem>> -> memref<8x512xbf16, #tpu.memory_space<vmem>>
    %c0_36 = arith.constant 0 : index
    %c42 = arith.constant 42 : index
    %47 = vector.load %46[%c0_36, %c42] : memref<8x512xbf16, #tpu.memory_space<vmem>>, vector<8x384xbf16>
    %c4_37 = arith.constant 4 : index
    %c0_38 = arith.constant 0 : index
    %c0_39 = arith.constant 0 : index
    %48 = vector.load %arg3[%c4_37, %c0_38, %c0_39] : memref<9x8x8xbf16, #tpu.memory_space<vmem>>, vector<1x8x8xbf16>
    %49 = vector.shape_cast %48 : vector<1x8x8xbf16> to vector<8x8xbf16>
    %cst_40 = arith.constant dense<0.000000e+00> : vector<8x384xf32>
    %50 = tpu.matmul %49, %47, %cst_40 {dimension_numbers = #tpu.dot_dimension_numbers<[1], [0], [0], [1], [0, 0, 1, 1], [], []>} : vector<8x8xbf16>, vector<8x384xbf16>, vector<8x384xf32> -> vector<8x384xf32>
    %51 = arith.addf %44, %50 : vector<8x384xf32>
    %c0_i32_41 = arith.constant 0 : i32
    %c0_i32_42 = arith.constant 0 : i32
    %52 = tpu.memref_slice %arg6[%0, %c0_i32_41, %c0_i32_42] : memref<2x8x512xbf16, #tpu.memory_space<vmem>> -> memref<1x8x512xbf16, #tpu.memory_space<vmem>>
    %53 = tpu.memref_squeeze %52 : memref<1x8x512xbf16, #tpu.memory_space<vmem>> -> memref<8x512xbf16, #tpu.memory_space<vmem>>
    %c0_43 = arith.constant 0 : index
    %c44 = arith.constant 44 : index
    %54 = vector.load %53[%c0_43, %c44] : memref<8x512xbf16, #tpu.memory_space<vmem>>, vector<8x384xbf16>
    %c5 = arith.constant 5 : index
    %c0_44 = arith.constant 0 : index
    %c0_45 = arith.constant 0 : index
    %55 = vector.load %arg3[%c5, %c0_44, %c0_45] : memref<9x8x8xbf16, #tpu.memory_space<vmem>>, vector<1x8x8xbf16>
    %56 = vector.shape_cast %55 : vector<1x8x8xbf16> to vector<8x8xbf16>
    %cst_46 = arith.constant dense<0.000000e+00> : vector<8x384xf32>
    %57 = tpu.matmul %56, %54, %cst_46 {dimension_numbers = #tpu.dot_dimension_numbers<[1], [0], [0], [1], [0, 0, 1, 1], [], []>} : vector<8x8xbf16>, vector<8x384xbf16>, vector<8x384xf32> -> vector<8x384xf32>
    %58 = arith.addf %51, %57 : vector<8x384xf32>
    %c0_i32_47 = arith.constant 0 : i32
    %c0_i32_48 = arith.constant 0 : i32
    %59 = tpu.memref_slice %arg6[%0, %c0_i32_47, %c0_i32_48] : memref<2x8x512xbf16, #tpu.memory_space<vmem>> -> memref<1x8x512xbf16, #tpu.memory_space<vmem>>
    %60 = tpu.memref_squeeze %59 : memref<1x8x512xbf16, #tpu.memory_space<vmem>> -> memref<8x512xbf16, #tpu.memory_space<vmem>>
    %c0_49 = arith.constant 0 : index
    %c80 = arith.constant 80 : index
    %61 = vector.load %60[%c0_49, %c80] : memref<8x512xbf16, #tpu.memory_space<vmem>>, vector<8x384xbf16>
    %c6 = arith.constant 6 : index
    %c0_50 = arith.constant 0 : index
    %c0_51 = arith.constant 0 : index
    %62 = vector.load %arg3[%c6, %c0_50, %c0_51] : memref<9x8x8xbf16, #tpu.memory_space<vmem>>, vector<1x8x8xbf16>
    %63 = vector.shape_cast %62 : vector<1x8x8xbf16> to vector<8x8xbf16>
    %cst_52 = arith.constant dense<0.000000e+00> : vector<8x384xf32>
    %64 = tpu.matmul %63, %61, %cst_52 {dimension_numbers = #tpu.dot_dimension_numbers<[1], [0], [0], [1], [0, 0, 1, 1], [], []>} : vector<8x8xbf16>, vector<8x384xbf16>, vector<8x384xf32> -> vector<8x384xf32>
    %65 = arith.addf %58, %64 : vector<8x384xf32>
    %c0_i32_53 = arith.constant 0 : i32
    %c0_i32_54 = arith.constant 0 : i32
    %66 = tpu.memref_slice %arg6[%0, %c0_i32_53, %c0_i32_54] : memref<2x8x512xbf16, #tpu.memory_space<vmem>> -> memref<1x8x512xbf16, #tpu.memory_space<vmem>>
    %67 = tpu.memref_squeeze %66 : memref<1x8x512xbf16, #tpu.memory_space<vmem>> -> memref<8x512xbf16, #tpu.memory_space<vmem>>
    %c0_55 = arith.constant 0 : index
    %c82 = arith.constant 82 : index
    %68 = vector.load %67[%c0_55, %c82] : memref<8x512xbf16, #tpu.memory_space<vmem>>, vector<8x384xbf16>
    %c7 = arith.constant 7 : index
    %c0_56 = arith.constant 0 : index
    %c0_57 = arith.constant 0 : index
    %69 = vector.load %arg3[%c7, %c0_56, %c0_57] : memref<9x8x8xbf16, #tpu.memory_space<vmem>>, vector<1x8x8xbf16>
    %70 = vector.shape_cast %69 : vector<1x8x8xbf16> to vector<8x8xbf16>
    %cst_58 = arith.constant dense<0.000000e+00> : vector<8x384xf32>
    %71 = tpu.matmul %70, %68, %cst_58 {dimension_numbers = #tpu.dot_dimension_numbers<[1], [0], [0], [1], [0, 0, 1, 1], [], []>} : vector<8x8xbf16>, vector<8x384xbf16>, vector<8x384xf32> -> vector<8x384xf32>
    %72 = arith.addf %65, %71 : vector<8x384xf32>
    %c0_i32_59 = arith.constant 0 : i32
    %c0_i32_60 = arith.constant 0 : i32
    %73 = tpu.memref_slice %arg6[%0, %c0_i32_59, %c0_i32_60] : memref<2x8x512xbf16, #tpu.memory_space<vmem>> -> memref<1x8x512xbf16, #tpu.memory_space<vmem>>
    %74 = tpu.memref_squeeze %73 : memref<1x8x512xbf16, #tpu.memory_space<vmem>> -> memref<8x512xbf16, #tpu.memory_space<vmem>>
    %c0_61 = arith.constant 0 : index
    %c84 = arith.constant 84 : index
    %75 = vector.load %74[%c0_61, %c84] : memref<8x512xbf16, #tpu.memory_space<vmem>>, vector<8x384xbf16>
    %c8 = arith.constant 8 : index
    %c0_62 = arith.constant 0 : index
    %c0_63 = arith.constant 0 : index
    %76 = vector.load %arg3[%c8, %c0_62, %c0_63] : memref<9x8x8xbf16, #tpu.memory_space<vmem>>, vector<1x8x8xbf16>
    %77 = vector.shape_cast %76 : vector<1x8x8xbf16> to vector<8x8xbf16>
    %cst_64 = arith.constant dense<0.000000e+00> : vector<8x384xf32>
    %78 = tpu.matmul %77, %75, %cst_64 {dimension_numbers = #tpu.dot_dimension_numbers<[1], [0], [0], [1], [0, 0, 1, 1], [], []>} : vector<8x8xbf16>, vector<8x384xbf16>, vector<8x384xf32> -> vector<8x384xf32>
    %79 = arith.addf %72, %78 : vector<8x384xf32>
    %c0_65 = arith.constant 0 : index
    %c0_66 = arith.constant 0 : index
    %80 = vector.load %arg4[%c0_65, %c0_66] : memref<8x4xf32, #tpu.memory_space<vmem>>, vector<8x4xf32>
    %81 = vector.extract_strided_slice %80 {offsets = [0, 0], sizes = [8, 1], strides = [1, 1]} : vector<8x4xf32> to vector<8x1xf32>
    %82 = vector.broadcast %81 : vector<8x1xf32> to vector<8x384xf32>
    %83 = arith.mulf %79, %82 : vector<8x384xf32>
    %84 = vector.extract_strided_slice %80 {offsets = [0, 1], sizes = [8, 1], strides = [1, 1]} : vector<8x4xf32> to vector<8x1xf32>
    %85 = vector.broadcast %84 : vector<8x1xf32> to vector<8x384xf32>
    %86 = arith.addf %83, %85 : vector<8x384xf32>
    %cst_67 = arith.constant 0.000000e+00 : f32
    %87 = vector.broadcast %cst_67 : f32 to vector<8x384xf32>
    %88 = arith.cmpf ogt, %86, %87 : vector<8x384xf32>
    %cst_68 = arith.constant 0.00999999977 : f32
    %89 = vector.broadcast %cst_68 : f32 to vector<8x384xf32>
    %90 = arith.mulf %89, %86 : vector<8x384xf32>
    %91 = arith.select %88, %86, %90 : vector<8x384xi1>, vector<8x384xf32>
    %92 = arith.truncf %91 : vector<8x384xf32> to vector<8x384xbf16>
    %c0_69 = arith.constant 0 : index
    %c0_70 = arith.constant 0 : index
    %c0_71 = arith.constant 0 : index
    %93 = vector.load %arg5[%c0_69, %c0_70, %c0_71] : memref<1x8x384xbf16, #tpu.memory_space<vmem>>, vector<1x8x384xbf16>
    %94 = vector.shape_cast %93 : vector<1x8x384xbf16> to vector<8x384xbf16>
    %95 = vector.shape_cast %92 : vector<8x384xbf16> to vector<1x8x384xbf16>
    tpu.vector_store %arg5[%c0_69, %c0_70, %c0_71], %95 {strides = array<i32>} : memref<1x8x384xbf16, #tpu.memory_space<vmem>>, vector<1x8x384xbf16>,
    return
  }
  func.func @transform_1(%arg0: i32, %arg1: i32) -> (i32, i32, i32) {
    %c0_i32 = arith.constant 0 : i32
    %c0_i32_0 = arith.constant 0 : i32
    %c0_i32_1 = arith.constant 0 : i32
    %c0_i32_2 = arith.constant 0 : i32
    return %c0_i32, %c0_i32_0, %c0_i32_1 : i32, i32, i32
  }
  func.func @transform_2(%arg0: i32, %arg1: i32) -> (i32, i32) {
    %c0_i32 = arith.constant 0 : i32
    %c0_i32_0 = arith.constant 0 : i32
    %c0_i32_1 = arith.constant 0 : i32
    return %c0_i32, %c0_i32_0 : i32, i32
  }
  func.func @transform_3(%arg0: i32, %arg1: i32) -> (i32, i32, i32) {
    %c0_i32 = arith.constant 0 : i32
    %c0_i32_0 = arith.constant 0 : i32
    return %arg0, %c0_i32, %arg1 : i32, i32, i32
  }
}

module attributes {stable_mosaic.version = 11 : i64} {
  func.func @_conv_kernel(%arg0: i32, %arg1: i32, %arg2: memref<2x8x512xbf16, #tpu.memory_space<any>>, %arg3: memref<2x8x512xbf16, #tpu.memory_space<any>>, %arg4: memref<9x8x8xbf16, #tpu.memory_space<vmem>>, %arg5: memref<9x8x8xbf16, #tpu.memory_space<vmem>>, %arg6: memref<8x4xf32, #tpu.memory_space<vmem>>, %arg7: memref<1x8x384xbf16, #tpu.memory_space<vmem>>, %arg8: memref<2x8x512xbf16, #tpu.memory_space<vmem>>, %arg9: memref<2x8x512xbf16, #tpu.memory_space<vmem>>, %arg10: memref<2x2x!tpu.dma_semaphore, #tpu.memory_space<semaphore_mem>>) attributes {dimension_semantics = [#tpu.dimension_semantics<parallel>, #tpu.dimension_semantics<arbitrary>], iteration_bounds = array<i64: 2, 1>, scalar_prefetch = 0 : i64, scratch_operands = 3 : i64, tpu.core_type = #tpu.core_type<tc>, window_params = [{}, {}, {pipeline_mode = #tpu.pipeline_mode<synchronous>, transform_indices = @transform_2, window_bounds = array<i64: 9, 8, 8>}, {pipeline_mode = #tpu.pipeline_mode<synchronous>, transform_indices = @transform_3, window_bounds = array<i64: 9, 8, 8>}, {pipeline_mode = #tpu.pipeline_mode<synchronous>, transform_indices = @transform_4, window_bounds = array<i64: 8, 4>}, {transform_indices = @transform_5, window_bounds = array<i64: 1, 8, 384>}]} {
    %c1_i32 = arith.constant 1 : i32
    %0 = arith.andi %arg1, %c1_i32 : i32
    %c0_i32 = arith.constant 0 : i32
    %1 = arith.cmpi eq, %arg1, %c0_i32 : i32
    %2 = arith.extui %1 : i1 to i32
    %c0_i32_0 = arith.constant 0 : i32
    %3 = arith.cmpi ne, %2, %c0_i32_0 : i32
    scf.if %3 {
      %c384_i32_149 = arith.constant 384 : i32
      %167 = arith.muli %arg1, %c384_i32_149 : i32
      %168 = tpu.assume_multiple %167, 128 : i32
      %c0_i32_150 = arith.constant 0 : i32
      %c0_i32_151 = arith.constant 0 : i32
      %169 = tpu.memref_slice %arg2[%arg0, %c0_i32_151, %168] : memref<2x8x512xbf16, #tpu.memory_space<any>> -> memref<1x8x512xbf16, #tpu.memory_space<any>>
      %170 = tpu.memref_squeeze %169 : memref<1x8x512xbf16, #tpu.memory_space<any>> -> memref<8x512xbf16, #tpu.memory_space<any>>
      %c0_i32_152 = arith.constant 0 : i32
      %c0_i32_153 = arith.constant 0 : i32
      %171 = tpu.memref_slice %arg8[%0, %c0_i32_152, %c0_i32_153] : memref<2x8x512xbf16, #tpu.memory_space<vmem>> -> memref<1x8x512xbf16, #tpu.memory_space<vmem>>
      %172 = tpu.memref_squeeze %171 : memref<1x8x512xbf16, #tpu.memory_space<vmem>> -> memref<8x512xbf16, #tpu.memory_space<vmem>>
      %173 = tpu.memref_slice %arg10[%c0_i32_150, %0] : memref<2x2x!tpu.dma_semaphore, #tpu.memory_space<semaphore_mem>> -> memref<1x1x!tpu.dma_semaphore, #tpu.memory_space<semaphore_mem>>
      %174 = tpu.memref_squeeze %173 : memref<1x1x!tpu.dma_semaphore, #tpu.memory_space<semaphore_mem>> -> memref<!tpu.dma_semaphore, #tpu.memory_space<semaphore_mem>>
      tpu.enqueue_dma source(%170 : memref<8x512xbf16, #tpu.memory_space<any>>) target(%172 : memref<8x512xbf16, #tpu.memory_space<vmem>>) target_semaphore(%174 : memref<!tpu.dma_semaphore, #tpu.memory_space<semaphore_mem>>)
      %c384_i32_154 = arith.constant 384 : i32
      %175 = arith.muli %arg1, %c384_i32_154 : i32
      %176 = tpu.assume_multiple %175, 128 : i32
      %c1_i32_155 = arith.constant 1 : i32
      %c0_i32_156 = arith.constant 0 : i32
      %177 = tpu.memref_slice %arg3[%arg0, %c0_i32_156, %176] : memref<2x8x512xbf16, #tpu.memory_space<any>> -> memref<1x8x512xbf16, #tpu.memory_space<any>>
      %178 = tpu.memref_squeeze %177 : memref<1x8x512xbf16, #tpu.memory_space<any>> -> memref<8x512xbf16, #tpu.memory_space<any>>
      %c0_i32_157 = arith.constant 0 : i32
      %c0_i32_158 = arith.constant 0 : i32
      %179 = tpu.memref_slice %arg9[%0, %c0_i32_157, %c0_i32_158] : memref<2x8x512xbf16, #tpu.memory_space<vmem>> -> memref<1x8x512xbf16, #tpu.memory_space<vmem>>
      %180 = tpu.memref_squeeze %179 : memref<1x8x512xbf16, #tpu.memory_space<vmem>> -> memref<8x512xbf16, #tpu.memory_space<vmem>>
      %181 = tpu.memref_slice %arg10[%c1_i32_155, %0] : memref<2x2x!tpu.dma_semaphore, #tpu.memory_space<semaphore_mem>> -> memref<1x1x!tpu.dma_semaphore, #tpu.memory_space<semaphore_mem>>
      %182 = tpu.memref_squeeze %181 : memref<1x1x!tpu.dma_semaphore, #tpu.memory_space<semaphore_mem>> -> memref<!tpu.dma_semaphore, #tpu.memory_space<semaphore_mem>>
      tpu.enqueue_dma source(%178 : memref<8x512xbf16, #tpu.memory_space<any>>) target(%180 : memref<8x512xbf16, #tpu.memory_space<vmem>>) target_semaphore(%182 : memref<!tpu.dma_semaphore, #tpu.memory_space<semaphore_mem>>)
    } else {
    }
    %c1_i32_1 = arith.constant 1 : i32
    %4 = arith.addi %arg1, %c1_i32_1 : i32
    %c1_i32_2 = arith.constant 1 : i32
    %5 = arith.cmpi slt, %4, %c1_i32_2 : i32
    %6 = arith.extui %5 : i1 to i32
    %c0_i32_3 = arith.constant 0 : i32
    %7 = arith.cmpi ne, %6, %c0_i32_3 : i32
    scf.if %7 {
      %c1_i32_149 = arith.constant 1 : i32
      %167 = arith.addi %arg1, %c1_i32_149 : i32
      %c1_i32_150 = arith.constant 1 : i32
      %168 = arith.subi %c1_i32_150, %0 : i32
      %c384_i32_151 = arith.constant 384 : i32
      %169 = arith.muli %167, %c384_i32_151 : i32
      %170 = tpu.assume_multiple %169, 128 : i32
      %c0_i32_152 = arith.constant 0 : i32
      %c0_i32_153 = arith.constant 0 : i32
      %171 = tpu.memref_slice %arg2[%arg0, %c0_i32_153, %170] : memref<2x8x512xbf16, #tpu.memory_space<any>> -> memref<1x8x512xbf16, #tpu.memory_space<any>>
      %172 = tpu.memref_squeeze %171 : memref<1x8x512xbf16, #tpu.memory_space<any>> -> memref<8x512xbf16, #tpu.memory_space<any>>
      %c0_i32_154 = arith.constant 0 : i32
      %c0_i32_155 = arith.constant 0 : i32
      %173 = tpu.memref_slice %arg8[%168, %c0_i32_154, %c0_i32_155] : memref<2x8x512xbf16, #tpu.memory_space<vmem>> -> memref<1x8x512xbf16, #tpu.memory_space<vmem>>
      %174 = tpu.memref_squeeze %173 : memref<1x8x512xbf16, #tpu.memory_space<vmem>> -> memref<8x512xbf16, #tpu.memory_space<vmem>>
      %175 = tpu.memref_slice %arg10[%c0_i32_152, %168] : memref<2x2x!tpu.dma_semaphore, #tpu.memory_space<semaphore_mem>> -> memref<1x1x!tpu.dma_semaphore, #tpu.memory_space<semaphore_mem>>
      %176 = tpu.memref_squeeze %175 : memref<1x1x!tpu.dma_semaphore, #tpu.memory_space<semaphore_mem>> -> memref<!tpu.dma_semaphore, #tpu.memory_space<semaphore_mem>>
      tpu.enqueue_dma source(%172 : memref<8x512xbf16, #tpu.memory_space<any>>) target(%174 : memref<8x512xbf16, #tpu.memory_space<vmem>>) target_semaphore(%176 : memref<!tpu.dma_semaphore, #tpu.memory_space<semaphore_mem>>)
      %c1_i32_156 = arith.constant 1 : i32
      %177 = arith.addi %arg1, %c1_i32_156 : i32
      %c1_i32_157 = arith.constant 1 : i32
      %178 = arith.subi %c1_i32_157, %0 : i32
      %c384_i32_158 = arith.constant 384 : i32
      %179 = arith.muli %177, %c384_i32_158 : i32
      %180 = tpu.assume_multiple %179, 128 : i32
      %c1_i32_159 = arith.constant 1 : i32
      %c0_i32_160 = arith.constant 0 : i32
      %181 = tpu.memref_slice %arg3[%arg0, %c0_i32_160, %180] : memref<2x8x512xbf16, #tpu.memory_space<any>> -> memref<1x8x512xbf16, #tpu.memory_space<any>>
      %182 = tpu.memref_squeeze %181 : memref<1x8x512xbf16, #tpu.memory_space<any>> -> memref<8x512xbf16, #tpu.memory_space<any>>
      %c0_i32_161 = arith.constant 0 : i32
      %c0_i32_162 = arith.constant 0 : i32
      %183 = tpu.memref_slice %arg9[%178, %c0_i32_161, %c0_i32_162] : memref<2x8x512xbf16, #tpu.memory_space<vmem>> -> memref<1x8x512xbf16, #tpu.memory_space<vmem>>
      %184 = tpu.memref_squeeze %183 : memref<1x8x512xbf16, #tpu.memory_space<vmem>> -> memref<8x512xbf16, #tpu.memory_space<vmem>>
      %185 = tpu.memref_slice %arg10[%c1_i32_159, %178] : memref<2x2x!tpu.dma_semaphore, #tpu.memory_space<semaphore_mem>> -> memref<1x1x!tpu.dma_semaphore, #tpu.memory_space<semaphore_mem>>
      %186 = tpu.memref_squeeze %185 : memref<1x1x!tpu.dma_semaphore, #tpu.memory_space<semaphore_mem>> -> memref<!tpu.dma_semaphore, #tpu.memory_space<semaphore_mem>>
      tpu.enqueue_dma source(%182 : memref<8x512xbf16, #tpu.memory_space<any>>) target(%184 : memref<8x512xbf16, #tpu.memory_space<vmem>>) target_semaphore(%186 : memref<!tpu.dma_semaphore, #tpu.memory_space<semaphore_mem>>)
    } else {
    }
    %c384_i32 = arith.constant 384 : i32
    %8 = arith.muli %arg1, %c384_i32 : i32
    %9 = tpu.assume_multiple %8, 128 : i32
    %c0_i32_4 = arith.constant 0 : i32
    %c0_i32_5 = arith.constant 0 : i32
    %10 = tpu.memref_slice %arg2[%arg0, %c0_i32_5, %9] : memref<2x8x512xbf16, #tpu.memory_space<any>> -> memref<1x8x512xbf16, #tpu.memory_space<any>>
    %11 = tpu.memref_squeeze %10 : memref<1x8x512xbf16, #tpu.memory_space<any>> -> memref<8x512xbf16, #tpu.memory_space<any>>
    %c0_i32_6 = arith.constant 0 : i32
    %c0_i32_7 = arith.constant 0 : i32
    %12 = tpu.memref_slice %arg8[%0, %c0_i32_6, %c0_i32_7] : memref<2x8x512xbf16, #tpu.memory_space<vmem>> -> memref<1x8x512xbf16, #tpu.memory_space<vmem>>
    %13 = tpu.memref_squeeze %12 : memref<1x8x512xbf16, #tpu.memory_space<vmem>> -> memref<8x512xbf16, #tpu.memory_space<vmem>>
    %14 = tpu.memref_slice %arg10[%c0_i32_4, %0] : memref<2x2x!tpu.dma_semaphore, #tpu.memory_space<semaphore_mem>> -> memref<1x1x!tpu.dma_semaphore, #tpu.memory_space<semaphore_mem>>
    %15 = tpu.memref_squeeze %14 : memref<1x1x!tpu.dma_semaphore, #tpu.memory_space<semaphore_mem>> -> memref<!tpu.dma_semaphore, #tpu.memory_space<semaphore_mem>>
    tpu.wait_dma2 semaphore(%15 : memref<!tpu.dma_semaphore, #tpu.memory_space<semaphore_mem>>) src(%11 : memref<8x512xbf16, #tpu.memory_space<any>>) dst(%13 : memref<8x512xbf16, #tpu.memory_space<vmem>>)
    %c384_i32_8 = arith.constant 384 : i32
    %16 = arith.muli %arg1, %c384_i32_8 : i32
    %17 = tpu.assume_multiple %16, 128 : i32
    %c1_i32_9 = arith.constant 1 : i32
    %c0_i32_10 = arith.constant 0 : i32
    %18 = tpu.memref_slice %arg3[%arg0, %c0_i32_10, %17] : memref<2x8x512xbf16, #tpu.memory_space<any>> -> memref<1x8x512xbf16, #tpu.memory_space<any>>
    %19 = tpu.memref_squeeze %18 : memref<1x8x512xbf16, #tpu.memory_space<any>> -> memref<8x512xbf16, #tpu.memory_space<any>>
    %c0_i32_11 = arith.constant 0 : i32
    %c0_i32_12 = arith.constant 0 : i32
    %20 = tpu.memref_slice %arg9[%0, %c0_i32_11, %c0_i32_12] : memref<2x8x512xbf16, #tpu.memory_space<vmem>> -> memref<1x8x512xbf16, #tpu.memory_space<vmem>>
    %21 = tpu.memref_squeeze %20 : memref<1x8x512xbf16, #tpu.memory_space<vmem>> -> memref<8x512xbf16, #tpu.memory_space<vmem>>
    %22 = tpu.memref_slice %arg10[%c1_i32_9, %0] : memref<2x2x!tpu.dma_semaphore, #tpu.memory_space<semaphore_mem>> -> memref<1x1x!tpu.dma_semaphore, #tpu.memory_space<semaphore_mem>>
    %23 = tpu.memref_squeeze %22 : memref<1x1x!tpu.dma_semaphore, #tpu.memory_space<semaphore_mem>> -> memref<!tpu.dma_semaphore, #tpu.memory_space<semaphore_mem>>
    tpu.wait_dma2 semaphore(%23 : memref<!tpu.dma_semaphore, #tpu.memory_space<semaphore_mem>>) src(%19 : memref<8x512xbf16, #tpu.memory_space<any>>) dst(%21 : memref<8x512xbf16, #tpu.memory_space<vmem>>)
    %cst = arith.constant 0.000000e+00 : f32
    %24 = vector.broadcast %cst : f32 to vector<8x384xf32>
    %c0_i32_13 = arith.constant 0 : i32
    %c0_i32_14 = arith.constant 0 : i32
    %25 = tpu.memref_slice %arg8[%0, %c0_i32_13, %c0_i32_14] : memref<2x8x512xbf16, #tpu.memory_space<vmem>> -> memref<1x8x512xbf16, #tpu.memory_space<vmem>>
    %26 = tpu.memref_squeeze %25 : memref<1x8x512xbf16, #tpu.memory_space<vmem>> -> memref<8x512xbf16, #tpu.memory_space<vmem>>
    %c0 = arith.constant 0 : index
    %c0_15 = arith.constant 0 : index
    %27 = vector.load %26[%c0, %c0_15] : memref<8x512xbf16, #tpu.memory_space<vmem>>, vector<8x384xbf16>
    %c0_16 = arith.constant 0 : index
    %c0_17 = arith.constant 0 : index
    %c0_18 = arith.constant 0 : index
    %28 = vector.load %arg4[%c0_16, %c0_17, %c0_18] : memref<9x8x8xbf16, #tpu.memory_space<vmem>>, vector<1x8x8xbf16>
    %29 = vector.shape_cast %28 : vector<1x8x8xbf16> to vector<8x8xbf16>
    %cst_19 = arith.constant dense<0.000000e+00> : vector<8x384xf32>
    %30 = tpu.matmul %29, %27, %cst_19 {dimension_numbers = #tpu.dot_dimension_numbers<[1], [0], [0], [1], [0, 0, 1, 1], [], []>} : vector<8x8xbf16>, vector<8x384xbf16>, vector<8x384xf32> -> vector<8x384xf32>
    %31 = arith.addf %24, %30 : vector<8x384xf32>
    %c0_i32_20 = arith.constant 0 : i32
    %c0_i32_21 = arith.constant 0 : i32
    %32 = tpu.memref_slice %arg8[%0, %c0_i32_20, %c0_i32_21] : memref<2x8x512xbf16, #tpu.memory_space<vmem>> -> memref<1x8x512xbf16, #tpu.memory_space<vmem>>
    %33 = tpu.memref_squeeze %32 : memref<1x8x512xbf16, #tpu.memory_space<vmem>> -> memref<8x512xbf16, #tpu.memory_space<vmem>>
    %c0_22 = arith.constant 0 : index
    %c1 = arith.constant 1 : index
    %34 = vector.load %33[%c0_22, %c1] : memref<8x512xbf16, #tpu.memory_space<vmem>>, vector<8x384xbf16>
    %c1_23 = arith.constant 1 : index
    %c0_24 = arith.constant 0 : index
    %c0_25 = arith.constant 0 : index
    %35 = vector.load %arg4[%c1_23, %c0_24, %c0_25] : memref<9x8x8xbf16, #tpu.memory_space<vmem>>, vector<1x8x8xbf16>
    %36 = vector.shape_cast %35 : vector<1x8x8xbf16> to vector<8x8xbf16>
    %cst_26 = arith.constant dense<0.000000e+00> : vector<8x384xf32>
    %37 = tpu.matmul %36, %34, %cst_26 {dimension_numbers = #tpu.dot_dimension_numbers<[1], [0], [0], [1], [0, 0, 1, 1], [], []>} : vector<8x8xbf16>, vector<8x384xbf16>, vector<8x384xf32> -> vector<8x384xf32>
    %38 = arith.addf %31, %37 : vector<8x384xf32>
    %c0_i32_27 = arith.constant 0 : i32
    %c0_i32_28 = arith.constant 0 : i32
    %39 = tpu.memref_slice %arg8[%0, %c0_i32_27, %c0_i32_28] : memref<2x8x512xbf16, #tpu.memory_space<vmem>> -> memref<1x8x512xbf16, #tpu.memory_space<vmem>>
    %40 = tpu.memref_squeeze %39 : memref<1x8x512xbf16, #tpu.memory_space<vmem>> -> memref<8x512xbf16, #tpu.memory_space<vmem>>
    %c0_29 = arith.constant 0 : index
    %c2 = arith.constant 2 : index
    %41 = vector.load %40[%c0_29, %c2] : memref<8x512xbf16, #tpu.memory_space<vmem>>, vector<8x384xbf16>
    %c2_30 = arith.constant 2 : index
    %c0_31 = arith.constant 0 : index
    %c0_32 = arith.constant 0 : index
    %42 = vector.load %arg4[%c2_30, %c0_31, %c0_32] : memref<9x8x8xbf16, #tpu.memory_space<vmem>>, vector<1x8x8xbf16>
    %43 = vector.shape_cast %42 : vector<1x8x8xbf16> to vector<8x8xbf16>
    %cst_33 = arith.constant dense<0.000000e+00> : vector<8x384xf32>
    %44 = tpu.matmul %43, %41, %cst_33 {dimension_numbers = #tpu.dot_dimension_numbers<[1], [0], [0], [1], [0, 0, 1, 1], [], []>} : vector<8x8xbf16>, vector<8x384xbf16>, vector<8x384xf32> -> vector<8x384xf32>
    %45 = arith.addf %38, %44 : vector<8x384xf32>
    %c0_i32_34 = arith.constant 0 : i32
    %c0_i32_35 = arith.constant 0 : i32
    %46 = tpu.memref_slice %arg8[%0, %c0_i32_34, %c0_i32_35] : memref<2x8x512xbf16, #tpu.memory_space<vmem>> -> memref<1x8x512xbf16, #tpu.memory_space<vmem>>
    %47 = tpu.memref_squeeze %46 : memref<1x8x512xbf16, #tpu.memory_space<vmem>> -> memref<8x512xbf16, #tpu.memory_space<vmem>>
    %c0_36 = arith.constant 0 : index
    %c18 = arith.constant 18 : index
    %48 = vector.load %47[%c0_36, %c18] : memref<8x512xbf16, #tpu.memory_space<vmem>>, vector<8x384xbf16>
    %c3 = arith.constant 3 : index
    %c0_37 = arith.constant 0 : index
    %c0_38 = arith.constant 0 : index
    %49 = vector.load %arg4[%c3, %c0_37, %c0_38] : memref<9x8x8xbf16, #tpu.memory_space<vmem>>, vector<1x8x8xbf16>
    %50 = vector.shape_cast %49 : vector<1x8x8xbf16> to vector<8x8xbf16>
    %cst_39 = arith.constant dense<0.000000e+00> : vector<8x384xf32>
    %51 = tpu.matmul %50, %48, %cst_39 {dimension_numbers = #tpu.dot_dimension_numbers<[1], [0], [0], [1], [0, 0, 1, 1], [], []>} : vector<8x8xbf16>, vector<8x384xbf16>, vector<8x384xf32> -> vector<8x384xf32>
    %52 = arith.addf %45, %51 : vector<8x384xf32>
    %c0_i32_40 = arith.constant 0 : i32
    %c0_i32_41 = arith.constant 0 : i32
    %53 = tpu.memref_slice %arg8[%0, %c0_i32_40, %c0_i32_41] : memref<2x8x512xbf16, #tpu.memory_space<vmem>> -> memref<1x8x512xbf16, #tpu.memory_space<vmem>>
    %54 = tpu.memref_squeeze %53 : memref<1x8x512xbf16, #tpu.memory_space<vmem>> -> memref<8x512xbf16, #tpu.memory_space<vmem>>
    %c0_42 = arith.constant 0 : index
    %c19 = arith.constant 19 : index
    %55 = vector.load %54[%c0_42, %c19] : memref<8x512xbf16, #tpu.memory_space<vmem>>, vector<8x384xbf16>
    %c4 = arith.constant 4 : index
    %c0_43 = arith.constant 0 : index
    %c0_44 = arith.constant 0 : index
    %56 = vector.load %arg4[%c4, %c0_43, %c0_44] : memref<9x8x8xbf16, #tpu.memory_space<vmem>>, vector<1x8x8xbf16>
    %57 = vector.shape_cast %56 : vector<1x8x8xbf16> to vector<8x8xbf16>
    %cst_45 = arith.constant dense<0.000000e+00> : vector<8x384xf32>
    %58 = tpu.matmul %57, %55, %cst_45 {dimension_numbers = #tpu.dot_dimension_numbers<[1], [0], [0], [1], [0, 0, 1, 1], [], []>} : vector<8x8xbf16>, vector<8x384xbf16>, vector<8x384xf32> -> vector<8x384xf32>
    %59 = arith.addf %52, %58 : vector<8x384xf32>
    %c0_i32_46 = arith.constant 0 : i32
    %c0_i32_47 = arith.constant 0 : i32
    %60 = tpu.memref_slice %arg8[%0, %c0_i32_46, %c0_i32_47] : memref<2x8x512xbf16, #tpu.memory_space<vmem>> -> memref<1x8x512xbf16, #tpu.memory_space<vmem>>
    %61 = tpu.memref_squeeze %60 : memref<1x8x512xbf16, #tpu.memory_space<vmem>> -> memref<8x512xbf16, #tpu.memory_space<vmem>>
    %c0_48 = arith.constant 0 : index
    %c20 = arith.constant 20 : index
    %62 = vector.load %61[%c0_48, %c20] : memref<8x512xbf16, #tpu.memory_space<vmem>>, vector<8x384xbf16>
    %c5 = arith.constant 5 : index
    %c0_49 = arith.constant 0 : index
    %c0_50 = arith.constant 0 : index
    %63 = vector.load %arg4[%c5, %c0_49, %c0_50] : memref<9x8x8xbf16, #tpu.memory_space<vmem>>, vector<1x8x8xbf16>
    %64 = vector.shape_cast %63 : vector<1x8x8xbf16> to vector<8x8xbf16>
    %cst_51 = arith.constant dense<0.000000e+00> : vector<8x384xf32>
    %65 = tpu.matmul %64, %62, %cst_51 {dimension_numbers = #tpu.dot_dimension_numbers<[1], [0], [0], [1], [0, 0, 1, 1], [], []>} : vector<8x8xbf16>, vector<8x384xbf16>, vector<8x384xf32> -> vector<8x384xf32>
    %66 = arith.addf %59, %65 : vector<8x384xf32>
    %c0_i32_52 = arith.constant 0 : i32
    %c0_i32_53 = arith.constant 0 : i32
    %67 = tpu.memref_slice %arg8[%0, %c0_i32_52, %c0_i32_53] : memref<2x8x512xbf16, #tpu.memory_space<vmem>> -> memref<1x8x512xbf16, #tpu.memory_space<vmem>>
    %68 = tpu.memref_squeeze %67 : memref<1x8x512xbf16, #tpu.memory_space<vmem>> -> memref<8x512xbf16, #tpu.memory_space<vmem>>
    %c0_54 = arith.constant 0 : index
    %c36 = arith.constant 36 : index
    %69 = vector.load %68[%c0_54, %c36] : memref<8x512xbf16, #tpu.memory_space<vmem>>, vector<8x384xbf16>
    %c6 = arith.constant 6 : index
    %c0_55 = arith.constant 0 : index
    %c0_56 = arith.constant 0 : index
    %70 = vector.load %arg4[%c6, %c0_55, %c0_56] : memref<9x8x8xbf16, #tpu.memory_space<vmem>>, vector<1x8x8xbf16>
    %71 = vector.shape_cast %70 : vector<1x8x8xbf16> to vector<8x8xbf16>
    %cst_57 = arith.constant dense<0.000000e+00> : vector<8x384xf32>
    %72 = tpu.matmul %71, %69, %cst_57 {dimension_numbers = #tpu.dot_dimension_numbers<[1], [0], [0], [1], [0, 0, 1, 1], [], []>} : vector<8x8xbf16>, vector<8x384xbf16>, vector<8x384xf32> -> vector<8x384xf32>
    %73 = arith.addf %66, %72 : vector<8x384xf32>
    %c0_i32_58 = arith.constant 0 : i32
    %c0_i32_59 = arith.constant 0 : i32
    %74 = tpu.memref_slice %arg8[%0, %c0_i32_58, %c0_i32_59] : memref<2x8x512xbf16, #tpu.memory_space<vmem>> -> memref<1x8x512xbf16, #tpu.memory_space<vmem>>
    %75 = tpu.memref_squeeze %74 : memref<1x8x512xbf16, #tpu.memory_space<vmem>> -> memref<8x512xbf16, #tpu.memory_space<vmem>>
    %c0_60 = arith.constant 0 : index
    %c37 = arith.constant 37 : index
    %76 = vector.load %75[%c0_60, %c37] : memref<8x512xbf16, #tpu.memory_space<vmem>>, vector<8x384xbf16>
    %c7 = arith.constant 7 : index
    %c0_61 = arith.constant 0 : index
    %c0_62 = arith.constant 0 : index
    %77 = vector.load %arg4[%c7, %c0_61, %c0_62] : memref<9x8x8xbf16, #tpu.memory_space<vmem>>, vector<1x8x8xbf16>
    %78 = vector.shape_cast %77 : vector<1x8x8xbf16> to vector<8x8xbf16>
    %cst_63 = arith.constant dense<0.000000e+00> : vector<8x384xf32>
    %79 = tpu.matmul %78, %76, %cst_63 {dimension_numbers = #tpu.dot_dimension_numbers<[1], [0], [0], [1], [0, 0, 1, 1], [], []>} : vector<8x8xbf16>, vector<8x384xbf16>, vector<8x384xf32> -> vector<8x384xf32>
    %80 = arith.addf %73, %79 : vector<8x384xf32>
    %c0_i32_64 = arith.constant 0 : i32
    %c0_i32_65 = arith.constant 0 : i32
    %81 = tpu.memref_slice %arg8[%0, %c0_i32_64, %c0_i32_65] : memref<2x8x512xbf16, #tpu.memory_space<vmem>> -> memref<1x8x512xbf16, #tpu.memory_space<vmem>>
    %82 = tpu.memref_squeeze %81 : memref<1x8x512xbf16, #tpu.memory_space<vmem>> -> memref<8x512xbf16, #tpu.memory_space<vmem>>
    %c0_66 = arith.constant 0 : index
    %c38 = arith.constant 38 : index
    %83 = vector.load %82[%c0_66, %c38] : memref<8x512xbf16, #tpu.memory_space<vmem>>, vector<8x384xbf16>
    %c8 = arith.constant 8 : index
    %c0_67 = arith.constant 0 : index
    %c0_68 = arith.constant 0 : index
    %84 = vector.load %arg4[%c8, %c0_67, %c0_68] : memref<9x8x8xbf16, #tpu.memory_space<vmem>>, vector<1x8x8xbf16>
    %85 = vector.shape_cast %84 : vector<1x8x8xbf16> to vector<8x8xbf16>
    %cst_69 = arith.constant dense<0.000000e+00> : vector<8x384xf32>
    %86 = tpu.matmul %85, %83, %cst_69 {dimension_numbers = #tpu.dot_dimension_numbers<[1], [0], [0], [1], [0, 0, 1, 1], [], []>} : vector<8x8xbf16>, vector<8x384xbf16>, vector<8x384xf32> -> vector<8x384xf32>
    %87 = arith.addf %80, %86 : vector<8x384xf32>
    %c0_i32_70 = arith.constant 0 : i32
    %c0_i32_71 = arith.constant 0 : i32
    %88 = tpu.memref_slice %arg9[%0, %c0_i32_70, %c0_i32_71] : memref<2x8x512xbf16, #tpu.memory_space<vmem>> -> memref<1x8x512xbf16, #tpu.memory_space<vmem>>
    %89 = tpu.memref_squeeze %88 : memref<1x8x512xbf16, #tpu.memory_space<vmem>> -> memref<8x512xbf16, #tpu.memory_space<vmem>>
    %c0_72 = arith.constant 0 : index
    %c0_73 = arith.constant 0 : index
    %90 = vector.load %89[%c0_72, %c0_73] : memref<8x512xbf16, #tpu.memory_space<vmem>>, vector<8x384xbf16>
    %c0_74 = arith.constant 0 : index
    %c0_75 = arith.constant 0 : index
    %c0_76 = arith.constant 0 : index
    %91 = vector.load %arg5[%c0_74, %c0_75, %c0_76] : memref<9x8x8xbf16, #tpu.memory_space<vmem>>, vector<1x8x8xbf16>
    %92 = vector.shape_cast %91 : vector<1x8x8xbf16> to vector<8x8xbf16>
    %cst_77 = arith.constant dense<0.000000e+00> : vector<8x384xf32>
    %93 = tpu.matmul %92, %90, %cst_77 {dimension_numbers = #tpu.dot_dimension_numbers<[1], [0], [0], [1], [0, 0, 1, 1], [], []>} : vector<8x8xbf16>, vector<8x384xbf16>, vector<8x384xf32> -> vector<8x384xf32>
    %94 = arith.addf %87, %93 : vector<8x384xf32>
    %c0_i32_78 = arith.constant 0 : i32
    %c0_i32_79 = arith.constant 0 : i32
    %95 = tpu.memref_slice %arg9[%0, %c0_i32_78, %c0_i32_79] : memref<2x8x512xbf16, #tpu.memory_space<vmem>> -> memref<1x8x512xbf16, #tpu.memory_space<vmem>>
    %96 = tpu.memref_squeeze %95 : memref<1x8x512xbf16, #tpu.memory_space<vmem>> -> memref<8x512xbf16, #tpu.memory_space<vmem>>
    %c0_80 = arith.constant 0 : index
    %c1_81 = arith.constant 1 : index
    %97 = vector.load %96[%c0_80, %c1_81] : memref<8x512xbf16, #tpu.memory_space<vmem>>, vector<8x384xbf16>
    %c1_82 = arith.constant 1 : index
    %c0_83 = arith.constant 0 : index
    %c0_84 = arith.constant 0 : index
    %98 = vector.load %arg5[%c1_82, %c0_83, %c0_84] : memref<9x8x8xbf16, #tpu.memory_space<vmem>>, vector<1x8x8xbf16>
    %99 = vector.shape_cast %98 : vector<1x8x8xbf16> to vector<8x8xbf16>
    %cst_85 = arith.constant dense<0.000000e+00> : vector<8x384xf32>
    %100 = tpu.matmul %99, %97, %cst_85 {dimension_numbers = #tpu.dot_dimension_numbers<[1], [0], [0], [1], [0, 0, 1, 1], [], []>} : vector<8x8xbf16>, vector<8x384xbf16>, vector<8x384xf32> -> vector<8x384xf32>
    %101 = arith.addf %94, %100 : vector<8x384xf32>
    %c0_i32_86 = arith.constant 0 : i32
    %c0_i32_87 = arith.constant 0 : i32
    %102 = tpu.memref_slice %arg9[%0, %c0_i32_86, %c0_i32_87] : memref<2x8x512xbf16, #tpu.memory_space<vmem>> -> memref<1x8x512xbf16, #tpu.memory_space<vmem>>
    %103 = tpu.memref_squeeze %102 : memref<1x8x512xbf16, #tpu.memory_space<vmem>> -> memref<8x512xbf16, #tpu.memory_space<vmem>>
    %c0_88 = arith.constant 0 : index
    %c2_89 = arith.constant 2 : index
    %104 = vector.load %103[%c0_88, %c2_89] : memref<8x512xbf16, #tpu.memory_space<vmem>>, vector<8x384xbf16>
    %c2_90 = arith.constant 2 : index
    %c0_91 = arith.constant 0 : index
    %c0_92 = arith.constant 0 : index
    %105 = vector.load %arg5[%c2_90, %c0_91, %c0_92] : memref<9x8x8xbf16, #tpu.memory_space<vmem>>, vector<1x8x8xbf16>
    %106 = vector.shape_cast %105 : vector<1x8x8xbf16> to vector<8x8xbf16>
    %cst_93 = arith.constant dense<0.000000e+00> : vector<8x384xf32>
    %107 = tpu.matmul %106, %104, %cst_93 {dimension_numbers = #tpu.dot_dimension_numbers<[1], [0], [0], [1], [0, 0, 1, 1], [], []>} : vector<8x8xbf16>, vector<8x384xbf16>, vector<8x384xf32> -> vector<8x384xf32>
    %108 = arith.addf %101, %107 : vector<8x384xf32>
    %c0_i32_94 = arith.constant 0 : i32
    %c0_i32_95 = arith.constant 0 : i32
    %109 = tpu.memref_slice %arg9[%0, %c0_i32_94, %c0_i32_95] : memref<2x8x512xbf16, #tpu.memory_space<vmem>> -> memref<1x8x512xbf16, #tpu.memory_space<vmem>>
    %110 = tpu.memref_squeeze %109 : memref<1x8x512xbf16, #tpu.memory_space<vmem>> -> memref<8x512xbf16, #tpu.memory_space<vmem>>
    %c0_96 = arith.constant 0 : index
    %c18_97 = arith.constant 18 : index
    %111 = vector.load %110[%c0_96, %c18_97] : memref<8x512xbf16, #tpu.memory_space<vmem>>, vector<8x384xbf16>
    %c3_98 = arith.constant 3 : index
    %c0_99 = arith.constant 0 : index
    %c0_100 = arith.constant 0 : index
    %112 = vector.load %arg5[%c3_98, %c0_99, %c0_100] : memref<9x8x8xbf16, #tpu.memory_space<vmem>>, vector<1x8x8xbf16>
    %113 = vector.shape_cast %112 : vector<1x8x8xbf16> to vector<8x8xbf16>
    %cst_101 = arith.constant dense<0.000000e+00> : vector<8x384xf32>
    %114 = tpu.matmul %113, %111, %cst_101 {dimension_numbers = #tpu.dot_dimension_numbers<[1], [0], [0], [1], [0, 0, 1, 1], [], []>} : vector<8x8xbf16>, vector<8x384xbf16>, vector<8x384xf32> -> vector<8x384xf32>
    %115 = arith.addf %108, %114 : vector<8x384xf32>
    %c0_i32_102 = arith.constant 0 : i32
    %c0_i32_103 = arith.constant 0 : i32
    %116 = tpu.memref_slice %arg9[%0, %c0_i32_102, %c0_i32_103] : memref<2x8x512xbf16, #tpu.memory_space<vmem>> -> memref<1x8x512xbf16, #tpu.memory_space<vmem>>
    %117 = tpu.memref_squeeze %116 : memref<1x8x512xbf16, #tpu.memory_space<vmem>> -> memref<8x512xbf16, #tpu.memory_space<vmem>>
    %c0_104 = arith.constant 0 : index
    %c19_105 = arith.constant 19 : index
    %118 = vector.load %117[%c0_104, %c19_105] : memref<8x512xbf16, #tpu.memory_space<vmem>>, vector<8x384xbf16>
    %c4_106 = arith.constant 4 : index
    %c0_107 = arith.constant 0 : index
    %c0_108 = arith.constant 0 : index
    %119 = vector.load %arg5[%c4_106, %c0_107, %c0_108] : memref<9x8x8xbf16, #tpu.memory_space<vmem>>, vector<1x8x8xbf16>
    %120 = vector.shape_cast %119 : vector<1x8x8xbf16> to vector<8x8xbf16>
    %cst_109 = arith.constant dense<0.000000e+00> : vector<8x384xf32>
    %121 = tpu.matmul %120, %118, %cst_109 {dimension_numbers = #tpu.dot_dimension_numbers<[1], [0], [0], [1], [0, 0, 1, 1], [], []>} : vector<8x8xbf16>, vector<8x384xbf16>, vector<8x384xf32> -> vector<8x384xf32>
    %122 = arith.addf %115, %121 : vector<8x384xf32>
    %c0_i32_110 = arith.constant 0 : i32
    %c0_i32_111 = arith.constant 0 : i32
    %123 = tpu.memref_slice %arg9[%0, %c0_i32_110, %c0_i32_111] : memref<2x8x512xbf16, #tpu.memory_space<vmem>> -> memref<1x8x512xbf16, #tpu.memory_space<vmem>>
    %124 = tpu.memref_squeeze %123 : memref<1x8x512xbf16, #tpu.memory_space<vmem>> -> memref<8x512xbf16, #tpu.memory_space<vmem>>
    %c0_112 = arith.constant 0 : index
    %c20_113 = arith.constant 20 : index
    %125 = vector.load %124[%c0_112, %c20_113] : memref<8x512xbf16, #tpu.memory_space<vmem>>, vector<8x384xbf16>
    %c5_114 = arith.constant 5 : index
    %c0_115 = arith.constant 0 : index
    %c0_116 = arith.constant 0 : index
    %126 = vector.load %arg5[%c5_114, %c0_115, %c0_116] : memref<9x8x8xbf16, #tpu.memory_space<vmem>>, vector<1x8x8xbf16>
    %127 = vector.shape_cast %126 : vector<1x8x8xbf16> to vector<8x8xbf16>
    %cst_117 = arith.constant dense<0.000000e+00> : vector<8x384xf32>
    %128 = tpu.matmul %127, %125, %cst_117 {dimension_numbers = #tpu.dot_dimension_numbers<[1], [0], [0], [1], [0, 0, 1, 1], [], []>} : vector<8x8xbf16>, vector<8x384xbf16>, vector<8x384xf32> -> vector<8x384xf32>
    %129 = arith.addf %122, %128 : vector<8x384xf32>
    %c0_i32_118 = arith.constant 0 : i32
    %c0_i32_119 = arith.constant 0 : i32
    %130 = tpu.memref_slice %arg9[%0, %c0_i32_118, %c0_i32_119] : memref<2x8x512xbf16, #tpu.memory_space<vmem>> -> memref<1x8x512xbf16, #tpu.memory_space<vmem>>
    %131 = tpu.memref_squeeze %130 : memref<1x8x512xbf16, #tpu.memory_space<vmem>> -> memref<8x512xbf16, #tpu.memory_space<vmem>>
    %c0_120 = arith.constant 0 : index
    %c36_121 = arith.constant 36 : index
    %132 = vector.load %131[%c0_120, %c36_121] : memref<8x512xbf16, #tpu.memory_space<vmem>>, vector<8x384xbf16>
    %c6_122 = arith.constant 6 : index
    %c0_123 = arith.constant 0 : index
    %c0_124 = arith.constant 0 : index
    %133 = vector.load %arg5[%c6_122, %c0_123, %c0_124] : memref<9x8x8xbf16, #tpu.memory_space<vmem>>, vector<1x8x8xbf16>
    %134 = vector.shape_cast %133 : vector<1x8x8xbf16> to vector<8x8xbf16>
    %cst_125 = arith.constant dense<0.000000e+00> : vector<8x384xf32>
    %135 = tpu.matmul %134, %132, %cst_125 {dimension_numbers = #tpu.dot_dimension_numbers<[1], [0], [0], [1], [0, 0, 1, 1], [], []>} : vector<8x8xbf16>, vector<8x384xbf16>, vector<8x384xf32> -> vector<8x384xf32>
    %136 = arith.addf %129, %135 : vector<8x384xf32>
    %c0_i32_126 = arith.constant 0 : i32
    %c0_i32_127 = arith.constant 0 : i32
    %137 = tpu.memref_slice %arg9[%0, %c0_i32_126, %c0_i32_127] : memref<2x8x512xbf16, #tpu.memory_space<vmem>> -> memref<1x8x512xbf16, #tpu.memory_space<vmem>>
    %138 = tpu.memref_squeeze %137 : memref<1x8x512xbf16, #tpu.memory_space<vmem>> -> memref<8x512xbf16, #tpu.memory_space<vmem>>
    %c0_128 = arith.constant 0 : index
    %c37_129 = arith.constant 37 : index
    %139 = vector.load %138[%c0_128, %c37_129] : memref<8x512xbf16, #tpu.memory_space<vmem>>, vector<8x384xbf16>
    %c7_130 = arith.constant 7 : index
    %c0_131 = arith.constant 0 : index
    %c0_132 = arith.constant 0 : index
    %140 = vector.load %arg5[%c7_130, %c0_131, %c0_132] : memref<9x8x8xbf16, #tpu.memory_space<vmem>>, vector<1x8x8xbf16>
    %141 = vector.shape_cast %140 : vector<1x8x8xbf16> to vector<8x8xbf16>
    %cst_133 = arith.constant dense<0.000000e+00> : vector<8x384xf32>
    %142 = tpu.matmul %141, %139, %cst_133 {dimension_numbers = #tpu.dot_dimension_numbers<[1], [0], [0], [1], [0, 0, 1, 1], [], []>} : vector<8x8xbf16>, vector<8x384xbf16>, vector<8x384xf32> -> vector<8x384xf32>
    %143 = arith.addf %136, %142 : vector<8x384xf32>
    %c0_i32_134 = arith.constant 0 : i32
    %c0_i32_135 = arith.constant 0 : i32
    %144 = tpu.memref_slice %arg9[%0, %c0_i32_134, %c0_i32_135] : memref<2x8x512xbf16, #tpu.memory_space<vmem>> -> memref<1x8x512xbf16, #tpu.memory_space<vmem>>
    %145 = tpu.memref_squeeze %144 : memref<1x8x512xbf16, #tpu.memory_space<vmem>> -> memref<8x512xbf16, #tpu.memory_space<vmem>>
    %c0_136 = arith.constant 0 : index
    %c38_137 = arith.constant 38 : index
    %146 = vector.load %145[%c0_136, %c38_137] : memref<8x512xbf16, #tpu.memory_space<vmem>>, vector<8x384xbf16>
    %c8_138 = arith.constant 8 : index
    %c0_139 = arith.constant 0 : index
    %c0_140 = arith.constant 0 : index
    %147 = vector.load %arg5[%c8_138, %c0_139, %c0_140] : memref<9x8x8xbf16, #tpu.memory_space<vmem>>, vector<1x8x8xbf16>
    %148 = vector.shape_cast %147 : vector<1x8x8xbf16> to vector<8x8xbf16>
    %cst_141 = arith.constant dense<0.000000e+00> : vector<8x384xf32>
    %149 = tpu.matmul %148, %146, %cst_141 {dimension_numbers = #tpu.dot_dimension_numbers<[1], [0], [0], [1], [0, 0, 1, 1], [], []>} : vector<8x8xbf16>, vector<8x384xbf16>, vector<8x384xf32> -> vector<8x384xf32>
    %150 = arith.addf %143, %149 : vector<8x384xf32>
    %c0_142 = arith.constant 0 : index
    %c0_143 = arith.constant 0 : index
    %151 = vector.load %arg6[%c0_142, %c0_143] : memref<8x4xf32, #tpu.memory_space<vmem>>, vector<8x4xf32>
    %152 = vector.extract_strided_slice %151 {offsets = [0, 0], sizes = [8, 1], strides = [1, 1]} : vector<8x4xf32> to vector<8x1xf32>
    %153 = vector.broadcast %152 : vector<8x1xf32> to vector<8x384xf32>
    %154 = arith.mulf %150, %153 : vector<8x384xf32>
    %155 = vector.extract_strided_slice %151 {offsets = [0, 1], sizes = [8, 1], strides = [1, 1]} : vector<8x4xf32> to vector<8x1xf32>
    %156 = vector.broadcast %155 : vector<8x1xf32> to vector<8x384xf32>
    %157 = arith.addf %154, %156 : vector<8x384xf32>
    %cst_144 = arith.constant 0.000000e+00 : f32
    %158 = vector.broadcast %cst_144 : f32 to vector<8x384xf32>
    %159 = arith.cmpf ogt, %157, %158 : vector<8x384xf32>
    %cst_145 = arith.constant 0.00999999977 : f32
    %160 = vector.broadcast %cst_145 : f32 to vector<8x384xf32>
    %161 = arith.mulf %160, %157 : vector<8x384xf32>
    %162 = arith.select %159, %157, %161 : vector<8x384xi1>, vector<8x384xf32>
    %163 = arith.truncf %162 : vector<8x384xf32> to vector<8x384xbf16>
    %c0_146 = arith.constant 0 : index
    %c0_147 = arith.constant 0 : index
    %c0_148 = arith.constant 0 : index
    %164 = vector.load %arg7[%c0_146, %c0_147, %c0_148] : memref<1x8x384xbf16, #tpu.memory_space<vmem>>, vector<1x8x384xbf16>
    %165 = vector.shape_cast %164 : vector<1x8x384xbf16> to vector<8x384xbf16>
    %166 = vector.shape_cast %163 : vector<8x384xbf16> to vector<1x8x384xbf16>
    tpu.vector_store %arg7[%c0_146, %c0_147, %c0_148], %166 {strides = array<i32>} : memref<1x8x384xbf16, #tpu.memory_space<vmem>>, vector<1x8x384xbf16>,
    return
  }
  func.func @transform_2(%arg0: i32, %arg1: i32) -> (i32, i32, i32) {
    %c0_i32 = arith.constant 0 : i32
    %c0_i32_0 = arith.constant 0 : i32
    %c0_i32_1 = arith.constant 0 : i32
    %c0_i32_2 = arith.constant 0 : i32
    return %c0_i32, %c0_i32_0, %c0_i32_1 : i32, i32, i32
  }
  func.func @transform_3(%arg0: i32, %arg1: i32) -> (i32, i32, i32) {
    %c0_i32 = arith.constant 0 : i32
    %c0_i32_0 = arith.constant 0 : i32
    %c0_i32_1 = arith.constant 0 : i32
    %c0_i32_2 = arith.constant 0 : i32
    return %c0_i32, %c0_i32_0, %c0_i32_1 : i32, i32, i32
  }
  func.func @transform_4(%arg0: i32, %arg1: i32) -> (i32, i32) {
    %c0_i32 = arith.constant 0 : i32
    %c0_i32_0 = arith.constant 0 : i32
    %c0_i32_1 = arith.constant 0 : i32
    return %c0_i32, %c0_i32_0 : i32, i32
  }
  func.func @transform_5(%arg0: i32, %arg1: i32) -> (i32, i32, i32) {
    %c0_i32 = arith.constant 0 : i32
    %c0_i32_0 = arith.constant 0 : i32
    return %arg0, %c0_i32, %arg1 : i32, i32, i32
  }
}

module attributes {stable_mosaic.version = 11 : i64} {
  func.func @_conv_kernel(%arg0: i32, %arg1: i32, %arg2: memref<2x8x256xbf16, #tpu.memory_space<any>>, %arg3: memref<2x8x256xbf16, #tpu.memory_space<any>>, %arg4: memref<1x8x8xbf16, #tpu.memory_space<vmem>>, %arg5: memref<1x8x8xbf16, #tpu.memory_space<vmem>>, %arg6: memref<8x4xf32, #tpu.memory_space<vmem>>, %arg7: memref<1x8x256xbf16, #tpu.memory_space<vmem>>, %arg8: memref<2x8x256xbf16, #tpu.memory_space<vmem>>, %arg9: memref<2x8x256xbf16, #tpu.memory_space<vmem>>, %arg10: memref<2x2x!tpu.dma_semaphore, #tpu.memory_space<semaphore_mem>>) attributes {dimension_semantics = [#tpu.dimension_semantics<parallel>, #tpu.dimension_semantics<arbitrary>], iteration_bounds = array<i64: 2, 1>, scalar_prefetch = 0 : i64, scratch_operands = 3 : i64, tpu.core_type = #tpu.core_type<tc>, window_params = [{}, {}, {pipeline_mode = #tpu.pipeline_mode<synchronous>, transform_indices = @transform_2, window_bounds = array<i64: 1, 8, 8>}, {pipeline_mode = #tpu.pipeline_mode<synchronous>, transform_indices = @transform_3, window_bounds = array<i64: 1, 8, 8>}, {pipeline_mode = #tpu.pipeline_mode<synchronous>, transform_indices = @transform_4, window_bounds = array<i64: 8, 4>}, {transform_indices = @transform_5, window_bounds = array<i64: 1, 8, 256>}]} {
    %c1_i32 = arith.constant 1 : i32
    %0 = arith.andi %arg1, %c1_i32 : i32
    %c0_i32 = arith.constant 0 : i32
    %1 = arith.cmpi eq, %arg1, %c0_i32 : i32
    %2 = arith.extui %1 : i1 to i32
    %c0_i32_0 = arith.constant 0 : i32
    %3 = arith.cmpi ne, %2, %c0_i32_0 : i32
    scf.if %3 {
      %c256_i32_35 = arith.constant 256 : i32
      %55 = arith.muli %arg1, %c256_i32_35 : i32
      %56 = tpu.assume_multiple %55, 128 : i32
      %c0_i32_36 = arith.constant 0 : i32
      %c0_i32_37 = arith.constant 0 : i32
      %57 = tpu.memref_slice %arg2[%arg0, %c0_i32_37, %56] : memref<2x8x256xbf16, #tpu.memory_space<any>> -> memref<1x8x256xbf16, #tpu.memory_space<any>>
      %58 = tpu.memref_squeeze %57 : memref<1x8x256xbf16, #tpu.memory_space<any>> -> memref<8x256xbf16, #tpu.memory_space<any>>
      %c0_i32_38 = arith.constant 0 : i32
      %c0_i32_39 = arith.constant 0 : i32
      %59 = tpu.memref_slice %arg8[%0, %c0_i32_38, %c0_i32_39] : memref<2x8x256xbf16, #tpu.memory_space<vmem>> -> memref<1x8x256xbf16, #tpu.memory_space<vmem>>
      %60 = tpu.memref_squeeze %59 : memref<1x8x256xbf16, #tpu.memory_space<vmem>> -> memref<8x256xbf16, #tpu.memory_space<vmem>>
      %61 = tpu.memref_slice %arg10[%c0_i32_36, %0] : memref<2x2x!tpu.dma_semaphore, #tpu.memory_space<semaphore_mem>> -> memref<1x1x!tpu.dma_semaphore, #tpu.memory_space<semaphore_mem>>
      %62 = tpu.memref_squeeze %61 : memref<1x1x!tpu.dma_semaphore, #tpu.memory_space<semaphore_mem>> -> memref<!tpu.dma_semaphore, #tpu.memory_space<semaphore_mem>>
      tpu.enqueue_dma source(%58 : memref<8x256xbf16, #tpu.memory_space<any>>) target(%60 : memref<8x256xbf16, #tpu.memory_space<vmem>>) target_semaphore(%62 : memref<!tpu.dma_semaphore, #tpu.memory_space<semaphore_mem>>)
      %c256_i32_40 = arith.constant 256 : i32
      %63 = arith.muli %arg1, %c256_i32_40 : i32
      %64 = tpu.assume_multiple %63, 128 : i32
      %c1_i32_41 = arith.constant 1 : i32
      %c0_i32_42 = arith.constant 0 : i32
      %65 = tpu.memref_slice %arg3[%arg0, %c0_i32_42, %64] : memref<2x8x256xbf16, #tpu.memory_space<any>> -> memref<1x8x256xbf16, #tpu.memory_space<any>>
      %66 = tpu.memref_squeeze %65 : memref<1x8x256xbf16, #tpu.memory_space<any>> -> memref<8x256xbf16, #tpu.memory_space<any>>
      %c0_i32_43 = arith.constant 0 : i32
      %c0_i32_44 = arith.constant 0 : i32
      %67 = tpu.memref_slice %arg9[%0, %c0_i32_43, %c0_i32_44] : memref<2x8x256xbf16, #tpu.memory_space<vmem>> -> memref<1x8x256xbf16, #tpu.memory_space<vmem>>
      %68 = tpu.memref_squeeze %67 : memref<1x8x256xbf16, #tpu.memory_space<vmem>> -> memref<8x256xbf16, #tpu.memory_space<vmem>>
      %69 = tpu.memref_slice %arg10[%c1_i32_41, %0] : memref<2x2x!tpu.dma_semaphore, #tpu.memory_space<semaphore_mem>> -> memref<1x1x!tpu.dma_semaphore, #tpu.memory_space<semaphore_mem>>
      %70 = tpu.memref_squeeze %69 : memref<1x1x!tpu.dma_semaphore, #tpu.memory_space<semaphore_mem>> -> memref<!tpu.dma_semaphore, #tpu.memory_space<semaphore_mem>>
      tpu.enqueue_dma source(%66 : memref<8x256xbf16, #tpu.memory_space<any>>) target(%68 : memref<8x256xbf16, #tpu.memory_space<vmem>>) target_semaphore(%70 : memref<!tpu.dma_semaphore, #tpu.memory_space<semaphore_mem>>)
    } else {
    }
    %c1_i32_1 = arith.constant 1 : i32
    %4 = arith.addi %arg1, %c1_i32_1 : i32
    %c1_i32_2 = arith.constant 1 : i32
    %5 = arith.cmpi slt, %4, %c1_i32_2 : i32
    %6 = arith.extui %5 : i1 to i32
    %c0_i32_3 = arith.constant 0 : i32
    %7 = arith.cmpi ne, %6, %c0_i32_3 : i32
    scf.if %7 {
      %c1_i32_35 = arith.constant 1 : i32
      %55 = arith.addi %arg1, %c1_i32_35 : i32
      %c1_i32_36 = arith.constant 1 : i32
      %56 = arith.subi %c1_i32_36, %0 : i32
      %c256_i32_37 = arith.constant 256 : i32
      %57 = arith.muli %55, %c256_i32_37 : i32
      %58 = tpu.assume_multiple %57, 128 : i32
      %c0_i32_38 = arith.constant 0 : i32
      %c0_i32_39 = arith.constant 0 : i32
      %59 = tpu.memref_slice %arg2[%arg0, %c0_i32_39, %58] : memref<2x8x256xbf16, #tpu.memory_space<any>> -> memref<1x8x256xbf16, #tpu.memory_space<any>>
      %60 = tpu.memref_squeeze %59 : memref<1x8x256xbf16, #tpu.memory_space<any>> -> memref<8x256xbf16, #tpu.memory_space<any>>
      %c0_i32_40 = arith.constant 0 : i32
      %c0_i32_41 = arith.constant 0 : i32
      %61 = tpu.memref_slice %arg8[%56, %c0_i32_40, %c0_i32_41] : memref<2x8x256xbf16, #tpu.memory_space<vmem>> -> memref<1x8x256xbf16, #tpu.memory_space<vmem>>
      %62 = tpu.memref_squeeze %61 : memref<1x8x256xbf16, #tpu.memory_space<vmem>> -> memref<8x256xbf16, #tpu.memory_space<vmem>>
      %63 = tpu.memref_slice %arg10[%c0_i32_38, %56] : memref<2x2x!tpu.dma_semaphore, #tpu.memory_space<semaphore_mem>> -> memref<1x1x!tpu.dma_semaphore, #tpu.memory_space<semaphore_mem>>
      %64 = tpu.memref_squeeze %63 : memref<1x1x!tpu.dma_semaphore, #tpu.memory_space<semaphore_mem>> -> memref<!tpu.dma_semaphore, #tpu.memory_space<semaphore_mem>>
      tpu.enqueue_dma source(%60 : memref<8x256xbf16, #tpu.memory_space<any>>) target(%62 : memref<8x256xbf16, #tpu.memory_space<vmem>>) target_semaphore(%64 : memref<!tpu.dma_semaphore, #tpu.memory_space<semaphore_mem>>)
      %c1_i32_42 = arith.constant 1 : i32
      %65 = arith.addi %arg1, %c1_i32_42 : i32
      %c1_i32_43 = arith.constant 1 : i32
      %66 = arith.subi %c1_i32_43, %0 : i32
      %c256_i32_44 = arith.constant 256 : i32
      %67 = arith.muli %65, %c256_i32_44 : i32
      %68 = tpu.assume_multiple %67, 128 : i32
      %c1_i32_45 = arith.constant 1 : i32
      %c0_i32_46 = arith.constant 0 : i32
      %69 = tpu.memref_slice %arg3[%arg0, %c0_i32_46, %68] : memref<2x8x256xbf16, #tpu.memory_space<any>> -> memref<1x8x256xbf16, #tpu.memory_space<any>>
      %70 = tpu.memref_squeeze %69 : memref<1x8x256xbf16, #tpu.memory_space<any>> -> memref<8x256xbf16, #tpu.memory_space<any>>
      %c0_i32_47 = arith.constant 0 : i32
      %c0_i32_48 = arith.constant 0 : i32
      %71 = tpu.memref_slice %arg9[%66, %c0_i32_47, %c0_i32_48] : memref<2x8x256xbf16, #tpu.memory_space<vmem>> -> memref<1x8x256xbf16, #tpu.memory_space<vmem>>
      %72 = tpu.memref_squeeze %71 : memref<1x8x256xbf16, #tpu.memory_space<vmem>> -> memref<8x256xbf16, #tpu.memory_space<vmem>>
      %73 = tpu.memref_slice %arg10[%c1_i32_45, %66] : memref<2x2x!tpu.dma_semaphore, #tpu.memory_space<semaphore_mem>> -> memref<1x1x!tpu.dma_semaphore, #tpu.memory_space<semaphore_mem>>
      %74 = tpu.memref_squeeze %73 : memref<1x1x!tpu.dma_semaphore, #tpu.memory_space<semaphore_mem>> -> memref<!tpu.dma_semaphore, #tpu.memory_space<semaphore_mem>>
      tpu.enqueue_dma source(%70 : memref<8x256xbf16, #tpu.memory_space<any>>) target(%72 : memref<8x256xbf16, #tpu.memory_space<vmem>>) target_semaphore(%74 : memref<!tpu.dma_semaphore, #tpu.memory_space<semaphore_mem>>)
    } else {
    }
    %c256_i32 = arith.constant 256 : i32
    %8 = arith.muli %arg1, %c256_i32 : i32
    %9 = tpu.assume_multiple %8, 128 : i32
    %c0_i32_4 = arith.constant 0 : i32
    %c0_i32_5 = arith.constant 0 : i32
    %10 = tpu.memref_slice %arg2[%arg0, %c0_i32_5, %9] : memref<2x8x256xbf16, #tpu.memory_space<any>> -> memref<1x8x256xbf16, #tpu.memory_space<any>>
    %11 = tpu.memref_squeeze %10 : memref<1x8x256xbf16, #tpu.memory_space<any>> -> memref<8x256xbf16, #tpu.memory_space<any>>
    %c0_i32_6 = arith.constant 0 : i32
    %c0_i32_7 = arith.constant 0 : i32
    %12 = tpu.memref_slice %arg8[%0, %c0_i32_6, %c0_i32_7] : memref<2x8x256xbf16, #tpu.memory_space<vmem>> -> memref<1x8x256xbf16, #tpu.memory_space<vmem>>
    %13 = tpu.memref_squeeze %12 : memref<1x8x256xbf16, #tpu.memory_space<vmem>> -> memref<8x256xbf16, #tpu.memory_space<vmem>>
    %14 = tpu.memref_slice %arg10[%c0_i32_4, %0] : memref<2x2x!tpu.dma_semaphore, #tpu.memory_space<semaphore_mem>> -> memref<1x1x!tpu.dma_semaphore, #tpu.memory_space<semaphore_mem>>
    %15 = tpu.memref_squeeze %14 : memref<1x1x!tpu.dma_semaphore, #tpu.memory_space<semaphore_mem>> -> memref<!tpu.dma_semaphore, #tpu.memory_space<semaphore_mem>>
    tpu.wait_dma2 semaphore(%15 : memref<!tpu.dma_semaphore, #tpu.memory_space<semaphore_mem>>) src(%11 : memref<8x256xbf16, #tpu.memory_space<any>>) dst(%13 : memref<8x256xbf16, #tpu.memory_space<vmem>>)
    %c256_i32_8 = arith.constant 256 : i32
    %16 = arith.muli %arg1, %c256_i32_8 : i32
    %17 = tpu.assume_multiple %16, 128 : i32
    %c1_i32_9 = arith.constant 1 : i32
    %c0_i32_10 = arith.constant 0 : i32
    %18 = tpu.memref_slice %arg3[%arg0, %c0_i32_10, %17] : memref<2x8x256xbf16, #tpu.memory_space<any>> -> memref<1x8x256xbf16, #tpu.memory_space<any>>
    %19 = tpu.memref_squeeze %18 : memref<1x8x256xbf16, #tpu.memory_space<any>> -> memref<8x256xbf16, #tpu.memory_space<any>>
    %c0_i32_11 = arith.constant 0 : i32
    %c0_i32_12 = arith.constant 0 : i32
    %20 = tpu.memref_slice %arg9[%0, %c0_i32_11, %c0_i32_12] : memref<2x8x256xbf16, #tpu.memory_space<vmem>> -> memref<1x8x256xbf16, #tpu.memory_space<vmem>>
    %21 = tpu.memref_squeeze %20 : memref<1x8x256xbf16, #tpu.memory_space<vmem>> -> memref<8x256xbf16, #tpu.memory_space<vmem>>
    %22 = tpu.memref_slice %arg10[%c1_i32_9, %0] : memref<2x2x!tpu.dma_semaphore, #tpu.memory_space<semaphore_mem>> -> memref<1x1x!tpu.dma_semaphore, #tpu.memory_space<semaphore_mem>>
    %23 = tpu.memref_squeeze %22 : memref<1x1x!tpu.dma_semaphore, #tpu.memory_space<semaphore_mem>> -> memref<!tpu.dma_semaphore, #tpu.memory_space<semaphore_mem>>
    tpu.wait_dma2 semaphore(%23 : memref<!tpu.dma_semaphore, #tpu.memory_space<semaphore_mem>>) src(%19 : memref<8x256xbf16, #tpu.memory_space<any>>) dst(%21 : memref<8x256xbf16, #tpu.memory_space<vmem>>)
    %cst = arith.constant 0.000000e+00 : f32
    %24 = vector.broadcast %cst : f32 to vector<8x256xf32>
    %c0_i32_13 = arith.constant 0 : i32
    %c0_i32_14 = arith.constant 0 : i32
    %25 = tpu.memref_slice %arg8[%0, %c0_i32_13, %c0_i32_14] : memref<2x8x256xbf16, #tpu.memory_space<vmem>> -> memref<1x8x256xbf16, #tpu.memory_space<vmem>>
    %26 = tpu.memref_squeeze %25 : memref<1x8x256xbf16, #tpu.memory_space<vmem>> -> memref<8x256xbf16, #tpu.memory_space<vmem>>
    %c0 = arith.constant 0 : index
    %c0_15 = arith.constant 0 : index
    %27 = vector.load %26[%c0, %c0_15] : memref<8x256xbf16, #tpu.memory_space<vmem>>, vector<8x256xbf16>
    %c0_16 = arith.constant 0 : index
    %c0_17 = arith.constant 0 : index
    %c0_18 = arith.constant 0 : index
    %28 = vector.load %arg4[%c0_16, %c0_17, %c0_18] : memref<1x8x8xbf16, #tpu.memory_space<vmem>>, vector<1x8x8xbf16>
    %29 = vector.shape_cast %28 : vector<1x8x8xbf16> to vector<8x8xbf16>
    %cst_19 = arith.constant dense<0.000000e+00> : vector<8x256xf32>
    %30 = tpu.matmul %29, %27, %cst_19 {dimension_numbers = #tpu.dot_dimension_numbers<[1], [0], [0], [1], [0, 0, 1, 1], [], []>} : vector<8x8xbf16>, vector<8x256xbf16>, vector<8x256xf32> -> vector<8x256xf32>
    %31 = arith.addf %24, %30 : vector<8x256xf32>
    %c0_i32_20 = arith.constant 0 : i32
    %c0_i32_21 = arith.constant 0 : i32
    %32 = tpu.memref_slice %arg9[%0, %c0_i32_20, %c0_i32_21] : memref<2x8x256xbf16, #tpu.memory_space<vmem>> -> memref<1x8x256xbf16, #tpu.memory_space<vmem>>
    %33 = tpu.memref_squeeze %32 : memref<1x8x256xbf16, #tpu.memory_space<vmem>> -> memref<8x256xbf16, #tpu.memory_space<vmem>>
    %c0_22 = arith.constant 0 : index
    %c0_23 = arith.constant 0 : index
    %34 = vector.load %33[%c0_22, %c0_23] : memref<8x256xbf16, #tpu.memory_space<vmem>>, vector<8x256xbf16>
    %c0_24 = arith.constant 0 : index
    %c0_25 = arith.constant 0 : index
    %c0_26 = arith.constant 0 : index
    %35 = vector.load %arg5[%c0_24, %c0_25, %c0_26] : memref<1x8x8xbf16, #tpu.memory_space<vmem>>, vector<1x8x8xbf16>
    %36 = vector.shape_cast %35 : vector<1x8x8xbf16> to vector<8x8xbf16>
    %cst_27 = arith.constant dense<0.000000e+00> : vector<8x256xf32>
    %37 = tpu.matmul %36, %34, %cst_27 {dimension_numbers = #tpu.dot_dimension_numbers<[1], [0], [0], [1], [0, 0, 1, 1], [], []>} : vector<8x8xbf16>, vector<8x256xbf16>, vector<8x256xf32> -> vector<8x256xf32>
    %38 = arith.addf %31, %37 : vector<8x256xf32>
    %c0_28 = arith.constant 0 : index
    %c0_29 = arith.constant 0 : index
    %39 = vector.load %arg6[%c0_28, %c0_29] : memref<8x4xf32, #tpu.memory_space<vmem>>, vector<8x4xf32>
    %40 = vector.extract_strided_slice %39 {offsets = [0, 0], sizes = [8, 1], strides = [1, 1]} : vector<8x4xf32> to vector<8x1xf32>
    %41 = vector.broadcast %40 : vector<8x1xf32> to vector<8x256xf32>
    %42 = arith.mulf %38, %41 : vector<8x256xf32>
    %43 = vector.extract_strided_slice %39 {offsets = [0, 1], sizes = [8, 1], strides = [1, 1]} : vector<8x4xf32> to vector<8x1xf32>
    %44 = vector.broadcast %43 : vector<8x1xf32> to vector<8x256xf32>
    %45 = arith.addf %42, %44 : vector<8x256xf32>
    %cst_30 = arith.constant 0.000000e+00 : f32
    %46 = vector.broadcast %cst_30 : f32 to vector<8x256xf32>
    %47 = arith.cmpf ogt, %45, %46 : vector<8x256xf32>
    %cst_31 = arith.constant 0.00999999977 : f32
    %48 = vector.broadcast %cst_31 : f32 to vector<8x256xf32>
    %49 = arith.mulf %48, %45 : vector<8x256xf32>
    %50 = arith.select %47, %45, %49 : vector<8x256xi1>, vector<8x256xf32>
    %51 = arith.truncf %50 : vector<8x256xf32> to vector<8x256xbf16>
    %c0_32 = arith.constant 0 : index
    %c0_33 = arith.constant 0 : index
    %c0_34 = arith.constant 0 : index
    %52 = vector.load %arg7[%c0_32, %c0_33, %c0_34] : memref<1x8x256xbf16, #tpu.memory_space<vmem>>, vector<1x8x256xbf16>
    %53 = vector.shape_cast %52 : vector<1x8x256xbf16> to vector<8x256xbf16>
    %54 = vector.shape_cast %51 : vector<8x256xbf16> to vector<1x8x256xbf16>
    tpu.vector_store %arg7[%c0_32, %c0_33, %c0_34], %54 {strides = array<i32>} : memref<1x8x256xbf16, #tpu.memory_space<vmem>>, vector<1x8x256xbf16>,
    return
  }
  func.func @transform_2(%arg0: i32, %arg1: i32) -> (i32, i32, i32) {
    %c0_i32 = arith.constant 0 : i32
    %c0_i32_0 = arith.constant 0 : i32
    %c0_i32_1 = arith.constant 0 : i32
    %c0_i32_2 = arith.constant 0 : i32
    return %c0_i32, %c0_i32_0, %c0_i32_1 : i32, i32, i32
  }
  func.func @transform_3(%arg0: i32, %arg1: i32) -> (i32, i32, i32) {
    %c0_i32 = arith.constant 0 : i32
    %c0_i32_0 = arith.constant 0 : i32
    %c0_i32_1 = arith.constant 0 : i32
    %c0_i32_2 = arith.constant 0 : i32
    return %c0_i32, %c0_i32_0, %c0_i32_1 : i32, i32, i32
  }
  func.func @transform_4(%arg0: i32, %arg1: i32) -> (i32, i32) {
    %c0_i32 = arith.constant 0 : i32
    %c0_i32_0 = arith.constant 0 : i32
    %c0_i32_1 = arith.constant 0 : i32
    return %c0_i32, %c0_i32_0 : i32, i32
  }
  func.func @transform_5(%arg0: i32, %arg1: i32) -> (i32, i32, i32) {
    %c0_i32 = arith.constant 0 : i32
    %c0_i32_0 = arith.constant 0 : i32
    return %arg0, %c0_i32, %arg1 : i32, i32, i32
  }
}

module attributes {stable_mosaic.version = 11 : i64} {
  func.func @_conv_kernel(%arg0: i32, %arg1: i32, %arg2: memref<2x8x256xbf16, #tpu.memory_space<any>>, %arg3: memref<1x8x8xbf16, #tpu.memory_space<vmem>>, %arg4: memref<8x4xf32, #tpu.memory_space<vmem>>, %arg5: memref<1x8x256xf32, #tpu.memory_space<vmem>>, %arg6: memref<2x8x256xbf16, #tpu.memory_space<vmem>>, %arg7: memref<1x2x!tpu.dma_semaphore, #tpu.memory_space<semaphore_mem>>) attributes {dimension_semantics = [#tpu.dimension_semantics<parallel>, #tpu.dimension_semantics<arbitrary>], iteration_bounds = array<i64: 2, 1>, scalar_prefetch = 0 : i64, scratch_operands = 2 : i64, tpu.core_type = #tpu.core_type<tc>, window_params = [{}, {pipeline_mode = #tpu.pipeline_mode<synchronous>, transform_indices = @transform_1, window_bounds = array<i64: 1, 8, 8>}, {pipeline_mode = #tpu.pipeline_mode<synchronous>, transform_indices = @transform_2, window_bounds = array<i64: 8, 4>}, {transform_indices = @transform_3, window_bounds = array<i64: 1, 8, 256>}]} {
    %c1_i32 = arith.constant 1 : i32
    %0 = arith.andi %arg1, %c1_i32 : i32
    %c0_i32 = arith.constant 0 : i32
    %1 = arith.cmpi eq, %arg1, %c0_i32 : i32
    %2 = arith.extui %1 : i1 to i32
    %c0_i32_0 = arith.constant 0 : i32
    %3 = arith.cmpi ne, %2, %c0_i32_0 : i32
    scf.if %3 {
      %c256_i32_20 = arith.constant 256 : i32
      %31 = arith.muli %arg1, %c256_i32_20 : i32
      %32 = tpu.assume_multiple %31, 128 : i32
      %c0_i32_21 = arith.constant 0 : i32
      %c0_i32_22 = arith.constant 0 : i32
      %33 = tpu.memref_slice %arg2[%arg0, %c0_i32_22, %32] : memref<2x8x256xbf16, #tpu.memory_space<any>> -> memref<1x8x256xbf16, #tpu.memory_space<any>>
      %34 = tpu.memref_squeeze %33 : memref<1x8x256xbf16, #tpu.memory_space<any>> -> memref<8x256xbf16, #tpu.memory_space<any>>
      %c0_i32_23 = arith.constant 0 : i32
      %c0_i32_24 = arith.constant 0 : i32
      %35 = tpu.memref_slice %arg6[%0, %c0_i32_23, %c0_i32_24] : memref<2x8x256xbf16, #tpu.memory_space<vmem>> -> memref<1x8x256xbf16, #tpu.memory_space<vmem>>
      %36 = tpu.memref_squeeze %35 : memref<1x8x256xbf16, #tpu.memory_space<vmem>> -> memref<8x256xbf16, #tpu.memory_space<vmem>>
      %37 = tpu.memref_slice %arg7[%c0_i32_21, %0] : memref<1x2x!tpu.dma_semaphore, #tpu.memory_space<semaphore_mem>> -> memref<1x1x!tpu.dma_semaphore, #tpu.memory_space<semaphore_mem>>
      %38 = tpu.memref_squeeze %37 : memref<1x1x!tpu.dma_semaphore, #tpu.memory_space<semaphore_mem>> -> memref<!tpu.dma_semaphore, #tpu.memory_space<semaphore_mem>>
      tpu.enqueue_dma source(%34 : memref<8x256xbf16, #tpu.memory_space<any>>) target(%36 : memref<8x256xbf16, #tpu.memory_space<vmem>>) target_semaphore(%38 : memref<!tpu.dma_semaphore, #tpu.memory_space<semaphore_mem>>)
    } else {
    }
    %c1_i32_1 = arith.constant 1 : i32
    %4 = arith.addi %arg1, %c1_i32_1 : i32
    %c1_i32_2 = arith.constant 1 : i32
    %5 = arith.cmpi slt, %4, %c1_i32_2 : i32
    %6 = arith.extui %5 : i1 to i32
    %c0_i32_3 = arith.constant 0 : i32
    %7 = arith.cmpi ne, %6, %c0_i32_3 : i32
    scf.if %7 {
      %c1_i32_20 = arith.constant 1 : i32
      %31 = arith.addi %arg1, %c1_i32_20 : i32
      %c1_i32_21 = arith.constant 1 : i32
      %32 = arith.subi %c1_i32_21, %0 : i32
      %c256_i32_22 = arith.constant 256 : i32
      %33 = arith.muli %31, %c256_i32_22 : i32
      %34 = tpu.assume_multiple %33, 128 : i32
      %c0_i32_23 = arith.constant 0 : i32
      %c0_i32_24 = arith.constant 0 : i32
      %35 = tpu.memref_slice %arg2[%arg0, %c0_i32_24, %34] : memref<2x8x256xbf16, #tpu.memory_space<any>> -> memref<1x8x256xbf16, #tpu.memory_space<any>>
      %36 = tpu.memref_squeeze %35 : memref<1x8x256xbf16, #tpu.memory_space<any>> -> memref<8x256xbf16, #tpu.memory_space<any>>
      %c0_i32_25 = arith.constant 0 : i32
      %c0_i32_26 = arith.constant 0 : i32
      %37 = tpu.memref_slice %arg6[%32, %c0_i32_25, %c0_i32_26] : memref<2x8x256xbf16, #tpu.memory_space<vmem>> -> memref<1x8x256xbf16, #tpu.memory_space<vmem>>
      %38 = tpu.memref_squeeze %37 : memref<1x8x256xbf16, #tpu.memory_space<vmem>> -> memref<8x256xbf16, #tpu.memory_space<vmem>>
      %39 = tpu.memref_slice %arg7[%c0_i32_23, %32] : memref<1x2x!tpu.dma_semaphore, #tpu.memory_space<semaphore_mem>> -> memref<1x1x!tpu.dma_semaphore, #tpu.memory_space<semaphore_mem>>
      %40 = tpu.memref_squeeze %39 : memref<1x1x!tpu.dma_semaphore, #tpu.memory_space<semaphore_mem>> -> memref<!tpu.dma_semaphore, #tpu.memory_space<semaphore_mem>>
      tpu.enqueue_dma source(%36 : memref<8x256xbf16, #tpu.memory_space<any>>) target(%38 : memref<8x256xbf16, #tpu.memory_space<vmem>>) target_semaphore(%40 : memref<!tpu.dma_semaphore, #tpu.memory_space<semaphore_mem>>)
    } else {
    }
    %c256_i32 = arith.constant 256 : i32
    %8 = arith.muli %arg1, %c256_i32 : i32
    %9 = tpu.assume_multiple %8, 128 : i32
    %c0_i32_4 = arith.constant 0 : i32
    %c0_i32_5 = arith.constant 0 : i32
    %10 = tpu.memref_slice %arg2[%arg0, %c0_i32_5, %9] : memref<2x8x256xbf16, #tpu.memory_space<any>> -> memref<1x8x256xbf16, #tpu.memory_space<any>>
    %11 = tpu.memref_squeeze %10 : memref<1x8x256xbf16, #tpu.memory_space<any>> -> memref<8x256xbf16, #tpu.memory_space<any>>
    %c0_i32_6 = arith.constant 0 : i32
    %c0_i32_7 = arith.constant 0 : i32
    %12 = tpu.memref_slice %arg6[%0, %c0_i32_6, %c0_i32_7] : memref<2x8x256xbf16, #tpu.memory_space<vmem>> -> memref<1x8x256xbf16, #tpu.memory_space<vmem>>
    %13 = tpu.memref_squeeze %12 : memref<1x8x256xbf16, #tpu.memory_space<vmem>> -> memref<8x256xbf16, #tpu.memory_space<vmem>>
    %14 = tpu.memref_slice %arg7[%c0_i32_4, %0] : memref<1x2x!tpu.dma_semaphore, #tpu.memory_space<semaphore_mem>> -> memref<1x1x!tpu.dma_semaphore, #tpu.memory_space<semaphore_mem>>
    %15 = tpu.memref_squeeze %14 : memref<1x1x!tpu.dma_semaphore, #tpu.memory_space<semaphore_mem>> -> memref<!tpu.dma_semaphore, #tpu.memory_space<semaphore_mem>>
    tpu.wait_dma2 semaphore(%15 : memref<!tpu.dma_semaphore, #tpu.memory_space<semaphore_mem>>) src(%11 : memref<8x256xbf16, #tpu.memory_space<any>>) dst(%13 : memref<8x256xbf16, #tpu.memory_space<vmem>>)
    %cst = arith.constant 0.000000e+00 : f32
    %16 = vector.broadcast %cst : f32 to vector<8x256xf32>
    %c0_i32_8 = arith.constant 0 : i32
    %c0_i32_9 = arith.constant 0 : i32
    %17 = tpu.memref_slice %arg6[%0, %c0_i32_8, %c0_i32_9] : memref<2x8x256xbf16, #tpu.memory_space<vmem>> -> memref<1x8x256xbf16, #tpu.memory_space<vmem>>
    %18 = tpu.memref_squeeze %17 : memref<1x8x256xbf16, #tpu.memory_space<vmem>> -> memref<8x256xbf16, #tpu.memory_space<vmem>>
    %c0 = arith.constant 0 : index
    %c0_10 = arith.constant 0 : index
    %19 = vector.load %18[%c0, %c0_10] : memref<8x256xbf16, #tpu.memory_space<vmem>>, vector<8x256xbf16>
    %c0_11 = arith.constant 0 : index
    %c0_12 = arith.constant 0 : index
    %c0_13 = arith.constant 0 : index
    %20 = vector.load %arg3[%c0_11, %c0_12, %c0_13] : memref<1x8x8xbf16, #tpu.memory_space<vmem>>, vector<1x8x8xbf16>
    %21 = vector.shape_cast %20 : vector<1x8x8xbf16> to vector<8x8xbf16>
    %cst_14 = arith.constant dense<0.000000e+00> : vector<8x256xf32>
    %22 = tpu.matmul %21, %19, %cst_14 {dimension_numbers = #tpu.dot_dimension_numbers<[1], [0], [0], [1], [0, 0, 1, 1], [], []>} : vector<8x8xbf16>, vector<8x256xbf16>, vector<8x256xf32> -> vector<8x256xf32>
    %23 = arith.addf %16, %22 : vector<8x256xf32>
    %c0_15 = arith.constant 0 : index
    %c0_16 = arith.constant 0 : index
    %24 = vector.load %arg4[%c0_15, %c0_16] : memref<8x4xf32, #tpu.memory_space<vmem>>, vector<8x4xf32>
    %25 = vector.extract_strided_slice %24 {offsets = [0, 1], sizes = [8, 1], strides = [1, 1]} : vector<8x4xf32> to vector<8x1xf32>
    %26 = vector.broadcast %25 : vector<8x1xf32> to vector<8x256xf32>
    %27 = arith.addf %23, %26 : vector<8x256xf32>
    %c0_17 = arith.constant 0 : index
    %c0_18 = arith.constant 0 : index
    %c0_19 = arith.constant 0 : index
    %28 = vector.load %arg5[%c0_17, %c0_18, %c0_19] : memref<1x8x256xf32, #tpu.memory_space<vmem>>, vector<1x8x256xf32>
    %29 = vector.shape_cast %28 : vector<1x8x256xf32> to vector<8x256xf32>
    %30 = vector.shape_cast %27 : vector<8x256xf32> to vector<1x8x256xf32>
    tpu.vector_store %arg5[%c0_17, %c0_18, %c0_19], %30 {strides = array<i32>} : memref<1x8x256xf32, #tpu.memory_space<vmem>>, vector<1x8x256xf32>,
    return
  }
  func.func @transform_1(%arg0: i32, %arg1: i32) -> (i32, i32, i32) {
    %c0_i32 = arith.constant 0 : i32
    %c0_i32_0 = arith.constant 0 : i32
    %c0_i32_1 = arith.constant 0 : i32
    %c0_i32_2 = arith.constant 0 : i32
    return %c0_i32, %c0_i32_0, %c0_i32_1 : i32, i32, i32
  }
  func.func @transform_2(%arg0: i32, %arg1: i32) -> (i32, i32) {
    %c0_i32 = arith.constant 0 : i32
    %c0_i32_0 = arith.constant 0 : i32
    %c0_i32_1 = arith.constant 0 : i32
    return %c0_i32, %c0_i32_0 : i32, i32
  }
  func.func @transform_3(%arg0: i32, %arg1: i32) -> (i32, i32, i32) {
    %c0_i32 = arith.constant 0 : i32
    %c0_i32_0 = arith.constant 0 : i32
    return %arg0, %c0_i32, %arg1 : i32, i32, i32
  }
}

</mosaic_0001>

<bundles_post_ra>
// kernel: feature_aggregation_forward.16
= control target key start
LH: loop header
LB: loop body
LE: loop exit
PB: predicated region body
PF: predicated region fallthrough
CT: control target
= control target key end

     0   :  { %s571_s12 = smov 0   ;;  %s573_s13 = smov 0   ;;  %s613_s0 = inlined_call_operand.vmem [shape: bf16[2,8,256], index: 0, kind: input, shape index: {}]   ;;  %s614_s1 = inlined_call_operand.vmem [shape: bf16[1,8,8], index: 1, kind: input, shape index: {}]   ;;  %s615_s2 = inlined_call_operand.vmem [shape: f32[8,4], index: 2, kind: input, shape index: {}]   ;;  %s616_s3 = inlined_call_operand.vmem [shape: bf16[2,8,256], index: 3, kind: output, shape index: {}]  }
   0x1   :  { %s575_s14 = smov 0  }
   0x2 LB: > { %s25_s15 = sadd.s32 1, %s543_s13  ;;  %p473_p0 = scmp.ge.s32.totalorder %s547_s14, 1  ;;  %s547_s14 = sphi %s575_s14, %s13_s14   ;;  %s543_s13 = sphi %s573_s13, %s618_s13   ;;  %s539_s12 = sphi %s571_s12, %s617_s12  }
   0x3   : > { %p27_p1 = scmp.ge.s32.totalorder %s25_s15, 2  ;;  %p117_p2 = scmp.lt.s32.totalorder %s547_s14, 3 }
   0x5   : > { %s620_s15 = smov (%p27_p1, %s25_s15), 0  ;;  %p118_p3 = pnand %p473_p0, %p117_p2 }
   0x6   : > { %p139_p4 = scmp.lt.s32.totalorder (!%p118_p3), %s539_s12, 1  ;;  %s492_s16 = sshll.u32 (!%p118_p3), %s539_s12, 3 }
   0x7   : > { %121 = sbr.rel (%p118_p3) target bundleno = 246 (0xf6), region = 28  ;;  %s160_s19 = scalar_lea.vmem (!%p118_p3), %s613_s0, %s492_s16 }
   0x8   : > { %v197_v0 = vld [vmem:[%s160_s19] sm:$0xff] (!%p118_p3) }
   0xe   : > { %s622_s12 = smov (!%p139_p4, %s539_s12), 1 }
   0xf   : > { %s491_s20 = sshll.u32 %s622_s12, 3 }
  0x10   : > { %s595_s23 = scalar_lea.vmem %s616_s3, %s491_s20 }
  0x11   : > { %206 = vsyncadd [#allocation3], 128 }
  0x12   : > { %535 = dma.done.wait [#allocation3], 128 }
  0x13   : > { %536 = vsyncadd [#allocation3], 4294967168  ;;  %v483_v1 = vcombine.high %v197_v0, %v197_v0  ;;  %vm292_vm0 = vcmask 1043456   ;;  %v482_v2 = vcombine.low %v197_v0, %v197_v0  ;;  %v549_v3 = vmov 0   ;;  %v276_v6 = vld [vmem:[%s614_s1] sm:$0xf] }
  0x14   : > { %331 = vmatprep.mubr.bf16.mxu0 %v549_v3  ;;  %v550_v5 = vmov 1   ;;  %vm288_vm1 = vcmask 64512   ;;  %v277_v7 = vld [vmem:[%s615_s2] sm:$0xff] }
  0x15   : > { %484 = vmatprep.subr.msk.bf16.mxu0 %vm292_vm0, %v483_v1  ;;  %v294_v4 = vsel %vm292_vm0, %v482_v2, 0  ;;  %522 = vset.pattern.permute.xlu0 %v550_v5 }
  0x16   : > { %300 = vmatpush1.bf16.msra.mxu0 %v294_v4  ;;  %280 = vperm.xlu0 %522, %v277_v7  }
  0x19   : > { %485 = vmatmul.mubr.msk.bf16.vlgmr.msra.gmra.mrb[0].mxu0 %vm288_vm1, %v276_v6 }
  0x95   : > { %v281_v8 = vpop.permute.xlu0 %280 }
  0xec   : > { %v333_v9 = vpop.f32.mrb[0].mxu0 }
  0xed   : > { %v334_v10 = vadd.f32 %v333_v9, %v281_v8  ;;  %v335_v11 = vpop.f32.mrb[1].mxu0 }
  0xee   : > { %v336_v12 = vadd.f32 %v335_v11, %v281_v8  ;;  %v337_v13 = vpop.f32.mrb[2].mxu0 }
  0xef   : > { %vm340_vm2 = vcmp.gt.f32.partialorder %v334_v10, 0.0  ;;  %v342_v14 = vmul.f32 0.01, %v334_v10  ;;  %v338_v15 = vpop.f32.mrb[3].mxu0 }
  0xf0   : > { %vm341_vm3 = vcmp.gt.f32.partialorder %v336_v12, 0.0  ;;  %v343_v16 = vmul.f32 0.01, %v336_v12 }
  0xf1   : > { %v344_v17 = vsel %vm340_vm2, %v334_v10, %v342_v14 }
  0xf2   : > { %v345_v18 = vsel %vm341_vm3, %v336_v12, %v343_v16 }
  0xf3   : > { %v495_v19 = vpack.c.bf16 %v345_v18, %v344_v17 }
  0xf5   : > { %354 = vst [vmem:[%s595_s23] sm:$0xff] %v495_v19 }
  0xf6 PF: > { %s13_s14 = sadd.s32 1, %s547_s14   ;;  %s617_s12 = smov %s543_s13 }
  0xf7   : > { %p10_p5 = scmp.ge.s32.totalorder %s13_s14, 4   ;;  %s618_s13 = smov %s620_s15 }
  0xf9   :  { %12 = sbr.rel (!%p10_p5) target bundleno = 2 (0x2), region = 156 }
 0x100   :  { %385 = vsyncmov [#allocation3] }
 0x103   :  { %s386_s28 = vpop.sfrf %385 }
 0x104   :  { %p489_p6 = scmp.ne.s32.totalorder %s386_s28, 0 }
 0x106   :  { %390 = shalt.err (%p489_p6)  }
 0x107   :  { %392 = vsyncmov [#allocation3 + $0x1] }
 0x10a   :  { %s393_s29 = vpop.sfrf %392 }
 0x10b   :  { %p490_p7 = scmp.ne.s32.totalorder %s393_s29, 0 }
 0x10d   :  { %397 = shalt.err (%p490_p7)  }

// kernel: feature_aggregation_forward.17
= control target key start
LH: loop header
LB: loop body
LE: loop exit
PB: predicated region body
PF: predicated region fallthrough
CT: control target
= control target key end

     0   :  { %s1681_s12 = smov 0   ;;  %s1683_s13 = smov 0   ;;  %s1851_s0 = inlined_call_operand.vmem [shape: bf16[2,8,512], index: 0, kind: input, shape index: {}]   ;;  %s1852_s1 = inlined_call_operand.vmem [shape: bf16[9,8,8], index: 1, kind: input, shape index: {}]   ;;  %s1853_s2 = inlined_call_operand.vmem [shape: f32[8,4], index: 2, kind: input, shape index: {}]   ;;  %s1854_s3 = inlined_call_operand.vmem [shape: bf16[2,8,384], index: 3, kind: output, shape index: {}]  }
   0x1   :  { %s1685_s14 = smov 0  }
   0x2 LB: > { %s25_s15 = sadd.s32 1, %s1641_s13  ;;  %p1439_p0 = scmp.ge.s32.totalorder %s1645_s14, 1  ;;  %s1645_s14 = sphi %s1685_s14, %s13_s14   ;;  %s1641_s13 = sphi %s1683_s13, %s1856_s13   ;;  %s1637_s12 = sphi %s1681_s12, %s1855_s12  }
   0x3   : > { %p27_p1 = scmp.ge.s32.totalorder %s25_s15, 2  ;;  %p117_p2 = scmp.lt.s32.totalorder %s1645_s14, 3 }
   0x5   : > { %s1858_s15 = smov (%p27_p1, %s25_s15), 0  ;;  %p118_p3 = pnand %p1439_p0, %p117_p2 }
   0x6   : > { %p139_p4 = scmp.lt.s32.totalorder (!%p118_p3), %s1637_s12, 1  ;;  %s1496_s16 = sshll.u32 (!%p118_p3), %s1637_s12, 4 }
   0x7   : > { %121 = sbr.rel (%p118_p3) target bundleno = 439 (0x1b7), region = 28  ;;  %s160_s19 = scalar_lea.vmem (!%p118_p3), %s1851_s0, %s1496_s16 }
   0x8   : > { %v197_v0 = vld [vmem:[%s160_s19] sm:$0xff] (!%p118_p3)  ;;  %v199_v1 = vld [vmem:[%s160_s19 + $0x8] sm:$0xff] (!%p118_p3) }
   0x9   : > { %198 = vst [vmem:[#allocation2] sm:$0xff] (!%p118_p3), %v197_v0  ;;  %200 = vst [vmem:[#allocation2 + $0x8] sm:$0xff] (!%p118_p3), %v199_v1 }
   0xe   : > { %s1860_s12 = smov (!%p139_p4, %s1637_s12), 1 }
   0xf   : > { %s1573_s20 = smul.u32 12, %s1860_s12 }
  0x11   : > { %s1705_s23 = scalar_lea.vmem %s1854_s3, %s1573_s20 }
  0x12   : > { %208 = vsyncadd [#allocation3], 256 }
  0x13   : > { %1633 = dma.done.wait [#allocation3], 256 }
  0x14   : > { %1634 = vsyncadd [#allocation3], 4294967040  ;;  %v1647_v2 = vmov 0.0   ;;  %v1648_v3 = vmov 0   ;;  %vm1649_vm0 = vmmov 0   ;;  %v283_v4 = vld [vmem:[#allocation2 + $0x8] sm:$0xff] }
  0x15   : > { %1519 = vmatprep.subr.bf16.mxu1 %v1647_v2  ;;  %354 = vmatprep.mubr.bf16.mxu0 %v1648_v3  ;;  %v282_v5 = vld [vmem:[#allocation2] sm:$0xff]  ;;  %v1451_v6 = vcombine.low %v283_v4, %v283_v4  ;;  %s1650_s24 = smov 127   ;;  %v1452_v8 = vcombine.high %v283_v4, %v283_v4  ;;  %s1651_s25 = smov 126   ;;  %v1658_v10 = vmov 1   ;;  %v1659_v12 = vmov 2  }
  0x16   : > { %1521 = vmatprep.mubr.msk.bf16.mxu1 %vm1649_vm0, %v1647_v2  ;;  %v1711_v7 = vcombine.low %v282_v5, %v282_v5  ;;  %v1714_v9 = vcombine.high %v282_v5, %v282_v5  ;;  %s1652_s26 = smov 110   ;;  %s1653_s27 = smov 109   ;;  %1612 = vset.pattern.permute.xlu0 %v1658_v10  ;;  %v1274_v11 = vld [vmem:[%s1853_s2] sm:$0xff]  ;;  %v1660_v13 = vmov 3   ;;  %vm304_vm1 = vcmask 1039360  }
  0x17   : > { %300 = vrot.lane.b32.xlu1 %v1451_v6, %s1650_s24  ;;  %s1654_s28 = smov 108   ;;  %s1655_s29 = smov 92   ;;  %vm312_vm2 = vcmask 1043456   ;;  %v1620_v18 = vld [vmem:[#allocation2 + $0x8] ss:$0 sps:$4 sm:$0xff]   ;;  %vm308_vm3 = vcmask 64512  }
  0x18   : > { %296 = vrot.lane.b32.xlu0 %v1711_v7, %s1650_s24  ;;  %s1656_s30 = smov 91   ;;  %s1657_s4 = smov 90   ;;  %1613 = vset.pattern.permute.xlu1 %v1659_v12  ;;  %v1448_v24 = vld [vmem:[%s1852_s1 + $0x4] sm:$0xf]  ;;  %v415_v26 = vsel %vm312_vm2, %v1711_v7, 0  ;;  %v421_v28 = vsel %vm312_vm2, %v1620_v18, 0 }
  0x19   : > { %vm514_vm4 = vcmask 1031168   ;;  %v281_v34 = vld [vmem:[%s1852_s1] sm:$0xf]  ;;  %vm624_vm5 = vcmask 900096   ;;  %v1462_v44 = vld [vmem:[%s1852_s1 + $0x8] sm:$0xf] }
  0x1a   : > { %vm734_vm6 = vcmask 891904   ;;  %v1466_v54 = vld [vmem:[%s1852_s1 + $0xc] sm:$0xf]  ;;  %vm844_vm7 = vcmask 883712   ;;  %v1470_v0 = vld [vmem:[%s1852_s1 + $0x10] sm:$0xf] }
  0x1b   : > { %302 = vrot.lane.b32.xlu1 %v1452_v8, %s1650_s24  ;;  %vm954_vm8 = vcmask 752640   ;;  %v1474_v12 = vld [vmem:[%s1852_s1 + $0x14] sm:$0xf]  ;;  %vm1064_vm9 = vcmask 744448   ;;  %vm1174_vm10 = vcmask 736256  }
  0x1c   : > { %298 = vrot.lane.b32.xlu0 %v1714_v9, %s1650_s24 }
  0x1f   : > { %508 = vrot.lane.b32.xlu1 %v1714_v9, %s1651_s25 }
  0x20   : > { %506 = vrot.lane.b32.xlu0 %v1711_v7, %s1651_s25 }
  0x23   : > { %512 = vrot.lane.b32.xlu1 %v1452_v8, %s1651_s25 }
  0x24   : > { %510 = vrot.lane.b32.xlu0 %v1451_v6, %s1651_s25 }
  0x27   : > { %618 = vrot.lane.b32.xlu1 %v1714_v9, %s1652_s26 }
  0x28   : > { %616 = vrot.lane.b32.xlu0 %v1711_v7, %s1652_s26 }
  0x2b   : > { %622 = vrot.lane.b32.xlu1 %v1452_v8, %s1652_s26 }
  0x2c   : > { %620 = vrot.lane.b32.xlu0 %v1451_v6, %s1652_s26 }
  0x2f   : > { %728 = vrot.lane.b32.xlu1 %v1714_v9, %s1653_s27 }
  0x30   : > { %726 = vrot.lane.b32.xlu0 %v1711_v7, %s1653_s27 }
  0x33   : > { %732 = vrot.lane.b32.xlu1 %v1452_v8, %s1653_s27 }
  0x34   : > { %730 = vrot.lane.b32.xlu0 %v1451_v6, %s1653_s27 }
  0x37   : > { %838 = vrot.lane.b32.xlu1 %v1714_v9, %s1654_s28 }
  0x38   : > { %836 = vrot.lane.b32.xlu0 %v1711_v7, %s1654_s28 }
  0x3b   : > { %842 = vrot.lane.b32.xlu1 %v1452_v8, %s1654_s28 }
  0x3c   : > { %840 = vrot.lane.b32.xlu0 %v1451_v6, %s1654_s28 }
  0x3f   : > { %948 = vrot.lane.b32.xlu1 %v1714_v9, %s1655_s29 }
  0x40   : > { %946 = vrot.lane.b32.xlu0 %v1711_v7, %s1655_s29 }
  0x43   : > { %952 = vrot.lane.b32.xlu1 %v1452_v8, %s1655_s29 }
  0x44   : > { %950 = vrot.lane.b32.xlu0 %v1451_v6, %s1655_s29 }
  0x47   : > { %1058 = vrot.lane.b32.xlu1 %v1714_v9, %s1656_s30 }
  0x48   : > { %1056 = vrot.lane.b32.xlu0 %v1711_v7, %s1656_s30 }
  0x4b   : > { %1062 = vrot.lane.b32.xlu1 %v1452_v8, %s1656_s30 }
  0x4c   : > { %1060 = vrot.lane.b32.xlu0 %v1451_v6, %s1656_s30 }
  0x4f   : > { %1168 = vrot.lane.b32.xlu1 %v1714_v9, %s1657_s4 }
  0x50   : > { %1166 = vrot.lane.b32.xlu0 %v1711_v7, %s1657_s4 }
  0x53   : > { %1172 = vrot.lane.b32.xlu1 %v1452_v8, %s1657_s4 }
  0x54   : > { %1170 = vrot.lane.b32.xlu0 %v1451_v6, %s1657_s4 }
  0x57   : > { %1293 = vperm.xlu1 %1613, %v1274_v11  }
  0x58   : > { %1277 = vperm.xlu0 %1612, %v1274_v11  }
  0x5b   : > { %1614 = vset.pattern.permute.xlu1 %v1660_v13 }
  0x5c   : > { %1615 = vset.pattern.permute.xlu0 %v1660_v13  ;;  %1300 = vperm.xlu1 %1614, %v1274_v11  }
  0x89   : > { %v301_v14 = vpop.permute.xlu1 %300 }
  0x8a   : > { %v297_v15 = vpop.permute.xlu0 %296 }
  0x8d   : > { %v303_v16 = vpop.permute.xlu1 %302 }
  0x8e   : > { %v299_v17 = vpop.permute.xlu0 %298  ;;  %v307_v21 = vsel %vm304_vm1, %v301_v14, %v303_v16 }
  0x8f   : > { %v306_v19 = vsel %vm304_vm1, %v299_v17, %v301_v14  ;;  %v305_v20 = vsel %vm304_vm1, %v297_v15, %v299_v17  ;;  %v320_v23 = vsel %vm312_vm2, %v307_v21, 0 }
  0x90   : > { %1453 = vmatprep.subr.msk.bf16.mxu0 %vm312_vm2, %v306_v19  ;;  %v314_v22 = vsel %vm312_vm2, %v305_v20, 0  ;;  %1520 = vmatpush3.bf16.msra.mxu1 %v320_v23 }
  0x91   : > { %323 = vmatpush1.bf16.msra.mxu0 %v314_v22  ;;  %1525 = vmatprep.subr.bf16.mxu1 %v1647_v2  ;;  %v509_v27 = vpop.permute.xlu1 %508  ;;  %v1478_v22 = vld [vmem:[%s1852_s1 + $0x18] sm:$0xf] }
  0x92   : > { %v507_v25 = vpop.permute.xlu0 %506  ;;  %1459 = vmatprep.subr.msk.bf16.mxu0 %vm312_vm2, %v1714_v9 }
  0x93   : > { %1522 = vmatmul.mubr.msk.bf16.vlgmr.msra.gmra.mrb[0].mxu1 %vm308_vm3, %v1448_v24  ;;  %v515_v31 = vsel %vm514_vm4, %v507_v25, %v509_v27 }
  0x94   : > { %1454 = vmatmul.mubr.msk.bf16.vlgmr.msra.gmra.mrb[0].mxu0 %vm308_vm3, %v1448_v24  ;;  %1526 = vmatpush3.bf16.msra.mxu1 %v421_v28  ;;  %v522_v35 = vsel %vm312_vm2, %v515_v31, 0 }
  0x95   : > { %424 = vmatpush1.bf16.msra.mxu0 %v415_v26  ;;  %v513_v30 = vpop.permute.xlu1 %512  ;;  %455 = vmatprep.mubr.bf16.mxu0 %v1648_v3 }
  0x96   : > { %v511_v29 = vpop.permute.xlu0 %510  ;;  %1527 = vmatprep.mubr.msk.bf16.mxu1 %vm1649_vm0, %v1647_v2  ;;  %1531 = vmatprep.subr.bf16.mxu1 %v1647_v2 }
  0x97   : > { %v516_v32 = vsel %vm514_vm4, %v509_v27, %v511_v29  ;;  %v517_v33 = vsel %vm514_vm4, %v511_v29, %v513_v30 }
  0x98   : > { %1463 = vmatprep.subr.msk.bf16.mxu0 %vm312_vm2, %v516_v32  ;;  %v528_v36 = vsel %vm312_vm2, %v517_v33, 0  ;;  %v1482_v32 = vld [vmem:[%s1852_s1 + $0x1c] sm:$0xf] }
  0x99   : > { %v619_v38 = vpop.permute.xlu1 %618 }
  0x9a   : > { %v617_v37 = vpop.permute.xlu0 %616 }
  0x9b   : > { %1528 = vmatmul.mubr.msk.bf16.vlgmr.msra.gmra.mrb[4].mxu1 %vm308_vm3, %v281_v34  ;;  %v625_v41 = vsel %vm624_vm5, %v617_v37, %v619_v38 }
  0x9c   : > { %1460 = vmatmul.mubr.msk.bf16.vlgmr.msra.gmra.mrb[4].mxu0 %vm308_vm3, %v281_v34  ;;  %1532 = vmatpush3.bf16.msra.mxu1 %v528_v36  ;;  %v632_v45 = vsel %vm312_vm2, %v625_v41, 0 }
  0x9d   : > { %531 = vmatpush1.bf16.msra.mxu0 %v522_v35  ;;  %v623_v40 = vpop.permute.xlu1 %622  ;;  %562 = vmatprep.mubr.bf16.mxu0 %v1648_v3  ;;  %v1486_v35 = vld [vmem:[%s1852_s1 + $0x20] sm:$0xf] }
  0x9e   : > { %v621_v39 = vpop.permute.xlu0 %620  ;;  %1533 = vmatprep.mubr.msk.bf16.mxu1 %vm1649_vm0, %v1647_v2  ;;  %1537 = vmatprep.subr.bf16.mxu1 %v1647_v2 }
  0x9f   : > { %v626_v42 = vsel %vm624_vm5, %v619_v38, %v621_v39  ;;  %v627_v43 = vsel %vm624_vm5, %v621_v39, %v623_v40 }
  0xa0   : > { %1467 = vmatprep.subr.msk.bf16.mxu0 %vm312_vm2, %v626_v42  ;;  %v638_v46 = vsel %vm312_vm2, %v627_v43, 0 }
  0xa1   : > { %v729_v48 = vpop.permute.xlu1 %728 }
  0xa2   : > { %v727_v47 = vpop.permute.xlu0 %726 }
  0xa3   : > { %1534 = vmatmul.mubr.msk.bf16.vlgmr.msra.gmra.mrb[8].mxu1 %vm308_vm3, %v1462_v44  ;;  %v735_v51 = vsel %vm734_vm6, %v727_v47, %v729_v48 }
  0xa4   : > { %1464 = vmatmul.mubr.msk.bf16.vlgmr.msra.gmra.mrb[8].mxu0 %vm308_vm3, %v1462_v44  ;;  %1538 = vmatpush3.bf16.msra.mxu1 %v638_v46  ;;  %v742_v55 = vsel %vm312_vm2, %v735_v51, 0 }
  0xa5   : > { %641 = vmatpush1.bf16.msra.mxu0 %v632_v45  ;;  %v733_v50 = vpop.permute.xlu1 %732  ;;  %672 = vmatprep.mubr.bf16.mxu0 %v1648_v3 }
  0xa6   : > { %v731_v49 = vpop.permute.xlu0 %730  ;;  %1539 = vmatprep.mubr.msk.bf16.mxu1 %vm1649_vm0, %v1647_v2  ;;  %1543 = vmatprep.subr.bf16.mxu1 %v1647_v2 }
  0xa7   : > { %v736_v52 = vsel %vm734_vm6, %v729_v48, %v731_v49  ;;  %v737_v53 = vsel %vm734_vm6, %v731_v49, %v733_v50 }
  0xa8   : > { %1471 = vmatprep.subr.msk.bf16.mxu0 %vm312_vm2, %v736_v52  ;;  %v748_v56 = vsel %vm312_vm2, %v737_v53, 0 }
  0xa9   : > { %v839_v58 = vpop.permute.xlu1 %838 }
  0xaa   : > { %v837_v57 = vpop.permute.xlu0 %836 }
  0xab   : > { %1540 = vmatmul.mubr.msk.bf16.vlgmr.msra.gmra.mrb[12].mxu1 %vm308_vm3, %v1466_v54  ;;  %v845_v61 = vsel %vm844_vm7, %v837_v57, %v839_v58 }
  0xac   : > { %1468 = vmatmul.mubr.msk.bf16.vlgmr.msra.gmra.mrb[12].mxu0 %vm308_vm3, %v1466_v54  ;;  %1544 = vmatpush3.bf16.msra.mxu1 %v748_v56  ;;  %v852_v1 = vsel %vm312_vm2, %v845_v61, 0 }
  0xad   : > { %751 = vmatpush1.bf16.msra.mxu0 %v742_v55  ;;  %v843_v60 = vpop.permute.xlu1 %842  ;;  %782 = vmatprep.mubr.bf16.mxu0 %v1648_v3 }
  0xae   : > { %v841_v59 = vpop.permute.xlu0 %840  ;;  %1545 = vmatprep.mubr.msk.bf16.mxu1 %vm1649_vm0, %v1647_v2  ;;  %1549 = vmatprep.subr.bf16.mxu1 %v1647_v2 }
  0xaf   : > { %v846_v62 = vsel %vm844_vm7, %v839_v58, %v841_v59  ;;  %v847_v63 = vsel %vm844_vm7, %v841_v59, %v843_v60 }
  0xb0   : > { %1475 = vmatprep.subr.msk.bf16.mxu0 %vm312_vm2, %v846_v62  ;;  %v858_v4 = vsel %vm312_vm2, %v847_v63, 0 }
  0xb1   : > { %v949_v6 = vpop.permute.xlu1 %948 }
  0xb2   : > { %v947_v5 = vpop.permute.xlu0 %946 }
  0xb3   : > { %1546 = vmatmul.mubr.msk.bf16.vlgmr.msra.gmra.mrb[16].mxu1 %vm308_vm3, %v1470_v0  ;;  %v955_v9 = vsel %vm954_vm8, %v947_v5, %v949_v6 }
  0xb4   : > { %1472 = vmatmul.mubr.msk.bf16.vlgmr.msra.gmra.mrb[16].mxu0 %vm308_vm3, %v1470_v0  ;;  %1550 = vmatpush3.bf16.msra.mxu1 %v858_v4  ;;  %v962_v13 = vsel %vm312_vm2, %v955_v9, 0 }
  0xb5   : > { %861 = vmatpush1.bf16.msra.mxu0 %v852_v1  ;;  %v953_v8 = vpop.permute.xlu1 %952  ;;  %892 = vmatprep.mubr.bf16.mxu0 %v1648_v3 }
  0xb6   : > { %v951_v7 = vpop.permute.xlu0 %950  ;;  %1551 = vmatprep.mubr.msk.bf16.mxu1 %vm1649_vm0, %v1647_v2  ;;  %1555 = vmatprep.subr.bf16.mxu1 %v1647_v2 }
  0xb7   : > { %v956_v10 = vsel %vm954_vm8, %v949_v6, %v951_v7  ;;  %v957_v11 = vsel %vm954_vm8, %v951_v7, %v953_v8 }
  0xb8   : > { %1479 = vmatprep.subr.msk.bf16.mxu0 %vm312_vm2, %v956_v10  ;;  %v968_v14 = vsel %vm312_vm2, %v957_v11, 0 }
  0xb9   : > { %v1059_v16 = vpop.permute.xlu1 %1058 }
  0xba   : > { %v1057_v15 = vpop.permute.xlu0 %1056 }
  0xbb   : > { %1552 = vmatmul.mubr.msk.bf16.vlgmr.msra.gmra.mrb[20].mxu1 %vm308_vm3, %v1474_v12  ;;  %v1065_v19 = vsel %vm1064_vm9, %v1057_v15, %v1059_v16 }
  0xbc   : > { %1476 = vmatmul.mubr.msk.bf16.vlgmr.msra.gmra.mrb[20].mxu0 %vm308_vm3, %v1474_v12  ;;  %1556 = vmatpush3.bf16.msra.mxu1 %v968_v14  ;;  %v1072_v23 = vsel %vm312_vm2, %v1065_v19, 0 }
  0xbd   : > { %971 = vmatpush1.bf16.msra.mxu0 %v962_v13  ;;  %v1063_v18 = vpop.permute.xlu1 %1062  ;;  %1002 = vmatprep.mubr.bf16.mxu0 %v1648_v3 }
  0xbe   : > { %v1061_v17 = vpop.permute.xlu0 %1060  ;;  %1557 = vmatprep.mubr.msk.bf16.mxu1 %vm1649_vm0, %v1647_v2  ;;  %1561 = vmatprep.subr.bf16.mxu1 %v1647_v2 }
  0xbf   : > { %v1066_v20 = vsel %vm1064_vm9, %v1059_v16, %v1061_v17  ;;  %v1067_v21 = vsel %vm1064_vm9, %v1061_v17, %v1063_v18 }
  0xc0   : > { %1483 = vmatprep.subr.msk.bf16.mxu0 %vm312_vm2, %v1066_v20  ;;  %v1078_v24 = vsel %vm312_vm2, %v1067_v21, 0 }
  0xc1   : > { %v1169_v26 = vpop.permute.xlu1 %1168 }
  0xc2   : > { %v1167_v25 = vpop.permute.xlu0 %1166 }
  0xc3   : > { %1558 = vmatmul.mubr.msk.bf16.vlgmr.msra.gmra.mrb[24].mxu1 %vm308_vm3, %v1478_v22  ;;  %v1175_v29 = vsel %vm1174_vm10, %v1167_v25, %v1169_v26 }
  0xc4   : > { %1480 = vmatmul.mubr.msk.bf16.vlgmr.msra.gmra.mrb[24].mxu0 %vm308_vm3, %v1478_v22  ;;  %1562 = vmatpush3.bf16.msra.mxu1 %v1078_v24  ;;  %v1182_v33 = vsel %vm312_vm2, %v1175_v29, 0 }
  0xc5   : > { %1081 = vmatpush1.bf16.msra.mxu0 %v1072_v23  ;;  %v1173_v28 = vpop.permute.xlu1 %1172  ;;  %1112 = vmatprep.mubr.bf16.mxu0 %v1648_v3 }
  0xc6   : > { %v1171_v27 = vpop.permute.xlu0 %1170  ;;  %1563 = vmatprep.mubr.msk.bf16.mxu1 %vm1649_vm0, %v1647_v2  ;;  %1567 = vmatprep.subr.bf16.mxu1 %v1647_v2 }
  0xc7   : > { %v1176_v30 = vsel %vm1174_vm10, %v1169_v26, %v1171_v27  ;;  %v1177_v31 = vsel %vm1174_vm10, %v1171_v27, %v1173_v28 }
  0xc8   : > { %1487 = vmatprep.subr.msk.bf16.mxu0 %vm312_vm2, %v1176_v30  ;;  %v1188_v34 = vsel %vm312_vm2, %v1177_v31, 0 }
  0xcb   : > { %1564 = vmatmul.mubr.msk.bf16.vlgmr.msra.gmra.mrb[28].mxu1 %vm308_vm3, %v1482_v32 }
  0xcc   : > { %1484 = vmatmul.mubr.msk.bf16.vlgmr.msra.gmra.mrb[28].mxu0 %vm308_vm3, %v1482_v32  ;;  %1568 = vmatpush3.bf16.msra.mxu1 %v1188_v34 }
  0xcd   : > { %1191 = vmatpush1.bf16.msra.mxu0 %v1182_v33  ;;  %1222 = vmatprep.mubr.bf16.mxu0 %v1648_v3 }
  0xce   : > { %1569 = vmatprep.mubr.msk.bf16.mxu1 %vm1649_vm0, %v1647_v2 }
  0xd3   : > { %1570 = vmatmul.mubr.msk.bf16.vlgmr.msra.gmra.mrb[32].mxu1 %vm308_vm3, %v1486_v35 }
  0xd4   : > { %1488 = vmatmul.mubr.msk.bf16.vlgmr.msra.gmra.mrb[32].mxu0 %vm308_vm3, %v1486_v35 }
 0x166   : > { %v397_v37 = vpop.f32.mrb[0].mxu1 }
 0x167   : > { %v356_v36 = vpop.f32.mrb[0].mxu0  ;;  %v1523_v39 = vpop.f32.mrb[1].mxu1 }
 0x168   : > { %v358_v38 = vpop.f32.mrb[1].mxu0  ;;  %v400_v41 = vpop.f32.mrb[2].mxu1 }
 0x169   : > { %v360_v40 = vpop.f32.mrb[2].mxu0  ;;  %v1524_v43 = vpop.f32.mrb[3].mxu1 }
 0x16a   : > { %v361_v42 = vpop.f32.mrb[3].mxu0 }
 0x16e   : > { %v498_v44 = vpop.f32.mrb[4].mxu1 }
 0x16f   : > { %v457_v3 = vpop.f32.mrb[4].mxu0  ;;  %v499_v2 = vadd.f32 %v498_v44, %v397_v37  ;;  %v1529_v47 = vpop.f32.mrb[5].mxu1 }
 0x170   : > { %v458_v45 = vadd.f32 %v457_v3, %v356_v36  ;;  %v459_v46 = vpop.f32.mrb[5].mxu0  ;;  %v501_v50 = vpop.f32.mrb[6].mxu1 }
 0x171   : > { %v460_v48 = vadd.f32 %v459_v46, %v358_v38  ;;  %v461_v49 = vpop.f32.mrb[6].mxu0  ;;  %v1530_v52 = vpop.f32.mrb[7].mxu1 }
 0x172   : > { %v462_v51 = vpop.f32.mrb[7].mxu0 }
 0x176   : > { %v605_v54 = vpop.f32.mrb[8].mxu1 }
 0x177   : > { %v564_v53 = vpop.f32.mrb[8].mxu0  ;;  %v613_v56 = vadd.f32 %v605_v54, %v499_v2  ;;  %v1535_v58 = vpop.f32.mrb[9].mxu1 }
 0x178   : > { %v611_v55 = vadd.f32 %v564_v53, %v458_v45  ;;  %v566_v57 = vpop.f32.mrb[9].mxu0  ;;  %v608_v61 = vpop.f32.mrb[10].mxu1 }
 0x179   : > { %v612_v59 = vadd.f32 %v566_v57, %v460_v48  ;;  %v568_v60 = vpop.f32.mrb[10].mxu0  ;;  %v1536_v63 = vpop.f32.mrb[11].mxu1 }
 0x17a   : > { %v569_v62 = vpop.f32.mrb[11].mxu0 }
 0x17e   : > { %v715_v1 = vpop.f32.mrb[12].mxu1 }
 0x17f   : > { %v674_v0 = vpop.f32.mrb[12].mxu0  ;;  %v723_v5 = vadd.f32 %v715_v1, %v613_v56  ;;  %v1541_v7 = vpop.f32.mrb[13].mxu1 }
 0x180   : > { %v721_v4 = vadd.f32 %v674_v0, %v611_v55  ;;  %v676_v6 = vpop.f32.mrb[13].mxu0  ;;  %v718_v10 = vpop.f32.mrb[14].mxu1 }
 0x181   : > { %v722_v8 = vadd.f32 %v676_v6, %v612_v59  ;;  %v678_v9 = vpop.f32.mrb[14].mxu0  ;;  %v1542_v12 = vpop.f32.mrb[15].mxu1 }
 0x182   : > { %v679_v11 = vpop.f32.mrb[15].mxu0  ;;  %v1278_v55 = vpop.permute.xlu0 %1277 }
 0x183   : > { %v1294_v56 = vpop.permute.xlu1 %1293 }
 0x186   : > { %v825_v14 = vpop.f32.mrb[16].mxu1 }
 0x187   : > { %v784_v13 = vpop.f32.mrb[16].mxu0  ;;  %v833_v16 = vadd.f32 %v825_v14, %v723_v5  ;;  %v1547_v18 = vpop.f32.mrb[17].mxu1 }
 0x188   : > { %v831_v15 = vadd.f32 %v784_v13, %v721_v4  ;;  %v786_v17 = vpop.f32.mrb[17].mxu0  ;;  %v828_v21 = vpop.f32.mrb[18].mxu1 }
 0x189   : > { %v832_v19 = vadd.f32 %v786_v17, %v722_v8  ;;  %v788_v20 = vpop.f32.mrb[18].mxu0  ;;  %v1548_v23 = vpop.f32.mrb[19].mxu1 }
 0x18a   : > { %v789_v22 = vpop.f32.mrb[19].mxu0  ;;  %v1301_v14 = vpop.permute.xlu1 %1300 }
 0x18e   : > { %v935_v25 = vpop.f32.mrb[20].mxu1 }
 0x18f   : > { %v894_v24 = vpop.f32.mrb[20].mxu0  ;;  %v943_v27 = vadd.f32 %v935_v25, %v833_v16  ;;  %v1553_v29 = vpop.f32.mrb[21].mxu1 }
 0x190   : > { %v941_v26 = vadd.f32 %v894_v24, %v831_v15  ;;  %v896_v28 = vpop.f32.mrb[21].mxu0  ;;  %v938_v32 = vpop.f32.mrb[22].mxu1 }
 0x191   : > { %v942_v30 = vadd.f32 %v896_v28, %v832_v19  ;;  %v898_v31 = vpop.f32.mrb[22].mxu0  ;;  %v1554_v34 = vpop.f32.mrb[23].mxu1 }
 0x192   : > { %v899_v33 = vpop.f32.mrb[23].mxu0 }
 0x196   : > { %v1045_v36 = vpop.f32.mrb[24].mxu1 }
 0x197   : > { %v1004_v35 = vpop.f32.mrb[24].mxu0  ;;  %v1053_v38 = vadd.f32 %v1045_v36, %v943_v27  ;;  %v1559_v40 = vpop.f32.mrb[25].mxu1 }
 0x198   : > { %v1051_v37 = vadd.f32 %v1004_v35, %v941_v26  ;;  %v1006_v39 = vpop.f32.mrb[25].mxu0  ;;  %v1048_v43 = vpop.f32.mrb[26].mxu1 }
 0x199   : > { %v1052_v41 = vadd.f32 %v1006_v39, %v942_v30  ;;  %v1008_v42 = vpop.f32.mrb[26].mxu0  ;;  %v1560_v44 = vpop.f32.mrb[27].mxu1 }
 0x19a   : > { %v1009_v3 = vpop.f32.mrb[27].mxu0 }
 0x19e   : > { %v1155_v2 = vpop.f32.mrb[28].mxu1 }
 0x19f   : > { %v1114_v45 = vpop.f32.mrb[28].mxu0  ;;  %v1163_v47 = vadd.f32 %v1155_v2, %v1053_v38  ;;  %v1565_v49 = vpop.f32.mrb[29].mxu1 }
 0x1a0   : > { %v1161_v46 = vadd.f32 %v1114_v45, %v1051_v37  ;;  %v1116_v48 = vpop.f32.mrb[29].mxu0  ;;  %v1158_v52 = vpop.f32.mrb[30].mxu1 }
 0x1a1   : > { %v1162_v50 = vadd.f32 %v1116_v48, %v1052_v41  ;;  %v1118_v51 = vpop.f32.mrb[30].mxu0  ;;  %v1566_v54 = vpop.f32.mrb[31].mxu1 }
 0x1a2   : > { %v1119_v53 = vpop.f32.mrb[31].mxu0 }
 0x1a6   : > { %v1265_v58 = vpop.f32.mrb[32].mxu1 }
 0x1a7   : > { %v1224_v57 = vpop.f32.mrb[32].mxu0  ;;  %v1273_v60 = vadd.f32 %v1265_v58, %v1163_v47  ;;  %v1571_v62 = vpop.f32.mrb[33].mxu1 }
 0x1a8   : > { %v1271_v59 = vadd.f32 %v1224_v57, %v1161_v46  ;;  %v1226_v61 = vpop.f32.mrb[33].mxu0  ;;  %v1268_v1 = vpop.f32.mrb[34].mxu1 }
 0x1a9   : > { %v1272_v63 = vadd.f32 %v1226_v61, %v1162_v50  ;;  %v1228_v0 = vpop.f32.mrb[34].mxu0  ;;  %v1282_v5 = vadd.f32 %v1278_v55, %v1273_v60  ;;  %v1572_v7 = vpop.f32.mrb[35].mxu1 }
 0x1aa   : > { %v1280_v4 = vadd.f32 %v1278_v55, %v1271_v59  ;;  %v1229_v6 = vpop.f32.mrb[35].mxu0 }
 0x1ab   : > { %v1281_v8 = vadd.f32 %v1278_v55, %v1272_v63  ;;  %vm1285_vm12 = vcmp.gt.f32.partialorder %v1282_v5, 0.0  ;;  %v1288_v10 = vmul.f32 0.01, %v1282_v5 }
 0x1ac   : > { %vm1283_vm11 = vcmp.gt.f32.partialorder %v1280_v4, 0.0  ;;  %v1286_v9 = vmul.f32 0.01, %v1280_v4 }
 0x1ad   : > { %vm1284_vm13 = vcmp.gt.f32.partialorder %v1281_v8, 0.0  ;;  %v1287_v11 = vmul.f32 0.01, %v1281_v8  ;;  %v1291_v13 = vsel %vm1285_vm12, %v1282_v5, %v1288_v10 }
 0x1ae   : > { %v1289_v12 = vsel %vm1283_vm11, %v1280_v4, %v1286_v9  ;;  %v1298_v17 = vmul.f32 %v1294_v56, %v1291_v13 }
 0x1af   : > { %v1290_v15 = vsel %vm1284_vm13, %v1281_v8, %v1287_v11  ;;  %v1296_v16 = vmul.f32 %v1294_v56, %v1289_v12 }
 0x1b0   : > { %v1297_v18 = vmul.f32 %v1294_v56, %v1290_v15  ;;  %v1305_v20 = vadd.f32 %v1301_v14, %v1298_v17 }
 0x1b1   : > { %v1303_v19 = vadd.f32 %v1301_v14, %v1296_v16 }
 0x1b2   : > { %v1304_v21 = vadd.f32 %v1301_v14, %v1297_v18  ;;  %v1500_v22 = vpack.c.bf16 %v1305_v20, %v1305_v20 }
 0x1b4   : > { %v1499_v23 = vpack.c.bf16 %v1304_v21, %v1303_v19  ;;  %1320 = vst [vmem:[%s1705_s23 + $0x8] sm:$0xf] %v1500_v22 }
 0x1b6   : > { %1319 = vst [vmem:[%s1705_s23] sm:$0xff] %v1499_v23 }
 0x1b7 PF: > { %s13_s14 = sadd.s32 1, %s1645_s14   ;;  %s1855_s12 = smov %s1641_s13 }
 0x1b8   : > { %p10_p5 = scmp.ge.s32.totalorder %s13_s14, 4   ;;  %s1856_s13 = smov %s1858_s15 }
 0x1ba   :  { %12 = sbr.rel (!%p10_p5) target bundleno = 2 (0x2), region = 164 }
 0x1c1   :  { %1351 = vsyncmov [#allocation3] }
 0x1c4   :  { %s1352_s29 = vpop.sfrf %1351 }
 0x1c5   :  { %p1494_p6 = scmp.ne.s32.totalorder %s1352_s29, 0 }
 0x1c7   :  { %1356 = shalt.err (%p1494_p6)  }
 0x1c8   :  { %1358 = vsyncmov [#allocation3 + $0x1] }
 0x1cb   :  { %s1359_s30 = vpop.sfrf %1358 }
 0x1cc   :  { %p1495_p7 = scmp.ne.s32.totalorder %s1359_s30, 0 }
 0x1ce   :  { %1363 = shalt.err (%p1495_p7)  }

// kernel: feature_aggregation_forward.19
= control target key start
LH: loop header
LB: loop body
LE: loop exit
PB: predicated region body
PF: predicated region fallthrough
CT: control target
= control target key end

     0   :  { %s571_s12 = smov 0   ;;  %s573_s13 = smov 0   ;;  %s613_s0 = inlined_call_operand.vmem [shape: bf16[2,8,256], index: 0, kind: input, shape index: {}]   ;;  %s614_s1 = inlined_call_operand.vmem [shape: bf16[1,8,8], index: 1, kind: input, shape index: {}]   ;;  %s615_s2 = inlined_call_operand.vmem [shape: f32[8,4], index: 2, kind: input, shape index: {}]   ;;  %s616_s3 = inlined_call_operand.vmem [shape: bf16[2,8,256], index: 3, kind: output, shape index: {}]  }
   0x1   :  { %s575_s14 = smov 0  }
   0x2 LB: > { %s25_s15 = sadd.s32 1, %s543_s13  ;;  %p473_p0 = scmp.ge.s32.totalorder %s547_s14, 1  ;;  %s547_s14 = sphi %s575_s14, %s13_s14   ;;  %s543_s13 = sphi %s573_s13, %s618_s13   ;;  %s539_s12 = sphi %s571_s12, %s617_s12  }
   0x3   : > { %p27_p1 = scmp.ge.s32.totalorder %s25_s15, 2  ;;  %p117_p2 = scmp.lt.s32.totalorder %s547_s14, 3 }
   0x5   : > { %s620_s15 = smov (%p27_p1, %s25_s15), 0  ;;  %p118_p3 = pnand %p473_p0, %p117_p2 }
   0x6   : > { %p139_p4 = scmp.lt.s32.totalorder (!%p118_p3), %s539_s12, 1  ;;  %s492_s16 = sshll.u32 (!%p118_p3), %s539_s12, 3 }
   0x7   : > { %121 = sbr.rel (%p118_p3) target bundleno = 246 (0xf6), region = 28  ;;  %s160_s19 = scalar_lea.vmem (!%p118_p3), %s613_s0, %s492_s16 }
   0x8   : > { %v197_v0 = vld [vmem:[%s160_s19] sm:$0xff] (!%p118_p3) }
   0xe   : > { %s622_s12 = smov (!%p139_p4, %s539_s12), 1 }
   0xf   : > { %s491_s20 = sshll.u32 %s622_s12, 3 }
  0x10   : > { %s595_s23 = scalar_lea.vmem %s616_s3, %s491_s20 }
  0x11   : > { %206 = vsyncadd [#allocation3], 128 }
  0x12   : > { %535 = dma.done.wait [#allocation3], 128 }
  0x13   : > { %536 = vsyncadd [#allocation3], 4294967168  ;;  %v483_v1 = vcombine.high %v197_v0, %v197_v0  ;;  %vm292_vm0 = vcmask 1043456   ;;  %v482_v2 = vcombine.low %v197_v0, %v197_v0  ;;  %v549_v3 = vmov 0   ;;  %v276_v6 = vld [vmem:[%s614_s1] sm:$0xf] }
  0x14   : > { %331 = vmatprep.mubr.bf16.mxu0 %v549_v3  ;;  %v550_v5 = vmov 1   ;;  %vm288_vm1 = vcmask 64512   ;;  %v277_v7 = vld [vmem:[%s615_s2] sm:$0xff] }
  0x15   : > { %484 = vmatprep.subr.msk.bf16.mxu0 %vm292_vm0, %v483_v1  ;;  %v294_v4 = vsel %vm292_vm0, %v482_v2, 0  ;;  %522 = vset.pattern.permute.xlu0 %v550_v5 }
  0x16   : > { %300 = vmatpush1.bf16.msra.mxu0 %v294_v4  ;;  %280 = vperm.xlu0 %522, %v277_v7  }
  0x19   : > { %485 = vmatmul.mubr.msk.bf16.vlgmr.msra.gmra.mrb[0].mxu0 %vm288_vm1, %v276_v6 }
  0x95   : > { %v281_v8 = vpop.permute.xlu0 %280 }
  0xec   : > { %v333_v9 = vpop.f32.mrb[0].mxu0 }
  0xed   : > { %v334_v10 = vadd.f32 %v333_v9, %v281_v8  ;;  %v335_v11 = vpop.f32.mrb[1].mxu0 }
  0xee   : > { %v336_v12 = vadd.f32 %v335_v11, %v281_v8  ;;  %v337_v13 = vpop.f32.mrb[2].mxu0 }
  0xef   : > { %vm340_vm2 = vcmp.gt.f32.partialorder %v334_v10, 0.0  ;;  %v342_v14 = vmul.f32 0.01, %v334_v10  ;;  %v338_v15 = vpop.f32.mrb[3].mxu0 }
  0xf0   : > { %vm341_vm3 = vcmp.gt.f32.partialorder %v336_v12, 0.0  ;;  %v343_v16 = vmul.f32 0.01, %v336_v12 }
  0xf1   : > { %v344_v17 = vsel %vm340_vm2, %v334_v10, %v342_v14 }
  0xf2   : > { %v345_v18 = vsel %vm341_vm3, %v336_v12, %v343_v16 }
  0xf3   : > { %v495_v19 = vpack.c.bf16 %v345_v18, %v344_v17 }
  0xf5   : > { %354 = vst [vmem:[%s595_s23] sm:$0xff] %v495_v19 }
  0xf6 PF: > { %s13_s14 = sadd.s32 1, %s547_s14   ;;  %s617_s12 = smov %s543_s13 }
  0xf7   : > { %p10_p5 = scmp.ge.s32.totalorder %s13_s14, 4   ;;  %s618_s13 = smov %s620_s15 }
  0xf9   :  { %12 = sbr.rel (!%p10_p5) target bundleno = 2 (0x2), region = 156 }
 0x100   :  { %385 = vsyncmov [#allocation3] }
 0x103   :  { %s386_s28 = vpop.sfrf %385 }
 0x104   :  { %p489_p6 = scmp.ne.s32.totalorder %s386_s28, 0 }
 0x106   :  { %390 = shalt.err (%p489_p6)  }
 0x107   :  { %392 = vsyncmov [#allocation3 + $0x1] }
 0x10a   :  { %s393_s29 = vpop.sfrf %392 }
 0x10b   :  { %p490_p7 = scmp.ne.s32.totalorder %s393_s29, 0 }
 0x10d   :  { %397 = shalt.err (%p490_p7)  }

// kernel: feature_aggregation_forward.18
= control target key start
LH: loop header
LB: loop body
LE: loop exit
PB: predicated region body
PF: predicated region fallthrough
CT: control target
= control target key end

     0   :  { %s1681_s12 = smov 0   ;;  %s1683_s13 = smov 0   ;;  %s1851_s0 = inlined_call_operand.vmem [shape: bf16[2,8,512], index: 0, kind: input, shape index: {}]   ;;  %s1852_s1 = inlined_call_operand.vmem [shape: bf16[9,8,8], index: 1, kind: input, shape index: {}]   ;;  %s1853_s2 = inlined_call_operand.vmem [shape: f32[8,4], index: 2, kind: input, shape index: {}]   ;;  %s1854_s3 = inlined_call_operand.vmem [shape: bf16[2,8,384], index: 3, kind: output, shape index: {}]  }
   0x1   :  { %s1685_s14 = smov 0  }
   0x2 LB: > { %s25_s15 = sadd.s32 1, %s1641_s13  ;;  %p1439_p0 = scmp.ge.s32.totalorder %s1645_s14, 1  ;;  %s1645_s14 = sphi %s1685_s14, %s13_s14   ;;  %s1641_s13 = sphi %s1683_s13, %s1856_s13   ;;  %s1637_s12 = sphi %s1681_s12, %s1855_s12  }
   0x3   : > { %p27_p1 = scmp.ge.s32.totalorder %s25_s15, 2  ;;  %p117_p2 = scmp.lt.s32.totalorder %s1645_s14, 3 }
   0x5   : > { %s1858_s15 = smov (%p27_p1, %s25_s15), 0  ;;  %p118_p3 = pnand %p1439_p0, %p117_p2 }
   0x6   : > { %p139_p4 = scmp.lt.s32.totalorder (!%p118_p3), %s1637_s12, 1  ;;  %s1496_s16 = sshll.u32 (!%p118_p3), %s1637_s12, 4 }
   0x7   : > { %121 = sbr.rel (%p118_p3) target bundleno = 439 (0x1b7), region = 28  ;;  %s160_s19 = scalar_lea.vmem (!%p118_p3), %s1851_s0, %s1496_s16 }
   0x8   : > { %v197_v0 = vld [vmem:[%s160_s19] sm:$0xff] (!%p118_p3)  ;;  %v199_v1 = vld [vmem:[%s160_s19 + $0x8] sm:$0xff] (!%p118_p3) }
   0x9   : > { %198 = vst [vmem:[#allocation2] sm:$0xff] (!%p118_p3), %v197_v0  ;;  %200 = vst [vmem:[#allocation2 + $0x8] sm:$0xff] (!%p118_p3), %v199_v1 }
   0xe   : > { %s1860_s12 = smov (!%p139_p4, %s1637_s12), 1 }
   0xf   : > { %s1573_s20 = smul.u32 12, %s1860_s12 }
  0x11   : > { %s1705_s23 = scalar_lea.vmem %s1854_s3, %s1573_s20 }
  0x12   : > { %208 = vsyncadd [#allocation3], 256 }
  0x13   : > { %1633 = dma.done.wait [#allocation3], 256 }
  0x14   : > { %1634 = vsyncadd [#allocation3], 4294967040  ;;  %v1647_v2 = vmov 0.0   ;;  %v1648_v3 = vmov 0   ;;  %vm1649_vm0 = vmmov 0   ;;  %v283_v4 = vld [vmem:[#allocation2 + $0x8] sm:$0xff] }
  0x15   : > { %1519 = vmatprep.subr.bf16.mxu1 %v1647_v2  ;;  %354 = vmatprep.mubr.bf16.mxu0 %v1648_v3  ;;  %v282_v5 = vld [vmem:[#allocation2] sm:$0xff]  ;;  %v1451_v6 = vcombine.low %v283_v4, %v283_v4  ;;  %s1650_s24 = smov 126   ;;  %v1452_v8 = vcombine.high %v283_v4, %v283_v4  ;;  %s1651_s25 = smov 124   ;;  %v1658_v10 = vmov 1   ;;  %v1659_v12 = vmov 2  }
  0x16   : > { %1521 = vmatprep.mubr.msk.bf16.mxu1 %vm1649_vm0, %v1647_v2  ;;  %v1711_v7 = vcombine.low %v282_v5, %v282_v5  ;;  %v1714_v9 = vcombine.high %v282_v5, %v282_v5  ;;  %s1652_s26 = smov 88   ;;  %s1653_s27 = smov 86   ;;  %1612 = vset.pattern.permute.xlu0 %v1658_v10  ;;  %v1274_v11 = vld [vmem:[%s1853_s2] sm:$0xff]  ;;  %v1660_v13 = vmov 3   ;;  %vm304_vm1 = vcmask 1031168  }
  0x17   : > { %300 = vrot.lane.b32.xlu1 %v1451_v6, %s1650_s24  ;;  %s1654_s28 = smov 84   ;;  %s1655_s29 = smov 48   ;;  %vm312_vm2 = vcmask 1043456   ;;  %v1620_v18 = vld [vmem:[#allocation2 + $0x8] ss:$0 sps:$4 sm:$0xff]   ;;  %vm308_vm3 = vcmask 64512  }
  0x18   : > { %296 = vrot.lane.b32.xlu0 %v1711_v7, %s1650_s24  ;;  %s1656_s30 = smov 46   ;;  %s1657_s4 = smov 44   ;;  %1613 = vset.pattern.permute.xlu1 %v1659_v12  ;;  %v1448_v24 = vld [vmem:[%s1852_s1 + $0x4] sm:$0xf]  ;;  %v415_v26 = vsel %vm312_vm2, %v1711_v7, 0  ;;  %v421_v28 = vsel %vm312_vm2, %v1620_v18, 0 }
  0x19   : > { %vm514_vm4 = vcmask 1014784   ;;  %v281_v34 = vld [vmem:[%s1852_s1] sm:$0xf]  ;;  %vm624_vm5 = vcmask 719872   ;;  %v1462_v44 = vld [vmem:[%s1852_s1 + $0x8] sm:$0xf] }
  0x1a   : > { %vm734_vm6 = vcmask 703488   ;;  %v1466_v54 = vld [vmem:[%s1852_s1 + $0xc] sm:$0xf]  ;;  %vm844_vm7 = vcmask 687104   ;;  %v1470_v0 = vld [vmem:[%s1852_s1 + $0x10] sm:$0xf] }
  0x1b   : > { %302 = vrot.lane.b32.xlu1 %v1452_v8, %s1650_s24  ;;  %vm954_vm8 = vcmask 392192   ;;  %v1474_v12 = vld [vmem:[%s1852_s1 + $0x14] sm:$0xf]  ;;  %vm1064_vm9 = vcmask 375808   ;;  %vm1174_vm10 = vcmask 359424  }
  0x1c   : > { %298 = vrot.lane.b32.xlu0 %v1714_v9, %s1650_s24 }
  0x1f   : > { %508 = vrot.lane.b32.xlu1 %v1714_v9, %s1651_s25 }
  0x20   : > { %506 = vrot.lane.b32.xlu0 %v1711_v7, %s1651_s25 }
  0x23   : > { %512 = vrot.lane.b32.xlu1 %v1452_v8, %s1651_s25 }
  0x24   : > { %510 = vrot.lane.b32.xlu0 %v1451_v6, %s1651_s25 }
  0x27   : > { %618 = vrot.lane.b32.xlu1 %v1714_v9, %s1652_s26 }
  0x28   : > { %616 = vrot.lane.b32.xlu0 %v1711_v7, %s1652_s26 }
  0x2b   : > { %622 = vrot.lane.b32.xlu1 %v1452_v8, %s1652_s26 }
  0x2c   : > { %620 = vrot.lane.b32.xlu0 %v1451_v6, %s1652_s26 }
  0x2f   : > { %728 = vrot.lane.b32.xlu1 %v1714_v9, %s1653_s27 }
  0x30   : > { %726 = vrot.lane.b32.xlu0 %v1711_v7, %s1653_s27 }
  0x33   : > { %732 = vrot.lane.b32.xlu1 %v1452_v8, %s1653_s27 }
  0x34   : > { %730 = vrot.lane.b32.xlu0 %v1451_v6, %s1653_s27 }
  0x37   : > { %838 = vrot.lane.b32.xlu1 %v1714_v9, %s1654_s28 }
  0x38   : > { %836 = vrot.lane.b32.xlu0 %v1711_v7, %s1654_s28 }
  0x3b   : > { %842 = vrot.lane.b32.xlu1 %v1452_v8, %s1654_s28 }
  0x3c   : > { %840 = vrot.lane.b32.xlu0 %v1451_v6, %s1654_s28 }
  0x3f   : > { %948 = vrot.lane.b32.xlu1 %v1714_v9, %s1655_s29 }
  0x40   : > { %946 = vrot.lane.b32.xlu0 %v1711_v7, %s1655_s29 }
  0x43   : > { %952 = vrot.lane.b32.xlu1 %v1452_v8, %s1655_s29 }
  0x44   : > { %950 = vrot.lane.b32.xlu0 %v1451_v6, %s1655_s29 }
  0x47   : > { %1058 = vrot.lane.b32.xlu1 %v1714_v9, %s1656_s30 }
  0x48   : > { %1056 = vrot.lane.b32.xlu0 %v1711_v7, %s1656_s30 }
  0x4b   : > { %1062 = vrot.lane.b32.xlu1 %v1452_v8, %s1656_s30 }
  0x4c   : > { %1060 = vrot.lane.b32.xlu0 %v1451_v6, %s1656_s30 }
  0x4f   : > { %1168 = vrot.lane.b32.xlu1 %v1714_v9, %s1657_s4 }
  0x50   : > { %1166 = vrot.lane.b32.xlu0 %v1711_v7, %s1657_s4 }
  0x53   : > { %1172 = vrot.lane.b32.xlu1 %v1452_v8, %s1657_s4 }
  0x54   : > { %1170 = vrot.lane.b32.xlu0 %v1451_v6, %s1657_s4 }
  0x57   : > { %1293 = vperm.xlu1 %1613, %v1274_v11  }
  0x58   : > { %1277 = vperm.xlu0 %1612, %v1274_v11  }
  0x5b   : > { %1614 = vset.pattern.permute.xlu1 %v1660_v13 }
  0x5c   : > { %1615 = vset.pattern.permute.xlu0 %v1660_v13  ;;  %1300 = vperm.xlu1 %1614, %v1274_v11  }
  0x89   : > { %v301_v14 = vpop.permute.xlu1 %300 }
  0x8a   : > { %v297_v15 = vpop.permute.xlu0 %296 }
  0x8d   : > { %v303_v16 = vpop.permute.xlu1 %302 }
  0x8e   : > { %v299_v17 = vpop.permute.xlu0 %298  ;;  %v307_v21 = vsel %vm304_vm1, %v301_v14, %v303_v16 }
  0x8f   : > { %v306_v19 = vsel %vm304_vm1, %v299_v17, %v301_v14  ;;  %v305_v20 = vsel %vm304_vm1, %v297_v15, %v299_v17  ;;  %v320_v23 = vsel %vm312_vm2, %v307_v21, 0 }
  0x90   : > { %1453 = vmatprep.subr.msk.bf16.mxu0 %vm312_vm2, %v306_v19  ;;  %v314_v22 = vsel %vm312_vm2, %v305_v20, 0  ;;  %1520 = vmatpush3.bf16.msra.mxu1 %v320_v23 }
  0x91   : > { %323 = vmatpush1.bf16.msra.mxu0 %v314_v22  ;;  %1525 = vmatprep.subr.bf16.mxu1 %v1647_v2  ;;  %v509_v27 = vpop.permute.xlu1 %508  ;;  %v1478_v22 = vld [vmem:[%s1852_s1 + $0x18] sm:$0xf] }
  0x92   : > { %v507_v25 = vpop.permute.xlu0 %506  ;;  %1459 = vmatprep.subr.msk.bf16.mxu0 %vm312_vm2, %v1714_v9 }
  0x93   : > { %1522 = vmatmul.mubr.msk.bf16.vlgmr.msra.gmra.mrb[0].mxu1 %vm308_vm3, %v1448_v24  ;;  %v515_v31 = vsel %vm514_vm4, %v507_v25, %v509_v27 }
  0x94   : > { %1454 = vmatmul.mubr.msk.bf16.vlgmr.msra.gmra.mrb[0].mxu0 %vm308_vm3, %v1448_v24  ;;  %1526 = vmatpush3.bf16.msra.mxu1 %v421_v28  ;;  %v522_v35 = vsel %vm312_vm2, %v515_v31, 0 }
  0x95   : > { %424 = vmatpush1.bf16.msra.mxu0 %v415_v26  ;;  %v513_v30 = vpop.permute.xlu1 %512  ;;  %455 = vmatprep.mubr.bf16.mxu0 %v1648_v3 }
  0x96   : > { %v511_v29 = vpop.permute.xlu0 %510  ;;  %1527 = vmatprep.mubr.msk.bf16.mxu1 %vm1649_vm0, %v1647_v2  ;;  %1531 = vmatprep.subr.bf16.mxu1 %v1647_v2 }
  0x97   : > { %v516_v32 = vsel %vm514_vm4, %v509_v27, %v511_v29  ;;  %v517_v33 = vsel %vm514_vm4, %v511_v29, %v513_v30 }
  0x98   : > { %1463 = vmatprep.subr.msk.bf16.mxu0 %vm312_vm2, %v516_v32  ;;  %v528_v36 = vsel %vm312_vm2, %v517_v33, 0  ;;  %v1482_v32 = vld [vmem:[%s1852_s1 + $0x1c] sm:$0xf] }
  0x99   : > { %v619_v38 = vpop.permute.xlu1 %618 }
  0x9a   : > { %v617_v37 = vpop.permute.xlu0 %616 }
  0x9b   : > { %1528 = vmatmul.mubr.msk.bf16.vlgmr.msra.gmra.mrb[4].mxu1 %vm308_vm3, %v281_v34  ;;  %v625_v41 = vsel %vm624_vm5, %v617_v37, %v619_v38 }
  0x9c   : > { %1460 = vmatmul.mubr.msk.bf16.vlgmr.msra.gmra.mrb[4].mxu0 %vm308_vm3, %v281_v34  ;;  %1532 = vmatpush3.bf16.msra.mxu1 %v528_v36  ;;  %v632_v45 = vsel %vm312_vm2, %v625_v41, 0 }
  0x9d   : > { %531 = vmatpush1.bf16.msra.mxu0 %v522_v35  ;;  %v623_v40 = vpop.permute.xlu1 %622  ;;  %562 = vmatprep.mubr.bf16.mxu0 %v1648_v3  ;;  %v1486_v35 = vld [vmem:[%s1852_s1 + $0x20] sm:$0xf] }
  0x9e   : > { %v621_v39 = vpop.permute.xlu0 %620  ;;  %1533 = vmatprep.mubr.msk.bf16.mxu1 %vm1649_vm0, %v1647_v2  ;;  %1537 = vmatprep.subr.bf16.mxu1 %v1647_v2 }
  0x9f   : > { %v626_v42 = vsel %vm624_vm5, %v619_v38, %v621_v39  ;;  %v627_v43 = vsel %vm624_vm5, %v621_v39, %v623_v40 }
  0xa0   : > { %1467 = vmatprep.subr.msk.bf16.mxu0 %vm312_vm2, %v626_v42  ;;  %v638_v46 = vsel %vm312_vm2, %v627_v43, 0 }
  0xa1   : > { %v729_v48 = vpop.permute.xlu1 %728 }
  0xa2   : > { %v727_v47 = vpop.permute.xlu0 %726 }
  0xa3   : > { %1534 = vmatmul.mubr.msk.bf16.vlgmr.msra.gmra.mrb[8].mxu1 %vm308_vm3, %v1462_v44  ;;  %v735_v51 = vsel %vm734_vm6, %v727_v47, %v729_v48 }
  0xa4   : > { %1464 = vmatmul.mubr.msk.bf16.vlgmr.msra.gmra.mrb[8].mxu0 %vm308_vm3, %v1462_v44  ;;  %1538 = vmatpush3.bf16.msra.mxu1 %v638_v46  ;;  %v742_v55 = vsel %vm312_vm2, %v735_v51, 0 }
  0xa5   : > { %641 = vmatpush1.bf16.msra.mxu0 %v632_v45  ;;  %v733_v50 = vpop.permute.xlu1 %732  ;;  %672 = vmatprep.mubr.bf16.mxu0 %v1648_v3 }
  0xa6   : > { %v731_v49 = vpop.permute.xlu0 %730  ;;  %1539 = vmatprep.mubr.msk.bf16.mxu1 %vm1649_vm0, %v1647_v2  ;;  %1543 = vmatprep.subr.bf16.mxu1 %v1647_v2 }
  0xa7   : > { %v736_v52 = vsel %vm734_vm6, %v729_v48, %v731_v49  ;;  %v737_v53 = vsel %vm734_vm6, %v731_v49, %v733_v50 }
  0xa8   : > { %1471 = vmatprep.subr.msk.bf16.mxu0 %vm312_vm2, %v736_v52  ;;  %v748_v56 = vsel %vm312_vm2, %v737_v53, 0 }
  0xa9   : > { %v839_v58 = vpop.permute.xlu1 %838 }
  0xaa   : > { %v837_v57 = vpop.permute.xlu0 %836 }
  0xab   : > { %1540 = vmatmul.mubr.msk.bf16.vlgmr.msra.gmra.mrb[12].mxu1 %vm308_vm3, %v1466_v54  ;;  %v845_v61 = vsel %vm844_vm7, %v837_v57, %v839_v58 }
  0xac   : > { %1468 = vmatmul.mubr.msk.bf16.vlgmr.msra.gmra.mrb[12].mxu0 %vm308_vm3, %v1466_v54  ;;  %1544 = vmatpush3.bf16.msra.mxu1 %v748_v56  ;;  %v852_v1 = vsel %vm312_vm2, %v845_v61, 0 }
  0xad   : > { %751 = vmatpush1.bf16.msra.mxu0 %v742_v55  ;;  %v843_v60 = vpop.permute.xlu1 %842  ;;  %782 = vmatprep.mubr.bf16.mxu0 %v1648_v3 }
  0xae   : > { %v841_v59 = vpop.permute.xlu0 %840  ;;  %1545 = vmatprep.mubr.msk.bf16.mxu1 %vm1649_vm0, %v1647_v2  ;;  %1549 = vmatprep.subr.bf16.mxu1 %v1647_v2 }
  0xaf   : > { %v846_v62 = vsel %vm844_vm7, %v839_v58, %v841_v59  ;;  %v847_v63 = vsel %vm844_vm7, %v841_v59, %v843_v60 }
  0xb0   : > { %1475 = vmatprep.subr.msk.bf16.mxu0 %vm312_vm2, %v846_v62  ;;  %v858_v4 = vsel %vm312_vm2, %v847_v63, 0 }
  0xb1   : > { %v949_v6 = vpop.permute.xlu1 %948 }
  0xb2   : > { %v947_v5 = vpop.permute.xlu0 %946 }
  0xb3   : > { %1546 = vmatmul.mubr.msk.bf16.vlgmr.msra.gmra.mrb[16].mxu1 %vm308_vm3, %v1470_v0  ;;  %v955_v9 = vsel %vm954_vm8, %v947_v5, %v949_v6 }
  0xb4   : > { %1472 = vmatmul.mubr.msk.bf16.vlgmr.msra.gmra.mrb[16].mxu0 %vm308_vm3, %v1470_v0  ;;  %1550 = vmatpush3.bf16.msra.mxu1 %v858_v4  ;;  %v962_v13 = vsel %vm312_vm2, %v955_v9, 0 }
  0xb5   : > { %861 = vmatpush1.bf16.msra.mxu0 %v852_v1  ;;  %v953_v8 = vpop.permute.xlu1 %952  ;;  %892 = vmatprep.mubr.bf16.mxu0 %v1648_v3 }
  0xb6   : > { %v951_v7 = vpop.permute.xlu0 %950  ;;  %1551 = vmatprep.mubr.msk.bf16.mxu1 %vm1649_vm0, %v1647_v2  ;;  %1555 = vmatprep.subr.bf16.mxu1 %v1647_v2 }
  0xb7   : > { %v956_v10 = vsel %vm954_vm8, %v949_v6, %v951_v7  ;;  %v957_v11 = vsel %vm954_vm8, %v951_v7, %v953_v8 }
  0xb8   : > { %1479 = vmatprep.subr.msk.bf16.mxu0 %vm312_vm2, %v956_v10  ;;  %v968_v14 = vsel %vm312_vm2, %v957_v11, 0 }
  0xb9   : > { %v1059_v16 = vpop.permute.xlu1 %1058 }
  0xba   : > { %v1057_v15 = vpop.permute.xlu0 %1056 }
  0xbb   : > { %1552 = vmatmul.mubr.msk.bf16.vlgmr.msra.gmra.mrb[20].mxu1 %vm308_vm3, %v1474_v12  ;;  %v1065_v19 = vsel %vm1064_vm9, %v1057_v15, %v1059_v16 }
  0xbc   : > { %1476 = vmatmul.mubr.msk.bf16.vlgmr.msra.gmra.mrb[20].mxu0 %vm308_vm3, %v1474_v12  ;;  %1556 = vmatpush3.bf16.msra.mxu1 %v968_v14  ;;  %v1072_v23 = vsel %vm312_vm2, %v1065_v19, 0 }
  0xbd   : > { %971 = vmatpush1.bf16.msra.mxu0 %v962_v13  ;;  %v1063_v18 = vpop.permute.xlu1 %1062  ;;  %1002 = vmatprep.mubr.bf16.mxu0 %v1648_v3 }
  0xbe   : > { %v1061_v17 = vpop.permute.xlu0 %1060  ;;  %1557 = vmatprep.mubr.msk.bf16.mxu1 %vm1649_vm0, %v1647_v2  ;;  %1561 = vmatprep.subr.bf16.mxu1 %v1647_v2 }
  0xbf   : > { %v1066_v20 = vsel %vm1064_vm9, %v1059_v16, %v1061_v17  ;;  %v1067_v21 = vsel %vm1064_vm9, %v1061_v17, %v1063_v18 }
  0xc0   : > { %1483 = vmatprep.subr.msk.bf16.mxu0 %vm312_vm2, %v1066_v20  ;;  %v1078_v24 = vsel %vm312_vm2, %v1067_v21, 0 }
  0xc1   : > { %v1169_v26 = vpop.permute.xlu1 %1168 }
  0xc2   : > { %v1167_v25 = vpop.permute.xlu0 %1166 }
  0xc3   : > { %1558 = vmatmul.mubr.msk.bf16.vlgmr.msra.gmra.mrb[24].mxu1 %vm308_vm3, %v1478_v22  ;;  %v1175_v29 = vsel %vm1174_vm10, %v1167_v25, %v1169_v26 }
  0xc4   : > { %1480 = vmatmul.mubr.msk.bf16.vlgmr.msra.gmra.mrb[24].mxu0 %vm308_vm3, %v1478_v22  ;;  %1562 = vmatpush3.bf16.msra.mxu1 %v1078_v24  ;;  %v1182_v33 = vsel %vm312_vm2, %v1175_v29, 0 }
  0xc5   : > { %1081 = vmatpush1.bf16.msra.mxu0 %v1072_v23  ;;  %v1173_v28 = vpop.permute.xlu1 %1172  ;;  %1112 = vmatprep.mubr.bf16.mxu0 %v1648_v3 }
  0xc6   : > { %v1171_v27 = vpop.permute.xlu0 %1170  ;;  %1563 = vmatprep.mubr.msk.bf16.mxu1 %vm1649_vm0, %v1647_v2  ;;  %1567 = vmatprep.subr.bf16.mxu1 %v1647_v2 }
  0xc7   : > { %v1176_v30 = vsel %vm1174_vm10, %v1169_v26, %v1171_v27  ;;  %v1177_v31 = vsel %vm1174_vm10, %v1171_v27, %v1173_v28 }
  0xc8   : > { %1487 = vmatprep.subr.msk.bf16.mxu0 %vm312_vm2, %v1176_v30  ;;  %v1188_v34 = vsel %vm312_vm2, %v1177_v31, 0 }
  0xcb   : > { %1564 = vmatmul.mubr.msk.bf16.vlgmr.msra.gmra.mrb[28].mxu1 %vm308_vm3, %v1482_v32 }
  0xcc   : > { %1484 = vmatmul.mubr.msk.bf16.vlgmr.msra.gmra.mrb[28].mxu0 %vm308_vm3, %v1482_v32  ;;  %1568 = vmatpush3.bf16.msra.mxu1 %v1188_v34 }
  0xcd   : > { %1191 = vmatpush1.bf16.msra.mxu0 %v1182_v33  ;;  %1222 = vmatprep.mubr.bf16.mxu0 %v1648_v3 }
  0xce   : > { %1569 = vmatprep.mubr.msk.bf16.mxu1 %vm1649_vm0, %v1647_v2 }
  0xd3   : > { %1570 = vmatmul.mubr.msk.bf16.vlgmr.msra.gmra.mrb[32].mxu1 %vm308_vm3, %v1486_v35 }
  0xd4   : > { %1488 = vmatmul.mubr.msk.bf16.vlgmr.msra.gmra.mrb[32].mxu0 %vm308_vm3, %v1486_v35 }
 0x166   : > { %v397_v37 = vpop.f32.mrb[0].mxu1 }
 0x167   : > { %v356_v36 = vpop.f32.mrb[0].mxu0  ;;  %v1523_v39 = vpop.f32.mrb[1].mxu1 }
 0x168   : > { %v358_v38 = vpop.f32.mrb[1].mxu0  ;;  %v400_v41 = vpop.f32.mrb[2].mxu1 }
 0x169   : > { %v360_v40 = vpop.f32.mrb[2].mxu0  ;;  %v1524_v43 = vpop.f32.mrb[3].mxu1 }
 0x16a   : > { %v361_v42 = vpop.f32.mrb[3].mxu0 }
 0x16e   : > { %v498_v44 = vpop.f32.mrb[4].mxu1 }
 0x16f   : > { %v457_v3 = vpop.f32.mrb[4].mxu0  ;;  %v499_v2 = vadd.f32 %v498_v44, %v397_v37  ;;  %v1529_v47 = vpop.f32.mrb[5].mxu1 }
 0x170   : > { %v458_v45 = vadd.f32 %v457_v3, %v356_v36  ;;  %v459_v46 = vpop.f32.mrb[5].mxu0  ;;  %v501_v50 = vpop.f32.mrb[6].mxu1 }
 0x171   : > { %v460_v48 = vadd.f32 %v459_v46, %v358_v38  ;;  %v461_v49 = vpop.f32.mrb[6].mxu0  ;;  %v1530_v52 = vpop.f32.mrb[7].mxu1 }
 0x172   : > { %v462_v51 = vpop.f32.mrb[7].mxu0 }
 0x176   : > { %v605_v54 = vpop.f32.mrb[8].mxu1 }
 0x177   : > { %v564_v53 = vpop.f32.mrb[8].mxu0  ;;  %v613_v56 = vadd.f32 %v605_v54, %v499_v2  ;;  %v1535_v58 = vpop.f32.mrb[9].mxu1 }
 0x178   : > { %v611_v55 = vadd.f32 %v564_v53, %v458_v45  ;;  %v566_v57 = vpop.f32.mrb[9].mxu0  ;;  %v608_v61 = vpop.f32.mrb[10].mxu1 }
 0x179   : > { %v612_v59 = vadd.f32 %v566_v57, %v460_v48  ;;  %v568_v60 = vpop.f32.mrb[10].mxu0  ;;  %v1536_v63 = vpop.f32.mrb[11].mxu1 }
 0x17a   : > { %v569_v62 = vpop.f32.mrb[11].mxu0 }
 0x17e   : > { %v715_v1 = vpop.f32.mrb[12].mxu1 }
 0x17f   : > { %v674_v0 = vpop.f32.mrb[12].mxu0  ;;  %v723_v5 = vadd.f32 %v715_v1, %v613_v56  ;;  %v1541_v7 = vpop.f32.mrb[13].mxu1 }
 0x180   : > { %v721_v4 = vadd.f32 %v674_v0, %v611_v55  ;;  %v676_v6 = vpop.f32.mrb[13].mxu0  ;;  %v718_v10 = vpop.f32.mrb[14].mxu1 }
 0x181   : > { %v722_v8 = vadd.f32 %v676_v6, %v612_v59  ;;  %v678_v9 = vpop.f32.mrb[14].mxu0  ;;  %v1542_v12 = vpop.f32.mrb[15].mxu1 }
 0x182   : > { %v679_v11 = vpop.f32.mrb[15].mxu0  ;;  %v1278_v55 = vpop.permute.xlu0 %1277 }
 0x183   : > { %v1294_v56 = vpop.permute.xlu1 %1293 }
 0x186   : > { %v825_v14 = vpop.f32.mrb[16].mxu1 }
 0x187   : > { %v784_v13 = vpop.f32.mrb[16].mxu0  ;;  %v833_v16 = vadd.f32 %v825_v14, %v723_v5  ;;  %v1547_v18 = vpop.f32.mrb[17].mxu1 }
 0x188   : > { %v831_v15 = vadd.f32 %v784_v13, %v721_v4  ;;  %v786_v17 = vpop.f32.mrb[17].mxu0  ;;  %v828_v21 = vpop.f32.mrb[18].mxu1 }
 0x189   : > { %v832_v19 = vadd.f32 %v786_v17, %v722_v8  ;;  %v788_v20 = vpop.f32.mrb[18].mxu0  ;;  %v1548_v23 = vpop.f32.mrb[19].mxu1 }
 0x18a   : > { %v789_v22 = vpop.f32.mrb[19].mxu0  ;;  %v1301_v14 = vpop.permute.xlu1 %1300 }
 0x18e   : > { %v935_v25 = vpop.f32.mrb[20].mxu1 }
 0x18f   : > { %v894_v24 = vpop.f32.mrb[20].mxu0  ;;  %v943_v27 = vadd.f32 %v935_v25, %v833_v16  ;;  %v1553_v29 = vpop.f32.mrb[21].mxu1 }
 0x190   : > { %v941_v26 = vadd.f32 %v894_v24, %v831_v15  ;;  %v896_v28 = vpop.f32.mrb[21].mxu0  ;;  %v938_v32 = vpop.f32.mrb[22].mxu1 }
 0x191   : > { %v942_v30 = vadd.f32 %v896_v28, %v832_v19  ;;  %v898_v31 = vpop.f32.mrb[22].mxu0  ;;  %v1554_v34 = vpop.f32.mrb[23].mxu1 }
 0x192   : > { %v899_v33 = vpop.f32.mrb[23].mxu0 }
 0x196   : > { %v1045_v36 = vpop.f32.mrb[24].mxu1 }
 0x197   : > { %v1004_v35 = vpop.f32.mrb[24].mxu0  ;;  %v1053_v38 = vadd.f32 %v1045_v36, %v943_v27  ;;  %v1559_v40 = vpop.f32.mrb[25].mxu1 }
 0x198   : > { %v1051_v37 = vadd.f32 %v1004_v35, %v941_v26  ;;  %v1006_v39 = vpop.f32.mrb[25].mxu0  ;;  %v1048_v43 = vpop.f32.mrb[26].mxu1 }
 0x199   : > { %v1052_v41 = vadd.f32 %v1006_v39, %v942_v30  ;;  %v1008_v42 = vpop.f32.mrb[26].mxu0  ;;  %v1560_v44 = vpop.f32.mrb[27].mxu1 }
 0x19a   : > { %v1009_v3 = vpop.f32.mrb[27].mxu0 }
 0x19e   : > { %v1155_v2 = vpop.f32.mrb[28].mxu1 }
 0x19f   : > { %v1114_v45 = vpop.f32.mrb[28].mxu0  ;;  %v1163_v47 = vadd.f32 %v1155_v2, %v1053_v38  ;;  %v1565_v49 = vpop.f32.mrb[29].mxu1 }
 0x1a0   : > { %v1161_v46 = vadd.f32 %v1114_v45, %v1051_v37  ;;  %v1116_v48 = vpop.f32.mrb[29].mxu0  ;;  %v1158_v52 = vpop.f32.mrb[30].mxu1 }
 0x1a1   : > { %v1162_v50 = vadd.f32 %v1116_v48, %v1052_v41  ;;  %v1118_v51 = vpop.f32.mrb[30].mxu0  ;;  %v1566_v54 = vpop.f32.mrb[31].mxu1 }
 0x1a2   : > { %v1119_v53 = vpop.f32.mrb[31].mxu0 }
 0x1a6   : > { %v1265_v58 = vpop.f32.mrb[32].mxu1 }
 0x1a7   : > { %v1224_v57 = vpop.f32.mrb[32].mxu0  ;;  %v1273_v60 = vadd.f32 %v1265_v58, %v1163_v47  ;;  %v1571_v62 = vpop.f32.mrb[33].mxu1 }
 0x1a8   : > { %v1271_v59 = vadd.f32 %v1224_v57, %v1161_v46  ;;  %v1226_v61 = vpop.f32.mrb[33].mxu0  ;;  %v1268_v1 = vpop.f32.mrb[34].mxu1 }
 0x1a9   : > { %v1272_v63 = vadd.f32 %v1226_v61, %v1162_v50  ;;  %v1228_v0 = vpop.f32.mrb[34].mxu0  ;;  %v1282_v5 = vadd.f32 %v1278_v55, %v1273_v60  ;;  %v1572_v7 = vpop.f32.mrb[35].mxu1 }
 0x1aa   : > { %v1280_v4 = vadd.f32 %v1278_v55, %v1271_v59  ;;  %v1229_v6 = vpop.f32.mrb[35].mxu0 }
 0x1ab   : > { %v1281_v8 = vadd.f32 %v1278_v55, %v1272_v63  ;;  %vm1285_vm12 = vcmp.gt.f32.partialorder %v1282_v5, 0.0  ;;  %v1288_v10 = vmul.f32 0.01, %v1282_v5 }
 0x1ac   : > { %vm1283_vm11 = vcmp.gt.f32.partialorder %v1280_v4, 0.0  ;;  %v1286_v9 = vmul.f32 0.01, %v1280_v4 }
 0x1ad   : > { %vm1284_vm13 = vcmp.gt.f32.partialorder %v1281_v8, 0.0  ;;  %v1287_v11 = vmul.f32 0.01, %v1281_v8  ;;  %v1291_v13 = vsel %vm1285_vm12, %v1282_v5, %v1288_v10 }
 0x1ae   : > { %v1289_v12 = vsel %vm1283_vm11, %v1280_v4, %v1286_v9  ;;  %v1298_v17 = vmul.f32 %v1294_v56, %v1291_v13 }
 0x1af   : > { %v1290_v15 = vsel %vm1284_vm13, %v1281_v8, %v1287_v11  ;;  %v1296_v16 = vmul.f32 %v1294_v56, %v1289_v12 }
 0x1b0   : > { %v1297_v18 = vmul.f32 %v1294_v56, %v1290_v15  ;;  %v1305_v20 = vadd.f32 %v1301_v14, %v1298_v17 }
 0x1b1   : > { %v1303_v19 = vadd.f32 %v1301_v14, %v1296_v16 }
 0x1b2   : > { %v1304_v21 = vadd.f32 %v1301_v14, %v1297_v18  ;;  %v1500_v22 = vpack.c.bf16 %v1305_v20, %v1305_v20 }
 0x1b4   : > { %v1499_v23 = vpack.c.bf16 %v1304_v21, %v1303_v19  ;;  %1320 = vst [vmem:[%s1705_s23 + $0x8] sm:$0xf] %v1500_v22 }
 0x1b6   : > { %1319 = vst [vmem:[%s1705_s23] sm:$0xff] %v1499_v23 }
 0x1b7 PF: > { %s13_s14 = sadd.s32 1, %s1645_s14   ;;  %s1855_s12 = smov %s1641_s13 }
 0x1b8   : > { %p10_p5 = scmp.ge.s32.totalorder %s13_s14, 4   ;;  %s1856_s13 = smov %s1858_s15 }
 0x1ba   :  { %12 = sbr.rel (!%p10_p5) target bundleno = 2 (0x2), region = 164 }
 0x1c1   :  { %1351 = vsyncmov [#allocation3] }
 0x1c4   :  { %s1352_s29 = vpop.sfrf %1351 }
 0x1c5   :  { %p1494_p6 = scmp.ne.s32.totalorder %s1352_s29, 0 }
 0x1c7   :  { %1356 = shalt.err (%p1494_p6)  }
 0x1c8   :  { %1358 = vsyncmov [#allocation3 + $0x1] }
 0x1cb   :  { %s1359_s30 = vpop.sfrf %1358 }
 0x1cc   :  { %p1495_p7 = scmp.ne.s32.totalorder %s1359_s30, 0 }
 0x1ce   :  { %1363 = shalt.err (%p1495_p7)  }

// kernel: feature_aggregation_forward.26
= control target key start
LH: loop header
LB: loop body
LE: loop exit
PB: predicated region body
PF: predicated region fallthrough
CT: control target
= control target key end

     0   :  { %s1727_s12 = smov 0   ;;  %s1729_s13 = smov 0   ;;  %s1905_s0 = inlined_call_operand.vmem [shape: bf16[2,8,512], index: 0, kind: input, shape index: {}]   ;;  %s1906_s1 = inlined_call_operand.vmem [shape: bf16[9,8,8], index: 1, kind: input, shape index: {}]   ;;  %s1907_s2 = inlined_call_operand.vmem [shape: f32[8,4], index: 2, kind: input, shape index: {}]   ;;  %s1908_s3 = inlined_call_operand.vmem [shape: bf16[2,8,384], index: 3, kind: output, shape index: {}]  }
   0x1   :  { %s1731_s14 = smov 0  }
   0x2 LB: > { %s25_s15 = sadd.s32 1, %s1689_s13  ;;  %p1426_p0 = scmp.ge.s32.totalorder %s1693_s14, 1  ;;  %s1693_s14 = sphi %s1731_s14, %s13_s14   ;;  %s1689_s13 = sphi %s1729_s13, %s1910_s13   ;;  %s1685_s12 = sphi %s1727_s12, %s1909_s12  }
   0x3   : > { %p27_p1 = scmp.ge.s32.totalorder %s25_s15, 2  ;;  %p117_p2 = scmp.lt.s32.totalorder %s1693_s14, 3 }
   0x5   : > { %s1912_s15 = smov (%p27_p1, %s25_s15), 0  ;;  %p118_p3 = pnand %p1426_p0, %p117_p2 }
   0x6   : > { %p139_p4 = scmp.lt.s32.totalorder (!%p118_p3), %s1685_s12, 1  ;;  %s1483_s16 = sshll.u32 (!%p118_p3), %s1685_s12, 4 }
   0x7   : > { %121 = sbr.rel (%p118_p3) target bundleno = 466 (0x1d2), region = 28  ;;  %s160_s19 = scalar_lea.vmem (!%p118_p3), %s1905_s0, %s1483_s16 }
   0x8   : > { %v197_v0 = vld [vmem:[%s160_s19] sm:$0xff] (!%p118_p3)  ;;  %v199_v1 = vld [vmem:[%s160_s19 + $0x8] sm:$0xff] (!%p118_p3) }
   0x9   : > { %198 = vst [vmem:[#allocation2] sm:$0xff] (!%p118_p3), %v197_v0  ;;  %200 = vst [vmem:[#allocation2 + $0x8] sm:$0xff] (!%p118_p3), %v199_v1 }
   0xe   : > { %s1914_s12 = smov (!%p139_p4, %s1685_s12), 1 }
   0xf   : > { %s1624_s20 = smul.u32 12, %s1914_s12 }
  0x11   : > { %s1751_s23 = scalar_lea.vmem %s1908_s3, %s1624_s20 }
  0x12   : > { %208 = vsyncadd [#allocation3], 256 }
  0x13   : > { %1681 = dma.done.wait [#allocation3], 256 }
  0x14   : > { %1682 = vsyncadd [#allocation3], 4294967040  ;;  %v1695_v2 = vmov 0.0   ;;  %v1696_v3 = vmov 0   ;;  %vm1697_vm0 = vmmov 0   ;;  %v283_v4 = vld [vmem:[#allocation2 + $0x8] sm:$0xff] }
  0x15   : > { %1506 = vmatprep.subr.bf16.mxu1 %v1695_v2  ;;  %354 = vmatprep.mubr.bf16.mxu0 %v1696_v3  ;;  %v282_v5 = vld [vmem:[#allocation2] sm:$0xff]  ;;  %v1438_v6 = vcombine.low %v283_v4, %v283_v4  ;;  %s1698_s24 = smov 127   ;;  %v1439_v8 = vcombine.high %v283_v4, %v283_v4  ;;  %s1699_s25 = smov 126   ;;  %v1706_v11 = vmov 1   ;;  %vm304_vm1 = vcmask 1039360  }
  0x16   : > { %1508 = vmatprep.mubr.msk.bf16.mxu1 %vm1697_vm0, %v1695_v2  ;;  %1661 = vset.pattern.permute.xlu0 %v1696_v3  ;;  %v1758_v7 = vcombine.low %v282_v5, %v282_v5  ;;  %v1437_v9 = vcombine.high %v282_v5, %v282_v5  ;;  %s1700_s26 = smov 110   ;;  %s1701_s27 = smov 109   ;;  %v1274_v10 = vld [vmem:[%s1907_s2] sm:$0xff]  ;;  %vm312_vm2 = vcmask 1043456   ;;  %v1668_v16 = vld [vmem:[#allocation2 + $0x8] ss:$0 sps:$4 sm:$0xff]  }
  0x17   : > { %300 = vrot.lane.b32.xlu1 %v1438_v6, %s1698_s24  ;;  %s1702_s28 = smov 108   ;;  %s1703_s29 = smov 92   ;;  %v1435_v22 = vld [vmem:[%s1906_s1 + $0x4] sm:$0xf]  ;;  %vm308_vm3 = vcmask 64512   ;;  %v421_v24 = vsel %vm312_vm2, %v1668_v16, 0 }
  0x18   : > { %296 = vrot.lane.b32.xlu0 %v1758_v7, %s1698_s24  ;;  %s1704_s30 = smov 91   ;;  %s1705_s4 = smov 90   ;;  %1662 = vset.pattern.permute.xlu1 %v1706_v11  ;;  %v415_v23 = vsel %vm312_vm2, %v1758_v7, 0  ;;  %vm514_vm4 = vcmask 1031168   ;;  %vm624_vm5 = vcmask 900096   ;;  %vm734_vm6 = vcmask 891904  }
  0x19   : > { %v281_v34 = vld [vmem:[%s1906_s1] sm:$0xf]  ;;  %v1449_v45 = vld [vmem:[%s1906_s1 + $0x8] sm:$0xf]  ;;  %vm844_vm7 = vcmask 883712   ;;  %vm954_vm8 = vcmask 752640  }
  0x1a   : > { %v1453_v55 = vld [vmem:[%s1906_s1 + $0xc] sm:$0xf]  ;;  %v1457_v1 = vld [vmem:[%s1906_s1 + $0x10] sm:$0xf]  ;;  %vm1064_vm9 = vcmask 744448   ;;  %vm1174_vm10 = vcmask 736256  }
  0x1b   : > { %302 = vrot.lane.b32.xlu1 %v1439_v8, %s1698_s24 }
  0x1c   : > { %298 = vrot.lane.b32.xlu0 %v1437_v9, %s1698_s24 }
  0x1f   : > { %508 = vrot.lane.b32.xlu1 %v1437_v9, %s1699_s25 }
  0x20   : > { %506 = vrot.lane.b32.xlu0 %v1758_v7, %s1699_s25 }
  0x23   : > { %512 = vrot.lane.b32.xlu1 %v1439_v8, %s1699_s25 }
  0x24   : > { %510 = vrot.lane.b32.xlu0 %v1438_v6, %s1699_s25 }
  0x27   : > { %618 = vrot.lane.b32.xlu1 %v1437_v9, %s1700_s26 }
  0x28   : > { %616 = vrot.lane.b32.xlu0 %v1758_v7, %s1700_s26 }
  0x2b   : > { %622 = vrot.lane.b32.xlu1 %v1439_v8, %s1700_s26 }
  0x2c   : > { %620 = vrot.lane.b32.xlu0 %v1438_v6, %s1700_s26 }
  0x2f   : > { %728 = vrot.lane.b32.xlu1 %v1437_v9, %s1701_s27 }
  0x30   : > { %726 = vrot.lane.b32.xlu0 %v1758_v7, %s1701_s27 }
  0x33   : > { %732 = vrot.lane.b32.xlu1 %v1439_v8, %s1701_s27 }
  0x34   : > { %730 = vrot.lane.b32.xlu0 %v1438_v6, %s1701_s27 }
  0x37   : > { %838 = vrot.lane.b32.xlu1 %v1437_v9, %s1702_s28 }
  0x38   : > { %836 = vrot.lane.b32.xlu0 %v1758_v7, %s1702_s28 }
  0x3b   : > { %842 = vrot.lane.b32.xlu1 %v1439_v8, %s1702_s28 }
  0x3c   : > { %840 = vrot.lane.b32.xlu0 %v1438_v6, %s1702_s28 }
  0x3f   : > { %948 = vrot.lane.b32.xlu1 %v1437_v9, %s1703_s29 }
  0x40   : > { %946 = vrot.lane.b32.xlu0 %v1758_v7, %s1703_s29 }
  0x43   : > { %952 = vrot.lane.b32.xlu1 %v1439_v8, %s1703_s29 }
  0x44   : > { %950 = vrot.lane.b32.xlu0 %v1438_v6, %s1703_s29 }
  0x47   : > { %1058 = vrot.lane.b32.xlu1 %v1437_v9, %s1704_s30 }
  0x48   : > { %1056 = vrot.lane.b32.xlu0 %v1758_v7, %s1704_s30 }
  0x4b   : > { %1062 = vrot.lane.b32.xlu1 %v1439_v8, %s1704_s30 }
  0x4c   : > { %1060 = vrot.lane.b32.xlu0 %v1438_v6, %s1704_s30 }
  0x4f   : > { %1168 = vrot.lane.b32.xlu1 %v1437_v9, %s1705_s4 }
  0x50   : > { %1166 = vrot.lane.b32.xlu0 %v1758_v7, %s1705_s4 }
  0x53   : > { %1172 = vrot.lane.b32.xlu1 %v1439_v8, %s1705_s4 }
  0x54   : > { %1170 = vrot.lane.b32.xlu0 %v1438_v6, %s1705_s4 }
  0x57   : > { %1284 = vperm.xlu1 %1662, %v1274_v10  }
  0x58   : > { %1277 = vperm.xlu0 %1661, %v1274_v10  }
  0x5c   : > { %1663 = vset.pattern.permute.xlu0 %v1706_v11 }
  0x89   : > { %v301_v12 = vpop.permute.xlu1 %300 }
  0x8a   : > { %v297_v13 = vpop.permute.xlu0 %296 }
  0x8d   : > { %v303_v14 = vpop.permute.xlu1 %302 }
  0x8e   : > { %v299_v15 = vpop.permute.xlu0 %298  ;;  %v307_v19 = vsel %vm304_vm1, %v301_v12, %v303_v14 }
  0x8f   : > { %v306_v17 = vsel %vm304_vm1, %v299_v15, %v301_v12  ;;  %v305_v18 = vsel %vm304_vm1, %v297_v13, %v299_v15  ;;  %v320_v21 = vsel %vm312_vm2, %v307_v19, 0  ;;  %v1461_v13 = vld [vmem:[%s1906_s1 + $0x14] sm:$0xf] }
  0x90   : > { %1440 = vmatprep.subr.msk.bf16.mxu0 %vm312_vm2, %v306_v17  ;;  %v314_v20 = vsel %vm312_vm2, %v305_v18, 0  ;;  %1507 = vmatpush3.bf16.msra.mxu1 %v320_v21 }
  0x91   : > { %323 = vmatpush1.bf16.msra.mxu0 %v314_v20  ;;  %1512 = vmatprep.subr.bf16.mxu1 %v1695_v2  ;;  %v509_v26 = vpop.permute.xlu1 %508 }
  0x92   : > { %1446 = vmatprep.subr.msk.bf16.mxu0 %vm312_vm2, %v1437_v9  ;;  %v507_v25 = vpop.permute.xlu0 %506 }
  0x93   : > { %1509 = vmatmul.mubr.msk.bf16.vlgmr.msra.gmra.mrb[0].mxu1 %vm308_vm3, %v1435_v22  ;;  %v515_v31 = vsel %vm514_vm4, %v507_v25, %v509_v26 }
  0x94   : > { %1441 = vmatmul.mubr.msk.bf16.vlgmr.msra.gmra.mrb[0].mxu0 %vm308_vm3, %v1435_v22  ;;  %1513 = vmatpush3.bf16.msra.mxu1 %v421_v24  ;;  %v522_v35 = vsel %vm312_vm2, %v515_v31, 0 }
  0x95   : > { %424 = vmatpush1.bf16.msra.mxu0 %v415_v23  ;;  %455 = vmatprep.mubr.bf16.mxu0 %v1696_v3  ;;  %v513_v29 = vpop.permute.xlu1 %512  ;;  %v1465_v23 = vld [vmem:[%s1906_s1 + $0x18] sm:$0xf] }
  0x96   : > { %v511_v27 = vpop.permute.xlu0 %510  ;;  %1514 = vmatprep.mubr.msk.bf16.mxu1 %vm1697_vm0, %v1695_v2  ;;  %1518 = vmatprep.subr.bf16.mxu1 %v1695_v2 }
  0x97   : > { %v516_v28 = vsel %vm514_vm4, %v509_v26, %v511_v27  ;;  %v517_v32 = vsel %vm514_vm4, %v511_v27, %v513_v29 }
  0x98   : > { %1450 = vmatprep.subr.msk.bf16.mxu0 %vm312_vm2, %v516_v28  ;;  %v528_v36 = vsel %vm312_vm2, %v517_v32, 0 }
  0x99   : > { %v619_v33 = vpop.permute.xlu1 %618 }
  0x9a   : > { %v617_v30 = vpop.permute.xlu0 %616 }
  0x9b   : > { %v625_v41 = vsel %vm624_vm5, %v617_v30, %v619_v33  ;;  %v1469_v30 = vld [vmem:[%s1906_s1 + $0x1c] sm:$0xf] }
  0x9c   : > { %v632_v46 = vsel %vm312_vm2, %v625_v41, 0 }
  0x9d   : > { %v623_v40 = vpop.permute.xlu1 %622 }
  0x9e   : > { %v621_v37 = vpop.permute.xlu0 %620 }
  0x9f   : > { %v626_v38 = vsel %vm624_vm5, %v619_v33, %v621_v37  ;;  %1515 = vmatmul.mubr.msk.bf16.vlgmr.msra.gmra.mrb[0].mxu1 %vm308_vm3, %v281_v34  ;;  %v627_v42 = vsel %vm624_vm5, %v621_v37, %v623_v40  ;;  %v1473_v33 = vld [vmem:[%s1906_s1 + $0x20] sm:$0xf] }
  0xa0   : > { %1447 = vmatmul.mubr.msk.bf16.vlgmr.msra.gmra.mrb[0].mxu0 %vm308_vm3, %v281_v34  ;;  %1519 = vmatpush3.bf16.msra.mxu1 %v528_v36  ;;  %v638_v47 = vsel %vm312_vm2, %v627_v42, 0 }
  0xa1   : > { %531 = vmatpush1.bf16.msra.mxu0 %v522_v35  ;;  %562 = vmatprep.mubr.bf16.mxu0 %v1696_v3  ;;  %v729_v43 = vpop.permute.xlu1 %728 }
  0xa2   : > { %1454 = vmatprep.subr.msk.bf16.mxu0 %vm312_vm2, %v626_v38  ;;  %v727_v39 = vpop.permute.xlu0 %726  ;;  %1520 = vmatprep.mubr.msk.bf16.mxu1 %vm1697_vm0, %v1695_v2 }
  0xa3   : > { %1524 = vmatprep.subr.bf16.mxu1 %v1695_v2  ;;  %v735_v51 = vsel %vm734_vm6, %v727_v39, %v729_v43 }
  0xa4   : > { %v742_v56 = vsel %vm312_vm2, %v735_v51, 0 }
  0xa5   : > { %v733_v50 = vpop.permute.xlu1 %732 }
  0xa6   : > { %v731_v44 = vpop.permute.xlu0 %730 }
  0xa7   : > { %v736_v48 = vsel %vm734_vm6, %v729_v43, %v731_v44  ;;  %v737_v52 = vsel %vm734_vm6, %v731_v44, %v733_v50 }
  0xa8   : > { %v748_v57 = vsel %vm312_vm2, %v737_v52, 0 }
  0xa9   : > { %v839_v53 = vpop.permute.xlu1 %838 }
  0xaa   : > { %v837_v49 = vpop.permute.xlu0 %836 }
  0xab   : > { %1521 = vmatmul.mubr.msk.bf16.vlgmr.msra.gmra.mrb[0].mxu1 %vm308_vm3, %v1449_v45  ;;  %v845_v61 = vsel %vm844_vm7, %v837_v49, %v839_v53 }
  0xac   : > { %1451 = vmatmul.mubr.msk.bf16.vlgmr.msra.gmra.mrb[0].mxu0 %vm308_vm3, %v1449_v45  ;;  %1525 = vmatpush3.bf16.msra.mxu1 %v638_v47  ;;  %v852_v4 = vsel %vm312_vm2, %v845_v61, 0 }
  0xad   : > { %641 = vmatpush1.bf16.msra.mxu0 %v632_v46  ;;  %672 = vmatprep.mubr.bf16.mxu0 %v1696_v3  ;;  %v843_v60 = vpop.permute.xlu1 %842 }
  0xae   : > { %1458 = vmatprep.subr.msk.bf16.mxu0 %vm312_vm2, %v736_v48  ;;  %1526 = vmatprep.mubr.msk.bf16.mxu1 %vm1697_vm0, %v1695_v2  ;;  %v841_v54 = vpop.permute.xlu0 %840 }
  0xaf   : > { %1530 = vmatprep.subr.bf16.mxu1 %v1695_v2  ;;  %v846_v58 = vsel %vm844_vm7, %v839_v53, %v841_v54  ;;  %v847_v62 = vsel %vm844_vm7, %v841_v54, %v843_v60 }
  0xb0   : > { %v858_v5 = vsel %vm312_vm2, %v847_v62, 0 }
  0xb1   : > { %v949_v63 = vpop.permute.xlu1 %948 }
  0xb2   : > { %v947_v59 = vpop.permute.xlu0 %946 }
  0xb3   : > { %v955_v9 = vsel %vm954_vm8, %v947_v59, %v949_v63 }
  0xb4   : > { %v962_v14 = vsel %vm312_vm2, %v955_v9, 0 }
  0xb5   : > { %v953_v8 = vpop.permute.xlu1 %952 }
  0xb6   : > { %v951_v0 = vpop.permute.xlu0 %950 }
  0xb7   : > { %1527 = vmatmul.mubr.msk.bf16.vlgmr.msra.gmra.mrb[0].mxu1 %vm308_vm3, %v1453_v55  ;;  %v956_v6 = vsel %vm954_vm8, %v949_v63, %v951_v0  ;;  %v957_v10 = vsel %vm954_vm8, %v951_v0, %v953_v8 }
  0xb8   : > { %1455 = vmatmul.mubr.msk.bf16.vlgmr.msra.gmra.mrb[0].mxu0 %vm308_vm3, %v1453_v55  ;;  %1531 = vmatpush3.bf16.msra.mxu1 %v748_v57  ;;  %v968_v15 = vsel %vm312_vm2, %v957_v10, 0 }
  0xb9   : > { %751 = vmatpush1.bf16.msra.mxu0 %v742_v56  ;;  %782 = vmatprep.mubr.bf16.mxu0 %v1696_v3  ;;  %v1059_v11 = vpop.permute.xlu1 %1058 }
  0xba   : > { %1462 = vmatprep.subr.msk.bf16.mxu0 %vm312_vm2, %v846_v58  ;;  %1532 = vmatprep.mubr.msk.bf16.mxu1 %vm1697_vm0, %v1695_v2  ;;  %v1057_v7 = vpop.permute.xlu0 %1056 }
  0xbb   : > { %1536 = vmatprep.subr.bf16.mxu1 %v1695_v2  ;;  %v1065_v19 = vsel %vm1064_vm9, %v1057_v7, %v1059_v11 }
  0xbc   : > { %v1072_v24 = vsel %vm312_vm2, %v1065_v19, 0 }
  0xbd   : > { %v1063_v18 = vpop.permute.xlu1 %1062 }
  0xbe   : > { %v1061_v12 = vpop.permute.xlu0 %1060 }
  0xbf   : > { %v1066_v16 = vsel %vm1064_vm9, %v1059_v11, %v1061_v12  ;;  %v1067_v20 = vsel %vm1064_vm9, %v1061_v12, %v1063_v18 }
  0xc0   : > { %v1078_v25 = vsel %vm312_vm2, %v1067_v20, 0 }
  0xc1   : > { %v1169_v21 = vpop.permute.xlu1 %1168 }
  0xc2   : > { %v1167_v17 = vpop.permute.xlu0 %1166 }
  0xc3   : > { %1533 = vmatmul.mubr.msk.bf16.vlgmr.msra.gmra.mrb[0].mxu1 %vm308_vm3, %v1457_v1  ;;  %v1175_v28 = vsel %vm1174_vm10, %v1167_v17, %v1169_v21 }
  0xc4   : > { %1459 = vmatmul.mubr.msk.bf16.vlgmr.msra.gmra.mrb[0].mxu0 %vm308_vm3, %v1457_v1  ;;  %1537 = vmatpush3.bf16.msra.mxu1 %v858_v5  ;;  %v1182_v31 = vsel %vm312_vm2, %v1175_v28, 0 }
  0xc5   : > { %861 = vmatpush1.bf16.msra.mxu0 %v852_v4  ;;  %892 = vmatprep.mubr.bf16.mxu0 %v1696_v3  ;;  %v1173_v27 = vpop.permute.xlu1 %1172 }
  0xc6   : > { %1466 = vmatprep.subr.msk.bf16.mxu0 %vm312_vm2, %v956_v6  ;;  %1538 = vmatprep.mubr.msk.bf16.mxu1 %vm1697_vm0, %v1695_v2  ;;  %v1171_v22 = vpop.permute.xlu0 %1170 }
  0xc7   : > { %1542 = vmatprep.subr.bf16.mxu1 %v1695_v2  ;;  %v1176_v26 = vsel %vm1174_vm10, %v1169_v21, %v1171_v22  ;;  %v1177_v29 = vsel %vm1174_vm10, %v1171_v22, %v1173_v27 }
  0xc8   : > { %v1188_v32 = vsel %vm312_vm2, %v1177_v29, 0 }
  0xcf   : > { %1539 = vmatmul.mubr.msk.bf16.vlgmr.msra.gmra.mrb[0].mxu1 %vm308_vm3, %v1461_v13 }
  0xd0   : > { %1463 = vmatmul.mubr.msk.bf16.vlgmr.msra.gmra.mrb[0].mxu0 %vm308_vm3, %v1461_v13  ;;  %1543 = vmatpush3.bf16.msra.mxu1 %v968_v15 }
  0xd1   : > { %971 = vmatpush1.bf16.msra.mxu0 %v962_v14  ;;  %1002 = vmatprep.mubr.bf16.mxu0 %v1696_v3 }
  0xd2   : > { %1470 = vmatprep.subr.msk.bf16.mxu0 %vm312_vm2, %v1066_v16  ;;  %1544 = vmatprep.mubr.msk.bf16.mxu1 %vm1697_vm0, %v1695_v2 }
  0xd3   : > { %1548 = vmatprep.subr.bf16.mxu1 %v1695_v2 }
  0xd6   : > { %v1285_v35 = vpop.permute.xlu1 %1284 }
  0xd7   : > { %v1278_v34 = vpop.permute.xlu0 %1277 }
  0xdb   : > { %1545 = vmatmul.mubr.msk.bf16.vlgmr.msra.gmra.mrb[0].mxu1 %vm308_vm3, %v1465_v23 }
  0xdc   : > { %1467 = vmatmul.mubr.msk.bf16.vlgmr.msra.gmra.mrb[0].mxu0 %vm308_vm3, %v1465_v23  ;;  %1549 = vmatpush3.bf16.msra.mxu1 %v1078_v25 }
  0xdd   : > { %1081 = vmatpush1.bf16.msra.mxu0 %v1072_v24  ;;  %1112 = vmatprep.mubr.bf16.mxu0 %v1696_v3 }
  0xde   : > { %1474 = vmatprep.subr.msk.bf16.mxu0 %vm312_vm2, %v1176_v26  ;;  %1550 = vmatprep.mubr.msk.bf16.mxu1 %vm1697_vm0, %v1695_v2 }
  0xdf   : > { %1554 = vmatprep.subr.bf16.mxu1 %v1695_v2 }
  0xe7   : > { %1551 = vmatmul.mubr.msk.bf16.vlgmr.msra.gmra.mrb[0].mxu1 %vm308_vm3, %v1469_v30 }
  0xe8   : > { %1471 = vmatmul.mubr.msk.bf16.vlgmr.msra.gmra.mrb[0].mxu0 %vm308_vm3, %v1469_v30  ;;  %1555 = vmatpush3.bf16.msra.mxu1 %v1188_v32 }
  0xe9   : > { %1191 = vmatpush1.bf16.msra.mxu0 %v1182_v31  ;;  %1222 = vmatprep.mubr.bf16.mxu0 %v1696_v3 }
  0xea   : > { %1556 = vmatprep.mubr.msk.bf16.mxu1 %vm1697_vm0, %v1695_v2 }
  0xf3   : > { %1557 = vmatmul.mubr.msk.bf16.vlgmr.msra.gmra.mrb[0].mxu1 %vm308_vm3, %v1473_v33 }
  0xf4   : > { %1475 = vmatmul.mubr.msk.bf16.vlgmr.msra.gmra.mrb[0].mxu0 %vm308_vm3, %v1473_v33 }
 0x1c6   : > { %v1265_v37 = vpop.f32.mrb[0].mxu1 }
 0x1c7   : > { %v1224_v36 = vpop.f32.mrb[0].mxu0  ;;  %v1282_v39 = vmul.f32 %v1278_v34, %v1265_v37  ;;  %v1558_v3 = vpop.f32.mrb[1].mxu1 }
 0x1c8   : > { %v1280_v38 = vmul.f32 %v1278_v34, %v1224_v36  ;;  %v1226_v40 = vpop.f32.mrb[1].mxu0  ;;  %v1268_v42 = vpop.f32.mrb[2].mxu1 }
 0x1c9   : > { %v1281_v41 = vmul.f32 %v1278_v34, %v1226_v40  ;;  %v1228_v2 = vpop.f32.mrb[2].mxu0  ;;  %v1289_v44 = vadd.f32 %v1285_v35, %v1282_v39  ;;  %v1559_v46 = vpop.f32.mrb[3].mxu1 }
 0x1ca   : > { %v1287_v43 = vadd.f32 %v1285_v35, %v1280_v38  ;;  %v1229_v45 = vpop.f32.mrb[3].mxu0 }
 0x1cb   : > { %v1288_v47 = vadd.f32 %v1285_v35, %v1281_v41  ;;  %v1292_v49 = vmax.f32 %v1289_v44, 0.0 }
 0x1cc   : > { %v1290_v48 = vmax.f32 %v1287_v43, 0.0 }
 0x1cd   : > { %v1291_v50 = vmax.f32 %v1288_v47, 0.0  ;;  %v1487_v51 = vpack.c.bf16 %v1292_v49, %v1292_v49 }
 0x1cf   : > { %v1486_v52 = vpack.c.bf16 %v1291_v50, %v1290_v48  ;;  %1307 = vst [vmem:[%s1751_s23 + $0x8] sm:$0xf] %v1487_v51 }
 0x1d1   : > { %1306 = vst [vmem:[%s1751_s23] sm:$0xff] %v1486_v52 }
 0x1d2 PF: > { %s13_s14 = sadd.s32 1, %s1693_s14   ;;  %s1909_s12 = smov %s1689_s13 }
 0x1d3   : > { %p10_p5 = scmp.ge.s32.totalorder %s13_s14, 4   ;;  %s1910_s13 = smov %s1912_s15 }
 0x1d5   :  { %12 = sbr.rel (!%p10_p5) target bundleno = 2 (0x2), region = 164 }
 0x1dc   :  { %1338 = vsyncmov [#allocation3] }
 0x1df   :  { %s1339_s29 = vpop.sfrf %1338 }
 0x1e0   :  { %p1481_p6 = scmp.ne.s32.totalorder %s1339_s29, 0 }
 0x1e2   :  { %1343 = shalt.err (%p1481_p6)  }
 0x1e3   :  { %1345 = vsyncmov [#allocation3 + $0x1] }
 0x1e6   :  { %s1346_s30 = vpop.sfrf %1345 }
 0x1e7   :  { %p1482_p7 = scmp.ne.s32.totalorder %s1346_s30, 0 }
 0x1e9   :  { %1350 = shalt.err (%p1482_p7)  }

// kernel: feature_aggregation_forward.27
= control target key start
LH: loop header
LB: loop body
LE: loop exit
PB: predicated region body
PF: predicated region fallthrough
CT: control target
= control target key end

     0   :  { %s1708_s12 = smov 0   ;;  %s1710_s13 = smov 0   ;;  %s1878_s0 = inlined_call_operand.vmem [shape: bf16[2,8,512], index: 0, kind: input, shape index: {}]   ;;  %s1879_s1 = inlined_call_operand.vmem [shape: bf16[9,8,8], index: 1, kind: input, shape index: {}]   ;;  %s1880_s2 = inlined_call_operand.vmem [shape: f32[8,4], index: 2, kind: input, shape index: {}]   ;;  %s1881_s3 = inlined_call_operand.vmem [shape: bf16[2,8,384], index: 3, kind: output, shape index: {}]  }
   0x1   :  { %s1712_s14 = smov 0  }
   0x2 LB: > { %s25_s15 = sadd.s32 1, %s1668_s13  ;;  %p1451_p0 = scmp.ge.s32.totalorder %s1672_s14, 1  ;;  %s1672_s14 = sphi %s1712_s14, %s13_s14   ;;  %s1668_s13 = sphi %s1710_s13, %s1883_s13   ;;  %s1664_s12 = sphi %s1708_s12, %s1882_s12  }
   0x3   : > { %p27_p1 = scmp.ge.s32.totalorder %s25_s15, 2  ;;  %p117_p2 = scmp.lt.s32.totalorder %s1672_s14, 3 }
   0x5   : > { %s1885_s15 = smov (%p27_p1, %s25_s15), 0  ;;  %p118_p3 = pnand %p1451_p0, %p117_p2 }
   0x6   : > { %p139_p4 = scmp.lt.s32.totalorder (!%p118_p3), %s1664_s12, 1  ;;  %s1511_s16 = sshll.u32 (!%p118_p3), %s1664_s12, 4 }
   0x7   : > { %121 = sbr.rel (%p118_p3) target bundleno = 467 (0x1d3), region = 28  ;;  %s160_s19 = scalar_lea.vmem (!%p118_p3), %s1878_s0, %s1511_s16 }
   0x8   : > { %v197_v0 = vld [vmem:[%s160_s19] sm:$0xff] (!%p118_p3)  ;;  %v199_v1 = vld [vmem:[%s160_s19 + $0x8] sm:$0xff] (!%p118_p3) }
   0x9   : > { %198 = vst [vmem:[#allocation2] sm:$0xff] (!%p118_p3), %v197_v0  ;;  %200 = vst [vmem:[#allocation2 + $0x8] sm:$0xff] (!%p118_p3), %v199_v1 }
   0xe   : > { %s1887_s12 = smov (!%p139_p4, %s1664_s12), 1 }
   0xf   : > { %s1588_s20 = smul.u32 12, %s1887_s12 }
  0x11   : > { %s1732_s23 = scalar_lea.vmem %s1881_s3, %s1588_s20 }
  0x12   : > { %208 = vsyncadd [#allocation3], 256 }
  0x13   : > { %1660 = dma.done.wait [#allocation3], 256 }
  0x14   : > { %1661 = vsyncadd [#allocation3], 4294967040  ;;  %v1674_v2 = vmov 0.0   ;;  %v1675_v3 = vmov 0   ;;  %vm1676_vm0 = vmmov 0   ;;  %v283_v4 = vld [vmem:[#allocation2 + $0x8] sm:$0xff] }
  0x15   : > { %1534 = vmatprep.subr.bf16.mxu1 %v1674_v2  ;;  %354 = vmatprep.mubr.bf16.mxu0 %v1675_v3  ;;  %v282_v5 = vld [vmem:[#allocation2] sm:$0xff]  ;;  %v1463_v6 = vcombine.low %v283_v4, %v283_v4  ;;  %s1677_s24 = smov 127   ;;  %v1464_v8 = vcombine.high %v283_v4, %v283_v4  ;;  %s1678_s25 = smov 126   ;;  %v1685_v10 = vmov 1   ;;  %v1686_v12 = vmov 2  }
  0x16   : > { %1536 = vmatprep.mubr.msk.bf16.mxu1 %vm1676_vm0, %v1674_v2  ;;  %v1738_v7 = vcombine.low %v282_v5, %v282_v5  ;;  %v1741_v9 = vcombine.high %v282_v5, %v282_v5  ;;  %s1679_s26 = smov 110   ;;  %s1680_s27 = smov 109   ;;  %1627 = vset.pattern.permute.xlu0 %v1685_v10  ;;  %v1274_v11 = vld [vmem:[%s1880_s2] sm:$0xff]  ;;  %v1687_v13 = vmov 3   ;;  %vm304_vm1 = vcmask 1039360  }
  0x17   : > { %300 = vrot.lane.b32.xlu1 %v1463_v6, %s1677_s24  ;;  %s1681_s28 = smov 108   ;;  %s1682_s29 = smov 92   ;;  %vm312_vm2 = vcmask 1043456   ;;  %v1635_v18 = vld [vmem:[#allocation2 + $0x8] ss:$0 sps:$4 sm:$0xff]   ;;  %vm308_vm3 = vcmask 64512  }
  0x18   : > { %296 = vrot.lane.b32.xlu0 %v1738_v7, %s1677_s24  ;;  %s1683_s30 = smov 91   ;;  %s1684_s4 = smov 90   ;;  %1628 = vset.pattern.permute.xlu1 %v1686_v12  ;;  %v1460_v24 = vld [vmem:[%s1879_s1 + $0x4] sm:$0xf]  ;;  %v415_v26 = vsel %vm312_vm2, %v1738_v7, 0  ;;  %v421_v28 = vsel %vm312_vm2, %v1635_v18, 0 }
  0x19   : > { %vm514_vm4 = vcmask 1031168   ;;  %v281_v34 = vld [vmem:[%s1879_s1] sm:$0xf]  ;;  %vm624_vm5 = vcmask 900096   ;;  %v1474_v44 = vld [vmem:[%s1879_s1 + $0x8] sm:$0xf] }
  0x1a   : > { %vm734_vm6 = vcmask 891904   ;;  %v1478_v54 = vld [vmem:[%s1879_s1 + $0xc] sm:$0xf]  ;;  %vm844_vm7 = vcmask 883712   ;;  %v1482_v0 = vld [vmem:[%s1879_s1 + $0x10] sm:$0xf] }
  0x1b   : > { %302 = vrot.lane.b32.xlu1 %v1464_v8, %s1677_s24  ;;  %vm954_vm8 = vcmask 752640   ;;  %v1486_v12 = vld [vmem:[%s1879_s1 + $0x14] sm:$0xf]  ;;  %vm1064_vm9 = vcmask 744448   ;;  %vm1174_vm10 = vcmask 736256  }
  0x1c   : > { %298 = vrot.lane.b32.xlu0 %v1741_v9, %s1677_s24 }
  0x1f   : > { %508 = vrot.lane.b32.xlu1 %v1741_v9, %s1678_s25 }
  0x20   : > { %506 = vrot.lane.b32.xlu0 %v1738_v7, %s1678_s25 }
  0x23   : > { %512 = vrot.lane.b32.xlu1 %v1464_v8, %s1678_s25 }
  0x24   : > { %510 = vrot.lane.b32.xlu0 %v1463_v6, %s1678_s25 }
  0x27   : > { %618 = vrot.lane.b32.xlu1 %v1741_v9, %s1679_s26 }
  0x28   : > { %616 = vrot.lane.b32.xlu0 %v1738_v7, %s1679_s26 }
  0x2b   : > { %622 = vrot.lane.b32.xlu1 %v1464_v8, %s1679_s26 }
  0x2c   : > { %620 = vrot.lane.b32.xlu0 %v1463_v6, %s1679_s26 }
  0x2f   : > { %728 = vrot.lane.b32.xlu1 %v1741_v9, %s1680_s27 }
  0x30   : > { %726 = vrot.lane.b32.xlu0 %v1738_v7, %s1680_s27 }
  0x33   : > { %732 = vrot.lane.b32.xlu1 %v1464_v8, %s1680_s27 }
  0x34   : > { %730 = vrot.lane.b32.xlu0 %v1463_v6, %s1680_s27 }
  0x37   : > { %838 = vrot.lane.b32.xlu1 %v1741_v9, %s1681_s28 }
  0x38   : > { %836 = vrot.lane.b32.xlu0 %v1738_v7, %s1681_s28 }
  0x3b   : > { %842 = vrot.lane.b32.xlu1 %v1464_v8, %s1681_s28 }
  0x3c   : > { %840 = vrot.lane.b32.xlu0 %v1463_v6, %s1681_s28 }
  0x3f   : > { %948 = vrot.lane.b32.xlu1 %v1741_v9, %s1682_s29 }
  0x40   : > { %946 = vrot.lane.b32.xlu0 %v1738_v7, %s1682_s29 }
  0x43   : > { %952 = vrot.lane.b32.xlu1 %v1464_v8, %s1682_s29 }
  0x44   : > { %950 = vrot.lane.b32.xlu0 %v1463_v6, %s1682_s29 }
  0x47   : > { %1058 = vrot.lane.b32.xlu1 %v1741_v9, %s1683_s30 }
  0x48   : > { %1056 = vrot.lane.b32.xlu0 %v1738_v7, %s1683_s30 }
  0x4b   : > { %1062 = vrot.lane.b32.xlu1 %v1464_v8, %s1683_s30 }
  0x4c   : > { %1060 = vrot.lane.b32.xlu0 %v1463_v6, %s1683_s30 }
  0x4f   : > { %1168 = vrot.lane.b32.xlu1 %v1741_v9, %s1684_s4 }
  0x50   : > { %1166 = vrot.lane.b32.xlu0 %v1738_v7, %s1684_s4 }
  0x53   : > { %1172 = vrot.lane.b32.xlu1 %v1464_v8, %s1684_s4 }
  0x54   : > { %1170 = vrot.lane.b32.xlu0 %v1463_v6, %s1684_s4 }
  0x57   : > { %1305 = vperm.xlu1 %1628, %v1274_v11  }
  0x58   : > { %1277 = vperm.xlu0 %1627, %v1274_v11  }
  0x5b   : > { %1629 = vset.pattern.permute.xlu1 %v1687_v13 }
  0x5c   : > { %1630 = vset.pattern.permute.xlu0 %v1687_v13  ;;  %1312 = vperm.xlu1 %1629, %v1274_v11  }
  0x89   : > { %v301_v14 = vpop.permute.xlu1 %300 }
  0x8a   : > { %v297_v15 = vpop.permute.xlu0 %296 }
  0x8d   : > { %v303_v16 = vpop.permute.xlu1 %302 }
  0x8e   : > { %v299_v17 = vpop.permute.xlu0 %298  ;;  %v307_v21 = vsel %vm304_vm1, %v301_v14, %v303_v16 }
  0x8f   : > { %v306_v19 = vsel %vm304_vm1, %v299_v17, %v301_v14  ;;  %v305_v20 = vsel %vm304_vm1, %v297_v15, %v299_v17  ;;  %v320_v23 = vsel %vm312_vm2, %v307_v21, 0 }
  0x90   : > { %1465 = vmatprep.subr.msk.bf16.mxu0 %vm312_vm2, %v306_v19  ;;  %v314_v22 = vsel %vm312_vm2, %v305_v20, 0  ;;  %1535 = vmatpush3.bf16.msra.mxu1 %v320_v23 }
  0x91   : > { %323 = vmatpush1.bf16.msra.mxu0 %v314_v22  ;;  %1540 = vmatprep.subr.bf16.mxu1 %v1674_v2  ;;  %v509_v27 = vpop.permute.xlu1 %508  ;;  %v1490_v22 = vld [vmem:[%s1879_s1 + $0x18] sm:$0xf] }
  0x92   : > { %v507_v25 = vpop.permute.xlu0 %506  ;;  %1471 = vmatprep.subr.msk.bf16.mxu0 %vm312_vm2, %v1741_v9 }
  0x93   : > { %1537 = vmatmul.mubr.msk.bf16.vlgmr.msra.gmra.mrb[0].mxu1 %vm308_vm3, %v1460_v24  ;;  %v515_v31 = vsel %vm514_vm4, %v507_v25, %v509_v27 }
  0x94   : > { %1466 = vmatmul.mubr.msk.bf16.vlgmr.msra.gmra.mrb[0].mxu0 %vm308_vm3, %v1460_v24  ;;  %1541 = vmatpush3.bf16.msra.mxu1 %v421_v28  ;;  %v522_v35 = vsel %vm312_vm2, %v515_v31, 0 }
  0x95   : > { %424 = vmatpush1.bf16.msra.mxu0 %v415_v26  ;;  %v513_v30 = vpop.permute.xlu1 %512  ;;  %455 = vmatprep.mubr.bf16.mxu0 %v1675_v3 }
  0x96   : > { %v511_v29 = vpop.permute.xlu0 %510  ;;  %1542 = vmatprep.mubr.msk.bf16.mxu1 %vm1676_vm0, %v1674_v2  ;;  %1546 = vmatprep.subr.bf16.mxu1 %v1674_v2 }
  0x97   : > { %v516_v32 = vsel %vm514_vm4, %v509_v27, %v511_v29  ;;  %v517_v33 = vsel %vm514_vm4, %v511_v29, %v513_v30 }
  0x98   : > { %1475 = vmatprep.subr.msk.bf16.mxu0 %vm312_vm2, %v516_v32  ;;  %v528_v36 = vsel %vm312_vm2, %v517_v33, 0  ;;  %v1494_v32 = vld [vmem:[%s1879_s1 + $0x1c] sm:$0xf] }
  0x99   : > { %v619_v38 = vpop.permute.xlu1 %618 }
  0x9a   : > { %v617_v37 = vpop.permute.xlu0 %616 }
  0x9b   : > { %1543 = vmatmul.mubr.msk.bf16.vlgmr.msra.gmra.mrb[4].mxu1 %vm308_vm3, %v281_v34  ;;  %v625_v41 = vsel %vm624_vm5, %v617_v37, %v619_v38 }
  0x9c   : > { %1472 = vmatmul.mubr.msk.bf16.vlgmr.msra.gmra.mrb[4].mxu0 %vm308_vm3, %v281_v34  ;;  %1547 = vmatpush3.bf16.msra.mxu1 %v528_v36  ;;  %v632_v45 = vsel %vm312_vm2, %v625_v41, 0 }
  0x9d   : > { %531 = vmatpush1.bf16.msra.mxu0 %v522_v35  ;;  %v623_v40 = vpop.permute.xlu1 %622  ;;  %562 = vmatprep.mubr.bf16.mxu0 %v1675_v3  ;;  %v1498_v35 = vld [vmem:[%s1879_s1 + $0x20] sm:$0xf] }
  0x9e   : > { %v621_v39 = vpop.permute.xlu0 %620  ;;  %1548 = vmatprep.mubr.msk.bf16.mxu1 %vm1676_vm0, %v1674_v2  ;;  %1552 = vmatprep.subr.bf16.mxu1 %v1674_v2 }
  0x9f   : > { %v626_v42 = vsel %vm624_vm5, %v619_v38, %v621_v39  ;;  %v627_v43 = vsel %vm624_vm5, %v621_v39, %v623_v40 }
  0xa0   : > { %1479 = vmatprep.subr.msk.bf16.mxu0 %vm312_vm2, %v626_v42  ;;  %v638_v46 = vsel %vm312_vm2, %v627_v43, 0 }
  0xa1   : > { %v729_v48 = vpop.permute.xlu1 %728 }
  0xa2   : > { %v727_v47 = vpop.permute.xlu0 %726 }
  0xa3   : > { %1549 = vmatmul.mubr.msk.bf16.vlgmr.msra.gmra.mrb[8].mxu1 %vm308_vm3, %v1474_v44  ;;  %v735_v51 = vsel %vm734_vm6, %v727_v47, %v729_v48 }
  0xa4   : > { %1476 = vmatmul.mubr.msk.bf16.vlgmr.msra.gmra.mrb[8].mxu0 %vm308_vm3, %v1474_v44  ;;  %1553 = vmatpush3.bf16.msra.mxu1 %v638_v46  ;;  %v742_v55 = vsel %vm312_vm2, %v735_v51, 0 }
  0xa5   : > { %641 = vmatpush1.bf16.msra.mxu0 %v632_v45  ;;  %v733_v50 = vpop.permute.xlu1 %732  ;;  %672 = vmatprep.mubr.bf16.mxu0 %v1675_v3 }
  0xa6   : > { %v731_v49 = vpop.permute.xlu0 %730  ;;  %1554 = vmatprep.mubr.msk.bf16.mxu1 %vm1676_vm0, %v1674_v2  ;;  %1558 = vmatprep.subr.bf16.mxu1 %v1674_v2 }
  0xa7   : > { %v736_v52 = vsel %vm734_vm6, %v729_v48, %v731_v49  ;;  %v737_v53 = vsel %vm734_vm6, %v731_v49, %v733_v50 }
  0xa8   : > { %1483 = vmatprep.subr.msk.bf16.mxu0 %vm312_vm2, %v736_v52  ;;  %v748_v56 = vsel %vm312_vm2, %v737_v53, 0 }
  0xa9   : > { %v839_v58 = vpop.permute.xlu1 %838 }
  0xaa   : > { %v837_v57 = vpop.permute.xlu0 %836 }
  0xab   : > { %1555 = vmatmul.mubr.msk.bf16.vlgmr.msra.gmra.mrb[12].mxu1 %vm308_vm3, %v1478_v54  ;;  %v845_v61 = vsel %vm844_vm7, %v837_v57, %v839_v58 }
  0xac   : > { %1480 = vmatmul.mubr.msk.bf16.vlgmr.msra.gmra.mrb[12].mxu0 %vm308_vm3, %v1478_v54  ;;  %1559 = vmatpush3.bf16.msra.mxu1 %v748_v56  ;;  %v852_v1 = vsel %vm312_vm2, %v845_v61, 0 }
  0xad   : > { %751 = vmatpush1.bf16.msra.mxu0 %v742_v55  ;;  %v843_v60 = vpop.permute.xlu1 %842  ;;  %782 = vmatprep.mubr.bf16.mxu0 %v1675_v3 }
  0xae   : > { %v841_v59 = vpop.permute.xlu0 %840  ;;  %1560 = vmatprep.mubr.msk.bf16.mxu1 %vm1676_vm0, %v1674_v2  ;;  %1564 = vmatprep.subr.bf16.mxu1 %v1674_v2 }
  0xaf   : > { %v846_v62 = vsel %vm844_vm7, %v839_v58, %v841_v59  ;;  %v847_v63 = vsel %vm844_vm7, %v841_v59, %v843_v60 }
  0xb0   : > { %1487 = vmatprep.subr.msk.bf16.mxu0 %vm312_vm2, %v846_v62  ;;  %v858_v4 = vsel %vm312_vm2, %v847_v63, 0 }
  0xb1   : > { %v949_v6 = vpop.permute.xlu1 %948 }
  0xb2   : > { %v947_v5 = vpop.permute.xlu0 %946 }
  0xb3   : > { %1561 = vmatmul.mubr.msk.bf16.vlgmr.msra.gmra.mrb[16].mxu1 %vm308_vm3, %v1482_v0  ;;  %v955_v9 = vsel %vm954_vm8, %v947_v5, %v949_v6 }
  0xb4   : > { %1484 = vmatmul.mubr.msk.bf16.vlgmr.msra.gmra.mrb[16].mxu0 %vm308_vm3, %v1482_v0  ;;  %1565 = vmatpush3.bf16.msra.mxu1 %v858_v4  ;;  %v962_v13 = vsel %vm312_vm2, %v955_v9, 0 }
  0xb5   : > { %861 = vmatpush1.bf16.msra.mxu0 %v852_v1  ;;  %v953_v8 = vpop.permute.xlu1 %952  ;;  %892 = vmatprep.mubr.bf16.mxu0 %v1675_v3 }
  0xb6   : > { %v951_v7 = vpop.permute.xlu0 %950  ;;  %1566 = vmatprep.mubr.msk.bf16.mxu1 %vm1676_vm0, %v1674_v2  ;;  %1570 = vmatprep.subr.bf16.mxu1 %v1674_v2 }
  0xb7   : > { %v956_v10 = vsel %vm954_vm8, %v949_v6, %v951_v7  ;;  %v957_v11 = vsel %vm954_vm8, %v951_v7, %v953_v8 }
  0xb8   : > { %1491 = vmatprep.subr.msk.bf16.mxu0 %vm312_vm2, %v956_v10  ;;  %v968_v14 = vsel %vm312_vm2, %v957_v11, 0 }
  0xb9   : > { %v1059_v16 = vpop.permute.xlu1 %1058 }
  0xba   : > { %v1057_v15 = vpop.permute.xlu0 %1056 }
  0xbb   : > { %1567 = vmatmul.mubr.msk.bf16.vlgmr.msra.gmra.mrb[20].mxu1 %vm308_vm3, %v1486_v12  ;;  %v1065_v19 = vsel %vm1064_vm9, %v1057_v15, %v1059_v16 }
  0xbc   : > { %1488 = vmatmul.mubr.msk.bf16.vlgmr.msra.gmra.mrb[20].mxu0 %vm308_vm3, %v1486_v12  ;;  %1571 = vmatpush3.bf16.msra.mxu1 %v968_v14  ;;  %v1072_v23 = vsel %vm312_vm2, %v1065_v19, 0 }
  0xbd   : > { %971 = vmatpush1.bf16.msra.mxu0 %v962_v13  ;;  %v1063_v18 = vpop.permute.xlu1 %1062  ;;  %1002 = vmatprep.mubr.bf16.mxu0 %v1675_v3 }
  0xbe   : > { %v1061_v17 = vpop.permute.xlu0 %1060  ;;  %1572 = vmatprep.mubr.msk.bf16.mxu1 %vm1676_vm0, %v1674_v2  ;;  %1576 = vmatprep.subr.bf16.mxu1 %v1674_v2 }
  0xbf   : > { %v1066_v20 = vsel %vm1064_vm9, %v1059_v16, %v1061_v17  ;;  %v1067_v21 = vsel %vm1064_vm9, %v1061_v17, %v1063_v18 }
  0xc0   : > { %1495 = vmatprep.subr.msk.bf16.mxu0 %vm312_vm2, %v1066_v20  ;;  %v1078_v24 = vsel %vm312_vm2, %v1067_v21, 0 }
  0xc1   : > { %v1169_v26 = vpop.permute.xlu1 %1168 }
  0xc2   : > { %v1167_v25 = vpop.permute.xlu0 %1166 }
  0xc3   : > { %1573 = vmatmul.mubr.msk.bf16.vlgmr.msra.gmra.mrb[24].mxu1 %vm308_vm3, %v1490_v22  ;;  %v1175_v29 = vsel %vm1174_vm10, %v1167_v25, %v1169_v26 }
  0xc4   : > { %1492 = vmatmul.mubr.msk.bf16.vlgmr.msra.gmra.mrb[24].mxu0 %vm308_vm3, %v1490_v22  ;;  %1577 = vmatpush3.bf16.msra.mxu1 %v1078_v24  ;;  %v1182_v33 = vsel %vm312_vm2, %v1175_v29, 0 }
  0xc5   : > { %1081 = vmatpush1.bf16.msra.mxu0 %v1072_v23  ;;  %v1173_v28 = vpop.permute.xlu1 %1172  ;;  %1112 = vmatprep.mubr.bf16.mxu0 %v1675_v3 }
  0xc6   : > { %v1171_v27 = vpop.permute.xlu0 %1170  ;;  %1578 = vmatprep.mubr.msk.bf16.mxu1 %vm1676_vm0, %v1674_v2  ;;  %1582 = vmatprep.subr.bf16.mxu1 %v1674_v2 }
  0xc7   : > { %v1176_v30 = vsel %vm1174_vm10, %v1169_v26, %v1171_v27  ;;  %v1177_v31 = vsel %vm1174_vm10, %v1171_v27, %v1173_v28 }
  0xc8   : > { %1499 = vmatprep.subr.msk.bf16.mxu0 %vm312_vm2, %v1176_v30  ;;  %v1188_v34 = vsel %vm312_vm2, %v1177_v31, 0 }
  0xcb   : > { %1579 = vmatmul.mubr.msk.bf16.vlgmr.msra.gmra.mrb[28].mxu1 %vm308_vm3, %v1494_v32 }
  0xcc   : > { %1496 = vmatmul.mubr.msk.bf16.vlgmr.msra.gmra.mrb[28].mxu0 %vm308_vm3, %v1494_v32  ;;  %1583 = vmatpush3.bf16.msra.mxu1 %v1188_v34 }
  0xcd   : > { %1191 = vmatpush1.bf16.msra.mxu0 %v1182_v33  ;;  %1222 = vmatprep.mubr.bf16.mxu0 %v1675_v3 }
  0xce   : > { %1584 = vmatprep.mubr.msk.bf16.mxu1 %vm1676_vm0, %v1674_v2 }
  0xd3   : > { %1585 = vmatmul.mubr.msk.bf16.vlgmr.msra.gmra.mrb[32].mxu1 %vm308_vm3, %v1498_v35 }
  0xd4   : > { %1500 = vmatmul.mubr.msk.bf16.vlgmr.msra.gmra.mrb[32].mxu0 %vm308_vm3, %v1498_v35 }
 0x166   : > { %v397_v37 = vpop.f32.mrb[0].mxu1 }
 0x167   : > { %v356_v36 = vpop.f32.mrb[0].mxu0  ;;  %v1538_v39 = vpop.f32.mrb[1].mxu1 }
 0x168   : > { %v358_v38 = vpop.f32.mrb[1].mxu0  ;;  %v400_v41 = vpop.f32.mrb[2].mxu1 }
 0x169   : > { %v360_v40 = vpop.f32.mrb[2].mxu0  ;;  %v1539_v43 = vpop.f32.mrb[3].mxu1 }
 0x16a   : > { %v361_v42 = vpop.f32.mrb[3].mxu0 }
 0x16e   : > { %v498_v44 = vpop.f32.mrb[4].mxu1 }
 0x16f   : > { %v457_v3 = vpop.f32.mrb[4].mxu0  ;;  %v499_v2 = vadd.f32 %v498_v44, %v397_v37  ;;  %v1544_v47 = vpop.f32.mrb[5].mxu1 }
 0x170   : > { %v458_v45 = vadd.f32 %v457_v3, %v356_v36  ;;  %v459_v46 = vpop.f32.mrb[5].mxu0  ;;  %v501_v50 = vpop.f32.mrb[6].mxu1 }
 0x171   : > { %v460_v48 = vadd.f32 %v459_v46, %v358_v38  ;;  %v461_v49 = vpop.f32.mrb[6].mxu0  ;;  %v1545_v52 = vpop.f32.mrb[7].mxu1 }
 0x172   : > { %v462_v51 = vpop.f32.mrb[7].mxu0 }
 0x176   : > { %v605_v54 = vpop.f32.mrb[8].mxu1 }
 0x177   : > { %v564_v53 = vpop.f32.mrb[8].mxu0  ;;  %v613_v56 = vadd.f32 %v605_v54, %v499_v2  ;;  %v1550_v58 = vpop.f32.mrb[9].mxu1 }
 0x178   : > { %v611_v55 = vadd.f32 %v564_v53, %v458_v45  ;;  %v566_v57 = vpop.f32.mrb[9].mxu0  ;;  %v608_v61 = vpop.f32.mrb[10].mxu1 }
 0x179   : > { %v612_v59 = vadd.f32 %v566_v57, %v460_v48  ;;  %v568_v60 = vpop.f32.mrb[10].mxu0  ;;  %v1551_v63 = vpop.f32.mrb[11].mxu1 }
 0x17a   : > { %v569_v62 = vpop.f32.mrb[11].mxu0 }
 0x17e   : > { %v715_v1 = vpop.f32.mrb[12].mxu1 }
 0x17f   : > { %v674_v0 = vpop.f32.mrb[12].mxu0  ;;  %v723_v5 = vadd.f32 %v715_v1, %v613_v56  ;;  %v1556_v7 = vpop.f32.mrb[13].mxu1 }
 0x180   : > { %v721_v4 = vadd.f32 %v674_v0, %v611_v55  ;;  %v676_v6 = vpop.f32.mrb[13].mxu0  ;;  %v718_v10 = vpop.f32.mrb[14].mxu1 }
 0x181   : > { %v722_v8 = vadd.f32 %v676_v6, %v612_v59  ;;  %v678_v9 = vpop.f32.mrb[14].mxu0  ;;  %v1557_v12 = vpop.f32.mrb[15].mxu1 }
 0x182   : > { %v679_v11 = vpop.f32.mrb[15].mxu0  ;;  %v1278_v55 = vpop.permute.xlu0 %1277 }
 0x186   : > { %v825_v14 = vpop.f32.mrb[16].mxu1 }
 0x187   : > { %v784_v13 = vpop.f32.mrb[16].mxu0  ;;  %v833_v16 = vadd.f32 %v825_v14, %v723_v5  ;;  %v1562_v18 = vpop.f32.mrb[17].mxu1 }
 0x188   : > { %v831_v15 = vadd.f32 %v784_v13, %v721_v4  ;;  %v786_v17 = vpop.f32.mrb[17].mxu0  ;;  %v828_v21 = vpop.f32.mrb[18].mxu1 }
 0x189   : > { %v832_v19 = vadd.f32 %v786_v17, %v722_v8  ;;  %v788_v20 = vpop.f32.mrb[18].mxu0  ;;  %v1563_v23 = vpop.f32.mrb[19].mxu1 }
 0x18a   : > { %v789_v22 = vpop.f32.mrb[19].mxu0  ;;  %v1306_v23 = vpop.permute.xlu1 %1305 }
 0x18e   : > { %v935_v25 = vpop.f32.mrb[20].mxu1 }
 0x18f   : > { %v894_v24 = vpop.f32.mrb[20].mxu0  ;;  %v943_v27 = vadd.f32 %v935_v25, %v833_v16  ;;  %v1568_v29 = vpop.f32.mrb[21].mxu1 }
 0x190   : > { %v941_v26 = vadd.f32 %v894_v24, %v831_v15  ;;  %v896_v28 = vpop.f32.mrb[21].mxu0  ;;  %v938_v32 = vpop.f32.mrb[22].mxu1 }
 0x191   : > { %v942_v30 = vadd.f32 %v896_v28, %v832_v19  ;;  %v898_v31 = vpop.f32.mrb[22].mxu0  ;;  %v1569_v34 = vpop.f32.mrb[23].mxu1 }
 0x192   : > { %v899_v33 = vpop.f32.mrb[23].mxu0  ;;  %v1313_v25 = vpop.permute.xlu1 %1312 }
 0x196   : > { %v1045_v36 = vpop.f32.mrb[24].mxu1 }
 0x197   : > { %v1004_v35 = vpop.f32.mrb[24].mxu0  ;;  %v1053_v38 = vadd.f32 %v1045_v36, %v943_v27  ;;  %v1574_v40 = vpop.f32.mrb[25].mxu1 }
 0x198   : > { %v1051_v37 = vadd.f32 %v1004_v35, %v941_v26  ;;  %v1006_v39 = vpop.f32.mrb[25].mxu0  ;;  %v1048_v43 = vpop.f32.mrb[26].mxu1 }
 0x199   : > { %v1052_v41 = vadd.f32 %v1006_v39, %v942_v30  ;;  %v1008_v42 = vpop.f32.mrb[26].mxu0  ;;  %v1575_v44 = vpop.f32.mrb[27].mxu1 }
 0x19a   : > { %v1009_v3 = vpop.f32.mrb[27].mxu0 }
 0x19e   : > { %v1155_v2 = vpop.f32.mrb[28].mxu1 }
 0x19f   : > { %v1114_v45 = vpop.f32.mrb[28].mxu0  ;;  %v1163_v47 = vadd.f32 %v1155_v2, %v1053_v38  ;;  %v1580_v49 = vpop.f32.mrb[29].mxu1 }
 0x1a0   : > { %v1161_v46 = vadd.f32 %v1114_v45, %v1051_v37  ;;  %v1116_v48 = vpop.f32.mrb[29].mxu0  ;;  %v1158_v52 = vpop.f32.mrb[30].mxu1 }
 0x1a1   : > { %v1162_v50 = vadd.f32 %v1116_v48, %v1052_v41  ;;  %v1118_v51 = vpop.f32.mrb[30].mxu0  ;;  %v1581_v54 = vpop.f32.mrb[31].mxu1 }
 0x1a2   : > { %v1119_v53 = vpop.f32.mrb[31].mxu0 }
 0x1a6   : > { %v1265_v57 = vpop.f32.mrb[32].mxu1 }
 0x1a7   : > { %v1224_v56 = vpop.f32.mrb[32].mxu0  ;;  %v1273_v59 = vadd.f32 %v1265_v57, %v1163_v47  ;;  %v1586_v61 = vpop.f32.mrb[33].mxu1 }
 0x1a8   : > { %v1271_v58 = vadd.f32 %v1224_v56, %v1161_v46  ;;  %v1226_v60 = vpop.f32.mrb[33].mxu0  ;;  %v1268_v0 = vpop.f32.mrb[34].mxu1 }
 0x1a9   : > { %v1272_v62 = vadd.f32 %v1226_v60, %v1162_v50  ;;  %v1228_v63 = vpop.f32.mrb[34].mxu0  ;;  %v1282_v4 = vadd.f32 %v1278_v55, %v1273_v59  ;;  %v1587_v6 = vpop.f32.mrb[35].mxu1 }
 0x1aa   : > { %v1280_v1 = vadd.f32 %v1278_v55, %v1271_v58  ;;  %v1229_v5 = vpop.f32.mrb[35].mxu0 }
 0x1ab   : > { %v1281_v7 = vadd.f32 %v1278_v55, %v1272_v62  ;;  %v1504_v9 = vclamps-f32 %v1282_v4, 30.0 }
 0x1ac   : > { %v1502_v8 = vclamps-f32 %v1280_v1, 30.0 }
 0x1ad   : > { %v1503_v10 = vclamps-f32 %v1281_v7, 30.0  ;;  %v1291_v12 = vsub.f32 0.0, %v1504_v9 }
 0x1ae   : > { %v1289_v11 = vsub.f32 0.0, %v1502_v8 }
 0x1af   : > { %v1290_v13 = vsub.f32 0.0, %v1503_v10  ;;  %v1296_v15 = vmul.f32 1.442695, %v1291_v12 }
 0x1b0   : > { %v1292_v14 = vmul.f32 1.442695, %v1289_v11 }
 0x1b1   : > { %v1294_v16 = vmul.f32 1.442695, %v1290_v13 }
 0x1b2   : > { %1636 = vpow2.f32 %v1292_v14 }
 0x1b3   : > { %1638 = vpow2.f32 %v1294_v16 }
 0x1b4   : > { %1640 = vpow2.f32 %v1296_v15 }
 0x1bc   : > { %v1637_v17 = vpop.eup %1636 }
 0x1bd   : > { %v1639_v18 = vpop.eup %1638  ;;  %v1298_v19 = vadd.f32 1.0, %v1637_v17 }
 0x1be   : > { %v1641_v20 = vpop.eup %1640  ;;  %v1299_v21 = vadd.f32 1.0, %v1639_v18 }
 0x1bf   : > { %v1300_v22 = vadd.f32 1.0, %v1641_v20  ;;  %1642 = vrcp.f32 %v1298_v19 }
 0x1c0   : > { %1644 = vrcp.f32 %v1299_v21 }
 0x1c1   : > { %1646 = vrcp.f32 %v1300_v22 }
 0x1c9   : > { %v1643_v24 = vpop.eup %1642 }
 0x1ca   : > { %v1645_v26 = vpop.eup %1644  ;;  %v1308_v27 = vmul.f32 %v1643_v24, %v1306_v23 }
 0x1cb   : > { %v1647_v28 = vpop.eup %1646  ;;  %v1309_v29 = vmul.f32 %v1645_v26, %v1306_v23 }
 0x1cc   : > { %v1310_v30 = vmul.f32 %v1647_v28, %v1306_v23  ;;  %v1315_v31 = vadd.f32 %v1313_v25, %v1308_v27 }
 0x1cd   : > { %v1316_v32 = vadd.f32 %v1313_v25, %v1309_v29 }
 0x1ce   : > { %v1317_v33 = vadd.f32 %v1313_v25, %v1310_v30 }
 0x1cf   : > { %v1514_v34 = vpack.c.bf16 %v1316_v32, %v1315_v31 }
 0x1d0   : > { %v1515_v35 = vpack.c.bf16 %v1317_v33, %v1317_v33 }
 0x1d1   : > { %1331 = vst [vmem:[%s1732_s23] sm:$0xff] %v1514_v34 }
 0x1d2   : > { %1332 = vst [vmem:[%s1732_s23 + $0x8] sm:$0xf] %v1515_v35 }
 0x1d3 PF: > { %s13_s14 = sadd.s32 1, %s1672_s14   ;;  %s1882_s12 = smov %s1668_s13 }
 0x1d4   : > { %p10_p5 = scmp.ge.s32.totalorder %s13_s14, 4   ;;  %s1883_s13 = smov %s1885_s15 }
 0x1d6   :  { %12 = sbr.rel (!%p10_p5) target bundleno = 2 (0x2), region = 164 }
 0x1dd   :  { %1363 = vsyncmov [#allocation3] }
 0x1e0   :  { %s1364_s29 = vpop.sfrf %1363 }
 0x1e1   :  { %p1509_p6 = scmp.ne.s32.totalorder %s1364_s29, 0 }
 0x1e3   :  { %1368 = shalt.err (%p1509_p6)  }
 0x1e4   :  { %1370 = vsyncmov [#allocation3 + $0x1] }
 0x1e7   :  { %s1371_s30 = vpop.sfrf %1370 }
 0x1e8   :  { %p1510_p7 = scmp.ne.s32.totalorder %s1371_s30, 0 }
 0x1ea   :  { %1375 = shalt.err (%p1510_p7)  }

// kernel: feature_aggregation_forward.25
= control target key start
LH: loop header
LB: loop body
LE: loop exit
PB: predicated region body
PF: predicated region fallthrough
CT: control target
= control target key end

     0   :  { %s3000_s18 = smov 0   ;;  %s3002_s19 = smov 0   ;;  %s3435_s0 = inlined_call_operand.vmem [shape: bf16[2,8,512], index: 0, kind: input, shape index: {}]   ;;  %s3436_s1 = inlined_call_operand.vmem [shape: bf16[2,8,512], index: 1, kind: input, shape index: {}]   ;;  %s3437_s2 = inlined_call_operand.vmem [shape: bf16[9,8,8], index: 2, kind: input, shape index: {}]   ;;  %s3438_s3 = inlined_call_operand.vmem [shape: bf16[9,8,8], index: 3, kind: input, shape index: {}]   ;;  %s3439_s4 = inlined_call_operand.vmem [shape: f32[8,4], index: 4, kind: input, shape index: {}]   ;;  %s3440_s5 = inlined_call_operand.vmem [shape: bf16[2,8,384], index: 5, kind: output, shape index: {}]  }
   0x1   :  { %s3004_s20 = smov 0  }
   0x2 LB: > { %s27_s21 = sadd.s32 1, %s2949_s19  ;;  %p2614_p0 = scmp.ge.s32.totalorder %s2953_s20, 1  ;;  %s2953_s20 = sphi %s3004_s20, %s15_s20   ;;  %s2949_s19 = sphi %s3002_s19, %s3442_s19   ;;  %s2945_s18 = sphi %s3000_s18, %s3441_s18  }
   0x3   : > { %p29_p1 = scmp.ge.s32.totalorder %s27_s21, 2  ;;  %p143_p2 = scmp.lt.s32.totalorder %s2953_s20, 3 }
   0x5   : > { %s3444_s21 = smov (%p29_p1, %s27_s21), 0  ;;  %p144_p3 = pnand %p2614_p0, %p143_p2 }
   0x6   : > { %p167_p4 = scmp.lt.s32.totalorder (!%p144_p3), %s2945_s18, 1  ;;  %s2721_s22 = sshll.u32 (!%p144_p3), %s2945_s18, 4 }
   0x7   : > { %147 = sbr.rel (%p144_p3) target bundleno = 515 (0x203), region = 32  ;;  %s188_s25 = scalar_lea.vmem (!%p144_p3), %s3435_s0, %s2721_s22 }
   0x8   : > { %v225_v0 = vld [vmem:[%s188_s25] sm:$0xff] (!%p144_p3)  ;;  %v227_v1 = vld [vmem:[%s188_s25 + $0x8] sm:$0xff] (!%p144_p3) }
   0x9   : > { %226 = vst [vmem:[#allocation2] sm:$0xff] (!%p144_p3), %v225_v0  ;;  %228 = vst [vmem:[#allocation2 + $0x8] sm:$0xff] (!%p144_p3), %v227_v1 }
   0xe   : > { %s3446_s18 = smov (!%p167_p4, %s2945_s18), 1 }
   0xf   : > { %s2873_s26 = smul.u32 12, %s3446_s18 }
  0x11   : > { %s3024_s29 = scalar_lea.vmem %s3440_s5, %s2873_s26 }
  0x12   : > { %236 = vsyncadd [#allocation4], 256  ;;  %s238_s7 = scalar_lea.vmem %s3436_s1, %s2721_s22  ;;  %s2955_s8 = smov [#allocation4]  }
  0x13   : > { %s2525_s9 = scalar_lea.sflag %s2955_s8, 2  ;;  %v275_v2 = vld [vmem:[%s238_s7] sm:$0xff]  ;;  %v277_v3 = vld [vmem:[%s238_s7 + $0x8] sm:$0xff] }
  0x14   : > { %276 = vst [vmem:[#allocation3] sm:$0xff] %v275_v2  ;;  %278 = vst [vmem:[#allocation3 + $0x8] sm:$0xff] %v277_v3 }
  0x15   : > { %286 = vsyncadd %s2525_s9, 256 }
  0x16   : > { %2939 = dma.done.wait [#allocation4], 256 }
  0x17   : > { %2940 = vsyncadd [#allocation4], 4294967040 }
  0x18   : > { %2941 = dma.done.wait %s2525_s9, 256 }
  0x19   : > { %2942 = vsyncadd %s2525_s9, 4294967040  ;;  %v2956_v4 = vmov 0.0   ;;  %v2957_v5 = vmov 0   ;;  %vm2958_vm0 = vmmov 0   ;;  %v417_v6 = vld [vmem:[#allocation2 + $0x8] sm:$0xff]  ;;  %v416_v7 = vld [vmem:[#allocation2] sm:$0xff] }
  0x1a   : > { %2765 = vmatprep.subr.bf16.mxu1 %v2956_v4  ;;  %488 = vmatprep.mubr.bf16.mxu0 %v2957_v5  ;;  %v2632_v8 = vcombine.low %v417_v6, %v417_v6  ;;  %v3033_v9 = vcombine.low %v416_v7, %v416_v7  ;;  %s2959_s10 = smov 127   ;;  %v2633_v10 = vcombine.high %v417_v6, %v417_v6  ;;  %s2960_s11 = smov 126   ;;  %vm438_vm1 = vcmask 1039360   ;;  %v2925_v22 = vld [vmem:[#allocation2 + $0x8] ss:$0 sps:$4 sm:$0xff]  }
  0x1b   : > { %2767 = vmatprep.mubr.msk.bf16.mxu1 %vm2958_vm0, %v2956_v4  ;;  %v3038_v11 = vcombine.high %v416_v7, %v416_v7  ;;  %s2961_s12 = smov 110   ;;  %s2962_s13 = smov 109   ;;  %v1515_v12 = vld [vmem:[#allocation3] sm:$0xff]  ;;  %v1516_v15 = vld [vmem:[#allocation3 + $0x8] sm:$0xff]  ;;  %vm446_vm2 = vcmask 1043456   ;;  %vm442_vm3 = vcmask 64512  }
  0x1c   : > { %434 = vrot.lane.b32.xlu1 %v2632_v8, %s2959_s10  ;;  %430 = vrot.lane.b32.xlu0 %v3033_v9, %s2959_s10  ;;  %s2963_s14 = smov 108   ;;  %s2964_s15 = smov 92   ;;  %v3085_v13 = vcombine.low %v1515_v12, %v1515_v12  ;;  %v3087_v14 = vcombine.high %v1515_v12, %v1515_v12  ;;  %v3093_v16 = vcombine.low %v1516_v15, %v1516_v15  ;;  %v2629_v28 = vld [vmem:[%s3437_s2 + $0x4] sm:$0xf]  ;;  %v549_v30 = vsel %vm446_vm2, %v3033_v9, 0 }
  0x1d   : > { %s2965_s16 = smov 91   ;;  %s2966_s17 = smov 90   ;;  %v3095_v17 = vcombine.high %v1516_v15, %v1516_v15  ;;  %v555_v32 = vsel %vm446_vm2, %v2925_v22, 0  ;;  %vm648_vm4 = vcmask 1031168   ;;  %v415_v38 = vld [vmem:[%s3437_s2] sm:$0xf] }
  0x1e   : > { %vm758_vm5 = vcmask 900096   ;;  %v2643_v48 = vld [vmem:[%s3437_s2 + $0x8] sm:$0xf]  ;;  %vm868_vm6 = vcmask 891904   ;;  %v2647_v58 = vld [vmem:[%s3437_s2 + $0xc] sm:$0xf] }
  0x1f   : > { %vm978_vm7 = vcmask 883712   ;;  %v2651_v6 = vld [vmem:[%s3437_s2 + $0x10] sm:$0xf]  ;;  %vm1088_vm8 = vcmask 752640   ;;  %vm1198_vm9 = vcmask 744448   ;;  %vm1308_vm10 = vcmask 736256  }
  0x20   : > { %436 = vrot.lane.b32.xlu1 %v2633_v10, %s2959_s10  ;;  %432 = vrot.lane.b32.xlu0 %v3038_v11, %s2959_s10 }
  0x24   : > { %640 = vrot.lane.b32.xlu0 %v3033_v9, %s2960_s11  ;;  %642 = vrot.lane.b32.xlu1 %v3038_v11, %s2960_s11 }
  0x28   : > { %644 = vrot.lane.b32.xlu0 %v2632_v8, %s2960_s11  ;;  %646 = vrot.lane.b32.xlu1 %v2633_v10, %s2960_s11 }
  0x2c   : > { %750 = vrot.lane.b32.xlu0 %v3033_v9, %s2961_s12  ;;  %752 = vrot.lane.b32.xlu1 %v3038_v11, %s2961_s12 }
  0x30   : > { %754 = vrot.lane.b32.xlu0 %v2632_v8, %s2961_s12  ;;  %756 = vrot.lane.b32.xlu1 %v2633_v10, %s2961_s12 }
  0x34   : > { %860 = vrot.lane.b32.xlu0 %v3033_v9, %s2962_s13  ;;  %862 = vrot.lane.b32.xlu1 %v3038_v11, %s2962_s13 }
  0x38   : > { %864 = vrot.lane.b32.xlu0 %v2632_v8, %s2962_s13  ;;  %866 = vrot.lane.b32.xlu1 %v2633_v10, %s2962_s13 }
  0x3c   : > { %970 = vrot.lane.b32.xlu0 %v3033_v9, %s2963_s14  ;;  %972 = vrot.lane.b32.xlu1 %v3038_v11, %s2963_s14 }
  0x40   : > { %974 = vrot.lane.b32.xlu0 %v2632_v8, %s2963_s14  ;;  %976 = vrot.lane.b32.xlu1 %v2633_v10, %s2963_s14 }
  0x44   : > { %1080 = vrot.lane.b32.xlu0 %v3033_v9, %s2964_s15  ;;  %1082 = vrot.lane.b32.xlu1 %v3038_v11, %s2964_s15 }
  0x48   : > { %1084 = vrot.lane.b32.xlu0 %v2632_v8, %s2964_s15  ;;  %1086 = vrot.lane.b32.xlu1 %v2633_v10, %s2964_s15 }
  0x4c   : > { %1190 = vrot.lane.b32.xlu0 %v3033_v9, %s2965_s16  ;;  %1192 = vrot.lane.b32.xlu1 %v3038_v11, %s2965_s16 }
  0x50   : > { %1194 = vrot.lane.b32.xlu0 %v2632_v8, %s2965_s16  ;;  %1196 = vrot.lane.b32.xlu1 %v2633_v10, %s2965_s16 }
  0x54   : > { %1300 = vrot.lane.b32.xlu0 %v3033_v9, %s2966_s17  ;;  %1302 = vrot.lane.b32.xlu1 %v3038_v11, %s2966_s17 }
  0x58   : > { %1304 = vrot.lane.b32.xlu0 %v2632_v8, %s2966_s17  ;;  %1306 = vrot.lane.b32.xlu1 %v2633_v10, %s2966_s17 }
  0x5c   : > { %1529 = vrot.lane.b32.xlu0 %v3085_v13, %s2959_s10  ;;  %1531 = vrot.lane.b32.xlu1 %v3087_v14, %s2959_s10 }
  0x60   : > { %1533 = vrot.lane.b32.xlu0 %v3093_v16, %s2959_s10  ;;  %1535 = vrot.lane.b32.xlu1 %v3095_v17, %s2959_s10 }
  0x64   : > { %1638 = vrot.lane.b32.xlu0 %v3085_v13, %s2960_s11  ;;  %1640 = vrot.lane.b32.xlu1 %v3087_v14, %s2960_s11 }
  0x68   : > { %1642 = vrot.lane.b32.xlu0 %v3093_v16, %s2960_s11  ;;  %1644 = vrot.lane.b32.xlu1 %v3095_v17, %s2960_s11 }
  0x6c   : > { %1747 = vrot.lane.b32.xlu0 %v3085_v13, %s2961_s12  ;;  %1749 = vrot.lane.b32.xlu1 %v3087_v14, %s2961_s12 }
  0x70   : > { %1751 = vrot.lane.b32.xlu0 %v3093_v16, %s2961_s12  ;;  %1753 = vrot.lane.b32.xlu1 %v3095_v17, %s2961_s12 }
  0x74   : > { %1856 = vrot.lane.b32.xlu0 %v3085_v13, %s2962_s13  ;;  %1858 = vrot.lane.b32.xlu1 %v3087_v14, %s2962_s13 }
  0x78   : > { %1860 = vrot.lane.b32.xlu0 %v3093_v16, %s2962_s13  ;;  %1862 = vrot.lane.b32.xlu1 %v3095_v17, %s2962_s13 }
  0x7c   : > { %1965 = vrot.lane.b32.xlu0 %v3085_v13, %s2963_s14  ;;  %1967 = vrot.lane.b32.xlu1 %v3087_v14, %s2963_s14 }
  0x80   : > { %1969 = vrot.lane.b32.xlu0 %v3093_v16, %s2963_s14  ;;  %1971 = vrot.lane.b32.xlu1 %v3095_v17, %s2963_s14 }
  0x84   : > { %2074 = vrot.lane.b32.xlu0 %v3085_v13, %s2964_s15  ;;  %2076 = vrot.lane.b32.xlu1 %v3087_v14, %s2964_s15 }
  0x88   : > { %2078 = vrot.lane.b32.xlu0 %v3093_v16, %s2964_s15  ;;  %2080 = vrot.lane.b32.xlu1 %v3095_v17, %s2964_s15 }
  0x8c   : > { %2183 = vrot.lane.b32.xlu0 %v3085_v13, %s2965_s16  ;;  %2185 = vrot.lane.b32.xlu1 %v3087_v14, %s2965_s16 }
  0x8e   : > { %v435_v18 = vpop.permute.xlu1 %434  ;;  %v431_v19 = vpop.permute.xlu0 %430 }
  0x90   : > { %2187 = vrot.lane.b32.xlu0 %v3093_v16, %s2965_s16  ;;  %2189 = vrot.lane.b32.xlu1 %v3095_v17, %s2965_s16 }
  0x92   : > { %v437_v20 = vpop.permute.xlu1 %436  ;;  %v433_v21 = vpop.permute.xlu0 %432 }
  0x93   : > { %v440_v23 = vsel %vm438_vm1, %v433_v21, %v435_v18  ;;  %v441_v24 = vsel %vm438_vm1, %v435_v18, %v437_v20  ;;  %v439_v25 = vsel %vm438_vm1, %v431_v19, %v433_v21  ;;  %v2655_v18 = vld [vmem:[%s3437_s2 + $0x14] sm:$0xf] }
  0x94   : > { %2634 = vmatprep.subr.msk.bf16.mxu0 %vm446_vm2, %v440_v23  ;;  %v454_v26 = vsel %vm446_vm2, %v441_v24, 0  ;;  %v448_v27 = vsel %vm446_vm2, %v439_v25, 0  ;;  %2292 = vrot.lane.b32.xlu0 %v3085_v13, %s2966_s17 }
  0x95   : > { %2766 = vmatpush3.bf16.msra.mxu1 %v454_v26  ;;  %457 = vmatpush1.bf16.msra.mxu0 %v448_v27 }
  0x96   : > { %v641_v29 = vpop.permute.xlu0 %640  ;;  %2640 = vmatprep.subr.msk.bf16.mxu0 %vm446_vm2, %v3038_v11  ;;  %2771 = vmatprep.subr.bf16.mxu1 %v2956_v4  ;;  %v643_v31 = vpop.permute.xlu1 %642 }
  0x97   : > { %2294 = vrot.lane.b32.xlu1 %v3087_v14, %s2966_s17  ;;  %v649_v35 = vsel %vm648_vm4, %v641_v29, %v643_v31 }
  0x98   : > { %2768 = vmatmul.mubr.msk.bf16.vlgmr.msra.gmra.mrb[0].mxu1 %vm442_vm3, %v2629_v28  ;;  %2635 = vmatmul.mubr.msk.bf16.vlgmr.msra.gmra.mrb[0].mxu0 %vm442_vm3, %v2629_v28  ;;  %v656_v39 = vsel %vm446_vm2, %v649_v35, 0  ;;  %v2659_v28 = vld [vmem:[%s3437_s2 + $0x18] sm:$0xf] }
  0x99   : > { %558 = vmatpush1.bf16.msra.mxu0 %v549_v30  ;;  %2772 = vmatpush3.bf16.msra.mxu1 %v555_v32 }
  0x9a   : > { %v645_v33 = vpop.permute.xlu0 %644  ;;  %v647_v34 = vpop.permute.xlu1 %646  ;;  %589 = vmatprep.mubr.bf16.mxu0 %v2957_v5  ;;  %2773 = vmatprep.mubr.msk.bf16.mxu1 %vm2958_vm0, %v2956_v4 }
  0x9b   : > { %v650_v36 = vsel %vm648_vm4, %v643_v31, %v645_v33  ;;  %v651_v37 = vsel %vm648_vm4, %v645_v33, %v647_v34  ;;  %2777 = vmatprep.subr.bf16.mxu1 %v2956_v4  ;;  %2296 = vrot.lane.b32.xlu0 %v3093_v16, %s2966_s17 }
  0x9c   : > { %2644 = vmatprep.subr.msk.bf16.mxu0 %vm446_vm2, %v650_v36  ;;  %2298 = vrot.lane.b32.xlu1 %v3095_v17, %s2966_s17  ;;  %v662_v40 = vsel %vm446_vm2, %v651_v37, 0 }
  0x9e   : > { %v751_v41 = vpop.permute.xlu0 %750  ;;  %v753_v42 = vpop.permute.xlu1 %752 }
  0x9f   : > { %v759_v45 = vsel %vm758_vm5, %v751_v41, %v753_v42 }
  0xa0   : > { %2641 = vmatmul.mubr.msk.bf16.vlgmr.msra.gmra.mrb[4].mxu0 %vm442_vm3, %v415_v38  ;;  %2774 = vmatmul.mubr.msk.bf16.vlgmr.msra.gmra.mrb[4].mxu1 %vm442_vm3, %v415_v38  ;;  %v766_v49 = vsel %vm446_vm2, %v759_v45, 0  ;;  %v2663_v38 = vld [vmem:[%s3437_s2 + $0x1c] sm:$0xf] }
  0xa1   : > { %665 = vmatpush1.bf16.msra.mxu0 %v656_v39  ;;  %2778 = vmatpush3.bf16.msra.mxu1 %v662_v40 }
  0xa2   : > { %v755_v43 = vpop.permute.xlu0 %754  ;;  %v757_v44 = vpop.permute.xlu1 %756  ;;  %696 = vmatprep.mubr.bf16.mxu0 %v2957_v5  ;;  %2779 = vmatprep.mubr.msk.bf16.mxu1 %vm2958_vm0, %v2956_v4 }
  0xa3   : > { %v760_v46 = vsel %vm758_vm5, %v753_v42, %v755_v43  ;;  %v761_v47 = vsel %vm758_vm5, %v755_v43, %v757_v44  ;;  %2783 = vmatprep.subr.bf16.mxu1 %v2956_v4  ;;  %v2926_v43 = vld [vmem:[#allocation3 + $0x8] ss:$0 sps:$4 sm:$0xff]  }
  0xa4   : > { %2648 = vmatprep.subr.msk.bf16.mxu0 %vm446_vm2, %v760_v46  ;;  %v772_v50 = vsel %vm446_vm2, %v761_v47, 0  ;;  %v2667_v46 = vld [vmem:[%s3437_s2 + $0x20] sm:$0xf]  ;;  %v1423_v47 = vsel %vm446_vm2, %v3085_v13, 0 }
  0xa6   : > { %v861_v51 = vpop.permute.xlu0 %860  ;;  %v863_v52 = vpop.permute.xlu1 %862 }
  0xa7   : > { %v869_v55 = vsel %vm868_vm6, %v861_v51, %v863_v52 }
  0xa8   : > { %2645 = vmatmul.mubr.msk.bf16.vlgmr.msra.gmra.mrb[8].mxu0 %vm442_vm3, %v2643_v48  ;;  %2780 = vmatmul.mubr.msk.bf16.vlgmr.msra.gmra.mrb[8].mxu1 %vm442_vm3, %v2643_v48  ;;  %v876_v59 = vsel %vm446_vm2, %v869_v55, 0  ;;  %v1429_v48 = vsel %vm446_vm2, %v2926_v43, 0 }
  0xa9   : > { %775 = vmatpush1.bf16.msra.mxu0 %v766_v49  ;;  %2784 = vmatpush3.bf16.msra.mxu1 %v772_v50 }
  0xaa   : > { %v865_v53 = vpop.permute.xlu0 %864  ;;  %v867_v54 = vpop.permute.xlu1 %866  ;;  %806 = vmatprep.mubr.bf16.mxu0 %v2957_v5  ;;  %2785 = vmatprep.mubr.msk.bf16.mxu1 %vm2958_vm0, %v2956_v4 }
  0xab   : > { %v870_v56 = vsel %vm868_vm6, %v863_v52, %v865_v53  ;;  %v871_v57 = vsel %vm868_vm6, %v865_v53, %v867_v54  ;;  %2789 = vmatprep.subr.bf16.mxu1 %v2956_v4  ;;  %v1410_v54 = vld [vmem:[%s3438_s3] sm:$0xf] }
  0xac   : > { %2652 = vmatprep.subr.msk.bf16.mxu0 %vm446_vm2, %v870_v56  ;;  %v882_v60 = vsel %vm446_vm2, %v871_v57, 0 }
  0xae   : > { %v971_v61 = vpop.permute.xlu0 %970  ;;  %v973_v62 = vpop.permute.xlu1 %972 }
  0xaf   : > { %v979_v1 = vsel %vm978_vm7, %v971_v61, %v973_v62 }
  0xb0   : > { %2649 = vmatmul.mubr.msk.bf16.vlgmr.msra.gmra.mrb[12].mxu0 %vm442_vm3, %v2647_v58  ;;  %2786 = vmatmul.mubr.msk.bf16.vlgmr.msra.gmra.mrb[12].mxu1 %vm442_vm3, %v2647_v58  ;;  %v986_v7 = vsel %vm446_vm2, %v979_v1, 0 }
  0xb1   : > { %885 = vmatpush1.bf16.msra.mxu0 %v876_v59  ;;  %2790 = vmatpush3.bf16.msra.mxu1 %v882_v60 }
  0xb2   : > { %v975_v63 = vpop.permute.xlu0 %974  ;;  %v977_v0 = vpop.permute.xlu1 %976  ;;  %916 = vmatprep.mubr.bf16.mxu0 %v2957_v5  ;;  %2791 = vmatprep.mubr.msk.bf16.mxu1 %vm2958_vm0, %v2956_v4 }
  0xb3   : > { %v980_v2 = vsel %vm978_vm7, %v973_v62, %v975_v63  ;;  %v981_v3 = vsel %vm978_vm7, %v975_v63, %v977_v0  ;;  %2795 = vmatprep.subr.bf16.mxu1 %v2956_v4  ;;  %v2677_v0 = vld [vmem:[%s3438_s3 + $0x4] sm:$0xf] }
  0xb4   : > { %2656 = vmatprep.subr.msk.bf16.mxu0 %vm446_vm2, %v980_v2  ;;  %v992_v8 = vsel %vm446_vm2, %v981_v3, 0 }
  0xb6   : > { %v1081_v9 = vpop.permute.xlu0 %1080  ;;  %v1083_v10 = vpop.permute.xlu1 %1082 }
  0xb7   : > { %v1089_v15 = vsel %vm1088_vm8, %v1081_v9, %v1083_v10 }
  0xb8   : > { %2653 = vmatmul.mubr.msk.bf16.vlgmr.msra.gmra.mrb[16].mxu0 %vm442_vm3, %v2651_v6  ;;  %2792 = vmatmul.mubr.msk.bf16.vlgmr.msra.gmra.mrb[16].mxu1 %vm442_vm3, %v2651_v6  ;;  %v1096_v19 = vsel %vm446_vm2, %v1089_v15, 0 }
  0xb9   : > { %995 = vmatpush1.bf16.msra.mxu0 %v986_v7  ;;  %2796 = vmatpush3.bf16.msra.mxu1 %v992_v8 }
  0xba   : > { %v1085_v11 = vpop.permute.xlu0 %1084  ;;  %v1087_v12 = vpop.permute.xlu1 %1086  ;;  %1026 = vmatprep.mubr.bf16.mxu0 %v2957_v5  ;;  %2797 = vmatprep.mubr.msk.bf16.mxu1 %vm2958_vm0, %v2956_v4 }
  0xbb   : > { %v1090_v16 = vsel %vm1088_vm8, %v1083_v10, %v1085_v11  ;;  %v1091_v17 = vsel %vm1088_vm8, %v1085_v11, %v1087_v12  ;;  %2801 = vmatprep.subr.bf16.mxu1 %v2956_v4  ;;  %v2685_v12 = vld [vmem:[%s3438_s3 + $0x8] sm:$0xf] }
  0xbc   : > { %2660 = vmatprep.subr.msk.bf16.mxu0 %vm446_vm2, %v1090_v16  ;;  %v1102_v20 = vsel %vm446_vm2, %v1091_v17, 0 }
  0xbe   : > { %v1191_v21 = vpop.permute.xlu0 %1190  ;;  %v1193_v22 = vpop.permute.xlu1 %1192 }
  0xbf   : > { %v1199_v25 = vsel %vm1198_vm9, %v1191_v21, %v1193_v22 }
  0xc0   : > { %2657 = vmatmul.mubr.msk.bf16.vlgmr.msra.gmra.mrb[20].mxu0 %vm442_vm3, %v2655_v18  ;;  %2798 = vmatmul.mubr.msk.bf16.vlgmr.msra.gmra.mrb[20].mxu1 %vm442_vm3, %v2655_v18  ;;  %v1206_v29 = vsel %vm446_vm2, %v1199_v25, 0  ;;  %v2967_v25 = vmov 1  }
  0xc1   : > { %1105 = vmatpush1.bf16.msra.mxu0 %v1096_v19  ;;  %2802 = vmatpush3.bf16.msra.mxu1 %v1102_v20 }
  0xc2   : > { %v1195_v23 = vpop.permute.xlu0 %1194  ;;  %v1197_v24 = vpop.permute.xlu1 %1196  ;;  %1136 = vmatprep.mubr.bf16.mxu0 %v2957_v5  ;;  %2803 = vmatprep.mubr.msk.bf16.mxu1 %vm2958_vm0, %v2956_v4 }
  0xc3   : > { %v1200_v26 = vsel %vm1198_vm9, %v1193_v22, %v1195_v23  ;;  %v1201_v27 = vsel %vm1198_vm9, %v1195_v23, %v1197_v24  ;;  %2807 = vmatprep.subr.bf16.mxu1 %v2956_v4  ;;  %v2689_v24 = vld [vmem:[%s3438_s3 + $0xc] sm:$0xf]  ;;  %2913 = vset.pattern.permute.xlu0 %v2967_v25 }
  0xc4   : > { %2664 = vmatprep.subr.msk.bf16.mxu0 %vm446_vm2, %v1200_v26  ;;  %v1212_v30 = vsel %vm446_vm2, %v1201_v27, 0  ;;  %v2399_v26 = vld [vmem:[%s3439_s4] sm:$0xff] }
  0xc5   : > { %2402 = vperm.xlu0 %2913, %v2399_v26  }
  0xc6   : > { %v1301_v31 = vpop.permute.xlu0 %1300  ;;  %v1303_v32 = vpop.permute.xlu1 %1302 }
  0xc7   : > { %v1309_v35 = vsel %vm1308_vm10, %v1301_v31, %v1303_v32 }
  0xc8   : > { %2661 = vmatmul.mubr.msk.bf16.vlgmr.msra.gmra.mrb[24].mxu0 %vm442_vm3, %v2659_v28  ;;  %2804 = vmatmul.mubr.msk.bf16.vlgmr.msra.gmra.mrb[24].mxu1 %vm442_vm3, %v2659_v28  ;;  %v1316_v39 = vsel %vm446_vm2, %v1309_v35, 0 }
  0xc9   : > { %1215 = vmatpush1.bf16.msra.mxu0 %v1206_v29  ;;  %2808 = vmatpush3.bf16.msra.mxu1 %v1212_v30 }
  0xca   : > { %v1305_v33 = vpop.permute.xlu0 %1304  ;;  %v1307_v34 = vpop.permute.xlu1 %1306  ;;  %1246 = vmatprep.mubr.bf16.mxu0 %v2957_v5  ;;  %2809 = vmatprep.mubr.msk.bf16.mxu1 %vm2958_vm0, %v2956_v4 }
  0xcb   : > { %v1310_v36 = vsel %vm1308_vm10, %v1303_v32, %v1305_v33  ;;  %v1311_v37 = vsel %vm1308_vm10, %v1305_v33, %v1307_v34  ;;  %2813 = vmatprep.subr.bf16.mxu1 %v2956_v4  ;;  %v2968_v32 = vmov 2  }
  0xcc   : > { %2668 = vmatprep.subr.msk.bf16.mxu0 %vm446_vm2, %v1310_v36  ;;  %v1322_v40 = vsel %vm446_vm2, %v1311_v37, 0  ;;  %2914 = vset.pattern.permute.xlu1 %v2968_v32  ;;  %v2969_v37 = vmov 3  }
  0xcd   : > { %2418 = vperm.xlu1 %2914, %v2399_v26   ;;  %2916 = vset.pattern.permute.xlu0 %v2969_v37 }
  0xce   : > { %v1530_v41 = vpop.permute.xlu0 %1529  ;;  %v1532_v42 = vpop.permute.xlu1 %1531 }
  0xcf   : > { %v1537_v13 = vsel %vm438_vm1, %v1530_v41, %v1532_v42 }
  0xd0   : > { %2665 = vmatmul.mubr.msk.bf16.vlgmr.msra.gmra.mrb[28].mxu0 %vm442_vm3, %v2663_v38  ;;  %2810 = vmatmul.mubr.msk.bf16.vlgmr.msra.gmra.mrb[28].mxu1 %vm442_vm3, %v2663_v38  ;;  %v1544_v55 = vsel %vm446_vm2, %v1537_v13, 0  ;;  %v2693_v38 = vld [vmem:[%s3438_s3 + $0x10] sm:$0xf] }
  0xd1   : > { %1325 = vmatpush1.bf16.msra.mxu0 %v1316_v39  ;;  %2814 = vmatpush3.bf16.msra.mxu1 %v1322_v40 }
  0xd2   : > { %1356 = vmatprep.mubr.bf16.mxu0 %v2957_v5  ;;  %2815 = vmatprep.mubr.msk.bf16.mxu1 %vm2958_vm0, %v2956_v4  ;;  %v1534_v44 = vpop.permute.xlu0 %1533  ;;  %v1536_v45 = vpop.permute.xlu1 %1535 }
  0xd3   : > { %2674 = vmatprep.subr.msk.bf16.mxu0 %vm446_vm2, %v3087_v14  ;;  %2819 = vmatprep.subr.bf16.mxu1 %v2956_v4  ;;  %v1538_v51 = vsel %vm438_vm1, %v1532_v42, %v1534_v44  ;;  %v1539_v53 = vsel %vm438_vm1, %v1534_v44, %v1536_v45 }
  0xd4   : > { %v1550_v56 = vsel %vm446_vm2, %v1539_v53, 0  ;;  %2915 = vset.pattern.permute.xlu1 %v2969_v37 }
  0xd5   : > { %2425 = vperm.xlu1 %2915, %v2399_v26  }
  0xd6   : > { %v1639_v49 = vpop.permute.xlu0 %1638  ;;  %v1641_v50 = vpop.permute.xlu1 %1640 }
  0xd7   : > { %v1646_v62 = vsel %vm648_vm4, %v1639_v49, %v1641_v50 }
  0xd8   : > { %2669 = vmatmul.mubr.msk.bf16.vlgmr.msra.gmra.mrb[32].mxu0 %vm442_vm3, %v2667_v46  ;;  %2816 = vmatmul.mubr.msk.bf16.vlgmr.msra.gmra.mrb[32].mxu1 %vm442_vm3, %v2667_v46  ;;  %v1653_v1 = vsel %vm446_vm2, %v1646_v62, 0  ;;  %v2705_v62 = vld [vmem:[%s3438_s3 + $0x1c] sm:$0xf] }
  0xd9   : > { %1432 = vmatpush1.bf16.msra.mxu0 %v1423_v47  ;;  %2820 = vmatpush3.bf16.msra.mxu1 %v1429_v48  ;;  %v2697_v48 = vld [vmem:[%s3438_s3 + $0x14] sm:$0xf] }
  0xda   : > { %2682 = vmatprep.subr.msk.bf16.mxu0 %vm446_vm2, %v1538_v51  ;;  %1463 = vmatprep.mubr.bf16.mxu0 %v2957_v5  ;;  %v1643_v14 = vpop.permute.xlu0 %1642  ;;  %v1645_v52 = vpop.permute.xlu1 %1644 }
  0xdb   : > { %2821 = vmatprep.mubr.msk.bf16.mxu1 %vm2958_vm0, %v2956_v4  ;;  %2825 = vmatprep.subr.bf16.mxu1 %v2956_v4  ;;  %v1647_v59 = vsel %vm648_vm4, %v1641_v50, %v1643_v14  ;;  %v1648_v63 = vsel %vm648_vm4, %v1643_v14, %v1645_v52 }
  0xdc   : > { %v1659_v2 = vsel %vm446_vm2, %v1648_v63, 0 }
  0xde   : > { %v1748_v57 = vpop.permute.xlu0 %1747  ;;  %v1750_v58 = vpop.permute.xlu1 %1749 }
  0xdf   : > { %v1755_v10 = vsel %vm758_vm5, %v1748_v57, %v1750_v58 }
  0xe0   : > { %2675 = vmatmul.mubr.msk.bf16.vlgmr.msra.gmra.mrb[36].mxu0 %vm442_vm3, %v1410_v54  ;;  %2822 = vmatmul.mubr.msk.bf16.vlgmr.msra.gmra.mrb[36].mxu1 %vm442_vm3, %v1410_v54  ;;  %v1762_v15 = vsel %vm446_vm2, %v1755_v10, 0  ;;  %v2701_v54 = vld [vmem:[%s3438_s3 + $0x18] sm:$0xf] }
  0xe1   : > { %1553 = vmatpush1.bf16.msra.mxu0 %v1544_v55  ;;  %2826 = vmatpush3.bf16.msra.mxu1 %v1550_v56 }
  0xe2   : > { %2686 = vmatprep.subr.msk.bf16.mxu0 %vm446_vm2, %v1647_v59  ;;  %1584 = vmatprep.mubr.bf16.mxu0 %v2957_v5  ;;  %v1752_v60 = vpop.permute.xlu0 %1751  ;;  %v1754_v61 = vpop.permute.xlu1 %1753 }
  0xe3   : > { %2827 = vmatprep.mubr.msk.bf16.mxu1 %vm2958_vm0, %v2956_v4  ;;  %2831 = vmatprep.subr.bf16.mxu1 %v2956_v4  ;;  %v1756_v7 = vsel %vm758_vm5, %v1750_v58, %v1752_v60  ;;  %v1757_v11 = vsel %vm758_vm5, %v1752_v60, %v1754_v61 }
  0xe4   : > { %v1768_v16 = vsel %vm446_vm2, %v1757_v11, 0 }
  0xe6   : > { %v1857_v3 = vpop.permute.xlu0 %1856  ;;  %v1859_v6 = vpop.permute.xlu1 %1858 }
  0xe7   : > { %v1864_v22 = vsel %vm868_vm6, %v1857_v3, %v1859_v6 }
  0xe8   : > { %2683 = vmatmul.mubr.msk.bf16.vlgmr.msra.gmra.mrb[40].mxu0 %vm442_vm3, %v2677_v0  ;;  %2828 = vmatmul.mubr.msk.bf16.vlgmr.msra.gmra.mrb[40].mxu1 %vm442_vm3, %v2677_v0  ;;  %v1871_v27 = vsel %vm446_vm2, %v1864_v22, 0 }
  0xe9   : > { %1662 = vmatpush1.bf16.msra.mxu0 %v1653_v1  ;;  %2832 = vmatpush3.bf16.msra.mxu1 %v1659_v2  ;;  %v2709_v1 = vld [vmem:[%s3438_s3 + $0x20] sm:$0xf] }
  0xea   : > { %2690 = vmatprep.subr.msk.bf16.mxu0 %vm446_vm2, %v1756_v7  ;;  %1693 = vmatprep.mubr.bf16.mxu0 %v2957_v5  ;;  %v1861_v8 = vpop.permute.xlu0 %1860  ;;  %v1863_v9 = vpop.permute.xlu1 %1862 }
  0xeb   : > { %2833 = vmatprep.mubr.msk.bf16.mxu1 %vm2958_vm0, %v2956_v4  ;;  %2837 = vmatprep.subr.bf16.mxu1 %v2956_v4  ;;  %v1865_v19 = vsel %vm868_vm6, %v1859_v6, %v1861_v8  ;;  %v1866_v23 = vsel %vm868_vm6, %v1861_v8, %v1863_v9 }
  0xec   : > { %v1877_v28 = vsel %vm446_vm2, %v1866_v23, 0 }
  0xee   : > { %v1966_v17 = vpop.permute.xlu0 %1965  ;;  %v1968_v18 = vpop.permute.xlu1 %1967 }
  0xef   : > { %v1973_v35 = vsel %vm978_vm7, %v1966_v17, %v1968_v18 }
  0xf0   : > { %2687 = vmatmul.mubr.msk.bf16.vlgmr.msra.gmra.mrb[44].mxu0 %vm442_vm3, %v2685_v12  ;;  %2834 = vmatmul.mubr.msk.bf16.vlgmr.msra.gmra.mrb[44].mxu1 %vm442_vm3, %v2685_v12  ;;  %v1980_v39 = vsel %vm446_vm2, %v1973_v35, 0 }
  0xf1   : > { %1771 = vmatpush1.bf16.msra.mxu0 %v1762_v15  ;;  %2838 = vmatpush3.bf16.msra.mxu1 %v1768_v16 }
  0xf2   : > { %2694 = vmatprep.subr.msk.bf16.mxu0 %vm446_vm2, %v1865_v19  ;;  %1802 = vmatprep.mubr.bf16.mxu0 %v2957_v5  ;;  %v1970_v20 = vpop.permute.xlu0 %1969  ;;  %v1972_v21 = vpop.permute.xlu1 %1971 }
  0xf3   : > { %2839 = vmatprep.mubr.msk.bf16.mxu1 %vm2958_vm0, %v2956_v4  ;;  %2843 = vmatprep.subr.bf16.mxu1 %v2956_v4  ;;  %v1974_v31 = vsel %vm978_vm7, %v1968_v18, %v1970_v20  ;;  %v1975_v36 = vsel %vm978_vm7, %v1970_v20, %v1972_v21 }
  0xf4   : > { %v1986_v40 = vsel %vm446_vm2, %v1975_v36, 0 }
  0xf6   : > { %v2075_v29 = vpop.permute.xlu0 %2074  ;;  %v2077_v30 = vpop.permute.xlu1 %2076 }
  0xf7   : > { %v2082_v45 = vsel %vm1088_vm8, %v2075_v29, %v2077_v30 }
  0xf8   : > { %2691 = vmatmul.mubr.msk.bf16.vlgmr.msra.gmra.mrb[48].mxu0 %vm442_vm3, %v2689_v24  ;;  %2840 = vmatmul.mubr.msk.bf16.vlgmr.msra.gmra.mrb[48].mxu1 %vm442_vm3, %v2689_v24  ;;  %v2089_v49 = vsel %vm446_vm2, %v2082_v45, 0 }
  0xf9   : > { %1880 = vmatpush1.bf16.msra.mxu0 %v1871_v27  ;;  %2844 = vmatpush3.bf16.msra.mxu1 %v1877_v28 }
  0xfa   : > { %2698 = vmatprep.subr.msk.bf16.mxu0 %vm446_vm2, %v1974_v31  ;;  %1911 = vmatprep.mubr.bf16.mxu0 %v2957_v5  ;;  %v2079_v33 = vpop.permute.xlu0 %2078  ;;  %v2081_v34 = vpop.permute.xlu1 %2080 }
  0xfb   : > { %2845 = vmatprep.mubr.msk.bf16.mxu1 %vm2958_vm0, %v2956_v4  ;;  %2849 = vmatprep.subr.bf16.mxu1 %v2956_v4  ;;  %v2083_v43 = vsel %vm1088_vm8, %v2077_v30, %v2079_v33  ;;  %v2084_v46 = vsel %vm1088_vm8, %v2079_v33, %v2081_v34 }
  0xfc   : > { %v2095_v50 = vsel %vm446_vm2, %v2084_v46, 0 }
  0xfe   : > { %v2184_v41 = vpop.permute.xlu0 %2183  ;;  %v2186_v42 = vpop.permute.xlu1 %2185 }
  0xff   : > { %v2191_v13 = vsel %vm1198_vm9, %v2184_v41, %v2186_v42 }
 0x100   : > { %2695 = vmatmul.mubr.msk.bf16.vlgmr.msra.gmra.mrb[52].mxu0 %vm442_vm3, %v2693_v38  ;;  %2846 = vmatmul.mubr.msk.bf16.vlgmr.msra.gmra.mrb[52].mxu1 %vm442_vm3, %v2693_v38  ;;  %v2198_v56 = vsel %vm446_vm2, %v2191_v13, 0 }
 0x101   : > { %1989 = vmatpush1.bf16.msra.mxu0 %v1980_v39  ;;  %2850 = vmatpush3.bf16.msra.mxu1 %v1986_v40 }
 0x102   : > { %2702 = vmatprep.subr.msk.bf16.mxu0 %vm446_vm2, %v2083_v43  ;;  %2020 = vmatprep.mubr.bf16.mxu0 %v2957_v5  ;;  %v2188_v44 = vpop.permute.xlu0 %2187  ;;  %v2190_v47 = vpop.permute.xlu1 %2189 }
 0x103   : > { %2851 = vmatprep.mubr.msk.bf16.mxu1 %vm2958_vm0, %v2956_v4  ;;  %2855 = vmatprep.subr.bf16.mxu1 %v2956_v4  ;;  %v2192_v51 = vsel %vm1198_vm9, %v2186_v42, %v2188_v44  ;;  %v2193_v53 = vsel %vm1198_vm9, %v2188_v44, %v2190_v47 }
 0x104   : > { %v2204_v57 = vsel %vm446_vm2, %v2193_v53, 0 }
 0x106   : > { %v2293_v14 = vpop.permute.xlu0 %2292 }
 0x108   : > { %2699 = vmatmul.mubr.msk.bf16.vlgmr.msra.gmra.mrb[56].mxu0 %vm442_vm3, %v2697_v48  ;;  %2852 = vmatmul.mubr.msk.bf16.vlgmr.msra.gmra.mrb[56].mxu1 %vm442_vm3, %v2697_v48 }
 0x109   : > { %2098 = vmatpush1.bf16.msra.mxu0 %v2089_v49  ;;  %2856 = vmatpush3.bf16.msra.mxu1 %v2095_v50  ;;  %v2295_v52 = vpop.permute.xlu1 %2294 }
 0x10a   : > { %2706 = vmatprep.subr.msk.bf16.mxu0 %vm446_vm2, %v2192_v51  ;;  %2129 = vmatprep.mubr.bf16.mxu0 %v2957_v5  ;;  %v2300_v60 = vsel %vm1308_vm10, %v2293_v14, %v2295_v52 }
 0x10b   : > { %2857 = vmatprep.mubr.msk.bf16.mxu1 %vm2958_vm0, %v2956_v4  ;;  %2861 = vmatprep.subr.bf16.mxu1 %v2956_v4  ;;  %v2307_v63 = vsel %vm446_vm2, %v2300_v60, 0 }
 0x10d   : > { %v2297_v55 = vpop.permute.xlu0 %2296 }
 0x10e   : > { %v2301_v58 = vsel %vm1308_vm10, %v2295_v52, %v2297_v55  ;;  %v2299_v59 = vpop.permute.xlu1 %2298 }
 0x10f   : > { %v2302_v61 = vsel %vm1308_vm10, %v2297_v55, %v2299_v59 }
 0x110   : > { %2703 = vmatmul.mubr.msk.bf16.vlgmr.msra.gmra.mrb[60].mxu0 %vm442_vm3, %v2701_v54  ;;  %2858 = vmatmul.mubr.msk.bf16.vlgmr.msra.gmra.mrb[60].mxu1 %vm442_vm3, %v2701_v54  ;;  %v2313_v0 = vsel %vm446_vm2, %v2302_v61, 0 }
 0x111   : > { %2207 = vmatpush1.bf16.msra.mxu0 %v2198_v56  ;;  %2862 = vmatpush3.bf16.msra.mxu1 %v2204_v57 }
 0x112   : > { %2710 = vmatprep.subr.msk.bf16.mxu0 %vm446_vm2, %v2301_v58  ;;  %2238 = vmatprep.mubr.bf16.mxu0 %v2957_v5 }
 0x113   : > { %2863 = vmatprep.mubr.msk.bf16.mxu1 %vm2958_vm0, %v2956_v4  ;;  %2867 = vmatprep.subr.bf16.mxu1 %v2956_v4 }
 0x118   : > { %2707 = vmatmul.mubr.msk.bf16.vlgmr.msra.gmra.mrb[64].mxu0 %vm442_vm3, %v2705_v62  ;;  %2864 = vmatmul.mubr.msk.bf16.vlgmr.msra.gmra.mrb[64].mxu1 %vm442_vm3, %v2705_v62 }
 0x119   : > { %2316 = vmatpush1.bf16.msra.mxu0 %v2307_v63  ;;  %2868 = vmatpush3.bf16.msra.mxu1 %v2313_v0 }
 0x11a   : > { %2347 = vmatprep.mubr.bf16.mxu0 %v2957_v5  ;;  %2869 = vmatprep.mubr.msk.bf16.mxu1 %vm2958_vm0, %v2956_v4 }
 0x120   : > { %2711 = vmatmul.mubr.msk.bf16.vlgmr.msra.gmra.mrb[68].mxu0 %vm442_vm3, %v2709_v1  ;;  %2870 = vmatmul.mubr.msk.bf16.vlgmr.msra.gmra.mrb[68].mxu1 %vm442_vm3, %v2709_v1 }
 0x16b   : > { %v490_v2 = vpop.f32.mrb[0].mxu0  ;;  %v531_v3 = vpop.f32.mrb[0].mxu1 }
 0x16c   : > { %v492_v6 = vpop.f32.mrb[1].mxu0  ;;  %v2769_v7 = vpop.f32.mrb[1].mxu1 }
 0x16d   : > { %v494_v8 = vpop.f32.mrb[2].mxu0  ;;  %v534_v9 = vpop.f32.mrb[2].mxu1 }
 0x16e   : > { %v495_v10 = vpop.f32.mrb[3].mxu0  ;;  %v2770_v11 = vpop.f32.mrb[3].mxu1 }
 0x173   : > { %v591_v5 = vpop.f32.mrb[4].mxu0  ;;  %v632_v12 = vpop.f32.mrb[4].mxu1 }
 0x174   : > { %v592_v15 = vadd.f32 %v591_v5, %v490_v2  ;;  %v633_v4 = vadd.f32 %v632_v12, %v531_v3  ;;  %v593_v16 = vpop.f32.mrb[5].mxu0  ;;  %v2775_v17 = vpop.f32.mrb[5].mxu1 }
 0x175   : > { %v594_v18 = vadd.f32 %v593_v16, %v492_v6  ;;  %v595_v19 = vpop.f32.mrb[6].mxu0  ;;  %v635_v20 = vpop.f32.mrb[6].mxu1 }
 0x176   : > { %v596_v21 = vpop.f32.mrb[7].mxu0  ;;  %v2776_v22 = vpop.f32.mrb[7].mxu1 }
 0x17b   : > { %v698_v23 = vpop.f32.mrb[8].mxu0  ;;  %v739_v24 = vpop.f32.mrb[8].mxu1 }
 0x17c   : > { %v745_v25 = vadd.f32 %v698_v23, %v592_v15  ;;  %v747_v26 = vadd.f32 %v739_v24, %v633_v4  ;;  %v700_v27 = vpop.f32.mrb[9].mxu0  ;;  %v2781_v28 = vpop.f32.mrb[9].mxu1 }
 0x17d   : > { %v746_v29 = vadd.f32 %v700_v27, %v594_v18  ;;  %v702_v30 = vpop.f32.mrb[10].mxu0  ;;  %v742_v31 = vpop.f32.mrb[10].mxu1 }
 0x17e   : > { %v703_v32 = vpop.f32.mrb[11].mxu0  ;;  %v2782_v33 = vpop.f32.mrb[11].mxu1 }
 0x183   : > { %v808_v34 = vpop.f32.mrb[12].mxu0  ;;  %v849_v35 = vpop.f32.mrb[12].mxu1 }
 0x184   : > { %v855_v36 = vadd.f32 %v808_v34, %v745_v25  ;;  %v857_v37 = vadd.f32 %v849_v35, %v747_v26  ;;  %v810_v38 = vpop.f32.mrb[13].mxu0  ;;  %v2787_v39 = vpop.f32.mrb[13].mxu1 }
 0x185   : > { %v856_v40 = vadd.f32 %v810_v38, %v746_v29  ;;  %v812_v41 = vpop.f32.mrb[14].mxu0  ;;  %v852_v42 = vpop.f32.mrb[14].mxu1 }
 0x186   : > { %v813_v43 = vpop.f32.mrb[15].mxu0  ;;  %v2788_v44 = vpop.f32.mrb[15].mxu1 }
 0x18b   : > { %v918_v45 = vpop.f32.mrb[16].mxu0  ;;  %v959_v46 = vpop.f32.mrb[16].mxu1 }
 0x18c   : > { %v965_v47 = vadd.f32 %v918_v45, %v855_v36  ;;  %v967_v48 = vadd.f32 %v959_v46, %v857_v37  ;;  %v920_v49 = vpop.f32.mrb[17].mxu0  ;;  %v2793_v50 = vpop.f32.mrb[17].mxu1 }
 0x18d   : > { %v966_v51 = vadd.f32 %v920_v49, %v856_v40  ;;  %v922_v14 = vpop.f32.mrb[18].mxu0  ;;  %v962_v52 = vpop.f32.mrb[18].mxu1 }
 0x18e   : > { %v923_v13 = vpop.f32.mrb[19].mxu0  ;;  %v2794_v53 = vpop.f32.mrb[19].mxu1 }
 0x193   : > { %v1028_v54 = vpop.f32.mrb[20].mxu0  ;;  %v1069_v55 = vpop.f32.mrb[20].mxu1 }
 0x194   : > { %v1075_v56 = vadd.f32 %v1028_v54, %v965_v47  ;;  %v1077_v57 = vadd.f32 %v1069_v55, %v967_v48  ;;  %v1030_v58 = vpop.f32.mrb[21].mxu0  ;;  %v2799_v59 = vpop.f32.mrb[21].mxu1 }
 0x195   : > { %v1076_v60 = vadd.f32 %v1030_v58, %v966_v51  ;;  %v1032_v61 = vpop.f32.mrb[22].mxu0  ;;  %v1072_v62 = vpop.f32.mrb[22].mxu1 }
 0x196   : > { %v1033_v63 = vpop.f32.mrb[23].mxu0  ;;  %v2800_v0 = vpop.f32.mrb[23].mxu1 }
 0x19b   : > { %v1138_v1 = vpop.f32.mrb[24].mxu0  ;;  %v1179_v2 = vpop.f32.mrb[24].mxu1 }
 0x19c   : > { %v1185_v3 = vadd.f32 %v1138_v1, %v1075_v56  ;;  %v1187_v6 = vadd.f32 %v1179_v2, %v1077_v57  ;;  %v1140_v7 = vpop.f32.mrb[25].mxu0  ;;  %v2805_v8 = vpop.f32.mrb[25].mxu1 }
 0x19d   : > { %v1186_v9 = vadd.f32 %v1140_v7, %v1076_v60  ;;  %v1142_v10 = vpop.f32.mrb[26].mxu0  ;;  %v1182_v11 = vpop.f32.mrb[26].mxu1 }
 0x19e   : > { %v1143_v5 = vpop.f32.mrb[27].mxu0  ;;  %v2806_v12 = vpop.f32.mrb[27].mxu1 }
 0x1a3   : > { %v1248_v15 = vpop.f32.mrb[28].mxu0  ;;  %v1289_v4 = vpop.f32.mrb[28].mxu1 }
 0x1a4   : > { %v1295_v16 = vadd.f32 %v1248_v15, %v1185_v3  ;;  %v1297_v17 = vadd.f32 %v1289_v4, %v1187_v6  ;;  %v1250_v18 = vpop.f32.mrb[29].mxu0  ;;  %v2811_v19 = vpop.f32.mrb[29].mxu1 }
 0x1a5   : > { %v1296_v20 = vadd.f32 %v1250_v18, %v1186_v9  ;;  %v1252_v21 = vpop.f32.mrb[30].mxu0  ;;  %v1292_v22 = vpop.f32.mrb[30].mxu1 }
 0x1a6   : > { %v1253_v23 = vpop.f32.mrb[31].mxu0  ;;  %v2812_v24 = vpop.f32.mrb[31].mxu1 }
 0x1ab   : > { %v1358_v25 = vpop.f32.mrb[32].mxu0  ;;  %v1399_v26 = vpop.f32.mrb[32].mxu1 }
 0x1ac   : > { %v1405_v27 = vadd.f32 %v1358_v25, %v1295_v16  ;;  %v1407_v28 = vadd.f32 %v1399_v26, %v1297_v17  ;;  %v1360_v29 = vpop.f32.mrb[33].mxu0  ;;  %v2817_v30 = vpop.f32.mrb[33].mxu1 }
 0x1ad   : > { %v1406_v31 = vadd.f32 %v1360_v29, %v1296_v20  ;;  %v1362_v32 = vpop.f32.mrb[34].mxu0  ;;  %v1402_v33 = vpop.f32.mrb[34].mxu1 }
 0x1ae   : > { %v1363_v34 = vpop.f32.mrb[35].mxu0  ;;  %v2818_v35 = vpop.f32.mrb[35].mxu1 }
 0x1b3   : > { %v1465_v36 = vpop.f32.mrb[36].mxu0  ;;  %v1506_v37 = vpop.f32.mrb[36].mxu1 }
 0x1b4   : > { %v1512_v38 = vadd.f32 %v1465_v36, %v1405_v27  ;;  %v1514_v39 = vadd.f32 %v1506_v37, %v1407_v28  ;;  %v1467_v40 = vpop.f32.mrb[37].mxu0  ;;  %v2823_v41 = vpop.f32.mrb[37].mxu1 }
 0x1b5   : > { %v1513_v42 = vadd.f32 %v1467_v40, %v1406_v31  ;;  %v1469_v43 = vpop.f32.mrb[38].mxu0  ;;  %v1509_v44 = vpop.f32.mrb[38].mxu1 }
 0x1b6   : > { %v1470_v45 = vpop.f32.mrb[39].mxu0  ;;  %v2824_v46 = vpop.f32.mrb[39].mxu1 }
 0x1bb   : > { %v1586_v47 = vpop.f32.mrb[40].mxu0  ;;  %v1627_v48 = vpop.f32.mrb[40].mxu1 }
 0x1bc   : > { %v1633_v49 = vadd.f32 %v1586_v47, %v1512_v38  ;;  %v1635_v50 = vadd.f32 %v1627_v48, %v1514_v39  ;;  %v1588_v51 = vpop.f32.mrb[41].mxu0  ;;  %v2829_v14 = vpop.f32.mrb[41].mxu1 }
 0x1bd   : > { %v1634_v52 = vadd.f32 %v1588_v51, %v1513_v42  ;;  %v1590_v13 = vpop.f32.mrb[42].mxu0  ;;  %v1630_v53 = vpop.f32.mrb[42].mxu1 }
 0x1be   : > { %v1591_v54 = vpop.f32.mrb[43].mxu0  ;;  %v2830_v55 = vpop.f32.mrb[43].mxu1 }
 0x1c3   : > { %v1695_v56 = vpop.f32.mrb[44].mxu0  ;;  %v1736_v57 = vpop.f32.mrb[44].mxu1 }
 0x1c4   : > { %v1742_v58 = vadd.f32 %v1695_v56, %v1633_v49  ;;  %v1744_v59 = vadd.f32 %v1736_v57, %v1635_v50  ;;  %v1697_v60 = vpop.f32.mrb[45].mxu0  ;;  %v2835_v61 = vpop.f32.mrb[45].mxu1 }
 0x1c5   : > { %v1743_v62 = vadd.f32 %v1697_v60, %v1634_v52  ;;  %v1699_v63 = vpop.f32.mrb[46].mxu0  ;;  %v1739_v0 = vpop.f32.mrb[46].mxu1 }
 0x1c6   : > { %v1700_v1 = vpop.f32.mrb[47].mxu0  ;;  %v2836_v2 = vpop.f32.mrb[47].mxu1 }
 0x1cb   : > { %v1804_v3 = vpop.f32.mrb[48].mxu0  ;;  %v1845_v6 = vpop.f32.mrb[48].mxu1 }
 0x1cc   : > { %v1851_v7 = vadd.f32 %v1804_v3, %v1742_v58  ;;  %v1853_v8 = vadd.f32 %v1845_v6, %v1744_v59  ;;  %v1806_v9 = vpop.f32.mrb[49].mxu0  ;;  %v2841_v10 = vpop.f32.mrb[49].mxu1 }
 0x1cd   : > { %v1852_v11 = vadd.f32 %v1806_v9, %v1743_v62  ;;  %v1808_v5 = vpop.f32.mrb[50].mxu0  ;;  %v1848_v12 = vpop.f32.mrb[50].mxu1 }
 0x1ce   : > { %v1809_v15 = vpop.f32.mrb[51].mxu0  ;;  %v2842_v4 = vpop.f32.mrb[51].mxu1 }
 0x1cf   : > { %v2403_v58 = vpop.permute.xlu0 %2402  ;;  %v2419_v59 = vpop.permute.xlu1 %2418 }
 0x1d3   : > { %v1913_v16 = vpop.f32.mrb[52].mxu0  ;;  %v1954_v17 = vpop.f32.mrb[52].mxu1 }
 0x1d4   : > { %v1960_v18 = vadd.f32 %v1913_v16, %v1851_v7  ;;  %v1962_v19 = vadd.f32 %v1954_v17, %v1853_v8  ;;  %v1915_v20 = vpop.f32.mrb[53].mxu0  ;;  %v2847_v21 = vpop.f32.mrb[53].mxu1 }
 0x1d5   : > { %v1961_v22 = vadd.f32 %v1915_v20, %v1852_v11  ;;  %v1917_v23 = vpop.f32.mrb[54].mxu0  ;;  %v1957_v24 = vpop.f32.mrb[54].mxu1 }
 0x1d6   : > { %v1918_v25 = vpop.f32.mrb[55].mxu0  ;;  %v2848_v26 = vpop.f32.mrb[55].mxu1 }
 0x1d7   : > { %v2426_v17 = vpop.permute.xlu1 %2425 }
 0x1db   : > { %v2022_v27 = vpop.f32.mrb[56].mxu0  ;;  %v2063_v28 = vpop.f32.mrb[56].mxu1 }
 0x1dc   : > { %v2069_v29 = vadd.f32 %v2022_v27, %v1960_v18  ;;  %v2071_v30 = vadd.f32 %v2063_v28, %v1962_v19  ;;  %v2024_v31 = vpop.f32.mrb[57].mxu0  ;;  %v2853_v32 = vpop.f32.mrb[57].mxu1 }
 0x1dd   : > { %v2070_v33 = vadd.f32 %v2024_v31, %v1961_v22  ;;  %v2026_v34 = vpop.f32.mrb[58].mxu0  ;;  %v2066_v35 = vpop.f32.mrb[58].mxu1 }
 0x1de   : > { %v2027_v36 = vpop.f32.mrb[59].mxu0  ;;  %v2854_v37 = vpop.f32.mrb[59].mxu1 }
 0x1e3   : > { %v2131_v38 = vpop.f32.mrb[60].mxu0  ;;  %v2172_v39 = vpop.f32.mrb[60].mxu1 }
 0x1e4   : > { %v2178_v40 = vadd.f32 %v2131_v38, %v2069_v29  ;;  %v2180_v41 = vadd.f32 %v2172_v39, %v2071_v30  ;;  %v2133_v42 = vpop.f32.mrb[61].mxu0  ;;  %v2859_v43 = vpop.f32.mrb[61].mxu1 }
 0x1e5   : > { %v2179_v44 = vadd.f32 %v2133_v42, %v2070_v33  ;;  %v2135_v45 = vpop.f32.mrb[62].mxu0  ;;  %v2175_v46 = vpop.f32.mrb[62].mxu1 }
 0x1e6   : > { %v2136_v47 = vpop.f32.mrb[63].mxu0  ;;  %v2860_v48 = vpop.f32.mrb[63].mxu1 }
 0x1eb   : > { %v2240_v49 = vpop.f32.mrb[64].mxu0  ;;  %v2281_v50 = vpop.f32.mrb[64].mxu1 }
 0x1ec   : > { %v2287_v51 = vadd.f32 %v2240_v49, %v2178_v40  ;;  %v2289_v14 = vadd.f32 %v2281_v50, %v2180_v41  ;;  %v2242_v52 = vpop.f32.mrb[65].mxu0  ;;  %v2865_v13 = vpop.f32.mrb[65].mxu1 }
 0x1ed   : > { %v2288_v53 = vadd.f32 %v2242_v52, %v2179_v44  ;;  %v2244_v54 = vpop.f32.mrb[66].mxu0  ;;  %v2284_v55 = vpop.f32.mrb[66].mxu1 }
 0x1ee   : > { %v2245_v56 = vpop.f32.mrb[67].mxu0  ;;  %v2866_v57 = vpop.f32.mrb[67].mxu1 }
 0x1f3   : > { %v2349_v60 = vpop.f32.mrb[68].mxu0  ;;  %v2390_v61 = vpop.f32.mrb[68].mxu1 }
 0x1f4   : > { %v2396_v62 = vadd.f32 %v2349_v60, %v2287_v51  ;;  %v2398_v63 = vadd.f32 %v2390_v61, %v2289_v14  ;;  %v2351_v0 = vpop.f32.mrb[69].mxu0  ;;  %v2871_v1 = vpop.f32.mrb[69].mxu1 }
 0x1f5   : > { %v2397_v2 = vadd.f32 %v2351_v0, %v2288_v53  ;;  %v2353_v3 = vpop.f32.mrb[70].mxu0  ;;  %v2393_v6 = vpop.f32.mrb[70].mxu1 }
 0x1f6   : > { %v2405_v7 = vadd.f32 %v2403_v58, %v2396_v62  ;;  %v2407_v8 = vadd.f32 %v2403_v58, %v2398_v63  ;;  %v2354_v9 = vpop.f32.mrb[71].mxu0  ;;  %v2872_v10 = vpop.f32.mrb[71].mxu1 }
 0x1f7   : > { %v2406_v11 = vadd.f32 %v2403_v58, %v2397_v2 }
 0x1f8   : > { %vm2408_vm11 = vcmp.gt.f32.partialorder %v2405_v7, 0.0  ;;  %vm2410_vm12 = vcmp.gt.f32.partialorder %v2407_v8, 0.0  ;;  %v2411_v5 = vmul.f32 0.01, %v2405_v7  ;;  %v2413_v12 = vmul.f32 0.01, %v2407_v8 }
 0x1f9   : > { %vm2409_vm13 = vcmp.gt.f32.partialorder %v2406_v11, 0.0  ;;  %v2412_v15 = vmul.f32 0.01, %v2406_v11 }
 0x1fa   : > { %v2414_v4 = vsel %vm2408_vm11, %v2405_v7, %v2411_v5  ;;  %v2416_v16 = vsel %vm2410_vm12, %v2407_v8, %v2413_v12 }
 0x1fb   : > { %v2415_v18 = vsel %vm2409_vm13, %v2406_v11, %v2412_v15  ;;  %v2421_v19 = vmul.f32 %v2419_v59, %v2414_v4  ;;  %v2423_v20 = vmul.f32 %v2419_v59, %v2416_v16 }
 0x1fc   : > { %v2422_v21 = vmul.f32 %v2419_v59, %v2415_v18 }
 0x1fd   : > { %v2428_v22 = vadd.f32 %v2426_v17, %v2421_v19  ;;  %v2430_v23 = vadd.f32 %v2426_v17, %v2423_v20 }
 0x1fe   : > { %v2429_v24 = vadd.f32 %v2426_v17, %v2422_v21 }
 0x1ff   : > { %v2728_v25 = vpack.c.bf16 %v2430_v23, %v2430_v23 }
 0x200   : > { %v2727_v26 = vpack.c.bf16 %v2429_v24, %v2428_v22 }
 0x201   : > { %2445 = vst [vmem:[%s3024_s29 + $0x8] sm:$0xf] %v2728_v25 }
 0x202   : > { %2444 = vst [vmem:[%s3024_s29] sm:$0xff] %v2727_v26 }
 0x203 PF: > { %s15_s20 = sadd.s32 1, %s2953_s20   ;;  %s3441_s18 = smov %s2949_s19 }
 0x204   : > { %p12_p5 = scmp.ge.s32.totalorder %s15_s20, 4   ;;  %s3442_s19 = smov %s3444_s21 }
 0x206   :  { %14 = sbr.rel (!%p12_p5) target bundleno = 2 (0x2), region = 270 }
 0x20d   :  { %2476 = vsyncmov [#allocation4] }
 0x210   :  { %s2477_s14 = vpop.sfrf %2476 }
 0x211   :  { %p2717_p6 = scmp.ne.s32.totalorder %s2477_s14, 0 }
 0x213   :  { %2481 = shalt.err (%p2717_p6)  }
 0x214   :  { %2483 = vsyncmov [#allocation4 + $0x1] }
 0x217   :  { %s2484_s15 = vpop.sfrf %2483 }
 0x218   :  { %p2718_p7 = scmp.ne.s32.totalorder %s2484_s15, 0 }
 0x21a   :  { %2488 = shalt.err (%p2718_p7)  }
 0x21b   :  { %2490 = vsyncmov [#allocation4 + $0x2] }
 0x21e   :  { %s2491_s29 = vpop.sfrf %2490 }
 0x21f   :  { %p2719_p8 = scmp.ne.s32.totalorder %s2491_s29, 0 }
 0x221   :  { %2495 = shalt.err (%p2719_p8)  }
 0x222   :  { %2497 = vsyncmov [#allocation4 + $0x3] }
 0x225   :  { %s2498_s16 = vpop.sfrf %2497 }
 0x226   :  { %p2720_p9 = scmp.ne.s32.totalorder %s2498_s16, 0 }
 0x228   :  { %2502 = shalt.err (%p2720_p9)  }

// kernel: feature_aggregation_forward.29
= control target key start
LH: loop header
LB: loop body
LE: loop exit
PB: predicated region body
PF: predicated region fallthrough
CT: control target
= control target key end

     0   :  { %s1733_s12 = smov 0   ;;  %s1735_s13 = smov 0   ;;  %s1911_s0 = inlined_call_operand.vmem [shape: bf16[2,8,512], index: 0, kind: input, shape index: {}]   ;;  %s1912_s1 = inlined_call_operand.vmem [shape: bf16[9,8,8], index: 1, kind: input, shape index: {}]   ;;  %s1913_s2 = inlined_call_operand.vmem [shape: f32[8,4], index: 2, kind: input, shape index: {}]   ;;  %s1914_s3 = inlined_call_operand.vmem [shape: bf16[2,8,384], index: 3, kind: output, shape index: {}]  }
   0x1   :  { %s1737_s14 = smov 0  }
   0x2 LB: > { %s25_s15 = sadd.s32 1, %s1695_s13  ;;  %p1432_p0 = scmp.ge.s32.totalorder %s1699_s14, 1  ;;  %s1699_s14 = sphi %s1737_s14, %s13_s14   ;;  %s1695_s13 = sphi %s1735_s13, %s1916_s13   ;;  %s1691_s12 = sphi %s1733_s12, %s1915_s12  }
   0x3   : > { %p27_p1 = scmp.ge.s32.totalorder %s25_s15, 2  ;;  %p117_p2 = scmp.lt.s32.totalorder %s1699_s14, 3 }
   0x5   : > { %s1918_s15 = smov (%p27_p1, %s25_s15), 0  ;;  %p118_p3 = pnand %p1432_p0, %p117_p2 }
   0x6   : > { %p139_p4 = scmp.lt.s32.totalorder (!%p118_p3), %s1691_s12, 1  ;;  %s1489_s16 = sshll.u32 (!%p118_p3), %s1691_s12, 4 }
   0x7   : > { %121 = sbr.rel (%p118_p3) target bundleno = 467 (0x1d3), region = 28  ;;  %s160_s19 = scalar_lea.vmem (!%p118_p3), %s1911_s0, %s1489_s16 }
   0x8   : > { %v197_v0 = vld [vmem:[%s160_s19] sm:$0xff] (!%p118_p3)  ;;  %v199_v1 = vld [vmem:[%s160_s19 + $0x8] sm:$0xff] (!%p118_p3) }
   0x9   : > { %198 = vst [vmem:[#allocation2] sm:$0xff] (!%p118_p3), %v197_v0  ;;  %200 = vst [vmem:[#allocation2 + $0x8] sm:$0xff] (!%p118_p3), %v199_v1 }
   0xe   : > { %s1920_s12 = smov (!%p139_p4, %s1691_s12), 1 }
   0xf   : > { %s1630_s20 = smul.u32 12, %s1920_s12 }
  0x11   : > { %s1757_s23 = scalar_lea.vmem %s1914_s3, %s1630_s20 }
  0x12   : > { %208 = vsyncadd [#allocation3], 256 }
  0x13   : > { %1687 = dma.done.wait [#allocation3], 256 }
  0x14   : > { %1688 = vsyncadd [#allocation3], 4294967040  ;;  %v1701_v2 = vmov 0.0   ;;  %v1702_v3 = vmov 0   ;;  %vm1703_vm0 = vmmov 0   ;;  %v283_v4 = vld [vmem:[#allocation2 + $0x8] sm:$0xff] }
  0x15   : > { %1512 = vmatprep.subr.bf16.mxu1 %v1701_v2  ;;  %354 = vmatprep.mubr.bf16.mxu0 %v1702_v3  ;;  %v282_v5 = vld [vmem:[#allocation2] sm:$0xff]  ;;  %v1444_v6 = vcombine.low %v283_v4, %v283_v4  ;;  %s1704_s24 = smov 126   ;;  %v1445_v8 = vcombine.high %v283_v4, %v283_v4  ;;  %s1705_s25 = smov 124   ;;  %v1712_v11 = vmov 1   ;;  %vm304_vm1 = vcmask 1031168  }
  0x16   : > { %1514 = vmatprep.mubr.msk.bf16.mxu1 %vm1703_vm0, %v1701_v2  ;;  %1667 = vset.pattern.permute.xlu0 %v1702_v3  ;;  %v1764_v7 = vcombine.low %v282_v5, %v282_v5  ;;  %v1443_v9 = vcombine.high %v282_v5, %v282_v5  ;;  %s1706_s26 = smov 88   ;;  %s1707_s27 = smov 86   ;;  %v1274_v10 = vld [vmem:[%s1913_s2] sm:$0xff]  ;;  %vm312_vm2 = vcmask 1043456   ;;  %v1674_v16 = vld [vmem:[#allocation2 + $0x8] ss:$0 sps:$4 sm:$0xff]  }
  0x17   : > { %300 = vrot.lane.b32.xlu1 %v1444_v6, %s1704_s24  ;;  %s1708_s28 = smov 84   ;;  %s1709_s29 = smov 48   ;;  %v1441_v22 = vld [vmem:[%s1912_s1 + $0x4] sm:$0xf]  ;;  %vm308_vm3 = vcmask 64512   ;;  %v421_v24 = vsel %vm312_vm2, %v1674_v16, 0 }
  0x18   : > { %296 = vrot.lane.b32.xlu0 %v1764_v7, %s1704_s24  ;;  %s1710_s30 = smov 46   ;;  %s1711_s4 = smov 44   ;;  %1668 = vset.pattern.permute.xlu1 %v1712_v11  ;;  %v415_v23 = vsel %vm312_vm2, %v1764_v7, 0  ;;  %vm514_vm4 = vcmask 1014784   ;;  %vm624_vm5 = vcmask 719872   ;;  %vm734_vm6 = vcmask 703488  }
  0x19   : > { %v281_v34 = vld [vmem:[%s1912_s1] sm:$0xf]  ;;  %v1455_v45 = vld [vmem:[%s1912_s1 + $0x8] sm:$0xf]  ;;  %vm844_vm7 = vcmask 687104   ;;  %vm954_vm8 = vcmask 392192  }
  0x1a   : > { %v1459_v55 = vld [vmem:[%s1912_s1 + $0xc] sm:$0xf]  ;;  %v1463_v1 = vld [vmem:[%s1912_s1 + $0x10] sm:$0xf]  ;;  %vm1064_vm9 = vcmask 375808   ;;  %vm1174_vm10 = vcmask 359424  }
  0x1b   : > { %302 = vrot.lane.b32.xlu1 %v1445_v8, %s1704_s24 }
  0x1c   : > { %298 = vrot.lane.b32.xlu0 %v1443_v9, %s1704_s24 }
  0x1f   : > { %508 = vrot.lane.b32.xlu1 %v1443_v9, %s1705_s25 }
  0x20   : > { %506 = vrot.lane.b32.xlu0 %v1764_v7, %s1705_s25 }
  0x23   : > { %512 = vrot.lane.b32.xlu1 %v1445_v8, %s1705_s25 }
  0x24   : > { %510 = vrot.lane.b32.xlu0 %v1444_v6, %s1705_s25 }
  0x27   : > { %618 = vrot.lane.b32.xlu1 %v1443_v9, %s1706_s26 }
  0x28   : > { %616 = vrot.lane.b32.xlu0 %v1764_v7, %s1706_s26 }
  0x2b   : > { %622 = vrot.lane.b32.xlu1 %v1445_v8, %s1706_s26 }
  0x2c   : > { %620 = vrot.lane.b32.xlu0 %v1444_v6, %s1706_s26 }
  0x2f   : > { %728 = vrot.lane.b32.xlu1 %v1443_v9, %s1707_s27 }
  0x30   : > { %726 = vrot.lane.b32.xlu0 %v1764_v7, %s1707_s27 }
  0x33   : > { %732 = vrot.lane.b32.xlu1 %v1445_v8, %s1707_s27 }
  0x34   : > { %730 = vrot.lane.b32.xlu0 %v1444_v6, %s1707_s27 }
  0x37   : > { %838 = vrot.lane.b32.xlu1 %v1443_v9, %s1708_s28 }
  0x38   : > { %836 = vrot.lane.b32.xlu0 %v1764_v7, %s1708_s28 }
  0x3b   : > { %842 = vrot.lane.b32.xlu1 %v1445_v8, %s1708_s28 }
  0x3c   : > { %840 = vrot.lane.b32.xlu0 %v1444_v6, %s1708_s28 }
  0x3f   : > { %948 = vrot.lane.b32.xlu1 %v1443_v9, %s1709_s29 }
  0x40   : > { %946 = vrot.lane.b32.xlu0 %v1764_v7, %s1709_s29 }
  0x43   : > { %952 = vrot.lane.b32.xlu1 %v1445_v8, %s1709_s29 }
  0x44   : > { %950 = vrot.lane.b32.xlu0 %v1444_v6, %s1709_s29 }
  0x47   : > { %1058 = vrot.lane.b32.xlu1 %v1443_v9, %s1710_s30 }
  0x48   : > { %1056 = vrot.lane.b32.xlu0 %v1764_v7, %s1710_s30 }
  0x4b   : > { %1062 = vrot.lane.b32.xlu1 %v1445_v8, %s1710_s30 }
  0x4c   : > { %1060 = vrot.lane.b32.xlu0 %v1444_v6, %s1710_s30 }
  0x4f   : > { %1168 = vrot.lane.b32.xlu1 %v1443_v9, %s1711_s4 }
  0x50   : > { %1166 = vrot.lane.b32.xlu0 %v1764_v7, %s1711_s4 }
  0x53   : > { %1172 = vrot.lane.b32.xlu1 %v1445_v8, %s1711_s4 }
  0x54   : > { %1170 = vrot.lane.b32.xlu0 %v1444_v6, %s1711_s4 }
  0x57   : > { %1284 = vperm.xlu1 %1668, %v1274_v10  }
  0x58   : > { %1277 = vperm.xlu0 %1667, %v1274_v10  }
  0x5c   : > { %1669 = vset.pattern.permute.xlu0 %v1712_v11 }
  0x89   : > { %v301_v12 = vpop.permute.xlu1 %300 }
  0x8a   : > { %v297_v13 = vpop.permute.xlu0 %296 }
  0x8d   : > { %v303_v14 = vpop.permute.xlu1 %302 }
  0x8e   : > { %v299_v15 = vpop.permute.xlu0 %298  ;;  %v307_v19 = vsel %vm304_vm1, %v301_v12, %v303_v14 }
  0x8f   : > { %v306_v17 = vsel %vm304_vm1, %v299_v15, %v301_v12  ;;  %v305_v18 = vsel %vm304_vm1, %v297_v13, %v299_v15  ;;  %v320_v21 = vsel %vm312_vm2, %v307_v19, 0  ;;  %v1467_v13 = vld [vmem:[%s1912_s1 + $0x14] sm:$0xf] }
  0x90   : > { %1446 = vmatprep.subr.msk.bf16.mxu0 %vm312_vm2, %v306_v17  ;;  %v314_v20 = vsel %vm312_vm2, %v305_v18, 0  ;;  %1513 = vmatpush3.bf16.msra.mxu1 %v320_v21 }
  0x91   : > { %323 = vmatpush1.bf16.msra.mxu0 %v314_v20  ;;  %1518 = vmatprep.subr.bf16.mxu1 %v1701_v2  ;;  %v509_v26 = vpop.permute.xlu1 %508 }
  0x92   : > { %1452 = vmatprep.subr.msk.bf16.mxu0 %vm312_vm2, %v1443_v9  ;;  %v507_v25 = vpop.permute.xlu0 %506 }
  0x93   : > { %1515 = vmatmul.mubr.msk.bf16.vlgmr.msra.gmra.mrb[0].mxu1 %vm308_vm3, %v1441_v22  ;;  %v515_v31 = vsel %vm514_vm4, %v507_v25, %v509_v26 }
  0x94   : > { %1447 = vmatmul.mubr.msk.bf16.vlgmr.msra.gmra.mrb[0].mxu0 %vm308_vm3, %v1441_v22  ;;  %1519 = vmatpush3.bf16.msra.mxu1 %v421_v24  ;;  %v522_v35 = vsel %vm312_vm2, %v515_v31, 0 }
  0x95   : > { %424 = vmatpush1.bf16.msra.mxu0 %v415_v23  ;;  %455 = vmatprep.mubr.bf16.mxu0 %v1702_v3  ;;  %v513_v29 = vpop.permute.xlu1 %512  ;;  %v1471_v23 = vld [vmem:[%s1912_s1 + $0x18] sm:$0xf] }
  0x96   : > { %v511_v27 = vpop.permute.xlu0 %510  ;;  %1520 = vmatprep.mubr.msk.bf16.mxu1 %vm1703_vm0, %v1701_v2  ;;  %1524 = vmatprep.subr.bf16.mxu1 %v1701_v2 }
  0x97   : > { %v516_v28 = vsel %vm514_vm4, %v509_v26, %v511_v27  ;;  %v517_v32 = vsel %vm514_vm4, %v511_v27, %v513_v29 }
  0x98   : > { %1456 = vmatprep.subr.msk.bf16.mxu0 %vm312_vm2, %v516_v28  ;;  %v528_v36 = vsel %vm312_vm2, %v517_v32, 0 }
  0x99   : > { %v619_v33 = vpop.permute.xlu1 %618 }
  0x9a   : > { %v617_v30 = vpop.permute.xlu0 %616 }
  0x9b   : > { %v625_v41 = vsel %vm624_vm5, %v617_v30, %v619_v33  ;;  %v1475_v30 = vld [vmem:[%s1912_s1 + $0x1c] sm:$0xf] }
  0x9c   : > { %v632_v46 = vsel %vm312_vm2, %v625_v41, 0 }
  0x9d   : > { %v623_v40 = vpop.permute.xlu1 %622 }
  0x9e   : > { %v621_v37 = vpop.permute.xlu0 %620 }
  0x9f   : > { %v626_v38 = vsel %vm624_vm5, %v619_v33, %v621_v37  ;;  %1521 = vmatmul.mubr.msk.bf16.vlgmr.msra.gmra.mrb[0].mxu1 %vm308_vm3, %v281_v34  ;;  %v627_v42 = vsel %vm624_vm5, %v621_v37, %v623_v40  ;;  %v1479_v33 = vld [vmem:[%s1912_s1 + $0x20] sm:$0xf] }
  0xa0   : > { %1453 = vmatmul.mubr.msk.bf16.vlgmr.msra.gmra.mrb[0].mxu0 %vm308_vm3, %v281_v34  ;;  %1525 = vmatpush3.bf16.msra.mxu1 %v528_v36  ;;  %v638_v47 = vsel %vm312_vm2, %v627_v42, 0 }
  0xa1   : > { %531 = vmatpush1.bf16.msra.mxu0 %v522_v35  ;;  %562 = vmatprep.mubr.bf16.mxu0 %v1702_v3  ;;  %v729_v43 = vpop.permute.xlu1 %728 }
  0xa2   : > { %1460 = vmatprep.subr.msk.bf16.mxu0 %vm312_vm2, %v626_v38  ;;  %v727_v39 = vpop.permute.xlu0 %726  ;;  %1526 = vmatprep.mubr.msk.bf16.mxu1 %vm1703_vm0, %v1701_v2 }
  0xa3   : > { %1530 = vmatprep.subr.bf16.mxu1 %v1701_v2  ;;  %v735_v51 = vsel %vm734_vm6, %v727_v39, %v729_v43 }
  0xa4   : > { %v742_v56 = vsel %vm312_vm2, %v735_v51, 0 }
  0xa5   : > { %v733_v50 = vpop.permute.xlu1 %732 }
  0xa6   : > { %v731_v44 = vpop.permute.xlu0 %730 }
  0xa7   : > { %v736_v48 = vsel %vm734_vm6, %v729_v43, %v731_v44  ;;  %v737_v52 = vsel %vm734_vm6, %v731_v44, %v733_v50 }
  0xa8   : > { %v748_v57 = vsel %vm312_vm2, %v737_v52, 0 }
  0xa9   : > { %v839_v53 = vpop.permute.xlu1 %838 }
  0xaa   : > { %v837_v49 = vpop.permute.xlu0 %836 }
  0xab   : > { %1527 = vmatmul.mubr.msk.bf16.vlgmr.msra.gmra.mrb[0].mxu1 %vm308_vm3, %v1455_v45  ;;  %v845_v61 = vsel %vm844_vm7, %v837_v49, %v839_v53 }
  0xac   : > { %1457 = vmatmul.mubr.msk.bf16.vlgmr.msra.gmra.mrb[0].mxu0 %vm308_vm3, %v1455_v45  ;;  %1531 = vmatpush3.bf16.msra.mxu1 %v638_v47  ;;  %v852_v4 = vsel %vm312_vm2, %v845_v61, 0 }
  0xad   : > { %641 = vmatpush1.bf16.msra.mxu0 %v632_v46  ;;  %672 = vmatprep.mubr.bf16.mxu0 %v1702_v3  ;;  %v843_v60 = vpop.permute.xlu1 %842 }
  0xae   : > { %1464 = vmatprep.subr.msk.bf16.mxu0 %vm312_vm2, %v736_v48  ;;  %1532 = vmatprep.mubr.msk.bf16.mxu1 %vm1703_vm0, %v1701_v2  ;;  %v841_v54 = vpop.permute.xlu0 %840 }
  0xaf   : > { %1536 = vmatprep.subr.bf16.mxu1 %v1701_v2  ;;  %v846_v58 = vsel %vm844_vm7, %v839_v53, %v841_v54  ;;  %v847_v62 = vsel %vm844_vm7, %v841_v54, %v843_v60 }
  0xb0   : > { %v858_v5 = vsel %vm312_vm2, %v847_v62, 0 }
  0xb1   : > { %v949_v63 = vpop.permute.xlu1 %948 }
  0xb2   : > { %v947_v59 = vpop.permute.xlu0 %946 }
  0xb3   : > { %v955_v9 = vsel %vm954_vm8, %v947_v59, %v949_v63 }
  0xb4   : > { %v962_v14 = vsel %vm312_vm2, %v955_v9, 0 }
  0xb5   : > { %v953_v8 = vpop.permute.xlu1 %952 }
  0xb6   : > { %v951_v0 = vpop.permute.xlu0 %950 }
  0xb7   : > { %1533 = vmatmul.mubr.msk.bf16.vlgmr.msra.gmra.mrb[0].mxu1 %vm308_vm3, %v1459_v55  ;;  %v956_v6 = vsel %vm954_vm8, %v949_v63, %v951_v0  ;;  %v957_v10 = vsel %vm954_vm8, %v951_v0, %v953_v8 }
  0xb8   : > { %1461 = vmatmul.mubr.msk.bf16.vlgmr.msra.gmra.mrb[0].mxu0 %vm308_vm3, %v1459_v55  ;;  %1537 = vmatpush3.bf16.msra.mxu1 %v748_v57  ;;  %v968_v15 = vsel %vm312_vm2, %v957_v10, 0 }
  0xb9   : > { %751 = vmatpush1.bf16.msra.mxu0 %v742_v56  ;;  %782 = vmatprep.mubr.bf16.mxu0 %v1702_v3  ;;  %v1059_v11 = vpop.permute.xlu1 %1058 }
  0xba   : > { %1468 = vmatprep.subr.msk.bf16.mxu0 %vm312_vm2, %v846_v58  ;;  %1538 = vmatprep.mubr.msk.bf16.mxu1 %vm1703_vm0, %v1701_v2  ;;  %v1057_v7 = vpop.permute.xlu0 %1056 }
  0xbb   : > { %1542 = vmatprep.subr.bf16.mxu1 %v1701_v2  ;;  %v1065_v19 = vsel %vm1064_vm9, %v1057_v7, %v1059_v11 }
  0xbc   : > { %v1072_v24 = vsel %vm312_vm2, %v1065_v19, 0 }
  0xbd   : > { %v1063_v18 = vpop.permute.xlu1 %1062 }
  0xbe   : > { %v1061_v12 = vpop.permute.xlu0 %1060 }
  0xbf   : > { %v1066_v16 = vsel %vm1064_vm9, %v1059_v11, %v1061_v12  ;;  %v1067_v20 = vsel %vm1064_vm9, %v1061_v12, %v1063_v18 }
  0xc0   : > { %v1078_v25 = vsel %vm312_vm2, %v1067_v20, 0 }
  0xc1   : > { %v1169_v21 = vpop.permute.xlu1 %1168 }
  0xc2   : > { %v1167_v17 = vpop.permute.xlu0 %1166 }
  0xc3   : > { %1539 = vmatmul.mubr.msk.bf16.vlgmr.msra.gmra.mrb[0].mxu1 %vm308_vm3, %v1463_v1  ;;  %v1175_v28 = vsel %vm1174_vm10, %v1167_v17, %v1169_v21 }
  0xc4   : > { %1465 = vmatmul.mubr.msk.bf16.vlgmr.msra.gmra.mrb[0].mxu0 %vm308_vm3, %v1463_v1  ;;  %1543 = vmatpush3.bf16.msra.mxu1 %v858_v5  ;;  %v1182_v31 = vsel %vm312_vm2, %v1175_v28, 0 }
  0xc5   : > { %861 = vmatpush1.bf16.msra.mxu0 %v852_v4  ;;  %892 = vmatprep.mubr.bf16.mxu0 %v1702_v3  ;;  %v1173_v27 = vpop.permute.xlu1 %1172 }
  0xc6   : > { %1472 = vmatprep.subr.msk.bf16.mxu0 %vm312_vm2, %v956_v6  ;;  %1544 = vmatprep.mubr.msk.bf16.mxu1 %vm1703_vm0, %v1701_v2  ;;  %v1171_v22 = vpop.permute.xlu0 %1170 }
  0xc7   : > { %1548 = vmatprep.subr.bf16.mxu1 %v1701_v2  ;;  %v1176_v26 = vsel %vm1174_vm10, %v1169_v21, %v1171_v22  ;;  %v1177_v29 = vsel %vm1174_vm10, %v1171_v22, %v1173_v27 }
  0xc8   : > { %v1188_v32 = vsel %vm312_vm2, %v1177_v29, 0 }
  0xcf   : > { %1545 = vmatmul.mubr.msk.bf16.vlgmr.msra.gmra.mrb[0].mxu1 %vm308_vm3, %v1467_v13 }
  0xd0   : > { %1469 = vmatmul.mubr.msk.bf16.vlgmr.msra.gmra.mrb[0].mxu0 %vm308_vm3, %v1467_v13  ;;  %1549 = vmatpush3.bf16.msra.mxu1 %v968_v15 }
  0xd1   : > { %971 = vmatpush1.bf16.msra.mxu0 %v962_v14  ;;  %1002 = vmatprep.mubr.bf16.mxu0 %v1702_v3 }
  0xd2   : > { %1476 = vmatprep.subr.msk.bf16.mxu0 %vm312_vm2, %v1066_v16  ;;  %1550 = vmatprep.mubr.msk.bf16.mxu1 %vm1703_vm0, %v1701_v2 }
  0xd3   : > { %1554 = vmatprep.subr.bf16.mxu1 %v1701_v2 }
  0xd6   : > { %v1285_v35 = vpop.permute.xlu1 %1284 }
  0xd7   : > { %v1278_v34 = vpop.permute.xlu0 %1277 }
  0xdb   : > { %1551 = vmatmul.mubr.msk.bf16.vlgmr.msra.gmra.mrb[0].mxu1 %vm308_vm3, %v1471_v23 }
  0xdc   : > { %1473 = vmatmul.mubr.msk.bf16.vlgmr.msra.gmra.mrb[0].mxu0 %vm308_vm3, %v1471_v23  ;;  %1555 = vmatpush3.bf16.msra.mxu1 %v1078_v25 }
  0xdd   : > { %1081 = vmatpush1.bf16.msra.mxu0 %v1072_v24  ;;  %1112 = vmatprep.mubr.bf16.mxu0 %v1702_v3 }
  0xde   : > { %1480 = vmatprep.subr.msk.bf16.mxu0 %vm312_vm2, %v1176_v26  ;;  %1556 = vmatprep.mubr.msk.bf16.mxu1 %vm1703_vm0, %v1701_v2 }
  0xdf   : > { %1560 = vmatprep.subr.bf16.mxu1 %v1701_v2 }
  0xe7   : > { %1557 = vmatmul.mubr.msk.bf16.vlgmr.msra.gmra.mrb[0].mxu1 %vm308_vm3, %v1475_v30 }
  0xe8   : > { %1477 = vmatmul.mubr.msk.bf16.vlgmr.msra.gmra.mrb[0].mxu0 %vm308_vm3, %v1475_v30  ;;  %1561 = vmatpush3.bf16.msra.mxu1 %v1188_v32 }
  0xe9   : > { %1191 = vmatpush1.bf16.msra.mxu0 %v1182_v31  ;;  %1222 = vmatprep.mubr.bf16.mxu0 %v1702_v3 }
  0xea   : > { %1562 = vmatprep.mubr.msk.bf16.mxu1 %vm1703_vm0, %v1701_v2 }
  0xf3   : > { %1563 = vmatmul.mubr.msk.bf16.vlgmr.msra.gmra.mrb[0].mxu1 %vm308_vm3, %v1479_v33 }
  0xf4   : > { %1481 = vmatmul.mubr.msk.bf16.vlgmr.msra.gmra.mrb[0].mxu0 %vm308_vm3, %v1479_v33 }
 0x1c6   : > { %v1265_v37 = vpop.f32.mrb[0].mxu1 }
 0x1c7   : > { %v1224_v36 = vpop.f32.mrb[0].mxu0  ;;  %v1282_v39 = vmul.f32 %v1278_v34, %v1265_v37  ;;  %v1564_v41 = vpop.f32.mrb[1].mxu1 }
 0x1c8   : > { %v1280_v38 = vmul.f32 %v1278_v34, %v1224_v36  ;;  %v1226_v40 = vpop.f32.mrb[1].mxu0  ;;  %v1268_v43 = vpop.f32.mrb[2].mxu1 }
 0x1c9   : > { %v1281_v3 = vmul.f32 %v1278_v34, %v1226_v40  ;;  %v1228_v42 = vpop.f32.mrb[2].mxu0  ;;  %v1289_v44 = vadd.f32 %v1285_v35, %v1282_v39  ;;  %v1565_v46 = vpop.f32.mrb[3].mxu1 }
 0x1ca   : > { %v1287_v2 = vadd.f32 %v1285_v35, %v1280_v38  ;;  %v1229_v45 = vpop.f32.mrb[3].mxu0 }
 0x1cb   : > { %v1288_v47 = vadd.f32 %v1285_v35, %v1281_v3  ;;  %vm1292_vm12 = vcmp.gt.f32.partialorder %v1289_v44, 0.0  ;;  %v1295_v49 = vmul.f32 0.01, %v1289_v44 }
 0x1cc   : > { %vm1290_vm11 = vcmp.gt.f32.partialorder %v1287_v2, 0.0  ;;  %v1293_v48 = vmul.f32 0.01, %v1287_v2 }
 0x1cd   : > { %vm1291_vm13 = vcmp.gt.f32.partialorder %v1288_v47, 0.0  ;;  %v1294_v50 = vmul.f32 0.01, %v1288_v47  ;;  %v1298_v52 = vsel %vm1292_vm12, %v1289_v44, %v1295_v49 }
 0x1ce   : > { %v1296_v51 = vsel %vm1290_vm11, %v1287_v2, %v1293_v48  ;;  %v1493_v54 = vpack.c.bf16 %v1298_v52, %v1298_v52 }
 0x1cf   : > { %v1297_v53 = vsel %vm1291_vm13, %v1288_v47, %v1294_v50 }
 0x1d0   : > { %v1492_v55 = vpack.c.bf16 %v1297_v53, %v1296_v51  ;;  %1313 = vst [vmem:[%s1757_s23 + $0x8] sm:$0xf] %v1493_v54 }
 0x1d2   : > { %1312 = vst [vmem:[%s1757_s23] sm:$0xff] %v1492_v55 }
 0x1d3 PF: > { %s13_s14 = sadd.s32 1, %s1699_s14   ;;  %s1915_s12 = smov %s1695_s13 }
 0x1d4   : > { %p10_p5 = scmp.ge.s32.totalorder %s13_s14, 4   ;;  %s1916_s13 = smov %s1918_s15 }
 0x1d6   :  { %12 = sbr.rel (!%p10_p5) target bundleno = 2 (0x2), region = 164 }
 0x1dd   :  { %1344 = vsyncmov [#allocation3] }
 0x1e0   :  { %s1345_s29 = vpop.sfrf %1344 }
 0x1e1   :  { %p1487_p6 = scmp.ne.s32.totalorder %s1345_s29, 0 }
 0x1e3   :  { %1349 = shalt.err (%p1487_p6)  }
 0x1e4   :  { %1351 = vsyncmov [#allocation3 + $0x1] }
 0x1e7   :  { %s1352_s30 = vpop.sfrf %1351 }
 0x1e8   :  { %p1488_p7 = scmp.ne.s32.totalorder %s1352_s30, 0 }
 0x1ea   :  { %1356 = shalt.err (%p1488_p7)  }

// kernel: feature_aggregation_forward.30
= control target key start
LH: loop header
LB: loop body
LE: loop exit
PB: predicated region body
PF: predicated region fallthrough
CT: control target
= control target key end

     0   :  { %s847_s18 = smov 0   ;;  %s849_s19 = smov 0   ;;  %s895_s0 = inlined_call_operand.vmem [shape: bf16[2,8,256], index: 0, kind: input, shape index: {}]   ;;  %s896_s1 = inlined_call_operand.vmem [shape: bf16[2,8,256], index: 1, kind: input, shape index: {}]   ;;  %s897_s2 = inlined_call_operand.vmem [shape: bf16[1,8,8], index: 2, kind: input, shape index: {}]   ;;  %s898_s3 = inlined_call_operand.vmem [shape: bf16[1,8,8], index: 3, kind: input, shape index: {}]   ;;  %s899_s4 = inlined_call_operand.vmem [shape: f32[8,4], index: 4, kind: input, shape index: {}]   ;;  %s900_s5 = inlined_call_operand.vmem [shape: bf16[2,8,256], index: 5, kind: output, shape index: {}]  }
   0x1   :  { %s851_s20 = smov 0  }
   0x2 LB: > { %s27_s21 = sadd.s32 1, %s808_s19  ;;  %p718_p0 = scmp.ge.s32.totalorder %s812_s20, 1  ;;  %s812_s20 = sphi %s851_s20, %s15_s20   ;;  %s808_s19 = sphi %s849_s19, %s902_s19   ;;  %s804_s18 = sphi %s847_s18, %s901_s18  }
   0x3   : > { %p29_p1 = scmp.ge.s32.totalorder %s27_s21, 2  ;;  %p143_p2 = scmp.lt.s32.totalorder %s812_s20, 3 }
   0x5   : > { %s904_s21 = smov (%p29_p1, %s27_s21), 0  ;;  %p144_p3 = pnand %p718_p0, %p143_p2 }
   0x6   : > { %p167_p4 = scmp.lt.s32.totalorder (!%p144_p3), %s804_s18, 1  ;;  %s748_s22 = sshll.u32 (!%p144_p3), %s804_s18, 3 }
   0x7   : > { %147 = sbr.rel (%p144_p3) target bundleno = 255 (0xff), region = 32  ;;  %s188_s25 = scalar_lea.vmem (!%p144_p3), %s895_s0, %s748_s22 }
   0x8   : > { %v225_v0 = vld [vmem:[%s188_s25] sm:$0xff] (!%p144_p3) }
   0xe   : > { %s906_s18 = smov (!%p167_p4, %s804_s18), 1 }
   0xf   : > { %s747_s26 = sshll.u32 %s906_s18, 3 }
  0x10   : > { %s871_s29 = scalar_lea.vmem %s900_s5, %s747_s26 }
  0x11   : > { %234 = vsyncadd [#allocation4], 128  ;;  %s236_s7 = scalar_lea.vmem %s896_s1, %s748_s22  ;;  %s814_s8 = smov [#allocation4]  }
  0x12   : > { %s629_s9 = scalar_lea.sflag %s814_s8, 2  ;;  %v273_v1 = vld [vmem:[%s236_s7] sm:$0xff] }
  0x13   : > { %282 = vsyncadd %s629_s9, 128 }
  0x14   : > { %798 = dma.done.wait [#allocation4], 128 }
  0x15   : > { %799 = vsyncadd [#allocation4], 4294967168 }
  0x16   : > { %800 = dma.done.wait %s629_s9, 128 }
  0x17   : > { %801 = vsyncadd %s629_s9, 4294967168  ;;  %v733_v2 = vcombine.high %v273_v1, %v273_v1  ;;  %vm418_vm0 = vcmask 1043456   ;;  %v737_v3 = vcombine.high %v225_v0, %v225_v0  ;;  %v732_v4 = vcombine.low %v273_v1, %v273_v1  ;;  %v408_v9 = vld [vmem:[%s898_s3] sm:$0xf] }
  0x18   : > { %v736_v5 = vcombine.low %v225_v0, %v225_v0  ;;  %v815_v8 = vmov 0   ;;  %vm414_vm1 = vcmask 64512   ;;  %v406_v10 = vld [vmem:[%s897_s2] sm:$0xf]  ;;  %v816_v12 = vmov 1  }
  0x19   : > { %734 = vmatprep.subr.msk.bf16.mxu1 %vm418_vm0, %v733_v2  ;;  %738 = vmatprep.subr.msk.bf16.mxu0 %vm418_vm0, %v737_v3  ;;  %v420_v6 = vsel %vm418_vm0, %v732_v4, 0  ;;  %v521_v11 = vld [vmem:[%s899_s4] sm:$0xff] }
  0x1a   : > { %426 = vmatpush1.bf16.msra.mxu1 %v420_v6  ;;  %v475_v7 = vsel %vm418_vm0, %v736_v5, 0  ;;  %457 = vmatprep.mubr.bf16.mxu1 %v815_v8 }
  0x1b   : > { %481 = vmatpush1.bf16.msra.mxu0 %v475_v7  ;;  %512 = vmatprep.mubr.bf16.mxu0 %v815_v8 }
  0x1c   : > { %784 = vset.pattern.permute.xlu0 %v815_v8 }
  0x1d   : > { %735 = vmatmul.mubr.msk.bf16.vlgmr.msra.gmra.mrb[0].mxu1 %vm414_vm1, %v408_v9  ;;  %524 = vperm.xlu0 %784, %v521_v11  }
  0x1e   : > { %739 = vmatmul.mubr.msk.bf16.vlgmr.msra.gmra.mrb[0].mxu0 %vm414_vm1, %v406_v10 }
  0x21   : > { %785 = vset.pattern.permute.xlu0 %v816_v12 }
  0x22   : > { %530 = vperm.xlu0 %785, %v521_v11  }
  0x9c   : > { %v525_v13 = vpop.permute.xlu0 %524 }
  0xa1   : > { %v531_v14 = vpop.permute.xlu0 %530 }
  0xf0   : > { %v459_v15 = vpop.f32.mrb[0].mxu1 }
  0xf1   : > { %v514_v16 = vpop.f32.mrb[0].mxu0  ;;  %v461_v18 = vpop.f32.mrb[1].mxu1 }
  0xf2   : > { %v515_v17 = vadd.f32 %v514_v16, %v459_v15  ;;  %v516_v19 = vpop.f32.mrb[1].mxu0  ;;  %v463_v21 = vpop.f32.mrb[2].mxu1 }
  0xf3   : > { %v517_v20 = vadd.f32 %v516_v19, %v461_v18  ;;  %v518_v22 = vpop.f32.mrb[2].mxu0  ;;  %v464_v23 = vpop.f32.mrb[3].mxu1 }
  0xf4   : > { %v519_v24 = vpop.f32.mrb[3].mxu0  ;;  %v527_v25 = vmul.f32 %v525_v13, %v515_v17 }
  0xf5   : > { %v528_v26 = vmul.f32 %v525_v13, %v517_v20 }
  0xf6   : > { %v533_v27 = vadd.f32 %v531_v14, %v527_v25 }
  0xf7   : > { %v534_v28 = vadd.f32 %v531_v14, %v528_v26 }
  0xf8   : > { %vm535_vm2 = vcmp.gt.f32.partialorder %v533_v27, 0.0  ;;  %v537_v29 = vmul.f32 0.01, %v533_v27 }
  0xf9   : > { %vm536_vm3 = vcmp.gt.f32.partialorder %v534_v28, 0.0  ;;  %v538_v30 = vmul.f32 0.01, %v534_v28 }
  0xfa   : > { %v539_v31 = vsel %vm535_vm2, %v533_v27, %v537_v29 }
  0xfb   : > { %v540_v32 = vsel %vm536_vm3, %v534_v28, %v538_v30 }
  0xfc   : > { %v754_v33 = vpack.c.bf16 %v540_v32, %v539_v31 }
  0xfe   : > { %549 = vst [vmem:[%s871_s29] sm:$0xff] %v754_v33 }
  0xff PF: > { %s15_s20 = sadd.s32 1, %s812_s20   ;;  %s901_s18 = smov %s808_s19 }
 0x100   : > { %p12_p5 = scmp.ge.s32.totalorder %s15_s20, 4   ;;  %s902_s19 = smov %s904_s21 }
 0x102   :  { %14 = sbr.rel (!%p12_p5) target bundleno = 2 (0x2), region = 254 }
 0x109   :  { %580 = vsyncmov [#allocation4] }
 0x10c   :  { %s581_s16 = vpop.sfrf %580 }
 0x10d   :  { %p743_p6 = scmp.ne.s32.totalorder %s581_s16, 0 }
 0x10f   :  { %585 = shalt.err (%p743_p6)  }
 0x110   :  { %587 = vsyncmov [#allocation4 + $0x1] }
 0x113   :  { %s588_s17 = vpop.sfrf %587 }
 0x114   :  { %p744_p7 = scmp.ne.s32.totalorder %s588_s17, 0 }
 0x116   :  { %592 = shalt.err (%p744_p7)  }
 0x117   :  { %594 = vsyncmov [#allocation4 + $0x2] }
 0x11a   :  { %s595_s22 = vpop.sfrf %594 }
 0x11b   :  { %p745_p8 = scmp.ne.s32.totalorder %s595_s22, 0 }
 0x11d   :  { %599 = shalt.err (%p745_p8)  }
 0x11e   :  { %601 = vsyncmov [#allocation4 + $0x3] }
 0x121   :  { %s602_s23 = vpop.sfrf %601 }
 0x122   :  { %p746_p9 = scmp.ne.s32.totalorder %s602_s23, 0 }
 0x124   :  { %606 = shalt.err (%p746_p9)  }

// kernel: feature_aggregation_forward.31
= control target key start
LH: loop header
LB: loop body
LE: loop exit
PB: predicated region body
PF: predicated region fallthrough
CT: control target
= control target key end

     0   :  { %s556_s12 = smov 0   ;;  %s558_s13 = smov 0   ;;  %s595_s0 = inlined_call_operand.vmem [shape: bf16[2,8,256], index: 0, kind: input, shape index: {}]   ;;  %s596_s1 = inlined_call_operand.vmem [shape: bf16[1,8,8], index: 1, kind: input, shape index: {}]   ;;  %s597_s2 = inlined_call_operand.vmem [shape: f32[8,4], index: 2, kind: input, shape index: {}]   ;;  %s598_s3 = inlined_call_operand.vmem [shape: f32[2,8,256], index: 3, kind: output, shape index: {}]  }
   0x1   :  { %s560_s14 = smov 0  }
   0x2 LB: > { %s25_s15 = sadd.s32 1, %s528_s13  ;;  %p460_p0 = scmp.ge.s32.totalorder %s532_s14, 1  ;;  %s532_s14 = sphi %s560_s14, %s13_s14   ;;  %s528_s13 = sphi %s558_s13, %s600_s13   ;;  %s524_s12 = sphi %s556_s12, %s599_s12  }
   0x3   : > { %p27_p1 = scmp.ge.s32.totalorder %s25_s15, 2  ;;  %p117_p2 = scmp.lt.s32.totalorder %s532_s14, 3 }
   0x5   : > { %s602_s15 = smov (%p27_p1, %s25_s15), 0  ;;  %p118_p3 = pnand %p460_p0, %p117_p2 }
   0x6   : > { %p139_p4 = scmp.lt.s32.totalorder (!%p118_p3), %s524_s12, 1  ;;  %s478_s16 = sshll.u32 (!%p118_p3), %s524_s12, 3 }
   0x7   : > { %121 = sbr.rel (%p118_p3) target bundleno = 241 (0xf1), region = 28  ;;  %s160_s19 = scalar_lea.vmem (!%p118_p3), %s595_s0, %s478_s16 }
   0x8   : > { %v197_v0 = vld [vmem:[%s160_s19] sm:$0xff] (!%p118_p3) }
   0xe   : > { %s604_s12 = smov (!%p139_p4, %s524_s12), 1 }
   0xf   : > { %s477_s20 = sshll.u32 %s604_s12, 4 }
  0x10   : > { %s146_s23 = scalar_lea.vmem %s598_s3, %s477_s20 }
  0x11   : > { %206 = vsyncadd [#allocation3], 128 }
  0x12   : > { %520 = dma.done.wait [#allocation3], 128 }
  0x13   : > { %521 = vsyncadd [#allocation3], 4294967168  ;;  %v470_v1 = vcombine.high %v197_v0, %v197_v0  ;;  %vm292_vm0 = vcmask 1043456   ;;  %v469_v2 = vcombine.low %v197_v0, %v197_v0  ;;  %v534_v3 = vmov 0   ;;  %v276_v6 = vld [vmem:[%s596_s1] sm:$0xf] }
  0x14   : > { %331 = vmatprep.mubr.bf16.mxu0 %v534_v3  ;;  %v535_v5 = vmov 1   ;;  %vm288_vm1 = vcmask 64512   ;;  %v277_v7 = vld [vmem:[%s597_s2] sm:$0xff] }
  0x15   : > { %471 = vmatprep.subr.msk.bf16.mxu0 %vm292_vm0, %v470_v1  ;;  %v294_v4 = vsel %vm292_vm0, %v469_v2, 0  ;;  %507 = vset.pattern.permute.xlu0 %v535_v5 }
  0x16   : > { %300 = vmatpush1.bf16.msra.mxu0 %v294_v4  ;;  %280 = vperm.xlu0 %507, %v277_v7  }
  0x19   : > { %472 = vmatmul.mubr.msk.bf16.vlgmr.msra.gmra.mrb[0].mxu0 %vm288_vm1, %v276_v6 }
  0x95   : > { %v281_v8 = vpop.permute.xlu0 %280 }
  0xec   : > { %v333_v9 = vpop.f32.mrb[0].mxu0 }
  0xed   : > { %v334_v10 = vadd.f32 %v333_v9, %v281_v8  ;;  %v335_v11 = vpop.f32.mrb[1].mxu0 }
  0xee   : > { %v336_v12 = vadd.f32 %v335_v11, %v281_v8  ;;  %v337_v13 = vpop.f32.mrb[2].mxu0 }
  0xef   : > { %340 = vst [vmem:[%s146_s23] sm:$0xff] %v334_v10  ;;  %v338_v14 = vpop.f32.mrb[3].mxu0 }
  0xf0   : > { %341 = vst [vmem:[%s146_s23 + $0x8] sm:$0xff] %v336_v12 }
  0xf1 PF: > { %s13_s14 = sadd.s32 1, %s532_s14   ;;  %s599_s12 = smov %s528_s13 }
  0xf2   : > { %p10_p5 = scmp.ge.s32.totalorder %s13_s14, 4   ;;  %s600_s13 = smov %s602_s15 }
  0xf4   :  { %12 = sbr.rel (!%p10_p5) target bundleno = 2 (0x2), region = 156 }
  0xfb   :  { %372 = vsyncmov [#allocation3] }
  0xfe   :  { %s373_s28 = vpop.sfrf %372 }
  0xff   :  { %p475_p6 = scmp.ne.s32.totalorder %s373_s28, 0 }
 0x101   :  { %377 = shalt.err (%p475_p6)  }
 0x102   :  { %379 = vsyncmov [#allocation3 + $0x1] }
 0x105   :  { %s380_s29 = vpop.sfrf %379 }
 0x106   :  { %p476_p7 = scmp.ne.s32.totalorder %s380_s29, 0 }
 0x108   :  { %384 = shalt.err (%p476_p7)  }

// kernel: feature_aggregation_forward.28
= control target key start
LH: loop header
LB: loop body
LE: loop exit
PB: predicated region body
PF: predicated region fallthrough
CT: control target
= control target key end

     0   :  { %s3124_s18 = smov 0   ;;  %s3126_s19 = smov 0   ;;  %s3560_s0 = inlined_call_operand.vmem [shape: bf16[2,8,512], index: 0, kind: input, shape index: {}]   ;;  %s3561_s1 = inlined_call_operand.vmem [shape: bf16[2,8,512], index: 1, kind: input, shape index: {}]   ;;  %s3562_s2 = inlined_call_operand.vmem [shape: bf16[9,8,8], index: 2, kind: input, shape index: {}]   ;;  %s3563_s3 = inlined_call_operand.vmem [shape: bf16[9,8,8], index: 3, kind: input, shape index: {}]   ;;  %s3564_s4 = inlined_call_operand.vmem [shape: f32[8,4], index: 4, kind: input, shape index: {}]   ;;  %s3565_s5 = inlined_call_operand.vmem [shape: bf16[2,8,384], index: 5, kind: output, shape index: {}]  }
   0x1   :  { %s3128_s20 = smov 0  }
   0x2 LB: > { %s27_s21 = sadd.s32 1, %s3075_s19  ;;  %p2607_p0 = scmp.ge.s32.totalorder %s3079_s20, 1  ;;  %s3079_s20 = sphi %s3128_s20, %s15_s20   ;;  %s3075_s19 = sphi %s3126_s19, %s3567_s19   ;;  %s3071_s18 = sphi %s3124_s18, %s3566_s18  }
   0x3   : > { %p29_p1 = scmp.ge.s32.totalorder %s27_s21, 2  ;;  %p143_p2 = scmp.lt.s32.totalorder %s3079_s20, 3 }
   0x5   : > { %s3569_s21 = smov (%p29_p1, %s27_s21), 0  ;;  %p144_p3 = pnand %p2607_p0, %p143_p2 }
   0x6   : > { %p167_p4 = scmp.lt.s32.totalorder (!%p144_p3), %s3071_s18, 1  ;;  %s2714_s22 = sshll.u32 (!%p144_p3), %s3071_s18, 4 }
   0x7   : > { %147 = sbr.rel (%p144_p3) target bundleno = 579 (0x243), region = 32  ;;  %s188_s25 = scalar_lea.vmem (!%p144_p3), %s3560_s0, %s2714_s22 }
   0x8   : > { %v225_v0 = vld [vmem:[%s188_s25] sm:$0xff] (!%p144_p3)  ;;  %v227_v1 = vld [vmem:[%s188_s25 + $0x8] sm:$0xff] (!%p144_p3) }
   0x9   : > { %226 = vst [vmem:[#allocation2] sm:$0xff] (!%p144_p3), %v225_v0  ;;  %228 = vst [vmem:[#allocation2 + $0x8] sm:$0xff] (!%p144_p3), %v227_v1 }
   0xe   : > { %s3571_s18 = smov (!%p167_p4, %s3071_s18), 1 }
   0xf   : > { %s3002_s26 = smul.u32 12, %s3571_s18 }
  0x11   : > { %s3148_s29 = scalar_lea.vmem %s3565_s5, %s3002_s26 }
  0x12   : > { %236 = vsyncadd [#allocation4], 256  ;;  %s238_s7 = scalar_lea.vmem %s3561_s1, %s2714_s22  ;;  %s3081_s8 = smov [#allocation4]  }
  0x13   : > { %s2518_s9 = scalar_lea.sflag %s3081_s8, 2  ;;  %v275_v2 = vld [vmem:[%s238_s7] sm:$0xff]  ;;  %v277_v3 = vld [vmem:[%s238_s7 + $0x8] sm:$0xff] }
  0x14   : > { %276 = vst [vmem:[#allocation3] sm:$0xff] %v275_v2  ;;  %278 = vst [vmem:[#allocation3 + $0x8] sm:$0xff] %v277_v3 }
  0x15   : > { %286 = vsyncadd %s2518_s9, 256 }
  0x16   : > { %3065 = dma.done.wait [#allocation4], 256 }
  0x17   : > { %3066 = vsyncadd [#allocation4], 4294967040 }
  0x18   : > { %3067 = dma.done.wait %s2518_s9, 256 }
  0x19   : > { %3068 = vsyncadd %s2518_s9, 4294967040  ;;  %v3082_v4 = vmov 0.0   ;;  %v3083_v5 = vmov 0   ;;  %vm3084_vm0 = vmmov 0   ;;  %v417_v6 = vld [vmem:[#allocation2 + $0x8] sm:$0xff]  ;;  %v416_v7 = vld [vmem:[#allocation2] sm:$0xff] }
  0x1a   : > { %2758 = vmatprep.subr.bf16.mxu1 %v3082_v4  ;;  %488 = vmatprep.mubr.bf16.mxu0 %v3083_v5  ;;  %v2625_v8 = vcombine.low %v417_v6, %v417_v6  ;;  %v3158_v9 = vcombine.low %v416_v7, %v416_v7  ;;  %s3085_s10 = smov 127   ;;  %v2626_v10 = vcombine.high %v417_v6, %v417_v6  ;;  %s3086_s11 = smov 126   ;;  %vm438_vm1 = vcmask 1039360   ;;  %v3051_v22 = vld [vmem:[#allocation2 + $0x8] ss:$0 sps:$4 sm:$0xff]  }
  0x1b   : > { %2760 = vmatprep.mubr.msk.bf16.mxu1 %vm3084_vm0, %v3082_v4  ;;  %3040 = vset.pattern.permute.xlu0 %v3083_v5  ;;  %v3163_v11 = vcombine.high %v416_v7, %v416_v7  ;;  %s3087_s12 = smov 110   ;;  %s3088_s13 = smov 109   ;;  %v1515_v12 = vld [vmem:[#allocation3] sm:$0xff]  ;;  %v1516_v15 = vld [vmem:[#allocation3 + $0x8] sm:$0xff]  ;;  %vm446_vm2 = vcmask 1043456   ;;  %vm442_vm3 = vcmask 64512  }
  0x1c   : > { %434 = vrot.lane.b32.xlu1 %v2625_v8, %s3085_s10  ;;  %430 = vrot.lane.b32.xlu0 %v3158_v9, %s3085_s10  ;;  %s3089_s14 = smov 108   ;;  %s3090_s15 = smov 92   ;;  %v3210_v13 = vcombine.low %v1515_v12, %v1515_v12  ;;  %v3212_v14 = vcombine.high %v1515_v12, %v1515_v12  ;;  %v3218_v16 = vcombine.low %v1516_v15, %v1516_v15  ;;  %v2622_v28 = vld [vmem:[%s3562_s2 + $0x4] sm:$0xf]  ;;  %v549_v29 = vsel %vm446_vm2, %v3158_v9, 0 }
  0x1d   : > { %s3091_s16 = smov 91   ;;  %s3092_s17 = smov 90   ;;  %v3220_v17 = vcombine.high %v1516_v15, %v1516_v15  ;;  %v555_v30 = vsel %vm446_vm2, %v3051_v22, 0  ;;  %vm648_vm4 = vcmask 1031168   ;;  %vm758_vm5 = vcmask 900096  }
  0x1e   : > { %v415_v40 = vld [vmem:[%s3562_s2] sm:$0xf]  ;;  %vm868_vm6 = vcmask 891904   ;;  %v2636_v51 = vld [vmem:[%s3562_s2 + $0x8] sm:$0xf]  ;;  %vm978_vm7 = vcmask 883712  }
  0x1f   : > { %v2640_v61 = vld [vmem:[%s3562_s2 + $0xc] sm:$0xf]  ;;  %vm1088_vm8 = vcmask 752640   ;;  %vm1198_vm9 = vcmask 744448   ;;  %vm1308_vm10 = vcmask 736256  }
  0x20   : > { %436 = vrot.lane.b32.xlu1 %v2626_v10, %s3085_s10  ;;  %432 = vrot.lane.b32.xlu0 %v3163_v11, %s3085_s10 }
  0x24   : > { %640 = vrot.lane.b32.xlu0 %v3158_v9, %s3086_s11  ;;  %642 = vrot.lane.b32.xlu1 %v3163_v11, %s3086_s11 }
  0x28   : > { %644 = vrot.lane.b32.xlu0 %v2625_v8, %s3086_s11  ;;  %646 = vrot.lane.b32.xlu1 %v2626_v10, %s3086_s11 }
  0x2c   : > { %750 = vrot.lane.b32.xlu0 %v3158_v9, %s3087_s12  ;;  %752 = vrot.lane.b32.xlu1 %v3163_v11, %s3087_s12 }
  0x30   : > { %754 = vrot.lane.b32.xlu0 %v2625_v8, %s3087_s12  ;;  %756 = vrot.lane.b32.xlu1 %v2626_v10, %s3087_s12 }
  0x34   : > { %860 = vrot.lane.b32.xlu0 %v3158_v9, %s3088_s13  ;;  %862 = vrot.lane.b32.xlu1 %v3163_v11, %s3088_s13 }
  0x38   : > { %864 = vrot.lane.b32.xlu0 %v2625_v8, %s3088_s13  ;;  %866 = vrot.lane.b32.xlu1 %v2626_v10, %s3088_s13 }
  0x3c   : > { %970 = vrot.lane.b32.xlu0 %v3158_v9, %s3089_s14  ;;  %972 = vrot.lane.b32.xlu1 %v3163_v11, %s3089_s14 }
  0x40   : > { %974 = vrot.lane.b32.xlu0 %v2625_v8, %s3089_s14  ;;  %976 = vrot.lane.b32.xlu1 %v2626_v10, %s3089_s14 }
  0x44   : > { %1080 = vrot.lane.b32.xlu0 %v3158_v9, %s3090_s15  ;;  %1082 = vrot.lane.b32.xlu1 %v3163_v11, %s3090_s15 }
  0x48   : > { %1084 = vrot.lane.b32.xlu0 %v2625_v8, %s3090_s15  ;;  %1086 = vrot.lane.b32.xlu1 %v2626_v10, %s3090_s15 }
  0x4c   : > { %1190 = vrot.lane.b32.xlu0 %v3158_v9, %s3091_s16  ;;  %1192 = vrot.lane.b32.xlu1 %v3163_v11, %s3091_s16 }
  0x50   : > { %1194 = vrot.lane.b32.xlu0 %v2625_v8, %s3091_s16  ;;  %1196 = vrot.lane.b32.xlu1 %v2626_v10, %s3091_s16 }
  0x54   : > { %1300 = vrot.lane.b32.xlu0 %v3158_v9, %s3092_s17  ;;  %1302 = vrot.lane.b32.xlu1 %v3163_v11, %s3092_s17  ;;  %v2644_v9 = vld [vmem:[%s3562_s2 + $0x10] sm:$0xf] }
  0x58   : > { %1304 = vrot.lane.b32.xlu0 %v2625_v8, %s3092_s17  ;;  %1306 = vrot.lane.b32.xlu1 %v2626_v10, %s3092_s17 }
  0x5c   : > { %1529 = vrot.lane.b32.xlu0 %v3210_v13, %s3085_s10  ;;  %1531 = vrot.lane.b32.xlu1 %v3212_v14, %s3085_s10 }
  0x60   : > { %1533 = vrot.lane.b32.xlu0 %v3218_v16, %s3085_s10  ;;  %1535 = vrot.lane.b32.xlu1 %v3220_v17, %s3085_s10 }
  0x64   : > { %1638 = vrot.lane.b32.xlu0 %v3210_v13, %s3086_s11  ;;  %1640 = vrot.lane.b32.xlu1 %v3212_v14, %s3086_s11 }
  0x68   : > { %1642 = vrot.lane.b32.xlu0 %v3218_v16, %s3086_s11  ;;  %1644 = vrot.lane.b32.xlu1 %v3220_v17, %s3086_s11 }
  0x6c   : > { %1747 = vrot.lane.b32.xlu0 %v3210_v13, %s3087_s12  ;;  %1749 = vrot.lane.b32.xlu1 %v3212_v14, %s3087_s12 }
  0x70   : > { %1751 = vrot.lane.b32.xlu0 %v3218_v16, %s3087_s12  ;;  %1753 = vrot.lane.b32.xlu1 %v3220_v17, %s3087_s12 }
  0x74   : > { %1856 = vrot.lane.b32.xlu0 %v3210_v13, %s3088_s13  ;;  %1858 = vrot.lane.b32.xlu1 %v3212_v14, %s3088_s13 }
  0x78   : > { %1860 = vrot.lane.b32.xlu0 %v3218_v16, %s3088_s13  ;;  %1862 = vrot.lane.b32.xlu1 %v3220_v17, %s3088_s13 }
  0x7c   : > { %1965 = vrot.lane.b32.xlu0 %v3210_v13, %s3089_s14  ;;  %1967 = vrot.lane.b32.xlu1 %v3212_v14, %s3089_s14 }
  0x80   : > { %1969 = vrot.lane.b32.xlu0 %v3218_v16, %s3089_s14  ;;  %1971 = vrot.lane.b32.xlu1 %v3220_v17, %s3089_s14 }
  0x84   : > { %2074 = vrot.lane.b32.xlu0 %v3210_v13, %s3090_s15  ;;  %2076 = vrot.lane.b32.xlu1 %v3212_v14, %s3090_s15 }
  0x88   : > { %2078 = vrot.lane.b32.xlu0 %v3218_v16, %s3090_s15  ;;  %2080 = vrot.lane.b32.xlu1 %v3220_v17, %s3090_s15 }
  0x8c   : > { %2183 = vrot.lane.b32.xlu0 %v3210_v13, %s3091_s16  ;;  %2185 = vrot.lane.b32.xlu1 %v3212_v14, %s3091_s16 }
  0x8e   : > { %v435_v18 = vpop.permute.xlu1 %434  ;;  %v431_v19 = vpop.permute.xlu0 %430 }
  0x90   : > { %2187 = vrot.lane.b32.xlu0 %v3218_v16, %s3091_s16  ;;  %2189 = vrot.lane.b32.xlu1 %v3220_v17, %s3091_s16 }
  0x92   : > { %v437_v20 = vpop.permute.xlu1 %436  ;;  %v433_v21 = vpop.permute.xlu0 %432 }
  0x93   : > { %v440_v23 = vsel %vm438_vm1, %v433_v21, %v435_v18  ;;  %v441_v24 = vsel %vm438_vm1, %v435_v18, %v437_v20  ;;  %v439_v25 = vsel %vm438_vm1, %v431_v19, %v433_v21  ;;  %v2648_v21 = vld [vmem:[%s3562_s2 + $0x14] sm:$0xf] }
  0x94   : > { %2627 = vmatprep.subr.msk.bf16.mxu0 %vm446_vm2, %v440_v23  ;;  %v454_v26 = vsel %vm446_vm2, %v441_v24, 0  ;;  %v448_v27 = vsel %vm446_vm2, %v439_v25, 0  ;;  %2292 = vrot.lane.b32.xlu0 %v3210_v13, %s3092_s17 }
  0x95   : > { %2759 = vmatpush3.bf16.msra.mxu1 %v454_v26  ;;  %457 = vmatpush1.bf16.msra.mxu0 %v448_v27 }
  0x96   : > { %2633 = vmatprep.subr.msk.bf16.mxu0 %vm446_vm2, %v3163_v11  ;;  %2764 = vmatprep.subr.bf16.mxu1 %v3082_v4  ;;  %v641_v31 = vpop.permute.xlu0 %640  ;;  %v643_v32 = vpop.permute.xlu1 %642 }
  0x97   : > { %2294 = vrot.lane.b32.xlu1 %v3212_v14, %s3092_s17  ;;  %v649_v37 = vsel %vm648_vm4, %v641_v31, %v643_v32  ;;  %v2652_v31 = vld [vmem:[%s3562_s2 + $0x18] sm:$0xf] }
  0x98   : > { %2761 = vmatmul.mubr.msk.bf16.vlgmr.msra.gmra.mrb[0].mxu1 %vm442_vm3, %v2622_v28  ;;  %2628 = vmatmul.mubr.msk.bf16.vlgmr.msra.gmra.mrb[0].mxu0 %vm442_vm3, %v2622_v28  ;;  %v656_v41 = vsel %vm446_vm2, %v649_v37, 0  ;;  %v3093_v37 = vmov 1  }
  0x99   : > { %558 = vmatpush1.bf16.msra.mxu0 %v549_v29  ;;  %2765 = vmatpush3.bf16.msra.mxu1 %v555_v30 }
  0x9a   : > { %v645_v33 = vpop.permute.xlu0 %644  ;;  %589 = vmatprep.mubr.bf16.mxu0 %v3083_v5  ;;  %2766 = vmatprep.mubr.msk.bf16.mxu1 %vm3084_vm0, %v3082_v4  ;;  %v647_v35 = vpop.permute.xlu1 %646 }
  0x9b   : > { %v650_v34 = vsel %vm648_vm4, %v643_v32, %v645_v33  ;;  %2770 = vmatprep.subr.bf16.mxu1 %v3082_v4  ;;  %2296 = vrot.lane.b32.xlu0 %v3218_v16, %s3092_s17  ;;  %v651_v38 = vsel %vm648_vm4, %v645_v33, %v647_v35 }
  0x9c   : > { %2637 = vmatprep.subr.msk.bf16.mxu0 %vm446_vm2, %v650_v34  ;;  %2298 = vrot.lane.b32.xlu1 %v3220_v17, %s3092_s17  ;;  %v662_v42 = vsel %vm446_vm2, %v651_v38, 0 }
  0x9d   : > { %3041 = vset.pattern.permute.xlu1 %v3093_v37 }
  0x9e   : > { %v751_v36 = vpop.permute.xlu0 %750  ;;  %v753_v39 = vpop.permute.xlu1 %752 }
  0x9f   : > { %v759_v47 = vsel %vm758_vm5, %v751_v36, %v753_v39  ;;  %v2399_v36 = vld [vmem:[%s3564_s4] sm:$0xff] }
  0xa0   : > { %v766_v52 = vsel %vm446_vm2, %v759_v47, 0  ;;  %2402 = vperm.xlu0 %3040, %v2399_v36   ;;  %2409 = vperm.xlu1 %3041, %v2399_v36   ;;  %v2660_v47 = vld [vmem:[%s3562_s2 + $0x20] sm:$0xf] }
  0xa2   : > { %v755_v43 = vpop.permute.xlu0 %754  ;;  %v757_v46 = vpop.permute.xlu1 %756 }
  0xa3   : > { %v760_v44 = vsel %vm758_vm5, %v753_v39, %v755_v43  ;;  %v761_v48 = vsel %vm758_vm5, %v755_v43, %v757_v46 }
  0xa4   : > { %2634 = vmatmul.mubr.msk.bf16.vlgmr.msra.gmra.mrb[0].mxu0 %vm442_vm3, %v415_v40  ;;  %2767 = vmatmul.mubr.msk.bf16.vlgmr.msra.gmra.mrb[0].mxu1 %vm442_vm3, %v415_v40  ;;  %v772_v53 = vsel %vm446_vm2, %v761_v48, 0  ;;  %v2656_v40 = vld [vmem:[%s3562_s2 + $0x1c] sm:$0xf]  ;;  %v1423_v48 = vsel %vm446_vm2, %v3210_v13, 0 }
  0xa5   : > { %665 = vmatpush1.bf16.msra.mxu0 %v656_v41  ;;  %2771 = vmatpush3.bf16.msra.mxu1 %v662_v42 }
  0xa6   : > { %2641 = vmatprep.subr.msk.bf16.mxu0 %vm446_vm2, %v760_v44  ;;  %696 = vmatprep.mubr.bf16.mxu0 %v3083_v5  ;;  %v861_v45 = vpop.permute.xlu0 %860  ;;  %v863_v49 = vpop.permute.xlu1 %862  ;;  %v3052_v44 = vld [vmem:[#allocation3 + $0x8] ss:$0 sps:$4 sm:$0xff]  }
  0xa7   : > { %2772 = vmatprep.mubr.msk.bf16.mxu1 %vm3084_vm0, %v3082_v4  ;;  %2776 = vmatprep.subr.bf16.mxu1 %v3082_v4  ;;  %v869_v57 = vsel %vm868_vm6, %v861_v45, %v863_v49 }
  0xa8   : > { %v876_v62 = vsel %vm446_vm2, %v869_v57, 0  ;;  %3042 = vset.pattern.permute.xlu0 %v3093_v37 }
  0xaa   : > { %v865_v50 = vpop.permute.xlu0 %864  ;;  %v867_v56 = vpop.permute.xlu1 %866 }
  0xab   : > { %v870_v54 = vsel %vm868_vm6, %v863_v49, %v865_v50  ;;  %v871_v58 = vsel %vm868_vm6, %v865_v50, %v867_v56  ;;  %v1429_v49 = vsel %vm446_vm2, %v3052_v44, 0 }
  0xac   : > { %v882_v63 = vsel %vm446_vm2, %v871_v58, 0 }
  0xae   : > { %v971_v55 = vpop.permute.xlu0 %970  ;;  %v973_v59 = vpop.permute.xlu1 %972 }
  0xaf   : > { %v979_v3 = vsel %vm978_vm7, %v971_v55, %v973_v59  ;;  %v1410_v55 = vld [vmem:[%s3563_s3] sm:$0xf] }
  0xb0   : > { %2638 = vmatmul.mubr.msk.bf16.vlgmr.msra.gmra.mrb[0].mxu0 %vm442_vm3, %v2636_v51  ;;  %2773 = vmatmul.mubr.msk.bf16.vlgmr.msra.gmra.mrb[0].mxu1 %vm442_vm3, %v2636_v51  ;;  %v986_v10 = vsel %vm446_vm2, %v979_v3, 0 }
  0xb1   : > { %775 = vmatpush1.bf16.msra.mxu0 %v766_v52  ;;  %2777 = vmatpush3.bf16.msra.mxu1 %v772_v53 }
  0xb2   : > { %2645 = vmatprep.subr.msk.bf16.mxu0 %vm446_vm2, %v870_v54  ;;  %806 = vmatprep.mubr.bf16.mxu0 %v3083_v5  ;;  %v975_v60 = vpop.permute.xlu0 %974  ;;  %v977_v2 = vpop.permute.xlu1 %976 }
  0xb3   : > { %2778 = vmatprep.mubr.msk.bf16.mxu1 %vm3084_vm0, %v3082_v4  ;;  %2782 = vmatprep.subr.bf16.mxu1 %v3082_v4  ;;  %v980_v0 = vsel %vm978_vm7, %v973_v59, %v975_v60  ;;  %v981_v6 = vsel %vm978_vm7, %v975_v60, %v977_v2 }
  0xb4   : > { %v992_v11 = vsel %vm446_vm2, %v981_v6, 0 }
  0xb6   : > { %v1081_v1 = vpop.permute.xlu0 %1080  ;;  %v1083_v7 = vpop.permute.xlu1 %1082 }
  0xb7   : > { %v1089_v17 = vsel %vm1088_vm8, %v1081_v1, %v1083_v7  ;;  %v2670_v1 = vld [vmem:[%s3563_s3 + $0x4] sm:$0xf] }
  0xb8   : > { %v1096_v22 = vsel %vm446_vm2, %v1089_v17, 0 }
  0xba   : > { %v1085_v8 = vpop.permute.xlu0 %1084  ;;  %v1087_v16 = vpop.permute.xlu1 %1086 }
  0xbb   : > { %v1090_v12 = vsel %vm1088_vm8, %v1083_v7, %v1085_v8  ;;  %v1091_v18 = vsel %vm1088_vm8, %v1085_v8, %v1087_v16 }
  0xbc   : > { %2642 = vmatmul.mubr.msk.bf16.vlgmr.msra.gmra.mrb[0].mxu0 %vm442_vm3, %v2640_v61  ;;  %2779 = vmatmul.mubr.msk.bf16.vlgmr.msra.gmra.mrb[0].mxu1 %vm442_vm3, %v2640_v61  ;;  %v1102_v23 = vsel %vm446_vm2, %v1091_v18, 0 }
  0xbd   : > { %885 = vmatpush1.bf16.msra.mxu0 %v876_v62  ;;  %2783 = vmatpush3.bf16.msra.mxu1 %v882_v63 }
  0xbe   : > { %2649 = vmatprep.subr.msk.bf16.mxu0 %vm446_vm2, %v980_v0  ;;  %916 = vmatprep.mubr.bf16.mxu0 %v3083_v5  ;;  %v1191_v15 = vpop.permute.xlu0 %1190  ;;  %v1193_v19 = vpop.permute.xlu1 %1192 }
  0xbf   : > { %2784 = vmatprep.mubr.msk.bf16.mxu1 %vm3084_vm0, %v3082_v4  ;;  %2788 = vmatprep.subr.bf16.mxu1 %v3082_v4  ;;  %v1199_v27 = vsel %vm1198_vm9, %v1191_v15, %v1193_v19  ;;  %v2678_v15 = vld [vmem:[%s3563_s3 + $0x8] sm:$0xf] }
  0xc0   : > { %v1206_v32 = vsel %vm446_vm2, %v1199_v27, 0 }
  0xc2   : > { %v1195_v20 = vpop.permute.xlu0 %1194  ;;  %v1197_v26 = vpop.permute.xlu1 %1196 }
  0xc3   : > { %v1200_v24 = vsel %vm1198_vm9, %v1193_v19, %v1195_v20  ;;  %v1201_v28 = vsel %vm1198_vm9, %v1195_v20, %v1197_v26 }
  0xc4   : > { %v1212_v33 = vsel %vm446_vm2, %v1201_v28, 0 }
  0xc6   : > { %v1301_v25 = vpop.permute.xlu0 %1300  ;;  %v1303_v29 = vpop.permute.xlu1 %1302 }
  0xc7   : > { %v1309_v38 = vsel %vm1308_vm10, %v1301_v25, %v1303_v29  ;;  %v2682_v25 = vld [vmem:[%s3563_s3 + $0xc] sm:$0xf] }
  0xc8   : > { %2646 = vmatmul.mubr.msk.bf16.vlgmr.msra.gmra.mrb[0].mxu0 %vm442_vm3, %v2644_v9  ;;  %2785 = vmatmul.mubr.msk.bf16.vlgmr.msra.gmra.mrb[0].mxu1 %vm442_vm3, %v2644_v9  ;;  %v1316_v41 = vsel %vm446_vm2, %v1309_v38, 0 }
  0xc9   : > { %995 = vmatpush1.bf16.msra.mxu0 %v986_v10  ;;  %2789 = vmatpush3.bf16.msra.mxu1 %v992_v11 }
  0xca   : > { %2653 = vmatprep.subr.msk.bf16.mxu0 %vm446_vm2, %v1090_v12  ;;  %1026 = vmatprep.mubr.bf16.mxu0 %v3083_v5  ;;  %v1305_v30 = vpop.permute.xlu0 %1304  ;;  %v1307_v35 = vpop.permute.xlu1 %1306 }
  0xcb   : > { %2790 = vmatprep.mubr.msk.bf16.mxu1 %vm3084_vm0, %v3082_v4  ;;  %2794 = vmatprep.subr.bf16.mxu1 %v3082_v4  ;;  %v1310_v34 = vsel %vm1308_vm10, %v1303_v29, %v1305_v30  ;;  %v1311_v39 = vsel %vm1308_vm10, %v1305_v30, %v1307_v35  ;;  %v2686_v35 = vld [vmem:[%s3563_s3 + $0x10] sm:$0xf] }
  0xcc   : > { %v1322_v42 = vsel %vm446_vm2, %v1311_v39, 0 }
  0xce   : > { %v1530_v43 = vpop.permute.xlu0 %1529  ;;  %v1532_v45 = vpop.permute.xlu1 %1531 }
  0xcf   : > { %v1537_v51 = vsel %vm438_vm1, %v1530_v43, %v1532_v45 }
  0xd0   : > { %v1544_v56 = vsel %vm446_vm2, %v1537_v51, 0 }
  0xd2   : > { %v1534_v46 = vpop.permute.xlu0 %1533  ;;  %v1536_v13 = vpop.permute.xlu1 %1535 }
  0xd3   : > { %v1538_v50 = vsel %vm438_vm1, %v1532_v45, %v1534_v46  ;;  %v1539_v52 = vsel %vm438_vm1, %v1534_v46, %v1536_v13  ;;  %v2690_v45 = vld [vmem:[%s3563_s3 + $0x14] sm:$0xf] }
  0xd4   : > { %2650 = vmatmul.mubr.msk.bf16.vlgmr.msra.gmra.mrb[0].mxu0 %vm442_vm3, %v2648_v21  ;;  %2791 = vmatmul.mubr.msk.bf16.vlgmr.msra.gmra.mrb[0].mxu1 %vm442_vm3, %v2648_v21  ;;  %v1550_v57 = vsel %vm446_vm2, %v1539_v52, 0 }
  0xd5   : > { %1105 = vmatpush1.bf16.msra.mxu0 %v1096_v22  ;;  %2795 = vmatpush3.bf16.msra.mxu1 %v1102_v23 }
  0xd6   : > { %2657 = vmatprep.subr.msk.bf16.mxu0 %vm446_vm2, %v1200_v24  ;;  %1136 = vmatprep.mubr.bf16.mxu0 %v3083_v5  ;;  %v1641_v53 = vpop.permute.xlu1 %1640 }
  0xd7   : > { %2796 = vmatprep.mubr.msk.bf16.mxu1 %vm3084_vm0, %v3082_v4  ;;  %2800 = vmatprep.subr.bf16.mxu1 %v3082_v4 }
  0xda   : > { %v1645_v60 = vpop.permute.xlu1 %1644 }
  0xde   : > { %v1750_v63 = vpop.permute.xlu1 %1749 }
  0xe0   : > { %2654 = vmatmul.mubr.msk.bf16.vlgmr.msra.gmra.mrb[0].mxu0 %vm442_vm3, %v2652_v31  ;;  %2797 = vmatmul.mubr.msk.bf16.vlgmr.msra.gmra.mrb[0].mxu1 %vm442_vm3, %v2652_v31 }
  0xe1   : > { %1215 = vmatpush1.bf16.msra.mxu0 %v1206_v32  ;;  %2801 = vmatpush3.bf16.msra.mxu1 %v1212_v33 }
  0xe2   : > { %2661 = vmatprep.subr.msk.bf16.mxu0 %vm446_vm2, %v1310_v34  ;;  %1246 = vmatprep.mubr.bf16.mxu0 %v3083_v5  ;;  %v1754_v8 = vpop.permute.xlu1 %1753 }
  0xe3   : > { %2802 = vmatprep.mubr.msk.bf16.mxu1 %vm3084_vm0, %v3082_v4  ;;  %2806 = vmatprep.subr.bf16.mxu1 %v3082_v4 }
  0xe6   : > { %v1859_v11 = vpop.permute.xlu1 %1858 }
  0xea   : > { %v1863_v20 = vpop.permute.xlu1 %1862 }
  0xec   : > { %2658 = vmatmul.mubr.msk.bf16.vlgmr.msra.gmra.mrb[0].mxu0 %vm442_vm3, %v2656_v40  ;;  %2803 = vmatmul.mubr.msk.bf16.vlgmr.msra.gmra.mrb[0].mxu1 %vm442_vm3, %v2656_v40 }
  0xed   : > { %1325 = vmatpush1.bf16.msra.mxu0 %v1316_v41  ;;  %2807 = vmatpush3.bf16.msra.mxu1 %v1322_v42 }
  0xee   : > { %1356 = vmatprep.mubr.bf16.mxu0 %v3083_v5  ;;  %2808 = vmatprep.mubr.msk.bf16.mxu1 %vm3084_vm0, %v3082_v4  ;;  %v1968_v23 = vpop.permute.xlu1 %1967 }
  0xef   : > { %2667 = vmatprep.subr.msk.bf16.mxu0 %vm446_vm2, %v3212_v14  ;;  %2812 = vmatprep.subr.bf16.mxu1 %v3082_v4  ;;  %v1639_v14 = vpop.permute.xlu0 %1638 }
  0xf0   : > { %v1646_v61 = vsel %vm648_vm4, %v1639_v14, %v1641_v53 }
  0xf1   : > { %v1653_v2 = vsel %vm446_vm2, %v1646_v61, 0 }
  0xf2   : > { %v1972_v30 = vpop.permute.xlu1 %1971 }
  0xf3   : > { %v1643_v54 = vpop.permute.xlu0 %1642 }
  0xf4   : > { %v1647_v58 = vsel %vm648_vm4, %v1641_v53, %v1643_v54  ;;  %v1648_v62 = vsel %vm648_vm4, %v1643_v54, %v1645_v60  ;;  %v2694_v53 = vld [vmem:[%s3563_s3 + $0x18] sm:$0xf]  ;;  %v2698_v60 = vld [vmem:[%s3563_s3 + $0x1c] sm:$0xf] }
  0xf5   : > { %v1659_v3 = vsel %vm446_vm2, %v1648_v62, 0 }
  0xf6   : > { %v2077_v33 = vpop.permute.xlu1 %2076 }
  0xf7   : > { %v1748_v59 = vpop.permute.xlu0 %1747 }
  0xf8   : > { %2662 = vmatmul.mubr.msk.bf16.vlgmr.msra.gmra.mrb[0].mxu0 %vm442_vm3, %v2660_v47  ;;  %2809 = vmatmul.mubr.msk.bf16.vlgmr.msra.gmra.mrb[0].mxu1 %vm442_vm3, %v2660_v47  ;;  %v1755_v9 = vsel %vm758_vm5, %v1748_v59, %v1750_v63 }
  0xf9   : > { %1432 = vmatpush1.bf16.msra.mxu0 %v1423_v48  ;;  %2813 = vmatpush3.bf16.msra.mxu1 %v1429_v49  ;;  %v1762_v16 = vsel %vm446_vm2, %v1755_v9, 0 }
  0xfa   : > { %2675 = vmatprep.subr.msk.bf16.mxu0 %vm446_vm2, %v1538_v50  ;;  %1463 = vmatprep.mubr.bf16.mxu0 %v3083_v5  ;;  %v2081_v40 = vpop.permute.xlu1 %2080 }
  0xfb   : > { %2814 = vmatprep.mubr.msk.bf16.mxu1 %vm3084_vm0, %v3082_v4  ;;  %2818 = vmatprep.subr.bf16.mxu1 %v3082_v4  ;;  %v1752_v0 = vpop.permute.xlu0 %1751 }
  0xfc   : > { %v1756_v6 = vsel %vm758_vm5, %v1750_v63, %v1752_v0  ;;  %v1757_v10 = vsel %vm758_vm5, %v1752_v0, %v1754_v8  ;;  %v2702_v63 = vld [vmem:[%s3563_s3 + $0x20] sm:$0xf] }
  0xfd   : > { %v1768_v17 = vsel %vm446_vm2, %v1757_v10, 0 }
  0xfe   : > { %v2186_v43 = vpop.permute.xlu1 %2185 }
  0xff   : > { %v1857_v7 = vpop.permute.xlu0 %1856 }
 0x100   : > { %v1864_v21 = vsel %vm868_vm6, %v1857_v7, %v1859_v11 }
 0x101   : > { %v1871_v26 = vsel %vm446_vm2, %v1864_v21, 0 }
 0x102   : > { %v2190_v50 = vpop.permute.xlu1 %2189 }
 0x103   : > { %v1861_v12 = vpop.permute.xlu0 %1860 }
 0x104   : > { %2668 = vmatmul.mubr.msk.bf16.vlgmr.msra.gmra.mrb[0].mxu0 %vm442_vm3, %v1410_v55  ;;  %2815 = vmatmul.mubr.msk.bf16.vlgmr.msra.gmra.mrb[0].mxu1 %vm442_vm3, %v1410_v55  ;;  %v1865_v18 = vsel %vm868_vm6, %v1859_v11, %v1861_v12  ;;  %v1866_v22 = vsel %vm868_vm6, %v1861_v12, %v1863_v20 }
 0x105   : > { %1553 = vmatpush1.bf16.msra.mxu0 %v1544_v56  ;;  %2819 = vmatpush3.bf16.msra.mxu1 %v1550_v57  ;;  %v1877_v27 = vsel %vm446_vm2, %v1866_v22, 0 }
 0x106   : > { %2679 = vmatprep.subr.msk.bf16.mxu0 %vm446_vm2, %v1647_v58  ;;  %1584 = vmatprep.mubr.bf16.mxu0 %v3083_v5 }
 0x107   : > { %2820 = vmatprep.mubr.msk.bf16.mxu1 %vm3084_vm0, %v3082_v4  ;;  %2824 = vmatprep.subr.bf16.mxu1 %v3082_v4  ;;  %v1966_v19 = vpop.permute.xlu0 %1965 }
 0x108   : > { %v1973_v31 = vsel %vm978_vm7, %v1966_v19, %v1968_v23 }
 0x109   : > { %v1980_v36 = vsel %vm446_vm2, %v1973_v31, 0  ;;  %v2295_v51 = vpop.permute.xlu1 %2294 }
 0x10b   : > { %v1970_v24 = vpop.permute.xlu0 %1969 }
 0x10c   : > { %v1974_v28 = vsel %vm978_vm7, %v1968_v23, %v1970_v24  ;;  %v1975_v32 = vsel %vm978_vm7, %v1970_v24, %v1972_v30 }
 0x10d   : > { %v1986_v37 = vsel %vm446_vm2, %v1975_v32, 0 }
 0x10e   : > { %v2299_v57 = vpop.permute.xlu1 %2298 }
 0x10f   : > { %v2075_v29 = vpop.permute.xlu0 %2074 }
 0x110   : > { %2676 = vmatmul.mubr.msk.bf16.vlgmr.msra.gmra.mrb[0].mxu0 %vm442_vm3, %v2670_v1  ;;  %2821 = vmatmul.mubr.msk.bf16.vlgmr.msra.gmra.mrb[0].mxu1 %vm442_vm3, %v2670_v1  ;;  %v2082_v41 = vsel %vm1088_vm8, %v2075_v29, %v2077_v33 }
 0x111   : > { %1662 = vmatpush1.bf16.msra.mxu0 %v1653_v2  ;;  %2825 = vmatpush3.bf16.msra.mxu1 %v1659_v3  ;;  %v2089_v46 = vsel %vm446_vm2, %v2082_v41, 0 }
 0x112   : > { %2683 = vmatprep.subr.msk.bf16.mxu0 %vm446_vm2, %v1756_v6  ;;  %1693 = vmatprep.mubr.bf16.mxu0 %v3083_v5 }
 0x113   : > { %2826 = vmatprep.mubr.msk.bf16.mxu1 %vm3084_vm0, %v3082_v4  ;;  %2830 = vmatprep.subr.bf16.mxu1 %v3082_v4  ;;  %v2079_v34 = vpop.permute.xlu0 %2078 }
 0x114   : > { %v2083_v38 = vsel %vm1088_vm8, %v2077_v33, %v2079_v34  ;;  %v2084_v42 = vsel %vm1088_vm8, %v2079_v34, %v2081_v40 }
 0x115   : > { %v2095_v47 = vsel %vm446_vm2, %v2084_v42, 0 }
 0x117   : > { %v2184_v39 = vpop.permute.xlu0 %2183 }
 0x118   : > { %v2191_v14 = vsel %vm1198_vm9, %v2184_v39, %v2186_v43 }
 0x119   : > { %v2198_v54 = vsel %vm446_vm2, %v2191_v14, 0 }
 0x11b   : > { %v2188_v44 = vpop.permute.xlu0 %2187 }
 0x11c   : > { %2680 = vmatmul.mubr.msk.bf16.vlgmr.msra.gmra.mrb[0].mxu0 %vm442_vm3, %v2678_v15  ;;  %2827 = vmatmul.mubr.msk.bf16.vlgmr.msra.gmra.mrb[0].mxu1 %vm442_vm3, %v2678_v15  ;;  %v2192_v48 = vsel %vm1198_vm9, %v2186_v43, %v2188_v44  ;;  %v2193_v13 = vsel %vm1198_vm9, %v2188_v44, %v2190_v50 }
 0x11d   : > { %1771 = vmatpush1.bf16.msra.mxu0 %v1762_v16  ;;  %2831 = vmatpush3.bf16.msra.mxu1 %v1768_v17  ;;  %v2204_v55 = vsel %vm446_vm2, %v2193_v13, 0 }
 0x11e   : > { %2687 = vmatprep.subr.msk.bf16.mxu0 %vm446_vm2, %v1865_v18  ;;  %1802 = vmatprep.mubr.bf16.mxu0 %v3083_v5 }
 0x11f   : > { %2832 = vmatprep.mubr.msk.bf16.mxu1 %vm3084_vm0, %v3082_v4  ;;  %2836 = vmatprep.subr.bf16.mxu1 %v3082_v4  ;;  %v2293_v49 = vpop.permute.xlu0 %2292  ;;  %v2410_v1 = vpop.permute.xlu1 %2409 }
 0x120   : > { %v2300_v58 = vsel %vm1308_vm10, %v2293_v49, %v2295_v51 }
 0x121   : > { %v2307_v61 = vsel %vm446_vm2, %v2300_v58, 0 }
 0x123   : > { %v2297_v52 = vpop.permute.xlu0 %2296 }
 0x124   : > { %v2301_v56 = vsel %vm1308_vm10, %v2295_v51, %v2297_v52  ;;  %v2302_v59 = vsel %vm1308_vm10, %v2297_v52, %v2299_v57 }
 0x125   : > { %v2313_v62 = vsel %vm446_vm2, %v2302_v59, 0 }
 0x127   : > { %v2403_v0 = vpop.permute.xlu0 %2402 }
 0x128   : > { %2684 = vmatmul.mubr.msk.bf16.vlgmr.msra.gmra.mrb[0].mxu0 %vm442_vm3, %v2682_v25  ;;  %2833 = vmatmul.mubr.msk.bf16.vlgmr.msra.gmra.mrb[0].mxu1 %vm442_vm3, %v2682_v25 }
 0x129   : > { %1880 = vmatpush1.bf16.msra.mxu0 %v1871_v26  ;;  %2837 = vmatpush3.bf16.msra.mxu1 %v1877_v27 }
 0x12a   : > { %2691 = vmatprep.subr.msk.bf16.mxu0 %vm446_vm2, %v1974_v28  ;;  %1911 = vmatprep.mubr.bf16.mxu0 %v3083_v5 }
 0x12b   : > { %2838 = vmatprep.mubr.msk.bf16.mxu1 %vm3084_vm0, %v3082_v4  ;;  %2842 = vmatprep.subr.bf16.mxu1 %v3082_v4 }
 0x134   : > { %2688 = vmatmul.mubr.msk.bf16.vlgmr.msra.gmra.mrb[0].mxu0 %vm442_vm3, %v2686_v35  ;;  %2839 = vmatmul.mubr.msk.bf16.vlgmr.msra.gmra.mrb[0].mxu1 %vm442_vm3, %v2686_v35 }
 0x135   : > { %1989 = vmatpush1.bf16.msra.mxu0 %v1980_v36  ;;  %2843 = vmatpush3.bf16.msra.mxu1 %v1986_v37 }
 0x136   : > { %2695 = vmatprep.subr.msk.bf16.mxu0 %vm446_vm2, %v2083_v38  ;;  %2020 = vmatprep.mubr.bf16.mxu0 %v3083_v5 }
 0x137   : > { %2844 = vmatprep.mubr.msk.bf16.mxu1 %vm3084_vm0, %v3082_v4  ;;  %2848 = vmatprep.subr.bf16.mxu1 %v3082_v4 }
 0x140   : > { %2692 = vmatmul.mubr.msk.bf16.vlgmr.msra.gmra.mrb[0].mxu0 %vm442_vm3, %v2690_v45  ;;  %2845 = vmatmul.mubr.msk.bf16.vlgmr.msra.gmra.mrb[0].mxu1 %vm442_vm3, %v2690_v45 }
 0x141   : > { %2098 = vmatpush1.bf16.msra.mxu0 %v2089_v46  ;;  %2849 = vmatpush3.bf16.msra.mxu1 %v2095_v47 }
 0x142   : > { %2699 = vmatprep.subr.msk.bf16.mxu0 %vm446_vm2, %v2192_v48  ;;  %2129 = vmatprep.mubr.bf16.mxu0 %v3083_v5 }
 0x143   : > { %2850 = vmatprep.mubr.msk.bf16.mxu1 %vm3084_vm0, %v3082_v4  ;;  %2854 = vmatprep.subr.bf16.mxu1 %v3082_v4 }
 0x14c   : > { %2696 = vmatmul.mubr.msk.bf16.vlgmr.msra.gmra.mrb[0].mxu0 %vm442_vm3, %v2694_v53  ;;  %2851 = vmatmul.mubr.msk.bf16.vlgmr.msra.gmra.mrb[0].mxu1 %vm442_vm3, %v2694_v53 }
 0x14d   : > { %2207 = vmatpush1.bf16.msra.mxu0 %v2198_v54  ;;  %2855 = vmatpush3.bf16.msra.mxu1 %v2204_v55 }
 0x14e   : > { %2703 = vmatprep.subr.msk.bf16.mxu0 %vm446_vm2, %v2301_v56  ;;  %2238 = vmatprep.mubr.bf16.mxu0 %v3083_v5 }
 0x14f   : > { %2856 = vmatprep.mubr.msk.bf16.mxu1 %vm3084_vm0, %v3082_v4  ;;  %2860 = vmatprep.subr.bf16.mxu1 %v3082_v4 }
 0x158   : > { %2700 = vmatmul.mubr.msk.bf16.vlgmr.msra.gmra.mrb[0].mxu0 %vm442_vm3, %v2698_v60  ;;  %2857 = vmatmul.mubr.msk.bf16.vlgmr.msra.gmra.mrb[0].mxu1 %vm442_vm3, %v2698_v60 }
 0x159   : > { %2316 = vmatpush1.bf16.msra.mxu0 %v2307_v61  ;;  %2861 = vmatpush3.bf16.msra.mxu1 %v2313_v62 }
 0x15a   : > { %2347 = vmatprep.mubr.bf16.mxu0 %v3083_v5  ;;  %2862 = vmatprep.mubr.msk.bf16.mxu1 %vm3084_vm0, %v3082_v4 }
 0x164   : > { %2704 = vmatmul.mubr.msk.bf16.vlgmr.msra.gmra.mrb[0].mxu0 %vm442_vm3, %v2702_v63  ;;  %2863 = vmatmul.mubr.msk.bf16.vlgmr.msra.gmra.mrb[0].mxu1 %vm442_vm3, %v2702_v63 }
 0x237   : > { %v2349_v2 = vpop.f32.mrb[0].mxu0  ;;  %v2390_v3 = vpop.f32.mrb[0].mxu1 }
 0x238   : > { %v2405_v6 = vmul.f32 %v2403_v0, %v2349_v2  ;;  %v2407_v7 = vmul.f32 %v2403_v0, %v2390_v3  ;;  %v2351_v8 = vpop.f32.mrb[1].mxu0  ;;  %v2864_v9 = vpop.f32.mrb[1].mxu1 }
 0x239   : > { %v2406_v5 = vmul.f32 %v2403_v0, %v2351_v8  ;;  %v2353_v10 = vpop.f32.mrb[2].mxu0  ;;  %v2393_v11 = vpop.f32.mrb[2].mxu1 }
 0x23a   : > { %v2412_v4 = vadd.f32 %v2410_v1, %v2405_v6  ;;  %v2414_v12 = vadd.f32 %v2410_v1, %v2407_v7  ;;  %v2354_v15 = vpop.f32.mrb[3].mxu0  ;;  %v2865_v16 = vpop.f32.mrb[3].mxu1 }
 0x23b   : > { %v2413_v17 = vadd.f32 %v2410_v1, %v2406_v5 }
 0x23c   : > { %vm2415_vm11 = vcmp.gt.f32.partialorder %v2412_v4, 0.0  ;;  %vm2417_vm12 = vcmp.gt.f32.partialorder %v2414_v12, 0.0  ;;  %v2418_v18 = vmul.f32 0.01, %v2412_v4  ;;  %v2420_v19 = vmul.f32 0.01, %v2414_v12 }
 0x23d   : > { %vm2416_vm13 = vcmp.gt.f32.partialorder %v2413_v17, 0.0  ;;  %v2419_v20 = vmul.f32 0.01, %v2413_v17 }
 0x23e   : > { %v2421_v21 = vsel %vm2415_vm11, %v2412_v4, %v2418_v18  ;;  %v2423_v22 = vsel %vm2417_vm12, %v2414_v12, %v2420_v19 }
 0x23f   : > { %v2422_v23 = vsel %vm2416_vm13, %v2413_v17, %v2419_v20  ;;  %v2721_v24 = vpack.c.bf16 %v2423_v22, %v2423_v22 }
 0x240   : > { %v2720_v25 = vpack.c.bf16 %v2422_v23, %v2421_v21 }
 0x241   : > { %2438 = vst [vmem:[%s3148_s29 + $0x8] sm:$0xf] %v2721_v24 }
 0x242   : > { %2437 = vst [vmem:[%s3148_s29] sm:$0xff] %v2720_v25 }
 0x243 PF: > { %s15_s20 = sadd.s32 1, %s3079_s20   ;;  %s3566_s18 = smov %s3075_s19 }
 0x244   : > { %p12_p5 = scmp.ge.s32.totalorder %s15_s20, 4   ;;  %s3567_s19 = smov %s3569_s21 }
 0x246   :  { %14 = sbr.rel (!%p12_p5) target bundleno = 2 (0x2), region = 270 }
 0x24d   :  { %2469 = vsyncmov [#allocation4] }
 0x250   :  { %s2470_s14 = vpop.sfrf %2469 }
 0x251   :  { %p2710_p6 = scmp.ne.s32.totalorder %s2470_s14, 0 }
 0x253   :  { %2474 = shalt.err (%p2710_p6)  }
 0x254   :  { %2476 = vsyncmov [#allocation4 + $0x1] }
 0x257   :  { %s2477_s15 = vpop.sfrf %2476 }
 0x258   :  { %p2711_p7 = scmp.ne.s32.totalorder %s2477_s15, 0 }
 0x25a   :  { %2481 = shalt.err (%p2711_p7)  }
 0x25b   :  { %2483 = vsyncmov [#allocation4 + $0x2] }
 0x25e   :  { %s2484_s29 = vpop.sfrf %2483 }
 0x25f   :  { %p2712_p8 = scmp.ne.s32.totalorder %s2484_s29, 0 }
 0x261   :  { %2488 = shalt.err (%p2712_p8)  }
 0x262   :  { %2490 = vsyncmov [#allocation4 + $0x3] }
 0x265   :  { %s2491_s16 = vpop.sfrf %2490 }
 0x266   :  { %p2713_p9 = scmp.ne.s32.totalorder %s2491_s16, 0 }
 0x268   :  { %2495 = shalt.err (%p2713_p9)  }

</bundles_post_ra>
